<compile_context>
chip_gen: v7x
topology: tpu7x:2x2x1
jax: 0.10.0
libtpu: 0.0.40
codegen_flags: <defaults>
</compile_context>

<pallas_src>
import jax
import jax.numpy as jnp
from jax import lax
from jax.experimental import pallas as pl
from jax.experimental.pallas import tpu as pltpu


# ------------------------------ kernel helpers ------------------------------ #

def _make_selb(batch, wo, wp, win):
    """(batch, wp, win) 0/1 matrix; row y picks column 2*y (floor-mode column
    pooling).  Rows y >= wo are all zero (used to pad the pooled width)."""
    r = lax.broadcasted_iota(jnp.int32, (wp, win), 0)
    k = lax.broadcasted_iota(jnp.int32, (wp, win), 1)
    sel = ((k == 2 * r) & (r < wo)).astype(jnp.float32)
    return jnp.broadcast_to(sel[None], (batch, wp, win))


def _pool2x2(a, selb):
    """2x2 / stride-2 max pool (floor mode) of (H, W, BT) -> (H//2, WP, BT).

    Rows: leading-dim reshape + max (free).  Columns: pairwise max of adjacent
    columns, then pick even columns with a constant selection matmul whose N
    dimension is the lane-resident batch.  Output columns >= W//2 are zero.
    """
    h, w, bt = a.shape
    ho = h // 2
    a = jnp.max(a[:2 * ho].reshape(ho, 2, w, bt), axis=1)          # (ho, w, bt)
    pair = jnp.maximum(a[:, :w - 1, :], a[:, 1:, :])               # (ho, w-1, bt)
    return jnp.einsum("byw,bwn->byn", selb, pair,
                      preferred_element_type=jnp.float32)          # (ho, wp, bt)


# ------------------------------- Pallas kernel ------------------------------ #

def _net_kernel(x_ref, w1_ref, b1_ref, w2_ref, b2_ref,
                wf1_ref, bf1_ref, wf2_ref, bf2_ref, o_ref,
                pat1_ref, p1s_ref, p2_ref):
    """Whole forward pass for one batch tile of BT images (batch on lanes)."""
    f32 = jnp.float32
    bt = x_ref.shape[-1]

    selb1 = _make_selb(13, 13, 13, 25)      # pool1: 26 cols -> 13
    selb2 = _make_selb(5, 5, 8, 10)         # pool2: 11 cols -> 5 (padded to 8)

    # Column-shifted views of the input block, built once and reused by all
    # 8 conv1 output channels (sublane shifts happen here only).
    x = x_ref[...]                                            # (28, 28, bt)
    for kw in range(3):
        pat1_ref[kw, :, :, :] = x[:, kw:kw + 26, :]           # (28, 26, bt)

    # ---- conv1 (1->8, k=3, valid) + bias + ReLU + 2x2 maxpool, per channel ----
    def conv1_body(co, carry):
        acc = pat1_ref[0, 0:26, :, :] * w1_ref[co, 0]
        for t in range(1, 9):
            kh, kw = t // 3, t % 3
            acc = acc + pat1_ref[kw, kh:kh + 26, :, :] * w1_ref[co, t]
        a = jnp.maximum(acc + b1_ref[co], 0.0)                # (26, 26, bt)
        pooled = _pool2x2(a, selb1)                           # (13, 13, bt)
        # Store the three column-shifted views conv2 will need.
        for kw in range(3):
            p1s_ref[co * 3 + kw, :, :, :] = pooled[:, kw:kw + 11, :]
        return carry

    lax.fori_loop(0, 8, conv1_body, 0)

    # ---- conv2 (8->16, k=3, valid) + bias + ReLU + 2x2 maxpool, per channel ----
    def conv2_body(co, carry):
        def ci_body(ci, acc):
            for kh in range(3):
                for kw in range(3):
                    w = w2_ref[co, ci * 9 + kh * 3 + kw]
                    acc = acc + p1s_ref[ci * 3 + kw, kh:kh + 11, :, :] * w
            return acc

        acc = lax.fori_loop(0, 8, ci_body, jnp.zeros((11, 11, bt), f32))
        a = jnp.maximum(acc + b2_ref[co], 0.0)                # (11, 11, bt)
        p2_ref[co, :, :, :] = _pool2x2(a, selb2)              # (5, 8, bt)
        return carry

    lax.fori_loop(0, 16, conv2_body, 0)

    # ---- fc1 (400 -> 32) + ReLU, fc2 (32 -> 10); lane-dense (10, bt) store ----
    p2 = p2_ref[...].reshape(80, 8, bt)                       # (c*5+h, w_pad, bt)
    hp = jnp.einsum("bow,bwn->bon", wf1_ref[...], p2,
                    preferred_element_type=f32)               # (80, 32, bt)
    h = jnp.maximum(jnp.sum(hp, axis=0) + bf1_ref[...], 0.0)  # (32, bt)
    o_ref[...] = (jnp.dot(wf2_ref[...], h, preferred_element_type=f32)
                  + bf2_ref[...])                             # (10, bt)


# -------------------------------- JAX wrapper ------------------------------- #

def net_forward(x, p, *, bt=128):
    """x: (B, 1, 28, 28) NCHW float32; returns (B, 10) logits."""
    B = x.shape[0]
    nb = (B + bt - 1) // bt
    bp = nb * bt

    # Batch on lanes: (28, 28, B_pad).  Padded images are zeros (sliced off).
    xs = x.reshape(B, 28, 28).astype(jnp.float32)
    if bp != B:
        xs = jnp.pad(xs, ((0, bp - B), (0, 0), (0, 0)))
    xs = xs.transpose(1, 2, 0)

    # Kernel-friendly weight layouts (tiny, one-time XLA work).
    w1s = p["conv1_w"].reshape(8, 9).astype(jnp.float32)       # (co, kh*3+kw)
    b1s = p["conv1_b"].astype(jnp.float32)                     # (8,)
    w2s = p["conv2_w"].reshape(16, 72).astype(jnp.float32)     # (co, ci*9+kh*3+kw)
    b2s = p["conv2_b"].astype(jnp.float32)                     # (16,)
    # fc1 rows are (c, h, w)-ordered (torch NCHW flatten); pad w 5->8 and regroup
    # per (c, h) so the kernel contracts the pooled activation without relayout.
    wf1 = p["fc1_w"].reshape(16, 5, 5, 32)
    wf1 = jnp.pad(wf1, ((0, 0), (0, 0), (0, 3), (0, 0)))       # (16, 5, 8, 32)
    wf1b = wf1.reshape(80, 8, 32).transpose(0, 2, 1).astype(jnp.float32)  # (80,32,8)
    bf1 = p["fc1_b"].reshape(32, 1).astype(jnp.float32)
    wf2 = p["fc2_w"].T.astype(jnp.float32)                     # (10, 32)
    bf2 = p["fc2_b"].reshape(10, 1).astype(jnp.float32)

    smem = pl.BlockSpec(memory_space=pltpu.MemorySpace.SMEM)
    out = pl.pallas_call(
        _net_kernel,
        out_shape=jax.ShapeDtypeStruct((10, bp), jnp.float32),
        grid=(nb,),
        in_specs=[
            pl.BlockSpec((28, 28, bt), lambda b: (0, 0, b)),   # images, batch on lanes
            smem, smem, smem, smem,                            # conv weights / biases
            pl.BlockSpec((80, 32, 8), lambda b: (0, 0, 0)),    # fc1 weight pieces
            pl.BlockSpec((32, 1), lambda b: (0, 0)),           # fc1 bias
            pl.BlockSpec((10, 32), lambda b: (0, 0)),          # fc2 weight
            pl.BlockSpec((10, 1), lambda b: (0, 0)),           # fc2 bias
        ],
        out_specs=pl.BlockSpec((10, bt), lambda b: (0, b)),    # lane-dense logits
        scratch_shapes=[
            pltpu.VMEM((3, 28, 26, bt), jnp.float32),          # conv1 shifted input views
            pltpu.VMEM((24, 13, 11, bt), jnp.float32),         # pooled conv1, col-shifted
            pltpu.VMEM((16, 5, 8, bt), jnp.float32),           # pooled conv2 (w padded to 8)
        ],
        compiler_params=pltpu.CompilerParams(
            dimension_semantics=("parallel",),                 # batch tiles split over TCs
            vmem_limit_bytes=32 * 1024 * 1024),
    )(xs, w1s, b1s, w2s, b2s, wf1b, bf1, wf2, bf2)
    return out.T[:B]


def net_forward_ref(x, p):
    """Pure-JAX reference (no Pallas) for correctness checking."""
    hi = jax.lax.Precision.HIGHEST
    dn = ("NCHW", "OIHW", "NCHW")
    y = jax.lax.conv_general_dilated(x, p["conv1_w"], (1, 1), "VALID",
                                     dimension_numbers=dn, precision=hi)
    y = jnp.maximum(y + p["conv1_b"][None, :, None, None], 0.0)
    y = jax.lax.reduce_window(y, -jnp.inf, jax.lax.max, (1, 1, 2, 2), (1, 1, 2, 2), "VALID")
    y = jax.lax.conv_general_dilated(y, p["conv2_w"], (1, 1), "VALID",
                                     dimension_numbers=dn, precision=hi)
    y = jnp.maximum(y + p["conv2_b"][None, :, None, None], 0.0)
    y = jax.lax.reduce_window(y, -jnp.inf, jax.lax.max, (1, 1, 2, 2), (1, 1, 2, 2), "VALID")
    y = y.reshape(y.shape[0], -1)
    y = jnp.maximum(jnp.dot(y, p["fc1_w"], precision=hi) + p["fc1_b"], 0.0)
    return jnp.dot(y, p["fc2_w"], precision=hi) + p["fc2_b"]


def init_params(key):
    """Deterministic PyTorch-style U(-1/sqrt(fan_in), 1/sqrt(fan_in)) init."""
    ks = jax.random.split(key, 8)

    def u(k, shape, fan_in):
        bound = 1.0 / float(fan_in) ** 0.5
        return jax.random.uniform(k, shape, jnp.float32, -bound, bound)

    return {
        "conv1_w": u(ks[0], (8, 1, 3, 3), 1 * 9),     # OIHW
        "conv1_b": u(ks[1], (8,), 1 * 9),
        "conv2_w": u(ks[2], (16, 8, 3, 3), 8 * 9),    # OIHW
        "conv2_b": u(ks[3], (16,), 8 * 9),
        "fc1_w":  u(ks[4], (400, 32), 400),           # (in, out)
        "fc1_b":  u(ks[5], (32,), 400),
        "fc2_w":  u(ks[6], (32, 10), 32),             # (in, out)
        "fc2_b":  u(ks[7], (10,), 32),
    }


if __name__ == "__main__":
    key = jax.random.PRNGKey(0)
    pkey, xkey = jax.random.split(key)
    params = init_params(pkey)

    # fc1 expects 16*5*5 features, which pins the input to 1x28x28 (MNIST). batch=2.
    x = jax.random.normal(xkey, (2, 1, 28, 28), jnp.float32)

    fwd = jax.jit(net_forward)
    out = jax.block_until_ready(fwd(x, params))
    assert out.shape == (2, 10) and out.dtype == jnp.float32

    ref = jax.block_until_ready(jax.jit(net_forward_ref)(x, params))
    assert jnp.allclose(out, ref, atol=1e-2, rtol=1e-2), "Pallas output mismatch vs reference"

    print("KERNEL_OK")
</pallas_src>

<mosaic_0001>
module attributes {stable_mosaic.version = 11 : i64} {
  func.func @_net_kernel(%arg0: i32, %arg1: memref<28x28x128xf32, #tpu.memory_space<vmem>>, %arg2: memref<8x9xf32, #tpu.memory_space<smem>>, %arg3: memref<8xf32, #tpu.memory_space<smem>>, %arg4: memref<16x72xf32, #tpu.memory_space<smem>>, %arg5: memref<16xf32, #tpu.memory_space<smem>>, %arg6: memref<80x32x8xf32, #tpu.memory_space<vmem>>, %arg7: memref<32x1xf32, #tpu.memory_space<vmem>>, %arg8: memref<10x32xf32, #tpu.memory_space<vmem>>, %arg9: memref<10x1xf32, #tpu.memory_space<vmem>>, %arg10: memref<10x128xf32, #tpu.memory_space<vmem>>, %arg11: memref<3x28x26x128xf32, #tpu.memory_space<vmem>>, %arg12: memref<24x13x11x128xf32, #tpu.memory_space<vmem>>, %arg13: memref<16x5x8x128xf32, #tpu.memory_space<vmem>>) attributes {dimension_semantics = [#tpu.dimension_semantics<parallel>], iteration_bounds = array<i64: 1>, scalar_prefetch = 0 : i64, scratch_operands = 3 : i64, tpu.core_type = #tpu.core_type<tc>, window_params = [{transform_indices = @transform_0, window_bounds = array<i64: 28, 28, 128>}, {transform_indices = @transform_1, window_bounds = array<i64: 8, 9>}, {transform_indices = @transform_2, window_bounds = array<i64: 8>}, {transform_indices = @transform_3, window_bounds = array<i64: 16, 72>}, {transform_indices = @transform_4, window_bounds = array<i64: 16>}, {pipeline_mode = #tpu.pipeline_mode<synchronous>, transform_indices = @transform_5, window_bounds = array<i64: 80, 32, 8>}, {pipeline_mode = #tpu.pipeline_mode<synchronous>, transform_indices = @transform_6, window_bounds = array<i64: 32, 1>}, {pipeline_mode = #tpu.pipeline_mode<synchronous>, transform_indices = @transform_7, window_bounds = array<i64: 10, 32>}, {pipeline_mode = #tpu.pipeline_mode<synchronous>, transform_indices = @transform_8, window_bounds = array<i64: 10, 1>}, {transform_indices = @transform_9, window_bounds = array<i64: 10, 128>}]} {
    %0 = tpu.iota {dimensions = array<i32: 0>} : vector<13x25xi32>
    %1 = tpu.iota {dimensions = array<i32: 1>} : vector<13x25xi32>
    %c2_i32 = arith.constant 2 : i32
    %2 = vector.broadcast %c2_i32 : i32 to vector<13x25xi32>
    %3 = arith.muli %2, %0 : vector<13x25xi32>
    %4 = arith.cmpi eq, %1, %3 : vector<13x25xi32>
    %c13_i32 = arith.constant 13 : i32
    %5 = vector.broadcast %c13_i32 : i32 to vector<13x25xi32>
    %6 = arith.cmpi slt, %0, %5 : vector<13x25xi32>
    %7 = arith.andi %4, %6 : vector<13x25xi1>
    %8 = arith.extui %7 : vector<13x25xi1> to vector<13x25xi32>
    %9 = arith.sitofp %8 : vector<13x25xi32> to vector<13x25xf32>
    %10 = vector.shape_cast %9 : vector<13x25xf32> to vector<1x13x25xf32>
    %11 = vector.shape_cast %10 : vector<1x13x25xf32> to vector<1x13x25xf32>
    %12 = vector.broadcast %11 : vector<1x13x25xf32> to vector<13x13x25xf32>
    %13 = tpu.iota {dimensions = array<i32: 0>} : vector<8x10xi32>
    %14 = tpu.iota {dimensions = array<i32: 1>} : vector<8x10xi32>
    %c2_i32_0 = arith.constant 2 : i32
    %15 = vector.broadcast %c2_i32_0 : i32 to vector<8x10xi32>
    %16 = arith.muli %15, %13 : vector<8x10xi32>
    %17 = arith.cmpi eq, %14, %16 : vector<8x10xi32>
    %c5_i32 = arith.constant 5 : i32
    %18 = vector.broadcast %c5_i32 : i32 to vector<8x10xi32>
    %19 = arith.cmpi slt, %13, %18 : vector<8x10xi32>
    %20 = arith.andi %17, %19 : vector<8x10xi1>
    %21 = arith.extui %20 : vector<8x10xi1> to vector<8x10xi32>
    %22 = arith.sitofp %21 : vector<8x10xi32> to vector<8x10xf32>
    %23 = vector.shape_cast %22 : vector<8x10xf32> to vector<1x8x10xf32>
    %24 = vector.shape_cast %23 : vector<1x8x10xf32> to vector<1x8x10xf32>
    %25 = vector.broadcast %24 : vector<1x8x10xf32> to vector<5x8x10xf32>
    %c0 = arith.constant 0 : index
    %c0_1 = arith.constant 0 : index
    %c0_2 = arith.constant 0 : index
    %26 = vector.load %arg1[%c0, %c0_1, %c0_2] : memref<28x28x128xf32, #tpu.memory_space<vmem>>, vector<28x28x128xf32>
    %27 = vector.extract_strided_slice %26 {offsets = [0, 0, 0], sizes = [28, 26, 128], strides = [1, 1, 1]} : vector<28x28x128xf32> to vector<28x26x128xf32>
    %c0_3 = arith.constant 0 : index
    %c0_4 = arith.constant 0 : index
    %c0_5 = arith.constant 0 : index
    %c0_6 = arith.constant 0 : index
    %28 = vector.load %arg11[%c0_3, %c0_4, %c0_5, %c0_6] : memref<3x28x26x128xf32, #tpu.memory_space<vmem>>, vector<1x28x26x128xf32>
    %29 = vector.shape_cast %28 : vector<1x28x26x128xf32> to vector<28x26x128xf32>
    %30 = vector.shape_cast %27 : vector<28x26x128xf32> to vector<1x28x26x128xf32>
    tpu.vector_store %arg11[%c0_3, %c0_4, %c0_5, %c0_6], %30 {strides = array<i32>} : memref<3x28x26x128xf32, #tpu.memory_space<vmem>>, vector<1x28x26x128xf32>,
    %31 = vector.extract_strided_slice %26 {offsets = [0, 1, 0], sizes = [28, 26, 128], strides = [1, 1, 1]} : vector<28x28x128xf32> to vector<28x26x128xf32>
    %c1 = arith.constant 1 : index
    %c0_7 = arith.constant 0 : index
    %c0_8 = arith.constant 0 : index
    %c0_9 = arith.constant 0 : index
    %32 = vector.load %arg11[%c1, %c0_7, %c0_8, %c0_9] : memref<3x28x26x128xf32, #tpu.memory_space<vmem>>, vector<1x28x26x128xf32>
    %33 = vector.shape_cast %32 : vector<1x28x26x128xf32> to vector<28x26x128xf32>
    %34 = vector.shape_cast %31 : vector<28x26x128xf32> to vector<1x28x26x128xf32>
    tpu.vector_store %arg11[%c1, %c0_7, %c0_8, %c0_9], %34 {strides = array<i32>} : memref<3x28x26x128xf32, #tpu.memory_space<vmem>>, vector<1x28x26x128xf32>,
    %35 = vector.extract_strided_slice %26 {offsets = [0, 2, 0], sizes = [28, 26, 128], strides = [1, 1, 1]} : vector<28x28x128xf32> to vector<28x26x128xf32>
    %c2 = arith.constant 2 : index
    %c0_10 = arith.constant 0 : index
    %c0_11 = arith.constant 0 : index
    %c0_12 = arith.constant 0 : index
    %36 = vector.load %arg11[%c2, %c0_10, %c0_11, %c0_12] : memref<3x28x26x128xf32, #tpu.memory_space<vmem>>, vector<1x28x26x128xf32>
    %37 = vector.shape_cast %36 : vector<1x28x26x128xf32> to vector<28x26x128xf32>
    %38 = vector.shape_cast %35 : vector<28x26x128xf32> to vector<1x28x26x128xf32>
    tpu.vector_store %arg11[%c2, %c0_10, %c0_11, %c0_12], %38 {strides = array<i32>} : memref<3x28x26x128xf32, #tpu.memory_space<vmem>>, vector<1x28x26x128xf32>,
    %c0_i32 = arith.constant 0 : i32
    %c8_i32 = arith.constant 8 : i32
    %39 = arith.addi %c0_i32, %c8_i32 : i32
    %c1_i32 = arith.constant 1 : i32
    scf.for %arg14 = %c0_i32 to %39 step %c1_i32  : i32 {
      %c0_35 = arith.constant 0 : index
      %c0_36 = arith.constant 0 : index
      %c0_37 = arith.constant 0 : index
      %c0_38 = arith.constant 0 : index
      %57 = vector.load %arg11[%c0_35, %c0_36, %c0_37, %c0_38] : memref<3x28x26x128xf32, #tpu.memory_space<vmem>>, vector<1x26x26x128xf32>
      %58 = vector.shape_cast %57 : vector<1x26x26x128xf32> to vector<26x26x128xf32>
      %59 = arith.index_cast %arg14 : i32 to index
      %c0_39 = arith.constant 0 : index
      %60 = memref.load %arg2[%59, %c0_39] : memref<8x9xf32, #tpu.memory_space<smem>>
      %61 = vector.broadcast %60 : f32 to vector<26x26x128xf32>
      %62 = arith.mulf %58, %61 : vector<26x26x128xf32>
      %c1_40 = arith.constant 1 : index
      %c0_41 = arith.constant 0 : index
      %c0_42 = arith.constant 0 : index
      %c0_43 = arith.constant 0 : index
      %63 = vector.load %arg11[%c1_40, %c0_41, %c0_42, %c0_43] : memref<3x28x26x128xf32, #tpu.memory_space<vmem>>, vector<1x26x26x128xf32>
      %64 = vector.shape_cast %63 : vector<1x26x26x128xf32> to vector<26x26x128xf32>
      %65 = arith.index_cast %arg14 : i32 to index
      %c1_44 = arith.constant 1 : index
      %66 = memref.load %arg2[%65, %c1_44] : memref<8x9xf32, #tpu.memory_space<smem>>
      %67 = vector.broadcast %66 : f32 to vector<26x26x128xf32>
      %68 = arith.mulf %64, %67 : vector<26x26x128xf32>
      %69 = arith.addf %62, %68 : vector<26x26x128xf32>
      %c2_45 = arith.constant 2 : index
      %c0_46 = arith.constant 0 : index
      %c0_47 = arith.constant 0 : index
      %c0_48 = arith.constant 0 : index
      %70 = vector.load %arg11[%c2_45, %c0_46, %c0_47, %c0_48] : memref<3x28x26x128xf32, #tpu.memory_space<vmem>>, vector<1x26x26x128xf32>
      %71 = vector.shape_cast %70 : vector<1x26x26x128xf32> to vector<26x26x128xf32>
      %72 = arith.index_cast %arg14 : i32 to index
      %c2_49 = arith.constant 2 : index
      %73 = memref.load %arg2[%72, %c2_49] : memref<8x9xf32, #tpu.memory_space<smem>>
      %74 = vector.broadcast %73 : f32 to vector<26x26x128xf32>
      %75 = arith.mulf %71, %74 : vector<26x26x128xf32>
      %76 = arith.addf %69, %75 : vector<26x26x128xf32>
      %c0_50 = arith.constant 0 : index
      %c1_51 = arith.constant 1 : index
      %c0_52 = arith.constant 0 : index
      %c0_53 = arith.constant 0 : index
      %77 = vector.load %arg11[%c0_50, %c1_51, %c0_52, %c0_53] : memref<3x28x26x128xf32, #tpu.memory_space<vmem>>, vector<1x26x26x128xf32>
      %78 = vector.shape_cast %77 : vector<1x26x26x128xf32> to vector<26x26x128xf32>
      %79 = arith.index_cast %arg14 : i32 to index
      %c3 = arith.constant 3 : index
      %80 = memref.load %arg2[%79, %c3] : memref<8x9xf32, #tpu.memory_space<smem>>
      %81 = vector.broadcast %80 : f32 to vector<26x26x128xf32>
      %82 = arith.mulf %78, %81 : vector<26x26x128xf32>
      %83 = arith.addf %76, %82 : vector<26x26x128xf32>
      %c1_54 = arith.constant 1 : index
      %c1_55 = arith.constant 1 : index
      %c0_56 = arith.constant 0 : index
      %c0_57 = arith.constant 0 : index
      %84 = vector.load %arg11[%c1_54, %c1_55, %c0_56, %c0_57] : memref<3x28x26x128xf32, #tpu.memory_space<vmem>>, vector<1x26x26x128xf32>
      %85 = vector.shape_cast %84 : vector<1x26x26x128xf32> to vector<26x26x128xf32>
      %86 = arith.index_cast %arg14 : i32 to index
      %c4 = arith.constant 4 : index
      %87 = memref.load %arg2[%86, %c4] : memref<8x9xf32, #tpu.memory_space<smem>>
      %88 = vector.broadcast %87 : f32 to vector<26x26x128xf32>
      %89 = arith.mulf %85, %88 : vector<26x26x128xf32>
      %90 = arith.addf %83, %89 : vector<26x26x128xf32>
      %c2_58 = arith.constant 2 : index
      %c1_59 = arith.constant 1 : index
      %c0_60 = arith.constant 0 : index
      %c0_61 = arith.constant 0 : index
      %91 = vector.load %arg11[%c2_58, %c1_59, %c0_60, %c0_61] : memref<3x28x26x128xf32, #tpu.memory_space<vmem>>, vector<1x26x26x128xf32>
      %92 = vector.shape_cast %91 : vector<1x26x26x128xf32> to vector<26x26x128xf32>
      %93 = arith.index_cast %arg14 : i32 to index
      %c5 = arith.constant 5 : index
      %94 = memref.load %arg2[%93, %c5] : memref<8x9xf32, #tpu.memory_space<smem>>
      %95 = vector.broadcast %94 : f32 to vector<26x26x128xf32>
      %96 = arith.mulf %92, %95 : vector<26x26x128xf32>
      %97 = arith.addf %90, %96 : vector<26x26x128xf32>
      %c0_62 = arith.constant 0 : index
      %c2_63 = arith.constant 2 : index
      %c0_64 = arith.constant 0 : index
      %c0_65 = arith.constant 0 : index
      %98 = vector.load %arg11[%c0_62, %c2_63, %c0_64, %c0_65] : memref<3x28x26x128xf32, #tpu.memory_space<vmem>>, vector<1x26x26x128xf32>
      %99 = vector.shape_cast %98 : vector<1x26x26x128xf32> to vector<26x26x128xf32>
      %100 = arith.index_cast %arg14 : i32 to index
      %c6 = arith.constant 6 : index
      %101 = memref.load %arg2[%100, %c6] : memref<8x9xf32, #tpu.memory_space<smem>>
      %102 = vector.broadcast %101 : f32 to vector<26x26x128xf32>
      %103 = arith.mulf %99, %102 : vector<26x26x128xf32>
      %104 = arith.addf %97, %103 : vector<26x26x128xf32>
      %c1_66 = arith.constant 1 : index
      %c2_67 = arith.constant 2 : index
      %c0_68 = arith.constant 0 : index
      %c0_69 = arith.constant 0 : index
      %105 = vector.load %arg11[%c1_66, %c2_67, %c0_68, %c0_69] : memref<3x28x26x128xf32, #tpu.memory_space<vmem>>, vector<1x26x26x128xf32>
      %106 = vector.shape_cast %105 : vector<1x26x26x128xf32> to vector<26x26x128xf32>
      %107 = arith.index_cast %arg14 : i32 to index
      %c7 = arith.constant 7 : index
      %108 = memref.load %arg2[%107, %c7] : memref<8x9xf32, #tpu.memory_space<smem>>
      %109 = vector.broadcast %108 : f32 to vector<26x26x128xf32>
      %110 = arith.mulf %106, %109 : vector<26x26x128xf32>
      %111 = arith.addf %104, %110 : vector<26x26x128xf32>
      %c2_70 = arith.constant 2 : index
      %c2_71 = arith.constant 2 : index
      %c0_72 = arith.constant 0 : index
      %c0_73 = arith.constant 0 : index
      %112 = vector.load %arg11[%c2_70, %c2_71, %c0_72, %c0_73] : memref<3x28x26x128xf32, #tpu.memory_space<vmem>>, vector<1x26x26x128xf32>
      %113 = vector.shape_cast %112 : vector<1x26x26x128xf32> to vector<26x26x128xf32>
      %114 = arith.index_cast %arg14 : i32 to index
      %c8 = arith.constant 8 : index
      %115 = memref.load %arg2[%114, %c8] : memref<8x9xf32, #tpu.memory_space<smem>>
      %116 = vector.broadcast %115 : f32 to vector<26x26x128xf32>
      %117 = arith.mulf %113, %116 : vector<26x26x128xf32>
      %118 = arith.addf %111, %117 : vector<26x26x128xf32>
      %119 = arith.index_cast %arg14 : i32 to index
      %120 = memref.load %arg3[%119] : memref<8xf32, #tpu.memory_space<smem>>
      %121 = vector.broadcast %120 : f32 to vector<26x26x128xf32>
      %122 = arith.addf %118, %121 : vector<26x26x128xf32>
      %cst_74 = arith.constant 0.000000e+00 : f32
      %123 = vector.broadcast %cst_74 : f32 to vector<26x26x128xf32>
      %124 = arith.maximumf %122, %123 : vector<26x26x128xf32>
      %125 = vector.shape_cast %124 : vector<26x26x128xf32> to vector<13x2x26x128xf32>
      %cst_75 = arith.constant dense<0xFF800000> : vector<13x26x128xf32>
      %126 = vector.multi_reduction <maximumf>, %125, %cst_75 [1] : vector<13x2x26x128xf32> to vector<13x26x128xf32>
      %127 = vector.extract_strided_slice %126 {offsets = [0, 0, 0], sizes = [13, 25, 128], strides = [1, 1, 1]} : vector<13x26x128xf32> to vector<13x25x128xf32>
      %128 = vector.extract_strided_slice %126 {offsets = [0, 1, 0], sizes = [13, 25, 128], strides = [1, 1, 1]} : vector<13x26x128xf32> to vector<13x25x128xf32>
      %129 = arith.maximumf %127, %128 : vector<13x25x128xf32>
      "tpu.trace_start"() <{level = 10 : i32, message = "byw,bwn->byn"}> : () -> ()
      %cst_76 = arith.constant dense<0.000000e+00> : vector<13x13x128xf32>
      %130 = tpu.matmul %12, %129, %cst_76 {dimension_numbers = #tpu.dot_dimension_numbers<[2], [1], [1], [2], [0, 0, 0, 1, 1, 2], [0], [0]>} : vector<13x13x25xf32>, vector<13x25x128xf32>, vector<13x13x128xf32> -> vector<13x13x128xf32>
      "tpu.trace_stop"() : () -> ()
      %131 = vector.extract_strided_slice %130 {offsets = [0, 0, 0], sizes = [13, 11, 128], strides = [1, 1, 1]} : vector<13x13x128xf32> to vector<13x11x128xf32>
      %c3_i32 = arith.constant 3 : i32
      %132 = arith.muli %arg14, %c3_i32 : i32
      %c0_i32_77 = arith.constant 0 : i32
      %133 = arith.addi %132, %c0_i32_77 : i32
      %134 = arith.index_cast %133 : i32 to index
      %c0_78 = arith.constant 0 : index
      %c0_79 = arith.constant 0 : index
      %c0_80 = arith.constant 0 : index
      %135 = vector.load %arg12[%134, %c0_78, %c0_79, %c0_80] : memref<24x13x11x128xf32, #tpu.memory_space<vmem>>, vector<1x13x11x128xf32>
      %136 = vector.shape_cast %135 : vector<1x13x11x128xf32> to vector<13x11x128xf32>
      %137 = vector.shape_cast %131 : vector<13x11x128xf32> to vector<1x13x11x128xf32>
      tpu.vector_store %arg12[%134, %c0_78, %c0_79, %c0_80], %137 {strides = array<i32>} : memref<24x13x11x128xf32, #tpu.memory_space<vmem>>, vector<1x13x11x128xf32>,
      %138 = vector.extract_strided_slice %130 {offsets = [0, 1, 0], sizes = [13, 11, 128], strides = [1, 1, 1]} : vector<13x13x128xf32> to vector<13x11x128xf32>
      %c3_i32_81 = arith.constant 3 : i32
      %139 = arith.muli %arg14, %c3_i32_81 : i32
      %c1_i32_82 = arith.constant 1 : i32
      %140 = arith.addi %139, %c1_i32_82 : i32
      %141 = arith.index_cast %140 : i32 to index
      %c0_83 = arith.constant 0 : index
      %c0_84 = arith.constant 0 : index
      %c0_85 = arith.constant 0 : index
      %142 = vector.load %arg12[%141, %c0_83, %c0_84, %c0_85] : memref<24x13x11x128xf32, #tpu.memory_space<vmem>>, vector<1x13x11x128xf32>
      %143 = vector.shape_cast %142 : vector<1x13x11x128xf32> to vector<13x11x128xf32>
      %144 = vector.shape_cast %138 : vector<13x11x128xf32> to vector<1x13x11x128xf32>
      tpu.vector_store %arg12[%141, %c0_83, %c0_84, %c0_85], %144 {strides = array<i32>} : memref<24x13x11x128xf32, #tpu.memory_space<vmem>>, vector<1x13x11x128xf32>,
      %145 = vector.extract_strided_slice %130 {offsets = [0, 2, 0], sizes = [13, 11, 128], strides = [1, 1, 1]} : vector<13x13x128xf32> to vector<13x11x128xf32>
      %c3_i32_86 = arith.constant 3 : i32
      %146 = arith.muli %arg14, %c3_i32_86 : i32
      %c2_i32_87 = arith.constant 2 : i32
      %147 = arith.addi %146, %c2_i32_87 : i32
      %148 = arith.index_cast %147 : i32 to index
      %c0_88 = arith.constant 0 : index
      %c0_89 = arith.constant 0 : index
      %c0_90 = arith.constant 0 : index
      %149 = vector.load %arg12[%148, %c0_88, %c0_89, %c0_90] : memref<24x13x11x128xf32, #tpu.memory_space<vmem>>, vector<1x13x11x128xf32>
      %150 = vector.shape_cast %149 : vector<1x13x11x128xf32> to vector<13x11x128xf32>
      %151 = vector.shape_cast %145 : vector<13x11x128xf32> to vector<1x13x11x128xf32>
      tpu.vector_store %arg12[%148, %c0_88, %c0_89, %c0_90], %151 {strides = array<i32>} : memref<24x13x11x128xf32, #tpu.memory_space<vmem>>, vector<1x13x11x128xf32>,
    }
    %c8_i32_13 = arith.constant 8 : i32
    %c0_i32_14 = arith.constant 0 : i32
    %c16_i32 = arith.constant 16 : i32
    %40 = arith.addi %c0_i32_14, %c16_i32 : i32
    %c1_i32_15 = arith.constant 1 : i32
    scf.for %arg14 = %c0_i32_14 to %40 step %c1_i32_15  : i32 {
      %cst_35 = arith.constant 0.000000e+00 : f32
      %57 = vector.broadcast %cst_35 : f32 to vector<11x11x128xf32>
      %c0_i32_36 = arith.constant 0 : i32
      %c8_i32_37 = arith.constant 8 : i32
      %58 = arith.addi %c0_i32_36, %c8_i32_37 : i32
      %c1_i32_38 = arith.constant 1 : i32
      %59 = scf.for %arg15 = %c0_i32_36 to %58 step %c1_i32_38 iter_args(%arg16 = %57) -> (vector<11x11x128xf32>)  : i32 {
        %c9_i32 = arith.constant 9 : i32
        %77 = arith.muli %arg15, %c9_i32 : i32
        %c0_i32_46 = arith.constant 0 : i32
        %78 = arith.addi %77, %c0_i32_46 : i32
        %c0_i32_47 = arith.constant 0 : i32
        %79 = arith.addi %78, %c0_i32_47 : i32
        %80 = arith.index_cast %arg14 : i32 to index
        %81 = arith.index_cast %79 : i32 to index
        %82 = memref.load %arg4[%80, %81] : memref<16x72xf32, #tpu.memory_space<smem>>
        %c3_i32 = arith.constant 3 : i32
        %83 = arith.muli %arg15, %c3_i32 : i32
        %c0_i32_48 = arith.constant 0 : i32
        %84 = arith.addi %83, %c0_i32_48 : i32
        %85 = arith.index_cast %84 : i32 to index
        %c0_49 = arith.constant 0 : index
        %c0_50 = arith.constant 0 : index
        %c0_51 = arith.constant 0 : index
        %86 = vector.load %arg12[%85, %c0_49, %c0_50, %c0_51] : memref<24x13x11x128xf32, #tpu.memory_space<vmem>>, vector<1x11x11x128xf32>
        %87 = vector.shape_cast %86 : vector<1x11x11x128xf32> to vector<11x11x128xf32>
        %88 = vector.broadcast %82 : f32 to vector<11x11x128xf32>
        %89 = arith.mulf %87, %88 : vector<11x11x128xf32>
        %90 = arith.addf %arg16, %89 : vector<11x11x128xf32>
        %c9_i32_52 = arith.constant 9 : i32
        %91 = arith.muli %arg15, %c9_i32_52 : i32
        %c0_i32_53 = arith.constant 0 : i32
        %92 = arith.addi %91, %c0_i32_53 : i32
        %c1_i32_54 = arith.constant 1 : i32
        %93 = arith.addi %92, %c1_i32_54 : i32
        %94 = arith.index_cast %arg14 : i32 to index
        %95 = arith.index_cast %93 : i32 to index
        %96 = memref.load %arg4[%94, %95] : memref<16x72xf32, #tpu.memory_space<smem>>
        %c3_i32_55 = arith.constant 3 : i32
        %97 = arith.muli %arg15, %c3_i32_55 : i32
        %c1_i32_56 = arith.constant 1 : i32
        %98 = arith.addi %97, %c1_i32_56 : i32
        %99 = arith.index_cast %98 : i32 to index
        %c0_57 = arith.constant 0 : index
        %c0_58 = arith.constant 0 : index
        %c0_59 = arith.constant 0 : index
        %100 = vector.load %arg12[%99, %c0_57, %c0_58, %c0_59] : memref<24x13x11x128xf32, #tpu.memory_space<vmem>>, vector<1x11x11x128xf32>
        %101 = vector.shape_cast %100 : vector<1x11x11x128xf32> to vector<11x11x128xf32>
        %102 = vector.broadcast %96 : f32 to vector<11x11x128xf32>
        %103 = arith.mulf %101, %102 : vector<11x11x128xf32>
        %104 = arith.addf %90, %103 : vector<11x11x128xf32>
        %c9_i32_60 = arith.constant 9 : i32
        %105 = arith.muli %arg15, %c9_i32_60 : i32
        %c0_i32_61 = arith.constant 0 : i32
        %106 = arith.addi %105, %c0_i32_61 : i32
        %c2_i32_62 = arith.constant 2 : i32
        %107 = arith.addi %106, %c2_i32_62 : i32
        %108 = arith.index_cast %arg14 : i32 to index
        %109 = arith.index_cast %107 : i32 to index
        %110 = memref.load %arg4[%108, %109] : memref<16x72xf32, #tpu.memory_space<smem>>
        %c3_i32_63 = arith.constant 3 : i32
        %111 = arith.muli %arg15, %c3_i32_63 : i32
        %c2_i32_64 = arith.constant 2 : i32
        %112 = arith.addi %111, %c2_i32_64 : i32
        %113 = arith.index_cast %112 : i32 to index
        %c0_65 = arith.constant 0 : index
        %c0_66 = arith.constant 0 : index
        %c0_67 = arith.constant 0 : index
        %114 = vector.load %arg12[%113, %c0_65, %c0_66, %c0_67] : memref<24x13x11x128xf32, #tpu.memory_space<vmem>>, vector<1x11x11x128xf32>
        %115 = vector.shape_cast %114 : vector<1x11x11x128xf32> to vector<11x11x128xf32>
        %116 = vector.broadcast %110 : f32 to vector<11x11x128xf32>
        %117 = arith.mulf %115, %116 : vector<11x11x128xf32>
        %118 = arith.addf %104, %117 : vector<11x11x128xf32>
        %c9_i32_68 = arith.constant 9 : i32
        %119 = arith.muli %arg15, %c9_i32_68 : i32
        %c3_i32_69 = arith.constant 3 : i32
        %120 = arith.addi %119, %c3_i32_69 : i32
        %c0_i32_70 = arith.constant 0 : i32
        %121 = arith.addi %120, %c0_i32_70 : i32
        %122 = arith.index_cast %arg14 : i32 to index
        %123 = arith.index_cast %121 : i32 to index
        %124 = memref.load %arg4[%122, %123] : memref<16x72xf32, #tpu.memory_space<smem>>
        %c3_i32_71 = arith.constant 3 : i32
        %125 = arith.muli %arg15, %c3_i32_71 : i32
        %c0_i32_72 = arith.constant 0 : i32
        %126 = arith.addi %125, %c0_i32_72 : i32
        %127 = arith.index_cast %126 : i32 to index
        %c1_73 = arith.constant 1 : index
        %c0_74 = arith.constant 0 : index
        %c0_75 = arith.constant 0 : index
        %128 = vector.load %arg12[%127, %c1_73, %c0_74, %c0_75] : memref<24x13x11x128xf32, #tpu.memory_space<vmem>>, vector<1x11x11x128xf32>
        %129 = vector.shape_cast %128 : vector<1x11x11x128xf32> to vector<11x11x128xf32>
        %130 = vector.broadcast %124 : f32 to vector<11x11x128xf32>
        %131 = arith.mulf %129, %130 : vector<11x11x128xf32>
        %132 = arith.addf %118, %131 : vector<11x11x128xf32>
        %c9_i32_76 = arith.constant 9 : i32
        %133 = arith.muli %arg15, %c9_i32_76 : i32
        %c3_i32_77 = arith.constant 3 : i32
        %134 = arith.addi %133, %c3_i32_77 : i32
        %c1_i32_78 = arith.constant 1 : i32
        %135 = arith.addi %134, %c1_i32_78 : i32
        %136 = arith.index_cast %arg14 : i32 to index
        %137 = arith.index_cast %135 : i32 to index
        %138 = memref.load %arg4[%136, %137] : memref<16x72xf32, #tpu.memory_space<smem>>
        %c3_i32_79 = arith.constant 3 : i32
        %139 = arith.muli %arg15, %c3_i32_79 : i32
        %c1_i32_80 = arith.constant 1 : i32
        %140 = arith.addi %139, %c1_i32_80 : i32
        %141 = arith.index_cast %140 : i32 to index
        %c1_81 = arith.constant 1 : index
        %c0_82 = arith.constant 0 : index
        %c0_83 = arith.constant 0 : index
        %142 = vector.load %arg12[%141, %c1_81, %c0_82, %c0_83] : memref<24x13x11x128xf32, #tpu.memory_space<vmem>>, vector<1x11x11x128xf32>
        %143 = vector.shape_cast %142 : vector<1x11x11x128xf32> to vector<11x11x128xf32>
        %144 = vector.broadcast %138 : f32 to vector<11x11x128xf32>
        %145 = arith.mulf %143, %144 : vector<11x11x128xf32>
        %146 = arith.addf %132, %145 : vector<11x11x128xf32>
        %c9_i32_84 = arith.constant 9 : i32
        %147 = arith.muli %arg15, %c9_i32_84 : i32
        %c3_i32_85 = arith.constant 3 : i32
        %148 = arith.addi %147, %c3_i32_85 : i32
        %c2_i32_86 = arith.constant 2 : i32
        %149 = arith.addi %148, %c2_i32_86 : i32
        %150 = arith.index_cast %arg14 : i32 to index
        %151 = arith.index_cast %149 : i32 to index
        %152 = memref.load %arg4[%150, %151] : memref<16x72xf32, #tpu.memory_space<smem>>
        %c3_i32_87 = arith.constant 3 : i32
        %153 = arith.muli %arg15, %c3_i32_87 : i32
        %c2_i32_88 = arith.constant 2 : i32
        %154 = arith.addi %153, %c2_i32_88 : i32
        %155 = arith.index_cast %154 : i32 to index
        %c1_89 = arith.constant 1 : index
        %c0_90 = arith.constant 0 : index
        %c0_91 = arith.constant 0 : index
        %156 = vector.load %arg12[%155, %c1_89, %c0_90, %c0_91] : memref<24x13x11x128xf32, #tpu.memory_space<vmem>>, vector<1x11x11x128xf32>
        %157 = vector.shape_cast %156 : vector<1x11x11x128xf32> to vector<11x11x128xf32>
        %158 = vector.broadcast %152 : f32 to vector<11x11x128xf32>
        %159 = arith.mulf %157, %158 : vector<11x11x128xf32>
        %160 = arith.addf %146, %159 : vector<11x11x128xf32>
        %c9_i32_92 = arith.constant 9 : i32
        %161 = arith.muli %arg15, %c9_i32_92 : i32
        %c6_i32 = arith.constant 6 : i32
        %162 = arith.addi %161, %c6_i32 : i32
        %c0_i32_93 = arith.constant 0 : i32
        %163 = arith.addi %162, %c0_i32_93 : i32
        %164 = arith.index_cast %arg14 : i32 to index
        %165 = arith.index_cast %163 : i32 to index
        %166 = memref.load %arg4[%164, %165] : memref<16x72xf32, #tpu.memory_space<smem>>
        %c3_i32_94 = arith.constant 3 : i32
        %167 = arith.muli %arg15, %c3_i32_94 : i32
        %c0_i32_95 = arith.constant 0 : i32
        %168 = arith.addi %167, %c0_i32_95 : i32
        %169 = arith.index_cast %168 : i32 to index
        %c2_96 = arith.constant 2 : index
        %c0_97 = arith.constant 0 : index
        %c0_98 = arith.constant 0 : index
        %170 = vector.load %arg12[%169, %c2_96, %c0_97, %c0_98] : memref<24x13x11x128xf32, #tpu.memory_space<vmem>>, vector<1x11x11x128xf32>
        %171 = vector.shape_cast %170 : vector<1x11x11x128xf32> to vector<11x11x128xf32>
        %172 = vector.broadcast %166 : f32 to vector<11x11x128xf32>
        %173 = arith.mulf %171, %172 : vector<11x11x128xf32>
        %174 = arith.addf %160, %173 : vector<11x11x128xf32>
        %c9_i32_99 = arith.constant 9 : i32
        %175 = arith.muli %arg15, %c9_i32_99 : i32
        %c6_i32_100 = arith.constant 6 : i32
        %176 = arith.addi %175, %c6_i32_100 : i32
        %c1_i32_101 = arith.constant 1 : i32
        %177 = arith.addi %176, %c1_i32_101 : i32
        %178 = arith.index_cast %arg14 : i32 to index
        %179 = arith.index_cast %177 : i32 to index
        %180 = memref.load %arg4[%178, %179] : memref<16x72xf32, #tpu.memory_space<smem>>
        %c3_i32_102 = arith.constant 3 : i32
        %181 = arith.muli %arg15, %c3_i32_102 : i32
        %c1_i32_103 = arith.constant 1 : i32
        %182 = arith.addi %181, %c1_i32_103 : i32
        %183 = arith.index_cast %182 : i32 to index
        %c2_104 = arith.constant 2 : index
        %c0_105 = arith.constant 0 : index
        %c0_106 = arith.constant 0 : index
        %184 = vector.load %arg12[%183, %c2_104, %c0_105, %c0_106] : memref<24x13x11x128xf32, #tpu.memory_space<vmem>>, vector<1x11x11x128xf32>
        %185 = vector.shape_cast %184 : vector<1x11x11x128xf32> to vector<11x11x128xf32>
        %186 = vector.broadcast %180 : f32 to vector<11x11x128xf32>
        %187 = arith.mulf %185, %186 : vector<11x11x128xf32>
        %188 = arith.addf %174, %187 : vector<11x11x128xf32>
        %c9_i32_107 = arith.constant 9 : i32
        %189 = arith.muli %arg15, %c9_i32_107 : i32
        %c6_i32_108 = arith.constant 6 : i32
        %190 = arith.addi %189, %c6_i32_108 : i32
        %c2_i32_109 = arith.constant 2 : i32
        %191 = arith.addi %190, %c2_i32_109 : i32
        %192 = arith.index_cast %arg14 : i32 to index
        %193 = arith.index_cast %191 : i32 to index
        %194 = memref.load %arg4[%192, %193] : memref<16x72xf32, #tpu.memory_space<smem>>
        %c3_i32_110 = arith.constant 3 : i32
        %195 = arith.muli %arg15, %c3_i32_110 : i32
        %c2_i32_111 = arith.constant 2 : i32
        %196 = arith.addi %195, %c2_i32_111 : i32
        %197 = arith.index_cast %196 : i32 to index
        %c2_112 = arith.constant 2 : index
        %c0_113 = arith.constant 0 : index
        %c0_114 = arith.constant 0 : index
        %198 = vector.load %arg12[%197, %c2_112, %c0_113, %c0_114] : memref<24x13x11x128xf32, #tpu.memory_space<vmem>>, vector<1x11x11x128xf32>
        %199 = vector.shape_cast %198 : vector<1x11x11x128xf32> to vector<11x11x128xf32>
        %200 = vector.broadcast %194 : f32 to vector<11x11x128xf32>
        %201 = arith.mulf %199, %200 : vector<11x11x128xf32>
        %202 = arith.addf %188, %201 : vector<11x11x128xf32>
        scf.yield %202 : vector<11x11x128xf32>
      }
      %c8_i32_39 = arith.constant 8 : i32
      %60 = arith.index_cast %arg14 : i32 to index
      %61 = memref.load %arg5[%60] : memref<16xf32, #tpu.memory_space<smem>>
      %62 = vector.broadcast %61 : f32 to vector<11x11x128xf32>
      %63 = arith.addf %59, %62 : vector<11x11x128xf32>
      %cst_40 = arith.constant 0.000000e+00 : f32
      %64 = vector.broadcast %cst_40 : f32 to vector<11x11x128xf32>
      %65 = arith.maximumf %63, %64 : vector<11x11x128xf32>
      %66 = vector.extract_strided_slice %65 {offsets = [0, 0, 0], sizes = [10, 11, 128], strides = [1, 1, 1]} : vector<11x11x128xf32> to vector<10x11x128xf32>
      %67 = vector.shape_cast %66 : vector<10x11x128xf32> to vector<5x2x11x128xf32>
      %cst_41 = arith.constant dense<0xFF800000> : vector<5x11x128xf32>
      %68 = vector.multi_reduction <maximumf>, %67, %cst_41 [1] : vector<5x2x11x128xf32> to vector<5x11x128xf32>
      %69 = vector.extract_strided_slice %68 {offsets = [0, 0, 0], sizes = [5, 10, 128], strides = [1, 1, 1]} : vector<5x11x128xf32> to vector<5x10x128xf32>
      %70 = vector.extract_strided_slice %68 {offsets = [0, 1, 0], sizes = [5, 10, 128], strides = [1, 1, 1]} : vector<5x11x128xf32> to vector<5x10x128xf32>
      %71 = arith.maximumf %69, %70 : vector<5x10x128xf32>
      "tpu.trace_start"() <{level = 10 : i32, message = "byw,bwn->byn"}> : () -> ()
      %cst_42 = arith.constant dense<0.000000e+00> : vector<5x8x128xf32>
      %72 = tpu.matmul %25, %71, %cst_42 {dimension_numbers = #tpu.dot_dimension_numbers<[2], [1], [1], [2], [0, 0, 0, 1, 1, 2], [0], [0]>} : vector<5x8x10xf32>, vector<5x10x128xf32>, vector<5x8x128xf32> -> vector<5x8x128xf32>
      "tpu.trace_stop"() : () -> ()
      %73 = arith.index_cast %arg14 : i32 to index
      %c0_43 = arith.constant 0 : index
      %c0_44 = arith.constant 0 : index
      %c0_45 = arith.constant 0 : index
      %74 = vector.load %arg13[%73, %c0_43, %c0_44, %c0_45] : memref<16x5x8x128xf32, #tpu.memory_space<vmem>>, vector<1x5x8x128xf32>
      %75 = vector.shape_cast %74 : vector<1x5x8x128xf32> to vector<5x8x128xf32>
      %76 = vector.shape_cast %72 : vector<5x8x128xf32> to vector<1x5x8x128xf32>
      tpu.vector_store %arg13[%73, %c0_43, %c0_44, %c0_45], %76 {strides = array<i32>} : memref<16x5x8x128xf32, #tpu.memory_space<vmem>>, vector<1x5x8x128xf32>,
    }
    %c16_i32_16 = arith.constant 16 : i32
    %c0_17 = arith.constant 0 : index
    %c0_18 = arith.constant 0 : index
    %c0_19 = arith.constant 0 : index
    %c0_20 = arith.constant 0 : index
    %41 = vector.load %arg13[%c0_17, %c0_18, %c0_19, %c0_20] : memref<16x5x8x128xf32, #tpu.memory_space<vmem>>, vector<16x5x8x128xf32>
    %42 = vector.shape_cast %41 : vector<16x5x8x128xf32> to vector<80x8x128xf32>
    %c0_21 = arith.constant 0 : index
    %c0_22 = arith.constant 0 : index
    %c0_23 = arith.constant 0 : index
    %43 = vector.load %arg6[%c0_21, %c0_22, %c0_23] : memref<80x32x8xf32, #tpu.memory_space<vmem>>, vector<80x32x8xf32>
    "tpu.trace_start"() <{level = 10 : i32, message = "bow,bwn->bon"}> : () -> ()
    %cst = arith.constant dense<0.000000e+00> : vector<80x32x128xf32>
    %44 = tpu.matmul %43, %42, %cst {dimension_numbers = #tpu.dot_dimension_numbers<[2], [1], [1], [2], [0, 0, 0, 1, 1, 2], [0], [0]>} : vector<80x32x8xf32>, vector<80x8x128xf32>, vector<80x32x128xf32> -> vector<80x32x128xf32>
    "tpu.trace_stop"() : () -> ()
    %cst_24 = arith.constant dense<0.000000e+00> : vector<32x128xf32>
    %45 = vector.multi_reduction <add>, %44, %cst_24 [0] : vector<80x32x128xf32> to vector<32x128xf32>
    %c0_25 = arith.constant 0 : index
    %c0_26 = arith.constant 0 : index
    %46 = vector.load %arg7[%c0_25, %c0_26] : memref<32x1xf32, #tpu.memory_space<vmem>>, vector<32x1xf32>
    %47 = vector.broadcast %46 : vector<32x1xf32> to vector<32x128xf32>
    %48 = arith.addf %45, %47 : vector<32x128xf32>
    %cst_27 = arith.constant 0.000000e+00 : f32
    %49 = vector.broadcast %cst_27 : f32 to vector<32x128xf32>
    %50 = arith.maximumf %48, %49 : vector<32x128xf32>
    %c0_28 = arith.constant 0 : index
    %c0_29 = arith.constant 0 : index
    %51 = vector.load %arg8[%c0_28, %c0_29] : memref<10x32xf32, #tpu.memory_space<vmem>>, vector<10x32xf32>
    %cst_30 = arith.constant dense<0.000000e+00> : vector<10x128xf32>
    %52 = tpu.matmul %51, %50, %cst_30 {dimension_numbers = #tpu.dot_dimension_numbers<[1], [0], [0], [1], [0, 0, 1, 1], [], []>} : vector<10x32xf32>, vector<32x128xf32>, vector<10x128xf32> -> vector<10x128xf32>
    %c0_31 = arith.constant 0 : index
    %c0_32 = arith.constant 0 : index
    %53 = vector.load %arg9[%c0_31, %c0_32] : memref<10x1xf32, #tpu.memory_space<vmem>>, vector<10x1xf32>
    %54 = vector.broadcast %53 : vector<10x1xf32> to vector<10x128xf32>
    %55 = arith.addf %52, %54 : vector<10x128xf32>
    %c0_33 = arith.constant 0 : index
    %c0_34 = arith.constant 0 : index
    %56 = vector.load %arg10[%c0_33, %c0_34] : memref<10x128xf32, #tpu.memory_space<vmem>>, vector<10x128xf32>
    tpu.vector_store %arg10[%c0_33, %c0_34], %55 {strides = array<i32>} : memref<10x128xf32, #tpu.memory_space<vmem>>, vector<10x128xf32>,
    return
  }
  func.func @transform_0(%arg0: i32) -> (i32, i32, i32) {
    %c0_i32 = arith.constant 0 : i32
    %c0_i32_0 = arith.constant 0 : i32
    %c0_i32_1 = arith.constant 0 : i32
    return %c0_i32, %c0_i32_0, %arg0 : i32, i32, i32
  }
  func.func @transform_1(%arg0: i32) -> (i32, i32) {
    %c0_i32 = arith.constant 0 : i32
    %c0_i32_0 = arith.constant 0 : i32
    %c0_i32_1 = arith.constant 0 : i32
    return %c0_i32, %c0_i32_0 : i32, i32
  }
  func.func @transform_2(%arg0: i32) -> i32 {
    %c0_i32 = arith.constant 0 : i32
    %c0_i32_0 = arith.constant 0 : i32
    return %c0_i32 : i32
  }
  func.func @transform_3(%arg0: i32) -> (i32, i32) {
    %c0_i32 = arith.constant 0 : i32
    %c0_i32_0 = arith.constant 0 : i32
    %c0_i32_1 = arith.constant 0 : i32
    return %c0_i32, %c0_i32_0 : i32, i32
  }
  func.func @transform_4(%arg0: i32) -> i32 {
    %c0_i32 = arith.constant 0 : i32
    %c0_i32_0 = arith.constant 0 : i32
    return %c0_i32 : i32
  }
  func.func @transform_5(%arg0: i32) -> (i32, i32, i32) {
    %c0_i32 = arith.constant 0 : i32
    %c0_i32_0 = arith.constant 0 : i32
    %c0_i32_1 = arith.constant 0 : i32
    %c0_i32_2 = arith.constant 0 : i32
    return %c0_i32, %c0_i32_0, %c0_i32_1 : i32, i32, i32
  }
  func.func @transform_6(%arg0: i32) -> (i32, i32) {
    %c0_i32 = arith.constant 0 : i32
    %c0_i32_0 = arith.constant 0 : i32
    %c0_i32_1 = arith.constant 0 : i32
    return %c0_i32, %c0_i32_0 : i32, i32
  }
  func.func @transform_7(%arg0: i32) -> (i32, i32) {
    %c0_i32 = arith.constant 0 : i32
    %c0_i32_0 = arith.constant 0 : i32
    %c0_i32_1 = arith.constant 0 : i32
    return %c0_i32, %c0_i32_0 : i32, i32
  }
  func.func @transform_8(%arg0: i32) -> (i32, i32) {
    %c0_i32 = arith.constant 0 : i32
    %c0_i32_0 = arith.constant 0 : i32
    %c0_i32_1 = arith.constant 0 : i32
    return %c0_i32, %c0_i32_0 : i32, i32
  }
  func.func @transform_9(%arg0: i32) -> (i32, i32) {
    %c0_i32 = arith.constant 0 : i32
    %c0_i32_0 = arith.constant 0 : i32
    return %c0_i32, %arg0 : i32, i32
  }
}

</mosaic_0001>

<bundles_post_ra>
// kernel: net_forward.1
= control target key start
LH: loop header
LB: loop body
LE: loop exit
PB: predicated region body
PF: predicated region fallthrough
CT: control target
= control target key end

     0   :  { %14 = vsyncpa [#allocation6], 0  ;;  %s23092_s0 = inlined_call_operand.vmem [shape: f32[28,28,128], index: 0, kind: input, shape index: {}]   ;;  %s23093_s1 = inlined_call_operand.vmem [shape: f32[8,9], index: 1, kind: input, shape index: {}]   ;;  %s23094_s2 = inlined_call_operand.vmem [shape: f32[8], index: 2, kind: input, shape index: {}]   ;;  %s23095_s3 = inlined_call_operand.vmem [shape: f32[16,72], index: 3, kind: input, shape index: {}]   ;;  %s23096_s4 = inlined_call_operand.vmem [shape: f32[16], index: 4, kind: input, shape index: {}]   ;;  %s23097_s5 = inlined_call_operand.vmem [shape: f32[80,32,8], index: 5, kind: input, shape index: {}]   ;;  %s23098_s6 = inlined_call_operand.vmem [shape: f32[32,1], index: 6, kind: input, shape index: {}]   ;;  %s23099_s7 = inlined_call_operand.vmem [shape: f32[10,32], index: 7, kind: input, shape index: {}]   ;;  %s23100_s8 = inlined_call_operand.vmem [shape: f32[10,1], index: 8, kind: input, shape index: {}]   ;;  %s23101_s9 = inlined_call_operand.vmem [shape: f32[10,128], index: 9, kind: output, shape index: {}]  }
   0x1   :  { %15 = vsyncpa [#allocation8], 0  ;;  %s35_s11 = sshll.u32 %s23094_s2, 4  ;;  %s36_s11 = int_to_ptr.vmem [resolvable:$true] %s35_s11 }
   0x2   :  { %16 = vsyncpa [#allocation11], 0  ;;  %s25_s14 = sshll.u32 %s23093_s1, 4  ;;  %s17507_s15 = scalar_lea.vmem %s36_s11, 16  ;;  %s26_s14 = int_to_ptr.vmem [resolvable:$true] %s25_s14 }
   0x3   :  { %p17508_p0 = scmp.ne.s32.totalorder %s36_s11, %s17507_s15  ;;  %p17512_p1 = scmp.lt.s32.totalorder %s36_s11, %s36_s11 }
   0x4   :  { %p17513_p2 = scmp.lt.s32.totalorder %s17507_s15, %s17507_s15 }
   0x6   :  { %p17514_p3 = por %p17513_p2, %p17512_p1 }
   0x8   :  { %p17515_p4 = pnand %p17514_p3, %p17508_p0 }
   0xa   :  { %17518 = shalt.err (!%p17515_p4)
}
   0xb   :  { %s17745_s16 = smov [#allocation7]   ;;  %s17519_s17 = scalar_lea.vmem %s26_s14, 128 }
   0xc   :  { %38 = dma.vmem_to_smem %s36_s11, 16, %s17745_s16, [#allocation8]  }
   0xd   :  { %p17520_p5 = scmp.ne.s32.totalorder %s26_s14, %s17519_s17  ;;  %p17524_p6 = scmp.lt.s32.totalorder %s26_s14, %s26_s14 }
   0xe   :  { %p17525_p7 = scmp.lt.s32.totalorder %s17519_s17, %s17519_s17 }
  0x10   :  { %p17526_p8 = por %p17525_p7, %p17524_p6 }
  0x12   :  { %p17527_p9 = pnand %p17526_p8, %p17520_p5 }
  0x14   :  { %17530 = shalt.err (!%p17527_p9)
}
  0x15   :  { %s17746_s2 = smov [#allocation5]   ;;  %s44_s19 = sshll.u32 %s23095_s3, 4  ;;  %s45_s19 = int_to_ptr.vmem [resolvable:$true] %s44_s19 }
  0x16   :  { %28 = dma.vmem_to_smem %s26_s14, 128, %s17746_s2, [#allocation6]  }
  0x17   :  { %s57_s22 = sshll.u32 %s23096_s4, 4  ;;  %s17531_s23 = scalar_lea.vmem %s45_s19, 256  ;;  %s58_s22 = int_to_ptr.vmem [resolvable:$true] %s57_s22 }
  0x18   :  { %p17532_p10 = scmp.ne.s32.totalorder %s45_s19, %s17531_s23  ;;  %p17536_p11 = scmp.lt.s32.totalorder %s45_s19, %s45_s19 }
  0x19   :  { %p17537_p12 = scmp.lt.s32.totalorder %s17531_s23, %s17531_s23 }
  0x1b   :  { %p17538_p13 = por %p17537_p12, %p17536_p11 }
  0x1d   :  { %p17539_p0 = pnand %p17538_p13, %p17532_p10 }
  0x1f   :  { %17542 = shalt.err (!%p17539_p0)
}
  0x20   :  { %s17747_s24 = smov [#allocation9]   ;;  %s17748_s25 = smov 128  }
  0x21   :  { %s17749_s26 = smov 8   ;;  %s17543_s27 = scalar_lea.vmem %s58_s22, 16 }
  0x22   :  { %50 = dma.vmem_to_smem %s45_s19, 256, %s17747_s24, [#allocation8], %s17748_s25, %s17748_s25, %s17749_s26  }
  0x23   :  { %p17544_p1 = scmp.ne.s32.totalorder %s58_s22, %s17543_s27  ;;  %p17548_p2 = scmp.lt.s32.totalorder %s58_s22, %s58_s22 }
  0x24   :  { %p17549_p3 = scmp.lt.s32.totalorder %s17543_s27, %s17543_s27 }
  0x26   :  { %p17550_p4 = por %p17549_p3, %p17548_p2 }
  0x28   :  { %p17551_p5 = pnand %p17550_p4, %p17544_p1 }
  0x2a   :  { %17554 = shalt.err (!%p17551_p5)
}
  0x2b   :  { %s17750_s3 = smov [#allocation10]  }
  0x2c   :  { %60 = dma.vmem_to_smem %s58_s22, 16, %s17750_s3, [#allocation11]  }
  0x2d   :  { %17647 = dma.done.wait [#allocation6], 128  }
  0x2e   :  { %17648 = vsyncadd [#allocation6], 4294967168 }
  0x2f   :  { %17649 = dma.done.wait [#allocation8], 272  }
  0x30   :  { %17650 = vsyncadd [#allocation8], 4294967024 }
  0x31   :  { %17651 = dma.done.wait [#allocation11], 16  }
  0x32   :  { %17652 = vsyncadd [#allocation11], 4294967280 }
  0x33   :  { %81 = sfence }
  0x34   :  { %v82_v0 = vlaneseq  ;;  %v103_v1 = vld [vmem:[%s23092_s0] sm:$0xff]  ;;  %v104_v2 = vld [vmem:[%s23092_s0 + $0x8] sm:$0xff]  ;;  %v105_v3 = vld [vmem:[%s23092_s0 + $0x10] sm:$0xff]  ;;  %v17751_v28 = vmov 0.0   ;;  %s18187_s3 = smov 0  }
  0x35   :  { %215 = vst [vmem:[#allocation2] sm:$0xff] %v103_v1  ;;  %328 = vst [vmem:[#allocation2 + $0x37f] sm:$0xfe] %v103_v1  ;;  %v106_v4 = vld [vmem:[%s23092_s0 + $0x18] sm:$0xf]  ;;  %v107_v5 = vld [vmem:[%s23092_s0 + $0x20] sm:$0xff] }
  0x36   :  { %441 = vst [vmem:[#allocation2 + $0x6fe] sm:$0xfc] %v103_v1  ;;  %216 = vst [vmem:[#allocation2 + $0x8] sm:$0xff] %v104_v2  ;;  %v108_v6 = vld [vmem:[%s23092_s0 + $0x28] sm:$0xff]  ;;  %v17838_v7 = vshrl.u32 %v82_v0, 7  ;;  %v17840_v8 = vand.u32 127, %v82_v0 }
  0x37   :  { %329 = vst [vmem:[#allocation2 + $0x387] sm:$0xff] %v104_v2  ;;  %442 = vst [vmem:[#allocation2 + $0x706] sm:$0xff] %v104_v2  ;;  %v109_v9 = vld [vmem:[%s23092_s0 + $0x30] sm:$0xff]  ;;  %v110_v10 = vld [vmem:[%s23092_s0 + $0x38] sm:$0xf] }
  0x38   :  { %217 = vst [vmem:[#allocation2 + $0x10] sm:$0xff] %v105_v3  ;;  %330 = vst [vmem:[#allocation2 + $0x38f] sm:$0xff] %v105_v3  ;;  %v111_v11 = vld [vmem:[%s23092_s0 + $0x40] sm:$0xff]  ;;  %v112_v12 = vld [vmem:[%s23092_s0 + $0x48] sm:$0xff]  ;;  %v17861_v15 = vadd.s32 8, %v17838_v7  ;;  %v87_v16 = vmul.u32 2, %v17838_v7 }
  0x39   :  { %443 = vst [vmem:[#allocation2 + $0x70e] sm:$0xff] %v105_v3  ;;  %218 = vst [vmem:[#allocation2 + $0x18] sm:$0x3] %v106_v4  ;;  %v113_v13 = vld [vmem:[%s23092_s0 + $0x50] sm:$0xff]  ;;  %v114_v14 = vld [vmem:[%s23092_s0 + $0x58] sm:$0xf] }
  0x3a   :  { %331 = vst [vmem:[#allocation2 + $0x397] sm:$0x7] %v106_v4  ;;  %444 = vst [vmem:[#allocation2 + $0x716] sm:$0xf] %v106_v4  ;;  %vm99_vm0 = vcmp.lt.s32.totalorder %v17838_v7, 5  ;;  %v115_v17 = vld [vmem:[%s23092_s0 + $0x60] sm:$0xff]  ;;  %vm17885_vm1 = vcmp.eq.s32.totalorder %v17840_v8, %v87_v16 }
  0x3b   :  { %219 = vst [vmem:[#allocation2 + $0x20] sm:$0xff] %v107_v5  ;;  %332 = vst [vmem:[#allocation2 + $0x39f] sm:$0xfe] %v107_v5  ;;  %v116_v18 = vld [vmem:[%s23092_s0 + $0x68] sm:$0xff]  ;;  %v117_v19 = vld [vmem:[%s23092_s0 + $0x70] sm:$0xff]  ;;  %v88_v23 = vmul.u32 2, %v17861_v15 }
  0x3c   :  { %445 = vst [vmem:[#allocation2 + $0x71e] sm:$0xfc] %v107_v5  ;;  %220 = vst [vmem:[#allocation2 + $0x28] sm:$0xff] %v108_v6  ;;  %v118_v20 = vld [vmem:[%s23092_s0 + $0x78] sm:$0xf]  ;;  %v119_v21 = vld [vmem:[%s23092_s0 + $0x80] sm:$0xff] }
  0x3d   :  { %333 = vst [vmem:[#allocation2 + $0x3a7] sm:$0xff] %v108_v6  ;;  %446 = vst [vmem:[#allocation2 + $0x726] sm:$0xff] %v108_v6  ;;  %v120_v22 = vld [vmem:[%s23092_s0 + $0x88] sm:$0xff]  ;;  %vm92_vm2 = vcmp.lt.s32.totalorder %v17861_v15, 13  ;;  %v121_v25 = vld [vmem:[%s23092_s0 + $0x90] sm:$0xff]  ;;  %v17901_v29 = vsel %vm17885_vm1, 1.0, %v17751_v28  ;;  %vm90_vm4 = vcmp.eq.s32.totalorder %v17840_v8, %v88_v23 }
  0x3e   :  { %221 = vst [vmem:[#allocation2 + $0x30] sm:$0xff] %v109_v9  ;;  %334 = vst [vmem:[#allocation2 + $0x3af] sm:$0xff] %v109_v9  ;;  %v122_v26 = vld [vmem:[%s23092_s0 + $0x98] sm:$0xf]  ;;  %v123_v27 = vld [vmem:[%s23092_s0 + $0xa0] sm:$0xff] }
  0x3f   :  { %447 = vst [vmem:[#allocation2 + $0x72e] sm:$0xff] %v109_v9  ;;  %222 = vst [vmem:[#allocation2 + $0x38] sm:$0x3] %v110_v10  ;;  %v124_v30 = vld [vmem:[%s23092_s0 + $0xa8] sm:$0xff]  ;;  %v125_v31 = vld [vmem:[%s23092_s0 + $0xb0] sm:$0xff] }
  0x40   :  { %335 = vst [vmem:[#allocation2 + $0x3b7] sm:$0x7] %v110_v10  ;;  %448 = vst [vmem:[#allocation2 + $0x736] sm:$0xf] %v110_v10  ;;  %v126_v33 = vld [vmem:[%s23092_s0 + $0xb8] sm:$0xf] }
  0x41   :  { %223 = vst [vmem:[#allocation2 + $0x40] sm:$0xff] %v111_v11  ;;  %336 = vst [vmem:[#allocation2 + $0x3bf] sm:$0xfe] %v111_v11  ;;  %v127_v34 = vld [vmem:[%s23092_s0 + $0xc0] sm:$0xff]  ;;  %v128_v35 = vld [vmem:[%s23092_s0 + $0xc8] sm:$0xff] }
  0x42   :  { %449 = vst [vmem:[#allocation2 + $0x73e] sm:$0xfc] %v111_v11  ;;  %224 = vst [vmem:[#allocation2 + $0x48] sm:$0xff] %v112_v12  ;;  %v129_v36 = vld [vmem:[%s23092_s0 + $0xd0] sm:$0xff]  ;;  %v130_v37 = vld [vmem:[%s23092_s0 + $0xd8] sm:$0xf] }
  0x43   :  { %337 = vst [vmem:[#allocation2 + $0x3c7] sm:$0xff] %v112_v12  ;;  %450 = vst [vmem:[#allocation2 + $0x746] sm:$0xff] %v112_v12  ;;  %v131_v39 = vld [vmem:[%s23092_s0 + $0xe0] sm:$0xff]  ;;  %v132_v40 = vld [vmem:[%s23092_s0 + $0xe8] sm:$0xff] }
  0x44   :  { %225 = vst [vmem:[#allocation2 + $0x50] sm:$0xff] %v113_v13  ;;  %338 = vst [vmem:[#allocation2 + $0x3cf] sm:$0xff] %v113_v13  ;;  %v133_v41 = vld [vmem:[%s23092_s0 + $0xf0] sm:$0xff]  ;;  %v134_v42 = vld [vmem:[%s23092_s0 + $0xf8] sm:$0xf] }
  0x45   :  { %451 = vst [vmem:[#allocation2 + $0x74e] sm:$0xff] %v113_v13  ;;  %226 = vst [vmem:[#allocation2 + $0x58] sm:$0x3] %v114_v14  ;;  %v135_v43 = vld [vmem:[%s23092_s0 + $0x100] sm:$0xff]  ;;  %v136_v44 = vld [vmem:[%s23092_s0 + $0x108] sm:$0xff] }
  0x46   :  { %339 = vst [vmem:[#allocation2 + $0x3d7] sm:$0x7] %v114_v14  ;;  %452 = vst [vmem:[#allocation2 + $0x756] sm:$0xf] %v114_v14  ;;  %v137_v45 = vld [vmem:[%s23092_s0 + $0x110] sm:$0xff]  ;;  %v139_v47 = vld [vmem:[%s23092_s0 + $0x120] sm:$0xff] }
  0x47   :  { %227 = vst [vmem:[#allocation2 + $0x60] sm:$0xff] %v115_v17  ;;  %340 = vst [vmem:[#allocation2 + $0x3df] sm:$0xfe] %v115_v17  ;;  %v138_v46 = vld [vmem:[%s23092_s0 + $0x118] sm:$0xf]  ;;  %v140_v48 = vld [vmem:[%s23092_s0 + $0x128] sm:$0xff] }
  0x48   :  { %453 = vst [vmem:[#allocation2 + $0x75e] sm:$0xfc] %v115_v17  ;;  %228 = vst [vmem:[#allocation2 + $0x68] sm:$0xff] %v116_v18  ;;  %v141_v49 = vld [vmem:[%s23092_s0 + $0x130] sm:$0xff]  ;;  %v142_v50 = vld [vmem:[%s23092_s0 + $0x138] sm:$0xf] }
  0x49   :  { %341 = vst [vmem:[#allocation2 + $0x3e7] sm:$0xff] %v116_v18  ;;  %454 = vst [vmem:[#allocation2 + $0x766] sm:$0xff] %v116_v18  ;;  %v143_v51 = vld [vmem:[%s23092_s0 + $0x140] sm:$0xff]  ;;  %v144_v52 = vld [vmem:[%s23092_s0 + $0x148] sm:$0xff] }
  0x4a   :  { %229 = vst [vmem:[#allocation2 + $0x70] sm:$0xff] %v117_v19  ;;  %342 = vst [vmem:[#allocation2 + $0x3ef] sm:$0xff] %v117_v19  ;;  %v145_v53 = vld [vmem:[%s23092_s0 + $0x150] sm:$0xff]  ;;  %v146_v54 = vld [vmem:[%s23092_s0 + $0x158] sm:$0xf] }
  0x4b   :  { %455 = vst [vmem:[#allocation2 + $0x76e] sm:$0xff] %v117_v19  ;;  %230 = vst [vmem:[#allocation2 + $0x78] sm:$0x3] %v118_v20  ;;  %v147_v55 = vld [vmem:[%s23092_s0 + $0x160] sm:$0xff]  ;;  %v148_v56 = vld [vmem:[%s23092_s0 + $0x168] sm:$0xff] }
  0x4c   :  { %343 = vst [vmem:[#allocation2 + $0x3f7] sm:$0x7] %v118_v20  ;;  %456 = vst [vmem:[#allocation2 + $0x776] sm:$0xf] %v118_v20  ;;  %v149_v57 = vld [vmem:[%s23092_s0 + $0x170] sm:$0xff]  ;;  %v151_v59 = vld [vmem:[%s23092_s0 + $0x180] sm:$0xff] }
  0x4d   :  { %231 = vst [vmem:[#allocation2 + $0x80] sm:$0xff] %v119_v21  ;;  %344 = vst [vmem:[#allocation2 + $0x3ff] sm:$0xfe] %v119_v21  ;;  %v150_v58 = vld [vmem:[%s23092_s0 + $0x178] sm:$0xf]  ;;  %v152_v60 = vld [vmem:[%s23092_s0 + $0x188] sm:$0xff] }
  0x4e   :  { %457 = vst [vmem:[#allocation2 + $0x77e] sm:$0xfc] %v119_v21  ;;  %232 = vst [vmem:[#allocation2 + $0x88] sm:$0xff] %v120_v22  ;;  %v153_v61 = vld [vmem:[%s23092_s0 + $0x190] sm:$0xff]  ;;  %v154_v62 = vld [vmem:[%s23092_s0 + $0x198] sm:$0xf] }
  0x4f   :  { %345 = vst [vmem:[#allocation2 + $0x407] sm:$0xff] %v120_v22  ;;  %458 = vst [vmem:[#allocation2 + $0x786] sm:$0xff] %v120_v22  ;;  %v155_v63 = vld [vmem:[%s23092_s0 + $0x1a0] sm:$0xff]  ;;  %v156_v0 = vld [vmem:[%s23092_s0 + $0x1a8] sm:$0xff] }
  0x50   :  { %23176 = vst [vmem:[#allocation15_spill] sm:$0xff] %v17901_v29  ;;  %vm100_vm3 = vmand %vm17885_vm1, %vm99_vm0  ;;  %v157_v1 = vld [vmem:[%s23092_s0 + $0x1b0] sm:$0xff]  ;;  %v158_v2 = vld [vmem:[%s23092_s0 + $0x1b8] sm:$0xf] }
  0x51   :  { %233 = vst [vmem:[#allocation2 + $0x90] sm:$0xff] %v121_v25  ;;  %346 = vst [vmem:[#allocation2 + $0x40f] sm:$0xff] %v121_v25  ;;  %v17914_v32 = vsel %vm100_vm3, 1.0, %v17751_v28  ;;  %v159_v3 = vld [vmem:[%s23092_s0 + $0x1c0] sm:$0xff]  ;;  %v160_v4 = vld [vmem:[%s23092_s0 + $0x1c8] sm:$0xff] }
  0x52   :  { %459 = vst [vmem:[#allocation2 + $0x78e] sm:$0xff] %v121_v25  ;;  %234 = vst [vmem:[#allocation2 + $0x98] sm:$0x3] %v122_v26  ;;  %v161_v5 = vld [vmem:[%s23092_s0 + $0x1d0] sm:$0xff]  ;;  %v162_v6 = vld [vmem:[%s23092_s0 + $0x1d8] sm:$0xf] }
  0x53   :  { %347 = vst [vmem:[#allocation2 + $0x417] sm:$0x7] %v122_v26  ;;  %460 = vst [vmem:[#allocation2 + $0x796] sm:$0xf] %v122_v26  ;;  %v163_v7 = vld [vmem:[%s23092_s0 + $0x1e0] sm:$0xff]  ;;  %v164_v8 = vld [vmem:[%s23092_s0 + $0x1e8] sm:$0xff] }
  0x54   :  { %235 = vst [vmem:[#allocation2 + $0xa0] sm:$0xff] %v123_v27  ;;  %348 = vst [vmem:[#allocation2 + $0x41f] sm:$0xfe] %v123_v27  ;;  %v165_v9 = vld [vmem:[%s23092_s0 + $0x1f0] sm:$0xff]  ;;  %v166_v10 = vld [vmem:[%s23092_s0 + $0x1f8] sm:$0xf] }
  0x55   :  { %461 = vst [vmem:[#allocation2 + $0x79e] sm:$0xfc] %v123_v27  ;;  %23177 = vst [vmem:[#allocation16_spill] sm:$0xff] %v17914_v32  ;;  %v167_v11 = vld [vmem:[%s23092_s0 + $0x200] sm:$0xff]  ;;  %v168_v12 = vld [vmem:[%s23092_s0 + $0x208] sm:$0xff] }
  0x56   :  { %236 = vst [vmem:[#allocation2 + $0xa8] sm:$0xff] %v124_v30  ;;  %349 = vst [vmem:[#allocation2 + $0x427] sm:$0xff] %v124_v30  ;;  %v169_v13 = vld [vmem:[%s23092_s0 + $0x210] sm:$0xff]  ;;  %v170_v14 = vld [vmem:[%s23092_s0 + $0x218] sm:$0xf] }
  0x57   :  { %462 = vst [vmem:[#allocation2 + $0x7a6] sm:$0xff] %v124_v30  ;;  %237 = vst [vmem:[#allocation2 + $0xb0] sm:$0xff] %v125_v31  ;;  %v171_v15 = vld [vmem:[%s23092_s0 + $0x220] sm:$0xff]  ;;  %v172_v16 = vld [vmem:[%s23092_s0 + $0x228] sm:$0xff] }
  0x58   :  { %350 = vst [vmem:[#allocation2 + $0x42f] sm:$0xff] %v125_v31  ;;  %463 = vst [vmem:[#allocation2 + $0x7ae] sm:$0xff] %v125_v31  ;;  %v173_v17 = vld [vmem:[%s23092_s0 + $0x230] sm:$0xff]  ;;  %v174_v18 = vld [vmem:[%s23092_s0 + $0x238] sm:$0xf] }
  0x59   :  { %vm94_vm5 = vmand %vm90_vm4, %vm92_vm2  ;;  %238 = vst [vmem:[#allocation2 + $0xb8] sm:$0x3] %v126_v33  ;;  %v175_v19 = vld [vmem:[%s23092_s0 + $0x240] sm:$0xff]  ;;  %v176_v20 = vld [vmem:[%s23092_s0 + $0x248] sm:$0xff] }
  0x5a   :  { %351 = vst [vmem:[#allocation2 + $0x437] sm:$0x7] %v126_v33  ;;  %464 = vst [vmem:[#allocation2 + $0x7b6] sm:$0xf] %v126_v33  ;;  %v17933_v38 = vsel %vm94_vm5, 1.0, %v17751_v28  ;;  %v177_v21 = vld [vmem:[%s23092_s0 + $0x250] sm:$0xff] }
  0x5b   :  { %239 = vst [vmem:[#allocation2 + $0xc0] sm:$0xff] %v127_v34  ;;  %352 = vst [vmem:[#allocation2 + $0x43f] sm:$0xfe] %v127_v34  ;;  %v178_v22 = vld [vmem:[%s23092_s0 + $0x258] sm:$0xf]  ;;  %v179_v23 = vld [vmem:[%s23092_s0 + $0x260] sm:$0xff] }
  0x5c   :  { %465 = vst [vmem:[#allocation2 + $0x7be] sm:$0xfc] %v127_v34  ;;  %240 = vst [vmem:[#allocation2 + $0xc8] sm:$0xff] %v128_v35  ;;  %v180_v24 = vld [vmem:[%s23092_s0 + $0x268] sm:$0xff]  ;;  %v181_v25 = vld [vmem:[%s23092_s0 + $0x270] sm:$0xff] }
  0x5d   :  { %353 = vst [vmem:[#allocation2 + $0x447] sm:$0xff] %v128_v35  ;;  %466 = vst [vmem:[#allocation2 + $0x7c6] sm:$0xff] %v128_v35  ;;  %v182_v26 = vld [vmem:[%s23092_s0 + $0x278] sm:$0xf]  ;;  %v183_v27 = vld [vmem:[%s23092_s0 + $0x280] sm:$0xff] }
  0x5e   :  { %23178 = vst [vmem:[#allocation17_spill] sm:$0xff] %v17933_v38  ;;  %241 = vst [vmem:[#allocation2 + $0xd0] sm:$0xff] %v129_v36  ;;  %v184_v28 = vld [vmem:[%s23092_s0 + $0x288] sm:$0xff]  ;;  %v185_v30 = vld [vmem:[%s23092_s0 + $0x290] sm:$0xff] }
  0x5f   :  { %354 = vst [vmem:[#allocation2 + $0x44f] sm:$0xff] %v129_v36  ;;  %467 = vst [vmem:[#allocation2 + $0x7ce] sm:$0xff] %v129_v36  ;;  %v186_v31 = vld [vmem:[%s23092_s0 + $0x298] sm:$0xf]  ;;  %v187_v33 = vld [vmem:[%s23092_s0 + $0x2a0] sm:$0xff] }
  0x60   :  { %242 = vst [vmem:[#allocation2 + $0xd8] sm:$0x3] %v130_v37  ;;  %355 = vst [vmem:[#allocation2 + $0x457] sm:$0x7] %v130_v37  ;;  %v188_v34 = vld [vmem:[%s23092_s0 + $0x2a8] sm:$0xff]  ;;  %v189_v35 = vld [vmem:[%s23092_s0 + $0x2b0] sm:$0xff] }
  0x61   :  { %468 = vst [vmem:[#allocation2 + $0x7d6] sm:$0xf] %v130_v37  ;;  %243 = vst [vmem:[#allocation2 + $0xe0] sm:$0xff] %v131_v39  ;;  %v190_v36 = vld [vmem:[%s23092_s0 + $0x2b8] sm:$0xf]  ;;  %v191_v37 = vld [vmem:[%s23092_s0 + $0x2c0] sm:$0xff] }
  0x62   :  { %356 = vst [vmem:[#allocation2 + $0x45f] sm:$0xfe] %v131_v39  ;;  %469 = vst [vmem:[#allocation2 + $0x7de] sm:$0xfc] %v131_v39  ;;  %v192_v39 = vld [vmem:[%s23092_s0 + $0x2c8] sm:$0xff] }
  0x63   :  { %244 = vst [vmem:[#allocation2 + $0xe8] sm:$0xff] %v132_v40  ;;  %357 = vst [vmem:[#allocation2 + $0x467] sm:$0xff] %v132_v40 }
  0x64   :  { %470 = vst [vmem:[#allocation2 + $0x7e6] sm:$0xff] %v132_v40  ;;  %245 = vst [vmem:[#allocation2 + $0xf0] sm:$0xff] %v133_v41  ;;  %v193_v40 = vld [vmem:[%s23092_s0 + $0x2d0] sm:$0xff] }
  0x65   :  { %358 = vst [vmem:[#allocation2 + $0x46f] sm:$0xff] %v133_v41  ;;  %471 = vst [vmem:[#allocation2 + $0x7ee] sm:$0xff] %v133_v41  ;;  %v194_v41 = vld [vmem:[%s23092_s0 + $0x2d8] sm:$0xf] }
  0x66   :  { %246 = vst [vmem:[#allocation2 + $0xf8] sm:$0x3] %v134_v42  ;;  %359 = vst [vmem:[#allocation2 + $0x477] sm:$0x7] %v134_v42 }
  0x67   :  { %472 = vst [vmem:[#allocation2 + $0x7f6] sm:$0xf] %v134_v42  ;;  %247 = vst [vmem:[#allocation2 + $0x100] sm:$0xff] %v135_v43  ;;  %v195_v42 = vld [vmem:[%s23092_s0 + $0x2e0] sm:$0xff] }
  0x68   :  { %360 = vst [vmem:[#allocation2 + $0x47f] sm:$0xfe] %v135_v43  ;;  %473 = vst [vmem:[#allocation2 + $0x7fe] sm:$0xfc] %v135_v43  ;;  %v196_v43 = vld [vmem:[%s23092_s0 + $0x2e8] sm:$0xff] }
  0x69   :  { %248 = vst [vmem:[#allocation2 + $0x108] sm:$0xff] %v136_v44  ;;  %361 = vst [vmem:[#allocation2 + $0x487] sm:$0xff] %v136_v44 }
  0x6a   :  { %474 = vst [vmem:[#allocation2 + $0x806] sm:$0xff] %v136_v44  ;;  %249 = vst [vmem:[#allocation2 + $0x110] sm:$0xff] %v137_v45  ;;  %v197_v44 = vld [vmem:[%s23092_s0 + $0x2f0] sm:$0xff] }
  0x6b   :  { %362 = vst [vmem:[#allocation2 + $0x48f] sm:$0xff] %v137_v45  ;;  %475 = vst [vmem:[#allocation2 + $0x80e] sm:$0xff] %v137_v45  ;;  %v198_v45 = vld [vmem:[%s23092_s0 + $0x2f8] sm:$0xf] }
  0x6c   :  { %250 = vst [vmem:[#allocation2 + $0x118] sm:$0x3] %v138_v46  ;;  %363 = vst [vmem:[#allocation2 + $0x497] sm:$0x7] %v138_v46 }
  0x6d   :  { %476 = vst [vmem:[#allocation2 + $0x816] sm:$0xf] %v138_v46  ;;  %251 = vst [vmem:[#allocation2 + $0x120] sm:$0xff] %v139_v47  ;;  %v199_v46 = vld [vmem:[%s23092_s0 + $0x300] sm:$0xff] }
  0x6e   :  { %364 = vst [vmem:[#allocation2 + $0x49f] sm:$0xfe] %v139_v47  ;;  %477 = vst [vmem:[#allocation2 + $0x81e] sm:$0xfc] %v139_v47  ;;  %v200_v47 = vld [vmem:[%s23092_s0 + $0x308] sm:$0xff] }
  0x6f   :  { %252 = vst [vmem:[#allocation2 + $0x128] sm:$0xff] %v140_v48  ;;  %365 = vst [vmem:[#allocation2 + $0x4a7] sm:$0xff] %v140_v48 }
  0x70   :  { %478 = vst [vmem:[#allocation2 + $0x826] sm:$0xff] %v140_v48  ;;  %253 = vst [vmem:[#allocation2 + $0x130] sm:$0xff] %v141_v49  ;;  %v201_v48 = vld [vmem:[%s23092_s0 + $0x310] sm:$0xff] }
  0x71   :  { %366 = vst [vmem:[#allocation2 + $0x4af] sm:$0xff] %v141_v49  ;;  %479 = vst [vmem:[#allocation2 + $0x82e] sm:$0xff] %v141_v49  ;;  %v202_v49 = vld [vmem:[%s23092_s0 + $0x318] sm:$0xf] }
  0x72   :  { %254 = vst [vmem:[#allocation2 + $0x138] sm:$0x3] %v142_v50  ;;  %367 = vst [vmem:[#allocation2 + $0x4b7] sm:$0x7] %v142_v50 }
  0x73   :  { %480 = vst [vmem:[#allocation2 + $0x836] sm:$0xf] %v142_v50  ;;  %255 = vst [vmem:[#allocation2 + $0x140] sm:$0xff] %v143_v51  ;;  %v203_v50 = vld [vmem:[%s23092_s0 + $0x320] sm:$0xff] }
  0x74   :  { %368 = vst [vmem:[#allocation2 + $0x4bf] sm:$0xfe] %v143_v51  ;;  %481 = vst [vmem:[#allocation2 + $0x83e] sm:$0xfc] %v143_v51  ;;  %v204_v51 = vld [vmem:[%s23092_s0 + $0x328] sm:$0xff] }
  0x75   :  { %256 = vst [vmem:[#allocation2 + $0x148] sm:$0xff] %v144_v52  ;;  %369 = vst [vmem:[#allocation2 + $0x4c7] sm:$0xff] %v144_v52 }
  0x76   :  { %482 = vst [vmem:[#allocation2 + $0x846] sm:$0xff] %v144_v52  ;;  %257 = vst [vmem:[#allocation2 + $0x150] sm:$0xff] %v145_v53  ;;  %v205_v52 = vld [vmem:[%s23092_s0 + $0x330] sm:$0xff] }
  0x77   :  { %370 = vst [vmem:[#allocation2 + $0x4cf] sm:$0xff] %v145_v53  ;;  %483 = vst [vmem:[#allocation2 + $0x84e] sm:$0xff] %v145_v53  ;;  %v206_v53 = vld [vmem:[%s23092_s0 + $0x338] sm:$0xf] }
  0x78   :  { %258 = vst [vmem:[#allocation2 + $0x158] sm:$0x3] %v146_v54  ;;  %371 = vst [vmem:[#allocation2 + $0x4d7] sm:$0x7] %v146_v54 }
  0x79   :  { %484 = vst [vmem:[#allocation2 + $0x856] sm:$0xf] %v146_v54  ;;  %259 = vst [vmem:[#allocation2 + $0x160] sm:$0xff] %v147_v55  ;;  %v207_v54 = vld [vmem:[%s23092_s0 + $0x340] sm:$0xff] }
  0x7a   :  { %372 = vst [vmem:[#allocation2 + $0x4df] sm:$0xfe] %v147_v55  ;;  %485 = vst [vmem:[#allocation2 + $0x85e] sm:$0xfc] %v147_v55  ;;  %v208_v55 = vld [vmem:[%s23092_s0 + $0x348] sm:$0xff] }
  0x7b   :  { %260 = vst [vmem:[#allocation2 + $0x168] sm:$0xff] %v148_v56  ;;  %373 = vst [vmem:[#allocation2 + $0x4e7] sm:$0xff] %v148_v56 }
  0x7c   :  { %486 = vst [vmem:[#allocation2 + $0x866] sm:$0xff] %v148_v56  ;;  %261 = vst [vmem:[#allocation2 + $0x170] sm:$0xff] %v149_v57  ;;  %v209_v56 = vld [vmem:[%s23092_s0 + $0x350] sm:$0xff] }
  0x7d   :  { %374 = vst [vmem:[#allocation2 + $0x4ef] sm:$0xff] %v149_v57  ;;  %487 = vst [vmem:[#allocation2 + $0x86e] sm:$0xff] %v149_v57  ;;  %v210_v57 = vld [vmem:[%s23092_s0 + $0x358] sm:$0xf] }
  0x7e   :  { %262 = vst [vmem:[#allocation2 + $0x178] sm:$0x3] %v150_v58  ;;  %375 = vst [vmem:[#allocation2 + $0x4f7] sm:$0x7] %v150_v58 }
  0x7f   :  { %488 = vst [vmem:[#allocation2 + $0x876] sm:$0xf] %v150_v58  ;;  %263 = vst [vmem:[#allocation2 + $0x180] sm:$0xff] %v151_v59  ;;  %v211_v58 = vld [vmem:[%s23092_s0 + $0x360] sm:$0xff] }
  0x80   :  { %376 = vst [vmem:[#allocation2 + $0x4ff] sm:$0xfe] %v151_v59  ;;  %489 = vst [vmem:[#allocation2 + $0x87e] sm:$0xfc] %v151_v59  ;;  %v212_v59 = vld [vmem:[%s23092_s0 + $0x368] sm:$0xff] }
  0x81   :  { %264 = vst [vmem:[#allocation2 + $0x188] sm:$0xff] %v152_v60  ;;  %377 = vst [vmem:[#allocation2 + $0x507] sm:$0xff] %v152_v60 }
  0x82   :  { %490 = vst [vmem:[#allocation2 + $0x886] sm:$0xff] %v152_v60  ;;  %265 = vst [vmem:[#allocation2 + $0x190] sm:$0xff] %v153_v61  ;;  %v213_v60 = vld [vmem:[%s23092_s0 + $0x370] sm:$0xff] }
  0x83   :  { %378 = vst [vmem:[#allocation2 + $0x50f] sm:$0xff] %v153_v61  ;;  %491 = vst [vmem:[#allocation2 + $0x88e] sm:$0xff] %v153_v61  ;;  %v214_v61 = vld [vmem:[%s23092_s0 + $0x378] sm:$0xf] }
  0x84   :  { %266 = vst [vmem:[#allocation2 + $0x198] sm:$0x3] %v154_v62  ;;  %379 = vst [vmem:[#allocation2 + $0x517] sm:$0x7] %v154_v62 }
  0x85   :  { %492 = vst [vmem:[#allocation2 + $0x896] sm:$0xf] %v154_v62  ;;  %267 = vst [vmem:[#allocation2 + $0x1a0] sm:$0xff] %v155_v63 }
  0x86   :  { %380 = vst [vmem:[#allocation2 + $0x51f] sm:$0xfe] %v155_v63  ;;  %493 = vst [vmem:[#allocation2 + $0x89e] sm:$0xfc] %v155_v63 }
  0x87   :  { %268 = vst [vmem:[#allocation2 + $0x1a8] sm:$0xff] %v156_v0  ;;  %381 = vst [vmem:[#allocation2 + $0x527] sm:$0xff] %v156_v0 }
  0x88   :  { %494 = vst [vmem:[#allocation2 + $0x8a6] sm:$0xff] %v156_v0  ;;  %269 = vst [vmem:[#allocation2 + $0x1b0] sm:$0xff] %v157_v1 }
  0x89   :  { %382 = vst [vmem:[#allocation2 + $0x52f] sm:$0xff] %v157_v1  ;;  %495 = vst [vmem:[#allocation2 + $0x8ae] sm:$0xff] %v157_v1 }
  0x8a   :  { %270 = vst [vmem:[#allocation2 + $0x1b8] sm:$0x3] %v158_v2  ;;  %383 = vst [vmem:[#allocation2 + $0x537] sm:$0x7] %v158_v2 }
  0x8b   :  { %496 = vst [vmem:[#allocation2 + $0x8b6] sm:$0xf] %v158_v2  ;;  %271 = vst [vmem:[#allocation2 + $0x1c0] sm:$0xff] %v159_v3 }
  0x8c   :  { %384 = vst [vmem:[#allocation2 + $0x53f] sm:$0xfe] %v159_v3  ;;  %497 = vst [vmem:[#allocation2 + $0x8be] sm:$0xfc] %v159_v3 }
  0x8d   :  { %272 = vst [vmem:[#allocation2 + $0x1c8] sm:$0xff] %v160_v4  ;;  %385 = vst [vmem:[#allocation2 + $0x547] sm:$0xff] %v160_v4 }
  0x8e   :  { %498 = vst [vmem:[#allocation2 + $0x8c6] sm:$0xff] %v160_v4  ;;  %273 = vst [vmem:[#allocation2 + $0x1d0] sm:$0xff] %v161_v5 }
  0x8f   :  { %386 = vst [vmem:[#allocation2 + $0x54f] sm:$0xff] %v161_v5  ;;  %499 = vst [vmem:[#allocation2 + $0x8ce] sm:$0xff] %v161_v5 }
  0x90   :  { %274 = vst [vmem:[#allocation2 + $0x1d8] sm:$0x3] %v162_v6  ;;  %387 = vst [vmem:[#allocation2 + $0x557] sm:$0x7] %v162_v6 }
  0x91   :  { %500 = vst [vmem:[#allocation2 + $0x8d6] sm:$0xf] %v162_v6  ;;  %275 = vst [vmem:[#allocation2 + $0x1e0] sm:$0xff] %v163_v7 }
  0x92   :  { %388 = vst [vmem:[#allocation2 + $0x55f] sm:$0xfe] %v163_v7  ;;  %501 = vst [vmem:[#allocation2 + $0x8de] sm:$0xfc] %v163_v7 }
  0x93   :  { %276 = vst [vmem:[#allocation2 + $0x1e8] sm:$0xff] %v164_v8  ;;  %389 = vst [vmem:[#allocation2 + $0x567] sm:$0xff] %v164_v8 }
  0x94   :  { %502 = vst [vmem:[#allocation2 + $0x8e6] sm:$0xff] %v164_v8  ;;  %277 = vst [vmem:[#allocation2 + $0x1f0] sm:$0xff] %v165_v9 }
  0x95   :  { %390 = vst [vmem:[#allocation2 + $0x56f] sm:$0xff] %v165_v9  ;;  %503 = vst [vmem:[#allocation2 + $0x8ee] sm:$0xff] %v165_v9 }
  0x96   :  { %278 = vst [vmem:[#allocation2 + $0x1f8] sm:$0x3] %v166_v10  ;;  %391 = vst [vmem:[#allocation2 + $0x577] sm:$0x7] %v166_v10 }
  0x97   :  { %504 = vst [vmem:[#allocation2 + $0x8f6] sm:$0xf] %v166_v10  ;;  %279 = vst [vmem:[#allocation2 + $0x200] sm:$0xff] %v167_v11 }
  0x98   :  { %392 = vst [vmem:[#allocation2 + $0x57f] sm:$0xfe] %v167_v11  ;;  %505 = vst [vmem:[#allocation2 + $0x8fe] sm:$0xfc] %v167_v11 }
  0x99   :  { %280 = vst [vmem:[#allocation2 + $0x208] sm:$0xff] %v168_v12  ;;  %393 = vst [vmem:[#allocation2 + $0x587] sm:$0xff] %v168_v12 }
  0x9a   :  { %506 = vst [vmem:[#allocation2 + $0x906] sm:$0xff] %v168_v12  ;;  %281 = vst [vmem:[#allocation2 + $0x210] sm:$0xff] %v169_v13 }
  0x9b   :  { %394 = vst [vmem:[#allocation2 + $0x58f] sm:$0xff] %v169_v13  ;;  %507 = vst [vmem:[#allocation2 + $0x90e] sm:$0xff] %v169_v13 }
  0x9c   :  { %282 = vst [vmem:[#allocation2 + $0x218] sm:$0x3] %v170_v14  ;;  %395 = vst [vmem:[#allocation2 + $0x597] sm:$0x7] %v170_v14 }
  0x9d   :  { %508 = vst [vmem:[#allocation2 + $0x916] sm:$0xf] %v170_v14  ;;  %283 = vst [vmem:[#allocation2 + $0x220] sm:$0xff] %v171_v15 }
  0x9e   :  { %396 = vst [vmem:[#allocation2 + $0x59f] sm:$0xfe] %v171_v15  ;;  %509 = vst [vmem:[#allocation2 + $0x91e] sm:$0xfc] %v171_v15 }
  0x9f   :  { %284 = vst [vmem:[#allocation2 + $0x228] sm:$0xff] %v172_v16  ;;  %397 = vst [vmem:[#allocation2 + $0x5a7] sm:$0xff] %v172_v16 }
  0xa0   :  { %510 = vst [vmem:[#allocation2 + $0x926] sm:$0xff] %v172_v16  ;;  %285 = vst [vmem:[#allocation2 + $0x230] sm:$0xff] %v173_v17 }
  0xa1   :  { %398 = vst [vmem:[#allocation2 + $0x5af] sm:$0xff] %v173_v17  ;;  %511 = vst [vmem:[#allocation2 + $0x92e] sm:$0xff] %v173_v17 }
  0xa2   :  { %286 = vst [vmem:[#allocation2 + $0x238] sm:$0x3] %v174_v18  ;;  %399 = vst [vmem:[#allocation2 + $0x5b7] sm:$0x7] %v174_v18 }
  0xa3   :  { %512 = vst [vmem:[#allocation2 + $0x936] sm:$0xf] %v174_v18  ;;  %287 = vst [vmem:[#allocation2 + $0x240] sm:$0xff] %v175_v19 }
  0xa4   :  { %400 = vst [vmem:[#allocation2 + $0x5bf] sm:$0xfe] %v175_v19  ;;  %513 = vst [vmem:[#allocation2 + $0x93e] sm:$0xfc] %v175_v19 }
  0xa5   :  { %288 = vst [vmem:[#allocation2 + $0x248] sm:$0xff] %v176_v20  ;;  %401 = vst [vmem:[#allocation2 + $0x5c7] sm:$0xff] %v176_v20 }
  0xa6   :  { %514 = vst [vmem:[#allocation2 + $0x946] sm:$0xff] %v176_v20  ;;  %289 = vst [vmem:[#allocation2 + $0x250] sm:$0xff] %v177_v21 }
  0xa7   :  { %402 = vst [vmem:[#allocation2 + $0x5cf] sm:$0xff] %v177_v21  ;;  %515 = vst [vmem:[#allocation2 + $0x94e] sm:$0xff] %v177_v21 }
  0xa8   :  { %290 = vst [vmem:[#allocation2 + $0x258] sm:$0x3] %v178_v22  ;;  %403 = vst [vmem:[#allocation2 + $0x5d7] sm:$0x7] %v178_v22 }
  0xa9   :  { %516 = vst [vmem:[#allocation2 + $0x956] sm:$0xf] %v178_v22  ;;  %291 = vst [vmem:[#allocation2 + $0x260] sm:$0xff] %v179_v23 }
  0xaa   :  { %404 = vst [vmem:[#allocation2 + $0x5df] sm:$0xfe] %v179_v23  ;;  %517 = vst [vmem:[#allocation2 + $0x95e] sm:$0xfc] %v179_v23 }
  0xab   :  { %292 = vst [vmem:[#allocation2 + $0x268] sm:$0xff] %v180_v24  ;;  %405 = vst [vmem:[#allocation2 + $0x5e7] sm:$0xff] %v180_v24 }
  0xac   :  { %518 = vst [vmem:[#allocation2 + $0x966] sm:$0xff] %v180_v24  ;;  %293 = vst [vmem:[#allocation2 + $0x270] sm:$0xff] %v181_v25 }
  0xad   :  { %406 = vst [vmem:[#allocation2 + $0x5ef] sm:$0xff] %v181_v25  ;;  %519 = vst [vmem:[#allocation2 + $0x96e] sm:$0xff] %v181_v25 }
  0xae   :  { %294 = vst [vmem:[#allocation2 + $0x278] sm:$0x3] %v182_v26  ;;  %407 = vst [vmem:[#allocation2 + $0x5f7] sm:$0x7] %v182_v26 }
  0xaf   :  { %520 = vst [vmem:[#allocation2 + $0x976] sm:$0xf] %v182_v26  ;;  %295 = vst [vmem:[#allocation2 + $0x280] sm:$0xff] %v183_v27 }
  0xb0   :  { %408 = vst [vmem:[#allocation2 + $0x5ff] sm:$0xfe] %v183_v27  ;;  %521 = vst [vmem:[#allocation2 + $0x97e] sm:$0xfc] %v183_v27 }
  0xb1   :  { %296 = vst [vmem:[#allocation2 + $0x288] sm:$0xff] %v184_v28  ;;  %409 = vst [vmem:[#allocation2 + $0x607] sm:$0xff] %v184_v28 }
  0xb2   :  { %522 = vst [vmem:[#allocation2 + $0x986] sm:$0xff] %v184_v28  ;;  %297 = vst [vmem:[#allocation2 + $0x290] sm:$0xff] %v185_v30 }
  0xb3   :  { %410 = vst [vmem:[#allocation2 + $0x60f] sm:$0xff] %v185_v30  ;;  %523 = vst [vmem:[#allocation2 + $0x98e] sm:$0xff] %v185_v30 }
  0xb4   :  { %298 = vst [vmem:[#allocation2 + $0x298] sm:$0x3] %v186_v31  ;;  %411 = vst [vmem:[#allocation2 + $0x617] sm:$0x7] %v186_v31 }
  0xb5   :  { %524 = vst [vmem:[#allocation2 + $0x996] sm:$0xf] %v186_v31  ;;  %299 = vst [vmem:[#allocation2 + $0x2a0] sm:$0xff] %v187_v33 }
  0xb6   :  { %412 = vst [vmem:[#allocation2 + $0x61f] sm:$0xfe] %v187_v33  ;;  %525 = vst [vmem:[#allocation2 + $0x99e] sm:$0xfc] %v187_v33 }
  0xb7   :  { %300 = vst [vmem:[#allocation2 + $0x2a8] sm:$0xff] %v188_v34  ;;  %413 = vst [vmem:[#allocation2 + $0x627] sm:$0xff] %v188_v34 }
  0xb8   :  { %526 = vst [vmem:[#allocation2 + $0x9a6] sm:$0xff] %v188_v34  ;;  %301 = vst [vmem:[#allocation2 + $0x2b0] sm:$0xff] %v189_v35 }
  0xb9   :  { %414 = vst [vmem:[#allocation2 + $0x62f] sm:$0xff] %v189_v35  ;;  %527 = vst [vmem:[#allocation2 + $0x9ae] sm:$0xff] %v189_v35 }
  0xba   :  { %302 = vst [vmem:[#allocation2 + $0x2b8] sm:$0x3] %v190_v36  ;;  %415 = vst [vmem:[#allocation2 + $0x637] sm:$0x7] %v190_v36 }
  0xbb   :  { %528 = vst [vmem:[#allocation2 + $0x9b6] sm:$0xf] %v190_v36  ;;  %303 = vst [vmem:[#allocation2 + $0x2c0] sm:$0xff] %v191_v37 }
  0xbc   :  { %416 = vst [vmem:[#allocation2 + $0x63f] sm:$0xfe] %v191_v37  ;;  %529 = vst [vmem:[#allocation2 + $0x9be] sm:$0xfc] %v191_v37 }
  0xbd   :  { %304 = vst [vmem:[#allocation2 + $0x2c8] sm:$0xff] %v192_v39  ;;  %417 = vst [vmem:[#allocation2 + $0x647] sm:$0xff] %v192_v39 }
  0xbe   :  { %530 = vst [vmem:[#allocation2 + $0x9c6] sm:$0xff] %v192_v39  ;;  %305 = vst [vmem:[#allocation2 + $0x2d0] sm:$0xff] %v193_v40 }
  0xbf   :  { %418 = vst [vmem:[#allocation2 + $0x64f] sm:$0xff] %v193_v40  ;;  %531 = vst [vmem:[#allocation2 + $0x9ce] sm:$0xff] %v193_v40 }
  0xc0   :  { %306 = vst [vmem:[#allocation2 + $0x2d8] sm:$0x3] %v194_v41  ;;  %419 = vst [vmem:[#allocation2 + $0x657] sm:$0x7] %v194_v41 }
  0xc1   :  { %532 = vst [vmem:[#allocation2 + $0x9d6] sm:$0xf] %v194_v41  ;;  %307 = vst [vmem:[#allocation2 + $0x2e0] sm:$0xff] %v195_v42 }
  0xc2   :  { %420 = vst [vmem:[#allocation2 + $0x65f] sm:$0xfe] %v195_v42  ;;  %533 = vst [vmem:[#allocation2 + $0x9de] sm:$0xfc] %v195_v42 }
  0xc3   :  { %308 = vst [vmem:[#allocation2 + $0x2e8] sm:$0xff] %v196_v43  ;;  %421 = vst [vmem:[#allocation2 + $0x667] sm:$0xff] %v196_v43 }
  0xc4   :  { %534 = vst [vmem:[#allocation2 + $0x9e6] sm:$0xff] %v196_v43  ;;  %309 = vst [vmem:[#allocation2 + $0x2f0] sm:$0xff] %v197_v44 }
  0xc5   :  { %422 = vst [vmem:[#allocation2 + $0x66f] sm:$0xff] %v197_v44  ;;  %535 = vst [vmem:[#allocation2 + $0x9ee] sm:$0xff] %v197_v44 }
  0xc6   :  { %310 = vst [vmem:[#allocation2 + $0x2f8] sm:$0x3] %v198_v45  ;;  %423 = vst [vmem:[#allocation2 + $0x677] sm:$0x7] %v198_v45 }
  0xc7   :  { %536 = vst [vmem:[#allocation2 + $0x9f6] sm:$0xf] %v198_v45  ;;  %311 = vst [vmem:[#allocation2 + $0x300] sm:$0xff] %v199_v46 }
  0xc8   :  { %424 = vst [vmem:[#allocation2 + $0x67f] sm:$0xfe] %v199_v46  ;;  %537 = vst [vmem:[#allocation2 + $0x9fe] sm:$0xfc] %v199_v46 }
  0xc9   :  { %312 = vst [vmem:[#allocation2 + $0x308] sm:$0xff] %v200_v47  ;;  %425 = vst [vmem:[#allocation2 + $0x687] sm:$0xff] %v200_v47 }
  0xca   :  { %538 = vst [vmem:[#allocation2 + $0xa06] sm:$0xff] %v200_v47  ;;  %313 = vst [vmem:[#allocation2 + $0x310] sm:$0xff] %v201_v48 }
  0xcb   :  { %426 = vst [vmem:[#allocation2 + $0x68f] sm:$0xff] %v201_v48  ;;  %539 = vst [vmem:[#allocation2 + $0xa0e] sm:$0xff] %v201_v48 }
  0xcc   :  { %314 = vst [vmem:[#allocation2 + $0x318] sm:$0x3] %v202_v49  ;;  %427 = vst [vmem:[#allocation2 + $0x697] sm:$0x7] %v202_v49 }
  0xcd   :  { %540 = vst [vmem:[#allocation2 + $0xa16] sm:$0xf] %v202_v49  ;;  %315 = vst [vmem:[#allocation2 + $0x320] sm:$0xff] %v203_v50 }
  0xce   :  { %428 = vst [vmem:[#allocation2 + $0x69f] sm:$0xfe] %v203_v50  ;;  %541 = vst [vmem:[#allocation2 + $0xa1e] sm:$0xfc] %v203_v50 }
  0xcf   :  { %316 = vst [vmem:[#allocation2 + $0x328] sm:$0xff] %v204_v51  ;;  %429 = vst [vmem:[#allocation2 + $0x6a7] sm:$0xff] %v204_v51 }
  0xd0   :  { %542 = vst [vmem:[#allocation2 + $0xa26] sm:$0xff] %v204_v51  ;;  %317 = vst [vmem:[#allocation2 + $0x330] sm:$0xff] %v205_v52 }
  0xd1   :  { %430 = vst [vmem:[#allocation2 + $0x6af] sm:$0xff] %v205_v52  ;;  %543 = vst [vmem:[#allocation2 + $0xa2e] sm:$0xff] %v205_v52 }
  0xd2   :  { %318 = vst [vmem:[#allocation2 + $0x338] sm:$0x3] %v206_v53  ;;  %431 = vst [vmem:[#allocation2 + $0x6b7] sm:$0x7] %v206_v53 }
  0xd3   :  { %544 = vst [vmem:[#allocation2 + $0xa36] sm:$0xf] %v206_v53  ;;  %319 = vst [vmem:[#allocation2 + $0x340] sm:$0xff] %v207_v54 }
  0xd4   :  { %432 = vst [vmem:[#allocation2 + $0x6bf] sm:$0xfe] %v207_v54  ;;  %545 = vst [vmem:[#allocation2 + $0xa3e] sm:$0xfc] %v207_v54 }
  0xd5   :  { %320 = vst [vmem:[#allocation2 + $0x348] sm:$0xff] %v208_v55  ;;  %433 = vst [vmem:[#allocation2 + $0x6c7] sm:$0xff] %v208_v55 }
  0xd6   :  { %546 = vst [vmem:[#allocation2 + $0xa46] sm:$0xff] %v208_v55  ;;  %321 = vst [vmem:[#allocation2 + $0x350] sm:$0xff] %v209_v56 }
  0xd7   :  { %434 = vst [vmem:[#allocation2 + $0x6cf] sm:$0xff] %v209_v56  ;;  %547 = vst [vmem:[#allocation2 + $0xa4e] sm:$0xff] %v209_v56 }
  0xd8   :  { %322 = vst [vmem:[#allocation2 + $0x358] sm:$0x3] %v210_v57  ;;  %435 = vst [vmem:[#allocation2 + $0x6d7] sm:$0x7] %v210_v57 }
  0xd9   :  { %548 = vst [vmem:[#allocation2 + $0xa56] sm:$0xf] %v210_v57  ;;  %323 = vst [vmem:[#allocation2 + $0x360] sm:$0xff] %v211_v58 }
  0xda   :  { %436 = vst [vmem:[#allocation2 + $0x6df] sm:$0xfe] %v211_v58  ;;  %549 = vst [vmem:[#allocation2 + $0xa5e] sm:$0xfc] %v211_v58 }
  0xdb   :  { %324 = vst [vmem:[#allocation2 + $0x368] sm:$0xff] %v212_v59  ;;  %437 = vst [vmem:[#allocation2 + $0x6e7] sm:$0xff] %v212_v59 }
  0xdc   :  { %550 = vst [vmem:[#allocation2 + $0xa66] sm:$0xff] %v212_v59  ;;  %325 = vst [vmem:[#allocation2 + $0x370] sm:$0xff] %v213_v60 }
  0xdd   :  { %438 = vst [vmem:[#allocation2 + $0x6ef] sm:$0xff] %v213_v60  ;;  %551 = vst [vmem:[#allocation2 + $0xa6e] sm:$0xff] %v213_v60 }
  0xde   :  { %326 = vst [vmem:[#allocation2 + $0x378] sm:$0x3] %v214_v61  ;;  %439 = vst [vmem:[#allocation2 + $0x6f7] sm:$0x7] %v214_v61 }
  0xdf   :  { %552 = vst [vmem:[#allocation2 + $0xa76] sm:$0xf] %v214_v61 }
  0xe0 LB: > { %v23179_v29 = vld [vmem:[#allocation15_spill] sm:$0xff]  ;;  %vm3833_vm6 = vcmask 203776   ;;  %s18193_s0 = sshll.u32 %s17655_s3, 7  ;;  %s3296_s4 = sld [smem:[#allocation7 + %s17655_s3]]  ;;  %v560_v63 = vld [vmem:[#allocation2 + $0x8] sm:$0xff]  ;;  %v561_v0 = vld [vmem:[#allocation2 + $0x10] sm:$0xff]  ;;  %s17655_s3 = sphi %s18187_s3, %s558_s3  }
  0xe1   : > { %16013 = vmatprep.mubr.msk.f32.mxu0 %vm3833_vm6, %v23179_v29  ;;  %16024 = vmatprep.mubr.msk.f32.mxu1 %vm3833_vm6, %v23179_v29  ;;  %s664_s28 = sld [smem:[#allocation5 + %s18193_s0]]  ;;  %s874_s29 = sadd.s32 1, %s18193_s0  ;;  %v559_v62 = vld [vmem:[#allocation2] sm:$0xff]  ;;  %v564_v2 = vld [vmem:[#allocation2 + $0x28] sm:$0xff]  ;;  %v565_v3 = vld [vmem:[#allocation2 + $0x30] sm:$0xff]  ;;  %vm3637_vm7 = vcmask 1046528  }
  0xe2   : > { %s875_s30 = sld [smem:[#allocation5 + %s874_s29]]  ;;  %s1189_s10 = sadd.s32 2, %s18193_s0  ;;  %v563_v1 = vld [vmem:[#allocation2 + $0x20] sm:$0xff]  ;;  %v771_v5 = vld [vmem:[#allocation2 + $0x388] sm:$0xff]  ;;  %v772_v7 = vld [vmem:[#allocation2 + $0x390] sm:$0xff]  ;;  %vm3509_vm8 = vcmask 1041408  }
  0xe3   : > { %s1190_s11 = sld [smem:[#allocation5 + %s1189_s10]]  ;;  %s1505_s12 = sadd.s32 3, %s18193_s0  ;;  %v770_v4 = vld [vmem:[#allocation2 + $0x380] sm:$0xff]  ;;  %v18209_v9 = vld [vmem:[#allocation2 + $0x3a8] sm:$0xff]  ;;  %v18221_v15 = vld [vmem:[#allocation2 + $0x3b0] sm:$0xff]  ;;  %vm3840_vm9 = vcmask 1040384  }
  0xe4   : > { %s1821_s13 = sadd.s32 4, %s18193_s0  ;;  %v18207_v8 = vld [vmem:[#allocation2 + $0x3a0] sm:$0xff]  ;;  %s18211_s14 = sld [smem:[#allocation5 + %s1505_s12]]  ;;  %v1086_v17 = vld [vmem:[#allocation2 + $0x708] sm:$0xff]  ;;  %v1087_v26 = vld [vmem:[#allocation2 + $0x710] sm:$0xff]  ;;  %vm17752_vm10 = vmmov 1  }
  0xe5   : > { %s18213_s15 = sld [smem:[#allocation5 + %s1821_s13]]  ;;  %v1085_v16 = vld [vmem:[#allocation2 + $0x700] sm:$0xff]  ;;  %s2137_s16 = sadd.s32 5, %s18193_s0  ;;  %v18242_v31 = vld [vmem:[#allocation2 + $0x728] sm:$0xff]  ;;  %v18244_v33 = vld [vmem:[#allocation2 + $0x730] sm:$0xff] }
  0xe6   : > { %v18215_v10 = vstv %s3296_s4  ;;  %v18234_v27 = vld [vmem:[#allocation2 + $0x720] sm:$0xff]  ;;  %s2453_s17 = sadd.s32 6, %s18193_s0  ;;  %s18251_s2 = sld [smem:[#allocation5 + %s2137_s16]]  ;;  %v18261_v50 = vld [vmem:[#allocation2 + $0x48] sm:$0xff]  ;;  %v18263_v51 = vld [vmem:[#allocation2 + $0x50] sm:$0xff] }
  0xe7   : > { %v18205_v6 = vstv %s664_s28  ;;  %s18253_s1 = sld [smem:[#allocation5 + %s2453_s17]]  ;;  %v18259_v49 = vld [vmem:[#allocation2 + $0x40] sm:$0xff]  ;;  %s2769_s18 = sadd.s32 7, %s18193_s0  ;;  %vm18514_vm11 = vmpackc.low %vm3840_vm9, %vm17752_vm10  ;;  %v23183_v38 = vld [vmem:[#allocation17_spill] sm:$0xff] }
  0xe8   : > { %v666_v11 = vmul.f32 %v18205_v6, %v559_v62  ;;  %v667_v12 = vmul.f32 %v18205_v6, %v560_v63  ;;  %v668_v13 = vmul.f32 %v18205_v6, %v561_v0  ;;  %v670_v14 = vmul.f32 %v18205_v6, %v563_v1  ;;  %v18280_v0 = vld [vmem:[#allocation2 + $0x3c0] sm:$0xff]  ;;  %s3085_s19 = sadd.s32 8, %s18193_s0  ;;  %s18302_s20 = sld [smem:[#allocation5 + %s2769_s18]]  ;;  %v1108_v32 = vld [vmem:[#allocation2 + $0x7b8] sm:$0x3] }
  0xe9   : > { %v671_v18 = vmul.f32 %v18205_v6, %v564_v2  ;;  %v672_v19 = vmul.f32 %v18205_v6, %v565_v3  ;;  %v18225_v20 = vstv %s875_s30  ;;  %v18227_v21 = vstv %s1190_s11  ;;  %s18304_s21 = sld [smem:[#allocation5 + %s3085_s19]]  ;;  %s14943_s22 = smul.u32 624, %s17655_s3 }
  0xea   : > { %v877_v22 = vmul.f32 %v18225_v20, %v770_v4  ;;  %v878_v23 = vmul.f32 %v18225_v20, %v771_v5  ;;  %v879_v24 = vmul.f32 %v18225_v20, %v772_v7  ;;  %v881_v25 = vmul.f32 %v18225_v20, %v18207_v8  ;;  %v18282_v4 = vld [vmem:[#allocation2 + $0x3c8] sm:$0xff]  ;;  %v18284_v5 = vld [vmem:[#allocation2 + $0x3d0] sm:$0xff]  ;;  %s558_s3 = sadd.s32 1, %s17655_s3  }
  0xeb   : > { %v882_v28 = vmul.f32 %v18225_v20, %v18209_v9  ;;  %v883_v30 = vmul.f32 %v18225_v20, %v18221_v15  ;;  %v1192_v34 = vmul.f32 %v18227_v21, %v1085_v16  ;;  %v1193_v35 = vmul.f32 %v18227_v21, %v1086_v17  ;;  %s20315_s23 = scalar_lea.vmem [#allocation3], %s14943_s22  ;;  %p555_p6 = scmp.ge.s32.totalorder %s558_s3, 8  }
  0xec   : > { %v981_v36 = vadd.f32 %v877_v22, %v666_v11  ;;  %v982_v37 = vadd.f32 %v878_v23, %v667_v12  ;;  %v983_v39 = vadd.f32 %v879_v24, %v668_v13  ;;  %v985_v40 = vadd.f32 %v881_v25, %v670_v14  ;;  %v18306_v23 = vld [vmem:[#allocation2 + $0x748] sm:$0xff]  ;;  %s20772_s24 = smov (%p555_p6), 0  }
  0xed   : > { %v986_v41 = vadd.f32 %v882_v28, %v671_v18  ;;  %v987_v42 = vadd.f32 %v883_v30, %v672_v19  ;;  %v1194_v43 = vmul.f32 %v18227_v21, %v1087_v26  ;;  %v1196_v44 = vmul.f32 %v18227_v21, %v18234_v27  ;;  %v18300_v19 = vld [vmem:[#allocation2 + $0x740] sm:$0xff] }
  0xee   : > { %v1197_v45 = vmul.f32 %v18227_v21, %v18242_v31  ;;  %v1198_v46 = vmul.f32 %v18227_v21, %v18244_v33  ;;  %v1296_v47 = vadd.f32 %v1192_v34, %v981_v36  ;;  %v1297_v48 = vadd.f32 %v1193_v35, %v982_v37 }
  0xef   : > { %v1298_v52 = vadd.f32 %v1194_v43, %v983_v39  ;;  %v1300_v53 = vadd.f32 %v1196_v44, %v985_v40  ;;  %v18266_v54 = vstv %s18211_s14  ;;  %v18269_v55 = vstv %s18213_s15 }
  0xf0   : > { %v1301_v56 = vadd.f32 %v1197_v45, %v986_v41  ;;  %v1302_v57 = vadd.f32 %v1198_v46, %v987_v42  ;;  %v1508_v58 = vmul.f32 %v18266_v54, %v563_v1  ;;  %v1509_v59 = vmul.f32 %v18266_v54, %v564_v2  ;;  %v18332_v45 = vld [vmem:[#allocation2 + $0x60] sm:$0xff] }
  0xf1   : > { %v1510_v60 = vmul.f32 %v18266_v54, %v565_v3  ;;  %v1512_v61 = vmul.f32 %v18266_v54, %v18259_v49  ;;  %v1513_v62 = vmul.f32 %v18266_v54, %v18261_v50  ;;  %v1514_v63 = vmul.f32 %v18266_v54, %v18263_v51 }
  0xf2   : > { %v1612_v1 = vadd.f32 %v1508_v58, %v1296_v47  ;;  %v1613_v2 = vadd.f32 %v1509_v59, %v1297_v48  ;;  %v1824_v3 = vmul.f32 %v18269_v55, %v18207_v8  ;;  %v1825_v7 = vmul.f32 %v18269_v55, %v18209_v9  ;;  %v18334_v48 = vld [vmem:[#allocation2 + $0x68] sm:$0xff] }
  0xf3   : > { %v1614_v11 = vadd.f32 %v1510_v60, %v1298_v52  ;;  %v1616_v12 = vadd.f32 %v1512_v61, %v1300_v53  ;;  %v1617_v13 = vadd.f32 %v1513_v62, %v1301_v56  ;;  %v1618_v14 = vadd.f32 %v1514_v63, %v1302_v57  ;;  %v18336_v52 = vld [vmem:[#allocation2 + $0x70] sm:$0xff] }
  0xf4   : > { %v1826_v16 = vmul.f32 %v18269_v55, %v18221_v15  ;;  %v1828_v17 = vmul.f32 %v18269_v55, %v18280_v0  ;;  %v1829_v18 = vmul.f32 %v18269_v55, %v18282_v4  ;;  %v1830_v8 = vmul.f32 %v18269_v55, %v18284_v5  ;;  %v18308_v15 = vld [vmem:[#allocation2 + $0x750] sm:$0xff] }
  0xf5   : > { %v1928_v9 = vadd.f32 %v1824_v3, %v1612_v1  ;;  %v1929_v22 = vadd.f32 %v1825_v7, %v1613_v2  ;;  %v18311_v24 = vstv %s18251_s2  ;;  %v18314_v25 = vstv %s18253_s1  ;;  %v18352_v7 = vld [vmem:[#allocation2 + $0x3e0] sm:$0xff] }
  0xf6   : > { %v1930_v26 = vadd.f32 %v1826_v16, %v1614_v11  ;;  %v1932_v28 = vadd.f32 %v1828_v17, %v1616_v12  ;;  %v1933_v30 = vadd.f32 %v1829_v18, %v1617_v13  ;;  %v1934_v34 = vadd.f32 %v1830_v8, %v1618_v14  ;;  %v18354_v11 = vld [vmem:[#allocation2 + $0x3e8] sm:$0xff]  ;;  %v18356_v12 = vld [vmem:[#allocation2 + $0x3f0] sm:$0xff] }
  0xf7   : > { %v2140_v35 = vmul.f32 %v18311_v24, %v18234_v27  ;;  %v2141_v36 = vmul.f32 %v18311_v24, %v18242_v31  ;;  %v2142_v37 = vmul.f32 %v18311_v24, %v18244_v33  ;;  %v2144_v39 = vmul.f32 %v18311_v24, %v18300_v19 }
  0xf8   : > { %v2145_v40 = vmul.f32 %v18311_v24, %v18306_v23  ;;  %v2146_v41 = vmul.f32 %v18311_v24, %v18308_v15  ;;  %v2456_v42 = vmul.f32 %v18314_v25, %v18259_v49  ;;  %v2457_v27 = vmul.f32 %v18314_v25, %v18261_v50 }
  0xf9   : > { %v2244_v43 = vadd.f32 %v2140_v35, %v1928_v9  ;;  %v2245_v31 = vadd.f32 %v2141_v36, %v1929_v22  ;;  %v2246_v44 = vadd.f32 %v2142_v37, %v1930_v26  ;;  %v2248_v33 = vadd.f32 %v2144_v39, %v1932_v28 }
  0xfa   : > { %v2249_v46 = vadd.f32 %v2145_v40, %v1933_v30  ;;  %v2250_v47 = vadd.f32 %v2146_v41, %v1934_v34  ;;  %v2458_v53 = vmul.f32 %v18314_v25, %v18263_v51  ;;  %v2460_v56 = vmul.f32 %v18314_v25, %v18332_v45  ;;  %v562_v30 = vld [vmem:[#allocation2 + $0x18] sm:$0x3]  ;;  %v18374_v40 = vld [vmem:[#allocation2 + $0x760] sm:$0xff]  ;;  %v18376_v41 = vld [vmem:[#allocation2 + $0x768] sm:$0xff] }
  0xfb   : > { %v2461_v57 = vmul.f32 %v18314_v25, %v18334_v48  ;;  %v2462_v58 = vmul.f32 %v18314_v25, %v18336_v52  ;;  %v2560_v59 = vadd.f32 %v2456_v42, %v2244_v43  ;;  %v2561_v60 = vadd.f32 %v2457_v27, %v2245_v31  ;;  %v566_v34 = vld [vmem:[#allocation2 + $0x38] sm:$0x3]  ;;  %v18378_v42 = vld [vmem:[#allocation2 + $0x770] sm:$0xff] }
  0xfc   : > { %v2562_v61 = vadd.f32 %v2458_v53, %v2246_v44  ;;  %v2564_v62 = vadd.f32 %v2460_v56, %v2248_v33  ;;  %v18347_v63 = vstv %s18302_s20  ;;  %v18350_v1 = vstv %s18304_s21  ;;  %v773_v33 = vld [vmem:[#allocation2 + $0x398] sm:$0x3] }
  0xfd   : > { %v2565_v2 = vadd.f32 %v2461_v57, %v2249_v46  ;;  %v2566_v3 = vadd.f32 %v2462_v58, %v2250_v47  ;;  %v2772_v13 = vmul.f32 %v18347_v63, %v18280_v0  ;;  %v2773_v14 = vmul.f32 %v18347_v63, %v18282_v4  ;;  %v777_v46 = vld [vmem:[#allocation2 + $0x3b8] sm:$0x3] }
  0xfe   : > { %v2774_v16 = vmul.f32 %v18347_v63, %v18284_v5  ;;  %v2776_v17 = vmul.f32 %v18347_v63, %v18352_v7  ;;  %v2777_v18 = vmul.f32 %v18347_v63, %v18354_v11  ;;  %v2778_v8 = vmul.f32 %v18347_v63, %v18356_v12 }
  0xff   : > { %v2876_v9 = vadd.f32 %v2772_v13, %v2560_v59  ;;  %v2877_v22 = vadd.f32 %v2773_v14, %v2561_v60  ;;  %v3088_v26 = vmul.f32 %v18350_v1, %v18300_v19  ;;  %v3089_v28 = vmul.f32 %v18350_v1, %v18306_v23  ;;  %v1088_v14 = vld [vmem:[#allocation2 + $0x718] sm:$0x3] }
 0x100   : > { %v2878_v35 = vadd.f32 %v2774_v16, %v2562_v61  ;;  %v2880_v36 = vadd.f32 %v2776_v17, %v2564_v62  ;;  %v2881_v37 = vadd.f32 %v2777_v18, %v2565_v2  ;;  %v2882_v39 = vadd.f32 %v2778_v8, %v2566_v3 }
 0x101   : > { %v3090_v27 = vmul.f32 %v18350_v1, %v18308_v15  ;;  %v3092_v43 = vmul.f32 %v18350_v1, %v18374_v40  ;;  %v3093_v31 = vmul.f32 %v18350_v1, %v18376_v41  ;;  %v3094_v44 = vmul.f32 %v18350_v1, %v18378_v42 }
 0x102   : > { %v3192_v47 = vadd.f32 %v3088_v26, %v2876_v9  ;;  %v3193_v53 = vadd.f32 %v3089_v28, %v2877_v22  ;;  %v669_v56 = vmul.f32 %v18205_v6, %v562_v30  ;;  %v673_v57 = vmul.f32 %v18205_v6, %v566_v34  ;;  %v1092_v9 = vld [vmem:[#allocation2 + $0x738] sm:$0x3] }
 0x103   : > { %v3194_v58 = vadd.f32 %v3090_v27, %v2878_v35  ;;  %v3196_v59 = vadd.f32 %v3092_v43, %v2880_v36  ;;  %v3197_v60 = vadd.f32 %v3093_v31, %v2881_v37  ;;  %v3198_v61 = vadd.f32 %v3094_v44, %v2882_v39  ;;  %v1404_v22 = vld [vmem:[#allocation2 + $0x38] sm:$0x3] }
 0x104   : > { %v3298_v62 = vadd.f32 %v18215_v10, %v3192_v47  ;;  %v3299_v2 = vadd.f32 %v18215_v10, %v3193_v53  ;;  %v880_v3 = vmul.f32 %v18225_v20, %v773_v33  ;;  %v884_v13 = vmul.f32 %v18225_v20, %v777_v46  ;;  %v1408_v26 = vld [vmem:[#allocation2 + $0x58] sm:$0x3] }
 0x105   : > { %v3300_v16 = vadd.f32 %v18215_v10, %v3194_v58  ;;  %v3302_v17 = vadd.f32 %v18215_v10, %v3196_v59  ;;  %v3303_v18 = vadd.f32 %v18215_v10, %v3197_v60  ;;  %v3304_v8 = vadd.f32 %v18215_v10, %v3198_v61  ;;  %v1720_v36 = vld [vmem:[#allocation2 + $0x3b8] sm:$0x3] }
 0x106   : > { %v3402_v28 = vmax.f32 %v3298_v62, 0.0  ;;  %v3403_v30 = vmax.f32 %v3299_v2, 0.0  ;;  %v984_v34 = vadd.f32 %v880_v3, %v669_v56  ;;  %v988_v35 = vadd.f32 %v884_v13, %v673_v57  ;;  %v1724_v37 = vld [vmem:[#allocation2 + $0x3d8] sm:$0x3] }
 0x107   : > { %v3404_v39 = vmax.f32 %v3300_v16, 0.0  ;;  %v3406_v27 = vmax.f32 %v3302_v17, 0.0  ;;  %v3407_v43 = vmax.f32 %v3303_v18, 0.0  ;;  %v3408_v31 = vmax.f32 %v3304_v8, 0.0  ;;  %v2036_v44 = vld [vmem:[#allocation2 + $0x738] sm:$0x3] }
 0x108   : > { %v1195_v33 = vmul.f32 %v18227_v21, %v1088_v14  ;;  %v1199_v46 = vmul.f32 %v18227_v21, %v1092_v9  ;;  %v1511_v47 = vmul.f32 %v18266_v54, %v1404_v22  ;;  %v1515_v53 = vmul.f32 %v18266_v54, %v1408_v26  ;;  %v2040_v58 = vld [vmem:[#allocation2 + $0x758] sm:$0x3] }
 0x109   : > { %v3506_v59 = vmax.f32 %v3402_v28, %v3406_v27  ;;  %v3507_v60 = vmax.f32 %v3403_v30, %v3407_v43  ;;  %v18402_v56 = vmax.f32 %v3404_v39, %v3408_v31  ;;  %v1827_v57 = vmul.f32 %v18269_v55, %v1720_v36  ;;  %v2352_v61 = vld [vmem:[#allocation2 + $0x58] sm:$0x3] }
 0x10a   : > { %v2356_v62 = vld [vmem:[#allocation2 + $0x78] sm:$0x3]  ;;  %v1299_v2 = vadd.f32 %v1195_v33, %v984_v34  ;;  %v1303_v3 = vadd.f32 %v1199_v46, %v988_v35  ;;  %v1831_v13 = vmul.f32 %v18269_v55, %v1724_v37  ;;  %v2143_v14 = vmul.f32 %v18311_v24, %v2036_v44 }
 0x10b   : > { %v2668_v16 = vld [vmem:[#allocation2 + $0x3d8] sm:$0x3]  ;;  %v3638_v18 = vrot.slane %v3506_v59, 1  ;;  %v3639_v8 = vrot.slane %v3507_v60, 1  ;;  %v3641_v9 = vrot.slane %v18402_v56, 1  ;;  %v2147_v22 = vmul.f32 %v18311_v24, %v2040_v58 }
 0x10c   : > { %v2672_v17 = vld [vmem:[#allocation2 + $0x3f8] sm:$0x3]  ;;  %v1615_v26 = vadd.f32 %v1511_v47, %v1299_v2  ;;  %v1619_v28 = vadd.f32 %v1515_v53, %v1303_v3  ;;  %v2459_v30 = vmul.f32 %v18314_v25, %v2352_v61  ;;  %v2463_v36 = vmul.f32 %v18314_v25, %v2356_v62 }
 0x10d   : > { %v2984_v34 = vld [vmem:[#allocation2 + $0x758] sm:$0x3]  ;;  %v3640_v37 = vsel %vm3637_vm7, %v3638_v18, %v3639_v8  ;;  %v3642_v39 = vsel %vm3637_vm7, %v3639_v8, %v3641_v9  ;;  %v2775_v27 = vmul.f32 %v18347_v63, %v2668_v16  ;;  %v2779_v43 = vmul.f32 %v18347_v63, %v2672_v17 }
 0x10e   : > { %v2988_v35 = vld [vmem:[#allocation2 + $0x778] sm:$0x3]  ;;  %v3781_v31 = vmax.f32 %v3506_v59, %v3640_v37  ;;  %v3782_v44 = vmax.f32 %v3507_v60, %v3642_v39  ;;  %v1931_v33 = vadd.f32 %v1827_v57, %v1615_v26  ;;  %v1935_v46 = vadd.f32 %v1831_v13, %v1619_v28 }
 0x10f   : > { %v3091_v47 = vmul.f32 %v18350_v1, %v2984_v34  ;;  %v3095_v53 = vmul.f32 %v18350_v1, %v2988_v35  ;;  %v674_v58 = vmul.f32 %v18259_v49, %v18205_v6  ;;  %v675_v61 = vmul.f32 %v18261_v50, %v18205_v6 }
 0x110   : > { %v16834_v62 = vpack.c.bf16 %v3782_v44, %v3781_v31  ;;  %v2247_v2 = vadd.f32 %v2143_v14, %v1931_v33  ;;  %v2251_v3 = vadd.f32 %v2147_v22, %v1935_v46  ;;  %v676_v16 = vmul.f32 %v18263_v51, %v18205_v6 }
 0x111   : > { %v678_v59 = vmul.f32 %v18332_v45, %v18205_v6  ;;  %v679_v60 = vmul.f32 %v18334_v48, %v18205_v6  ;;  %v680_v57 = vmul.f32 %v18336_v52, %v18205_v6  ;;  %v885_v49 = vmul.f32 %v18280_v0, %v18225_v20 }
 0x112   : > { %16835 = vmatprep.subr.bf16.mxu0 %v16834_v62  ;;  %v2563_v50 = vadd.f32 %v2459_v30, %v2247_v2  ;;  %v2567_v13 = vadd.f32 %v2463_v36, %v2251_v3  ;;  %v886_v14 = vmul.f32 %v18282_v4, %v18225_v20  ;;  %v887_v51 = vmul.f32 %v18284_v5, %v18225_v20  ;;  %v18459_v3 = vld [vmem:[#allocation2 + $0x80] sm:$0xff] }
 0x113   : > { %16837 = vmatpush3.bf16.msra.mxu0 %v16834_v62  ;;  %v889_v17 = vmul.f32 %v18352_v7, %v18225_v20  ;;  %v890_v18 = vmul.f32 %v18354_v11, %v18225_v20  ;;  %v891_v8 = vmul.f32 %v18356_v12, %v18225_v20  ;;  %v989_v0 = vadd.f32 %v885_v49, %v674_v58 }
 0x114   : > { %v2879_v22 = vadd.f32 %v2775_v27, %v2563_v50  ;;  %v2883_v26 = vadd.f32 %v2779_v43, %v2567_v13  ;;  %v990_v28 = vadd.f32 %v886_v14, %v675_v61  ;;  %v991_v30 = vadd.f32 %v887_v51, %v676_v16  ;;  %v18461_v16 = vld [vmem:[#allocation2 + $0x88] sm:$0xff] }
 0x115   : > { %v993_v36 = vadd.f32 %v889_v17, %v678_v59  ;;  %v994_v4 = vadd.f32 %v890_v18, %v679_v60  ;;  %v995_v34 = vadd.f32 %v891_v8, %v680_v57  ;;  %v1200_v5 = vmul.f32 %v18300_v19, %v18227_v21  ;;  %v18463_v59 = vld [vmem:[#allocation2 + $0x90] sm:$0xff] }
 0x116   : > { %v3195_v35 = vadd.f32 %v3091_v47, %v2879_v22  ;;  %v3199_v37 = vadd.f32 %v3095_v53, %v2883_v26  ;;  %v1201_v39 = vmul.f32 %v18306_v23, %v18227_v21  ;;  %v1202_v31 = vmul.f32 %v18308_v15, %v18227_v21  ;;  %v18477_v22 = vld [vmem:[#allocation2 + $0x400] sm:$0xff]  ;;  %v18479_v26 = vld [vmem:[#allocation2 + $0x408] sm:$0xff] }
 0x117   : > { %v1204_v27 = vmul.f32 %v18374_v40, %v18227_v21  ;;  %v1205_v43 = vmul.f32 %v18376_v41, %v18227_v21  ;;  %v1206_v44 = vmul.f32 %v18378_v42, %v18227_v21  ;;  %v1304_v33 = vadd.f32 %v1200_v5, %v989_v0 }
 0x118   : > { %v3301_v19 = vadd.f32 %v18215_v10, %v3195_v35  ;;  %v3305_v46 = vadd.f32 %v18215_v10, %v3199_v37  ;;  %v1305_v47 = vadd.f32 %v1201_v39, %v990_v28  ;;  %v1306_v23 = vadd.f32 %v1202_v31, %v991_v30  ;;  %v18481_v28 = vld [vmem:[#allocation2 + $0x410] sm:$0xff] }
 0x119   : > { %v1308_v53 = vadd.f32 %v1204_v27, %v993_v36  ;;  %v1309_v58 = vadd.f32 %v1205_v43, %v994_v4  ;;  %v1310_v15 = vadd.f32 %v1206_v44, %v995_v34  ;;  %v1516_v61 = vmul.f32 %v18332_v45, %v18266_v54 }
 0x11a   : > { %v3405_v62 = vmax.f32 %v3301_v19, 0.0  ;;  %v3409_v2 = vmax.f32 %v3305_v46, 0.0  ;;  %v1517_v60 = vmul.f32 %v18334_v48, %v18266_v54  ;;  %v1518_v57 = vmul.f32 %v18336_v52, %v18266_v54  ;;  %v18500_v19 = vld [vmem:[#allocation2 + $0x780] sm:$0xff] }
 0x11b   : > { %v1520_v49 = vmul.f32 %v18266_v54, %v18459_v3  ;;  %v1521_v45 = vmul.f32 %v18266_v54, %v18461_v16  ;;  %v1522_v50 = vmul.f32 %v18266_v54, %v18463_v59  ;;  %v1620_v13 = vadd.f32 %v1516_v61, %v1304_v33 }
 0x11c   : > { %v3510_v14 = vsel %vm3509_vm8, %v3405_v62, -inf  ;;  %v3511_v51 = vsel %vm3509_vm8, %v3409_v2, -inf  ;;  %v1621_v17 = vadd.f32 %v1517_v60, %v1305_v47  ;;  %v1622_v18 = vadd.f32 %v1518_v57, %v1306_v23  ;;  %v18503_v47 = vld [vmem:[#allocation2 + $0x788] sm:$0xff]  ;;  %v18505_v23 = vld [vmem:[#allocation2 + $0x790] sm:$0xff] }
 0x11d   : > { %v3512_v48 = vmax.f32 %v3510_v14, %v3511_v51  ;;  %v1624_v8 = vadd.f32 %v1520_v49, %v1308_v53  ;;  %v1625_v0 = vadd.f32 %v1521_v45, %v1309_v58  ;;  %v1626_v52 = vadd.f32 %v1522_v50, %v1310_v15  ;;  %v18524_v45 = vld [vmem:[#allocation2 + $0xa0] sm:$0xff]  ;;  %v18526_v50 = vld [vmem:[#allocation2 + $0xa8] sm:$0xff] }
 0x11e   : > { %v1832_v30 = vmul.f32 %v18352_v7, %v18269_v55  ;;  %v1833_v36 = vmul.f32 %v18354_v11, %v18269_v55  ;;  %v1834_v4 = vmul.f32 %v18356_v12, %v18269_v55  ;;  %v1836_v34 = vmul.f32 %v18269_v55, %v18477_v22 }
 0x11f   : > { %v3643_v5 = vrot.slane %v3512_v48, 1  ;;  %v1837_v35 = vmul.f32 %v18269_v55, %v18479_v26  ;;  %v1838_v37 = vmul.f32 %v18269_v55, %v18481_v28  ;;  %v2148_v39 = vmul.f32 %v18374_v40, %v18311_v24 }
 0x120   : > { %v1936_v7 = vadd.f32 %v1832_v30, %v1620_v13  ;;  %v1937_v31 = vadd.f32 %v1833_v36, %v1621_v17  ;;  %v1938_v27 = vadd.f32 %v1834_v4, %v1622_v18  ;;  %v1940_v11 = vadd.f32 %v1836_v34, %v1624_v8  ;;  %v18528_v13 = vld [vmem:[#allocation2 + $0xb0] sm:$0xff] }
 0x121   : > { %v3644_v12 = vsel %vm3637_vm7, %v3641_v9, %v3643_v5  ;;  %v3784_v43 = vmax.f32 %v3512_v48, %v3643_v5  ;;  %v1941_v44 = vadd.f32 %v1837_v35, %v1625_v0  ;;  %v1942_v33 = vadd.f32 %v1838_v37, %v1626_v52  ;;  %v18548_v35 = vld [vmem:[#allocation2 + $0x420] sm:$0xff]  ;;  %v18550_v37 = vld [vmem:[#allocation2 + $0x428] sm:$0xff] }
 0x122   : > { %v3783_v46 = vmax.f32 %v18402_v56, %v3644_v12  ;;  %v2149_v40 = vmul.f32 %v18376_v41, %v18311_v24  ;;  %v2150_v53 = vmul.f32 %v18378_v42, %v18311_v24  ;;  %v2152_v9 = vmul.f32 %v18311_v24, %v18500_v19 }
 0x123   : > { %v23180_v58 = vmov 0  ;;  %v2153_v56 = vmul.f32 %v18311_v24, %v18503_v47  ;;  %v2154_v15 = vmul.f32 %v18311_v24, %v18505_v23  ;;  %v2252_v61 = vadd.f32 %v2148_v39, %v1936_v7  ;;  %v18552_v39 = vld [vmem:[#allocation2 + $0x430] sm:$0xff] }
 0x124   : > { %v23181_v58 = vsel %vm18514_vm11, 4294967295, %v23180_v58  ;;  %v2464_v41 = vmul.f32 %v18314_v25, %v18459_v3  ;;  %v16838_v42 = vpack.c.bf16 %v3784_v43, %v3783_v46  ;;  %v2253_v62 = vadd.f32 %v2149_v40, %v1937_v31 }
 0x125   : > { %23182 = vst [vmem:[#allocation18_spill] sm:$0xff] %v23181_v58  ;;  %v2254_v2 = vadd.f32 %v2150_v53, %v1938_v27  ;;  %v2256_v60 = vadd.f32 %v2152_v9, %v1940_v11  ;;  %v2257_v57 = vadd.f32 %v2153_v56, %v1941_v44  ;;  %v2258_v49 = vadd.f32 %v2154_v15, %v1942_v33  ;;  %v18568_v56 = vld [vmem:[#allocation2 + $0x7a0] sm:$0xff]  ;;  %v18570_v15 = vld [vmem:[#allocation2 + $0x7a8] sm:$0xff] }
 0x126   : > { %v2465_v14 = vmul.f32 %v18314_v25, %v18461_v16  ;;  %v2466_v51 = vmul.f32 %v18314_v25, %v18463_v59  ;;  %16840 = vmatprep.subr.msk.bf16.mxu0 %vm18514_vm11, %v16838_v42  ;;  %v2468_v17 = vmul.f32 %v18314_v25, %v18524_v45  ;;  %v2469_v18 = vmul.f32 %v18314_v25, %v18526_v50 }
 0x127   : > { %v2470_v48 = vmul.f32 %v18314_v25, %v18528_v13  ;;  %v2568_v8 = vadd.f32 %v2464_v41, %v2252_v61  ;;  %16843 = vmatpush3.bf16.msk.msra.mxu0 %vm18514_vm11, %v16838_v42  ;;  %v2780_v30 = vmul.f32 %v18347_v63, %v18477_v22  ;;  %v2781_v36 = vmul.f32 %v18347_v63, %v18479_v26  ;;  %v18572_v61 = vld [vmem:[#allocation2 + $0x7b0] sm:$0xff] }
 0x128   : > { %v2569_v0 = vadd.f32 %v2465_v14, %v2253_v62  ;;  %v2570_v52 = vadd.f32 %v2466_v51, %v2254_v2  ;;  %v2572_v4 = vadd.f32 %v2468_v17, %v2256_v60  ;;  %v2573_v34 = vadd.f32 %v2469_v18, %v2257_v57 }
 0x129   : > { %v2574_v5 = vadd.f32 %v2470_v48, %v2258_v49  ;;  %v2782_v7 = vmul.f32 %v18347_v63, %v18481_v28  ;;  %v2784_v31 = vmul.f32 %v18347_v63, %v18548_v35  ;;  %v2785_v27 = vmul.f32 %v18347_v63, %v18550_v37 }
 0x12a   : > { %v2786_v11 = vmul.f32 %v18347_v63, %v18552_v39  ;;  %v2884_v12 = vadd.f32 %v2780_v30, %v2568_v8  ;;  %v2885_v43 = vadd.f32 %v2781_v36, %v2569_v0  ;;  %v3096_v33 = vmul.f32 %v18350_v1, %v18500_v19  ;;  %16014 = vmatmul.mubr.msk.f32.vlgmr.msra.gmra.mrb[0].mxu0 %vm3833_vm6, %v23183_v38 }
 0x12b   : > { %v2886_v44 = vadd.f32 %v2782_v7, %v2570_v52  ;;  %v3097_v46 = vmul.f32 %v18350_v1, %v18503_v47  ;;  %v2888_v40 = vadd.f32 %v2784_v31, %v2572_v4  ;;  %v2889_v53 = vadd.f32 %v2785_v27, %v2573_v34  ;;  %16035 = vmatprep.mubr.msk.f32.mxu0 %vm3833_vm6, %v23179_v29  ;;  %v1420_v29 = vld [vmem:[#allocation2 + $0xb8] sm:$0x3] }
 0x12c   : > { %v2890_v9 = vadd.f32 %v2786_v11, %v2574_v5  ;;  %v3098_v41 = vmul.f32 %v18350_v1, %v18505_v23  ;;  %v3100_v42 = vmul.f32 %v18350_v1, %v18568_v56  ;;  %v3101_v62 = vmul.f32 %v18350_v1, %v18570_v15 }
 0x12d   : > { %v3102_v2 = vmul.f32 %v18350_v1, %v18572_v61  ;;  %v3200_v60 = vadd.f32 %v3096_v33, %v2884_v12  ;;  %v3201_v57 = vadd.f32 %v3097_v46, %v2885_v43  ;;  %v682_v14 = vmul.f32 %v18459_v3, %v18205_v6 }
 0x12e   : > { %v3202_v49 = vadd.f32 %v3098_v41, %v2886_v44  ;;  %v683_v51 = vmul.f32 %v18461_v16, %v18205_v6  ;;  %v3204_v17 = vadd.f32 %v3100_v42, %v2888_v40  ;;  %v3205_v18 = vadd.f32 %v3101_v62, %v2889_v53 }
 0x12f   : > { %v3206_v48 = vadd.f32 %v3102_v2, %v2890_v9  ;;  %v3306_v8 = vadd.f32 %v18215_v10, %v3200_v60  ;;  %v3307_v0 = vadd.f32 %v18215_v10, %v3201_v57  ;;  %v684_v30 = vmul.f32 %v18463_v59, %v18205_v6 }
 0x130   : > { %v3308_v52 = vadd.f32 %v18215_v10, %v3202_v49  ;;  %v686_v36 = vmul.f32 %v18524_v45, %v18205_v6  ;;  %v3310_v3 = vadd.f32 %v18215_v10, %v3204_v17  ;;  %v3311_v4 = vadd.f32 %v18215_v10, %v3205_v18 }
 0x131   : > { %v3312_v16 = vadd.f32 %v18215_v10, %v3206_v48  ;;  %v3410_v34 = vmax.f32 %v3306_v8, 0.0  ;;  %v3411_v5 = vmax.f32 %v3307_v0, 0.0  ;;  %v687_v31 = vmul.f32 %v18526_v50, %v18205_v6 }
 0x132   : > { %v3412_v7 = vmax.f32 %v3308_v52, 0.0  ;;  %v688_v27 = vmul.f32 %v18528_v13, %v18205_v6  ;;  %v3414_v11 = vmax.f32 %v3310_v3, 0.0  ;;  %v3415_v59 = vmax.f32 %v3311_v4, 0.0  ;;  %v18633_v3 = vld [vmem:[#allocation2 + $0xc0] sm:$0xff]  ;;  %v18637_v4 = vld [vmem:[#allocation2 + $0xd0] sm:$0xff] }
 0x133   : > { %v3416_v12 = vmax.f32 %v3312_v16, 0.0  ;;  %v893_v43 = vmul.f32 %v18477_v22, %v18225_v20  ;;  %v894_v44 = vmul.f32 %v18479_v26, %v18225_v20  ;;  %v895_v33 = vmul.f32 %v18481_v28, %v18225_v20 }
 0x134   : > { %v897_v46 = vmul.f32 %v18548_v35, %v18225_v20  ;;  %v898_v40 = vmul.f32 %v18550_v37, %v18225_v20  ;;  %v3513_v53 = vmax.f32 %v3410_v34, %v3414_v11  ;;  %v3514_v9 = vmax.f32 %v3411_v5, %v3415_v59 }
 0x135   : > { %v18612_v41 = vmax.f32 %v3412_v7, %v3416_v12  ;;  %v899_v42 = vmul.f32 %v18552_v39, %v18225_v20  ;;  %v997_v22 = vadd.f32 %v893_v43, %v682_v14  ;;  %v998_v62 = vadd.f32 %v894_v44, %v683_v51 }
 0x136   : > { %v999_v2 = vadd.f32 %v895_v33, %v684_v30  ;;  %v1001_v26 = vadd.f32 %v897_v46, %v686_v36  ;;  %v3645_v60 = vrot.slane %v3513_v53, 1  ;;  %v3646_v57 = vrot.slane %v3514_v9, 1  ;;  %v18651_v46 = vld [vmem:[#allocation2 + $0x440] sm:$0xff] }
 0x137   : > { %v23102_v28 = vrot.slane %v18612_v41, 1  ;;  %v1002_v49 = vadd.f32 %v898_v40, %v687_v31  ;;  %v1003_v17 = vadd.f32 %v899_v42, %v688_v27  ;;  %v1208_v18 = vmul.f32 %v18500_v19, %v18227_v21  ;;  %v18653_v40 = vld [vmem:[#allocation2 + $0x448] sm:$0xff] }
 0x138   : > { %v1209_v48 = vmul.f32 %v18503_v47, %v18227_v21  ;;  %v1210_v8 = vmul.f32 %v18505_v23, %v18227_v21  ;;  %v3647_v14 = vsel %vm3637_vm7, %v3645_v60, %v3646_v57  ;;  %v1212_v0 = vmul.f32 %v18568_v56, %v18227_v21  ;;  %v18635_v23 = vld [vmem:[#allocation2 + $0xc8] sm:$0xff] }
 0x139   : > { %v3649_v51 = vsel %vm3637_vm7, %v3646_v57, %v23102_v28  ;;  %v1213_v52 = vmul.f32 %v18570_v15, %v18227_v21  ;;  %v3785_v30 = vmax.f32 %v3513_v53, %v3647_v14  ;;  %v1214_v47 = vmul.f32 %v18572_v61, %v18227_v21 }
 0x13a   : > { %v3786_v19 = vmax.f32 %v3514_v9, %v3649_v51  ;;  %v1312_v36 = vadd.f32 %v1208_v18, %v997_v22  ;;  %v1313_v16 = vadd.f32 %v1209_v48, %v998_v62  ;;  %v1314_v34 = vadd.f32 %v1210_v8, %v999_v2 }
 0x13b   : > { %v1316_v5 = vadd.f32 %v1212_v0, %v1001_v26  ;;  %v1317_v7 = vadd.f32 %v1213_v52, %v1002_v49  ;;  %v1318_v27 = vadd.f32 %v1214_v47, %v1003_v17  ;;  %v1524_v11 = vmul.f32 %v18524_v45, %v18266_v54  ;;  %v18655_v45 = vld [vmem:[#allocation2 + $0x450] sm:$0xff]  ;;  %v18669_v49 = vld [vmem:[#allocation2 + $0x7c0] sm:$0xff] }
 0x13c   : > { %v16844_v31 = vpack.c.bf16 %v3786_v19, %v3785_v30  ;;  %v1525_v59 = vmul.f32 %v18526_v50, %v18266_v54  ;;  %v1526_v12 = vmul.f32 %v18528_v13, %v18266_v54  ;;  %v1528_v43 = vmul.f32 %v18266_v54, %v18633_v3  ;;  %v18673_v17 = vld [vmem:[#allocation2 + $0x7d0] sm:$0xff] }
 0x13d   : > { %v1529_v44 = vmul.f32 %v18266_v54, %v18635_v23  ;;  %v1530_v33 = vmul.f32 %v18266_v54, %v18637_v4  ;;  %v1628_v50 = vadd.f32 %v1524_v11, %v1312_v36  ;;  %v1840_v13 = vmul.f32 %v18548_v35, %v18269_v55  ;;  %v18693_v11 = vld [vmem:[#allocation2 + $0xe8] sm:$0xff] }
 0x13e   : > { %16845 = vmatprep.subr.bf16.mxu1 %v16844_v31  ;;  %v1629_v53 = vadd.f32 %v1525_v59, %v1313_v16  ;;  %v1841_v9 = vmul.f32 %v18550_v37, %v18269_v55  ;;  %v1630_v42 = vadd.f32 %v1526_v12, %v1314_v34  ;;  %v1632_v22 = vadd.f32 %v1528_v43, %v1316_v5  ;;  %v18671_v37 = vld [vmem:[#allocation2 + $0x7c8] sm:$0xff]  ;;  %v18695_v59 = vld [vmem:[#allocation2 + $0xf0] sm:$0xff] }
 0x13f   : > { %16847 = vmatpush3.bf16.msra.mxu1 %v16844_v31  ;;  %v1633_v62 = vadd.f32 %v1529_v44, %v1317_v7  ;;  %v1634_v2 = vadd.f32 %v1530_v33, %v1318_v27  ;;  %v1842_v26 = vmul.f32 %v18552_v39, %v18269_v55  ;;  %v1844_v60 = vmul.f32 %v18269_v55, %v18651_v46  ;;  %v18691_v27 = vld [vmem:[#allocation2 + $0xe0] sm:$0xff] }
 0x140   : > { %v1845_v57 = vmul.f32 %v18269_v55, %v18653_v40  ;;  %v1846_v35 = vmul.f32 %v18269_v55, %v18655_v45  ;;  %v1944_v18 = vadd.f32 %v1840_v13, %v1628_v50  ;;  %v1945_v48 = vadd.f32 %v1841_v9, %v1629_v53 }
 0x141   : > { %v2156_v39 = vmul.f32 %v18568_v56, %v18311_v24  ;;  %v2157_v8 = vmul.f32 %v18570_v15, %v18311_v24  ;;  %v1946_v14 = vadd.f32 %v1842_v26, %v1630_v42  ;;  %v1948_v51 = vadd.f32 %v1844_v60, %v1632_v22  ;;  %v18709_v26 = vld [vmem:[#allocation2 + $0x460] sm:$0xff]  ;;  %v18711_v60 = vld [vmem:[#allocation2 + $0x468] sm:$0xff] }
 0x142   : > { %v1949_v0 = vadd.f32 %v1845_v57, %v1633_v62  ;;  %v1950_v52 = vadd.f32 %v1846_v35, %v1634_v2  ;;  %v2158_v30 = vmul.f32 %v18572_v61, %v18311_v24  ;;  %v2160_v19 = vmul.f32 %v18311_v24, %v18669_v49  ;;  %v18713_v57 = vld [vmem:[#allocation2 + $0x470] sm:$0xff] }
 0x143   : > { %v2161_v47 = vmul.f32 %v18311_v24, %v18671_v37  ;;  %v2162_v36 = vmul.f32 %v18311_v24, %v18673_v17  ;;  %v2260_v56 = vadd.f32 %v2156_v39, %v1944_v18  ;;  %v2261_v16 = vadd.f32 %v2157_v8, %v1945_v48 }
 0x144   : > { %v2472_v15 = vmul.f32 %v18314_v25, %v18633_v3  ;;  %v2473_v34 = vmul.f32 %v18314_v25, %v18635_v23  ;;  %v2262_v5 = vadd.f32 %v2158_v30, %v1946_v14  ;;  %v2264_v7 = vadd.f32 %v2160_v19, %v1948_v51  ;;  %v574_v30 = vld [vmem:[#allocation2 + $0x78] sm:$0x3] }
 0x145   : > { %v2265_v61 = vadd.f32 %v2161_v47, %v1949_v0  ;;  %v2266_v31 = vadd.f32 %v2162_v36, %v1950_v52  ;;  %v2474_v12 = vmul.f32 %v18314_v25, %v18637_v4  ;;  %v2476_v43 = vmul.f32 %v18314_v25, %v18691_v27  ;;  %v570_v52 = vld [vmem:[#allocation2 + $0x58] sm:$0x3] }
 0x146   : > { %v2477_v44 = vmul.f32 %v18314_v25, %v18693_v11  ;;  %v2478_v33 = vmul.f32 %v18314_v25, %v18695_v59  ;;  %v2576_v50 = vadd.f32 %v2472_v15, %v2260_v56  ;;  %v2577_v53 = vadd.f32 %v2473_v34, %v2261_v16  ;;  %v18727_v16 = vld [vmem:[#allocation2 + $0x7e0] sm:$0xff]  ;;  %v18729_v15 = vld [vmem:[#allocation2 + $0x7e8] sm:$0xff]  ;;  %v18731_v34 = vld [vmem:[#allocation2 + $0x7f0] sm:$0xff] }
 0x147   : > { %v2788_v13 = vmul.f32 %v18347_v63, %v18651_v46  ;;  %v2789_v9 = vmul.f32 %v18347_v63, %v18653_v40  ;;  %v2578_v42 = vadd.f32 %v2474_v12, %v2262_v5  ;;  %v2580_v22 = vadd.f32 %v2476_v43, %v2264_v7  ;;  %23184 = vst [vmem:[#allocation19_spill] sm:$0xff] %v18731_v34  ;;  %v781_v12 = vld [vmem:[#allocation2 + $0x3d8] sm:$0x3] }
 0x148   : > { %v2581_v62 = vadd.f32 %v2477_v44, %v2265_v61  ;;  %v2582_v2 = vadd.f32 %v2478_v33, %v2266_v31  ;;  %v2790_v35 = vmul.f32 %v18347_v63, %v18655_v45  ;;  %v2792_v18 = vmul.f32 %v18347_v63, %v18709_v26  ;;  %v785_v43 = vld [vmem:[#allocation2 + $0x3f8] sm:$0x3] }
 0x149   : > { %v2793_v48 = vmul.f32 %v18347_v63, %v18711_v60  ;;  %v2794_v39 = vmul.f32 %v18347_v63, %v18713_v57  ;;  %v2892_v8 = vadd.f32 %v2788_v13, %v2576_v50  ;;  %v2893_v14 = vadd.f32 %v2789_v9, %v2577_v53 }
 0x14a   : > { %v3104_v51 = vmul.f32 %v18350_v1, %v18669_v49  ;;  %v3105_v0 = vmul.f32 %v18350_v1, %v18671_v37  ;;  %v2894_v19 = vadd.f32 %v2790_v35, %v2578_v42  ;;  %v2896_v47 = vadd.f32 %v2792_v18, %v2580_v22 }
 0x14b   : > { %v2897_v36 = vadd.f32 %v2793_v48, %v2581_v62  ;;  %v2898_v56 = vadd.f32 %v2794_v39, %v2582_v2  ;;  %v3106_v5 = vmul.f32 %v18350_v1, %v18673_v17  ;;  %v3108_v7 = vmul.f32 %v18350_v1, %v18727_v16  ;;  %v1096_v48 = vld [vmem:[#allocation2 + $0x758] sm:$0x3] }
 0x14c   : > { %v3109_v61 = vmul.f32 %v18350_v1, %v18729_v15  ;;  %v3110_v31 = vmul.f32 %v18350_v1, %v18731_v34  ;;  %v3208_v44 = vadd.f32 %v3104_v51, %v2892_v8  ;;  %v3209_v33 = vadd.f32 %v3105_v0, %v2893_v14  ;;  %v1100_v0 = vld [vmem:[#allocation2 + $0x778] sm:$0x3] }
 0x14d   : > { %v677_v50 = vmul.f32 %v18205_v6, %v570_v52  ;;  %v681_v53 = vmul.f32 %v18205_v6, %v574_v30  ;;  %v3210_v13 = vadd.f32 %v3106_v5, %v2894_v19  ;;  %v3212_v9 = vadd.f32 %v3108_v7, %v2896_v47  ;;  %v1412_v52 = vld [vmem:[#allocation2 + $0x78] sm:$0x3] }
 0x14e   : > { %v3213_v42 = vadd.f32 %v3109_v61, %v2897_v36  ;;  %v3214_v22 = vadd.f32 %v3110_v31, %v2898_v56  ;;  %v3314_v62 = vadd.f32 %v18215_v10, %v3208_v44  ;;  %v3315_v2 = vadd.f32 %v18215_v10, %v3209_v33  ;;  %v1416_v30 = vld [vmem:[#allocation2 + $0x98] sm:$0x3] }
 0x14f   : > { %v888_v35 = vmul.f32 %v18225_v20, %v781_v12  ;;  %v892_v18 = vmul.f32 %v18225_v20, %v785_v43  ;;  %v3316_v39 = vadd.f32 %v18215_v10, %v3210_v13  ;;  %v3318_v8 = vadd.f32 %v18215_v10, %v3212_v9  ;;  %v1728_v5 = vld [vmem:[#allocation2 + $0x3f8] sm:$0x3] }
 0x150   : > { %v3319_v14 = vadd.f32 %v18215_v10, %v3213_v42  ;;  %v3320_v51 = vadd.f32 %v18215_v10, %v3214_v22  ;;  %v3418_v19 = vmax.f32 %v3314_v62, 0.0  ;;  %v3419_v47 = vmax.f32 %v3315_v2, 0.0  ;;  %v1732_v7 = vld [vmem:[#allocation2 + $0x418] sm:$0x3] }
 0x151   : > { %v992_v36 = vadd.f32 %v888_v35, %v677_v50  ;;  %v996_v56 = vadd.f32 %v892_v18, %v681_v53  ;;  %v3420_v61 = vmax.f32 %v3316_v39, 0.0  ;;  %v3422_v31 = vmax.f32 %v3318_v8, 0.0  ;;  %v2044_v44 = vld [vmem:[#allocation2 + $0x778] sm:$0x3] }
 0x152   : > { %v3423_v12 = vmax.f32 %v3319_v14, 0.0  ;;  %v3424_v43 = vmax.f32 %v3320_v51, 0.0  ;;  %v1203_v33 = vmul.f32 %v18227_v21, %v1096_v48  ;;  %v1207_v13 = vmul.f32 %v18227_v21, %v1100_v0  ;;  %v2048_v22 = vld [vmem:[#allocation2 + $0x798] sm:$0x3] }
 0x153   : > { %v1519_v9 = vmul.f32 %v18266_v54, %v1412_v52  ;;  %v1523_v42 = vmul.f32 %v18266_v54, %v1416_v30  ;;  %v3519_v62 = vmax.f32 %v3418_v19, %v3422_v31  ;;  %v1835_v53 = vmul.f32 %v18269_v55, %v1728_v5  ;;  %v2360_v35 = vld [vmem:[#allocation2 + $0x98] sm:$0x3] }
 0x154   : > { %v3520_v2 = vmax.f32 %v3419_v47, %v3423_v12  ;;  %v18755_v50 = vmax.f32 %v3420_v61, %v3424_v43  ;;  %v2364_v18 = vld [vmem:[#allocation2 + $0xb8] sm:$0x3]  ;;  %v1307_v39 = vadd.f32 %v1203_v33, %v992_v36  ;;  %v1311_v8 = vadd.f32 %v1207_v13, %v996_v56 }
 0x155   : > { %v1839_v14 = vmul.f32 %v18269_v55, %v1732_v7  ;;  %v2151_v48 = vmul.f32 %v18311_v24, %v2044_v44  ;;  %v2676_v51 = vld [vmem:[#allocation2 + $0x418] sm:$0x3]  ;;  %v3652_v52 = vrot.slane %v3519_v62, 1  ;;  %v2155_v19 = vmul.f32 %v18311_v24, %v2048_v22 }
 0x156   : > { %23185 = vst [vmem:[#allocation20_spill] sm:$0xff] %v18755_v50  ;;  %v2680_v0 = vld [vmem:[#allocation2 + $0x438] sm:$0x3]  ;;  %v3653_v28 = vrot.slane %v3520_v2, 1  ;;  %v23109_v30 = vrot.slane %v18755_v50, 1  ;;  %v1623_v61 = vadd.f32 %v1519_v9, %v1307_v39  ;;  %v1627_v31 = vadd.f32 %v1523_v42, %v1311_v8 }
 0x157   : > { %v2992_v47 = vld [vmem:[#allocation2 + $0x798] sm:$0x3]  ;;  %v2467_v5 = vmul.f32 %v18314_v25, %v2360_v35  ;;  %v2471_v36 = vmul.f32 %v18314_v25, %v2364_v18  ;;  %v2783_v33 = vmul.f32 %v18347_v63, %v2676_v51  ;;  %v2787_v13 = vmul.f32 %v18347_v63, %v2680_v0 }
 0x158   : > { %v2996_v56 = vld [vmem:[#allocation2 + $0x7b8] sm:$0x3]  ;;  %v3654_v43 = vsel %vm3637_vm7, %v3652_v52, %v3653_v28  ;;  %v3656_v44 = vsel %vm3637_vm7, %v3653_v28, %v23109_v30  ;;  %v1939_v35 = vadd.f32 %v1835_v53, %v1623_v61  ;;  %v1943_v8 = vadd.f32 %v1839_v14, %v1627_v31 }
 0x159   : > { %v578_v12 = vld [vmem:[#allocation2 + $0x98] sm:$0x3]  ;;  %v3789_v42 = vmax.f32 %v3519_v62, %v3654_v43  ;;  %v3790_v39 = vmax.f32 %v3520_v2, %v3656_v44  ;;  %v3099_v38 = vmul.f32 %v18350_v1, %v2992_v47  ;;  %v3103_v52 = vmul.f32 %v18350_v1, %v2996_v56 }
 0x15a   : > { %v582_v7 = vld [vmem:[#allocation2 + $0xb8] sm:$0x3]  ;;  %v685_v50 = vmul.f32 %v18205_v6, %v578_v12  ;;  %v2255_v0 = vadd.f32 %v2151_v48, %v1939_v35  ;;  %v2259_v58 = vadd.f32 %v2155_v19, %v1943_v8  ;;  %v1215_v47 = vmul.f32 %v18227_v21, %v1108_v32 }
 0x15b   : > { %v789_v22 = vld [vmem:[#allocation2 + $0x418] sm:$0x3]  ;;  %v689_v28 = vmul.f32 %v18205_v6, %v582_v7  ;;  %v16854_v30 = vpack.c.bf16 %v3790_v39, %v3789_v42  ;;  %v1527_v56 = vmul.f32 %v18266_v54, %v1420_v29 }
 0x15c   : > { %v793_v9 = vld [vmem:[#allocation2 + $0x438] sm:$0x3]  ;;  %v896_v62 = vmul.f32 %v18225_v20, %v789_v22  ;;  %v2571_v7 = vadd.f32 %v2467_v5, %v2255_v0  ;;  %v2575_v43 = vadd.f32 %v2471_v36, %v2259_v58 }
 0x15d   : > { %v1104_v18 = vld [vmem:[#allocation2 + $0x798] sm:$0x3]  ;;  %v900_v61 = vmul.f32 %v18225_v20, %v793_v9  ;;  %16855 = vmatprep.subr.bf16.mxu0 %v16854_v30 }
 0x15e   : > { %v1424_v51 = vld [vmem:[#allocation2 + $0xd8] sm:$0x3]  ;;  %v1211_v31 = vmul.f32 %v18227_v21, %v1104_v18  ;;  %v1000_v44 = vadd.f32 %v896_v62, %v685_v50  ;;  %16857 = vmatpush3.bf16.msra.mxu0 %v16854_v30  ;;  %v2887_v29 = vadd.f32 %v2783_v33, %v2571_v7  ;;  %v2891_v18 = vadd.f32 %v2787_v13, %v2575_v43 }
 0x15f   : > { %v1736_v2 = vld [vmem:[#allocation2 + $0x438] sm:$0x3]  ;;  %v1531_v48 = vmul.f32 %v18266_v54, %v1424_v51  ;;  %v1004_v39 = vadd.f32 %v900_v61, %v689_v28  ;;  %v690_v61 = vmul.f32 %v18633_v3, %v18205_v6  ;;  %v695_v7 = vmul.f32 %v18693_v11, %v18205_v6 }
 0x160   : > { %v1740_v53 = vld [vmem:[#allocation2 + $0x458] sm:$0x3]  ;;  %v1843_v9 = vmul.f32 %v18269_v55, %v1736_v2  ;;  %v1315_v34 = vadd.f32 %v1211_v31, %v1000_v44  ;;  %v3203_v0 = vadd.f32 %v3099_v38, %v2887_v29  ;;  %v3207_v62 = vadd.f32 %v3103_v52, %v2891_v18 }
 0x161   : > { %v2052_v14 = vld [vmem:[#allocation2 + $0x7b8] sm:$0x3]  ;;  %v1847_v35 = vmul.f32 %v18269_v55, %v1740_v53  ;;  %v1319_v36 = vadd.f32 %v1215_v47, %v1004_v39  ;;  %v691_v38 = vmul.f32 %v18635_v23, %v18205_v6  ;;  %v901_v23 = vmul.f32 %v18651_v46, %v18225_v20 }
 0x162   : > { %v2056_v12 = vld [vmem:[#allocation2 + $0x7d8] sm:$0x3]  ;;  %v2159_v32 = vmul.f32 %v18311_v24, %v2052_v14  ;;  %v1631_v2 = vadd.f32 %v1527_v56, %v1315_v34  ;;  %v3309_v31 = vadd.f32 %v18215_v10, %v3203_v0  ;;  %v3313_v47 = vadd.f32 %v18215_v10, %v3207_v62 }
 0x163   : > { %v2368_v19 = vld [vmem:[#allocation2 + $0xd8] sm:$0x3]  ;;  %v2163_v58 = vmul.f32 %v18311_v24, %v2056_v12  ;;  %v1635_v14 = vadd.f32 %v1531_v48, %v1319_v36  ;;  %v692_v34 = vmul.f32 %v18637_v4, %v18205_v6  ;;  %v694_v56 = vmul.f32 %v18691_v27, %v18205_v6 }
 0x164   : > { %v2372_v22 = vld [vmem:[#allocation2 + $0xf8] sm:$0x3]  ;;  %v2475_v51 = vmul.f32 %v18314_v25, %v2368_v19  ;;  %v1947_v12 = vadd.f32 %v1843_v9, %v1631_v2  ;;  %v3413_v43 = vmax.f32 %v3309_v31, 0.0  ;;  %v3417_v3 = vmax.f32 %v3313_v47, 0.0 }
 0x165   : > { %v2684_v42 = vld [vmem:[#allocation2 + $0x458] sm:$0x3]  ;;  %v2479_v30 = vmul.f32 %v18314_v25, %v2372_v22  ;;  %v1951_v52 = vadd.f32 %v1847_v35, %v1635_v14  ;;  %v696_v48 = vmul.f32 %v18695_v59, %v18205_v6  ;;  %v902_v22 = vmul.f32 %v18653_v40, %v18225_v20 }
 0x166   : > { %v2688_v8 = vld [vmem:[#allocation2 + $0x478] sm:$0x3]  ;;  %v2791_v28 = vmul.f32 %v18347_v63, %v2684_v42  ;;  %v2263_v44 = vadd.f32 %v2159_v32, %v1947_v12  ;;  %v903_v4 = vmul.f32 %v18655_v45, %v18225_v20  ;;  %v3516_v42 = vsel %vm3509_vm8, %v3413_v43, -inf }
 0x167   : > { %v3000_v50 = vld [vmem:[#allocation2 + $0x7d8] sm:$0x3]  ;;  %v2795_v53 = vmul.f32 %v18347_v63, %v2688_v8  ;;  %v2267_v19 = vadd.f32 %v2163_v58, %v1951_v52  ;;  %v3517_v39 = vsel %vm3509_vm8, %v3417_v3, -inf  ;;  %v905_v35 = vmul.f32 %v18709_v26, %v18225_v20 }
 0x168   : > { %v3004_v5 = vld [vmem:[#allocation2 + $0x7f8] sm:$0x3]  ;;  %v3107_v33 = vmul.f32 %v18350_v1, %v3000_v50  ;;  %v2579_v9 = vadd.f32 %v2475_v51, %v2263_v44  ;;  %v3518_v32 = vmax.f32 %v3516_v42, %v3517_v39  ;;  %v906_v29 = vmul.f32 %v18711_v60, %v18225_v20  ;;  %v18845_v42 = vld [vmem:[#allocation2 + $0x110] sm:$0xff] }
 0x169   : > { %v3111_v13 = vmul.f32 %v18350_v1, %v3004_v5  ;;  %v2583_v8 = vadd.f32 %v2479_v30, %v2267_v19  ;;  %v907_v46 = vmul.f32 %v18713_v57, %v18225_v20  ;;  %v1005_v18 = vadd.f32 %v901_v23, %v690_v61 }
 0x16a   : > { %v2895_v40 = vadd.f32 %v2791_v28, %v2579_v9  ;;  %v1006_v58 = vadd.f32 %v902_v22, %v691_v38  ;;  %v1007_v45 = vadd.f32 %v903_v4, %v692_v34  ;;  %v3650_v50 = vrot.slane %v3518_v32, 1  ;;  %v23187_v38 = vld [vmem:[#allocation19_spill] sm:$0xff]  ;;  %v18843_v4 = vld [vmem:[#allocation2 + $0x108] sm:$0xff] }
 0x16b   : > { %v2899_v5 = vadd.f32 %v2795_v53, %v2583_v8  ;;  %v1009_v36 = vadd.f32 %v905_v35, %v694_v56  ;;  %v1010_v0 = vadd.f32 %v906_v29, %v695_v7  ;;  %v1011_v62 = vadd.f32 %v907_v46, %v696_v48  ;;  %v18836_v48 = vld [vmem:[#allocation2 + $0x100] sm:$0xff] }
 0x16c   : > { %v3211_v51 = vadd.f32 %v3107_v33, %v2895_v40  ;;  %v1216_v2 = vmul.f32 %v18669_v49, %v18227_v21  ;;  %v1217_v30 = vmul.f32 %v18671_v37, %v18227_v21  ;;  %v23186_v14 = vrot.slane %v18612_v41, 1 }
 0x16d   : > { %v3788_v28 = vmax.f32 %v3518_v32, %v3650_v50  ;;  %v3215_v61 = vadd.f32 %v3111_v13, %v2899_v5  ;;  %v1218_v47 = vmul.f32 %v18673_v17, %v18227_v21  ;;  %v1220_v12 = vmul.f32 %v18727_v16, %v18227_v21 }
 0x16e   : > { %v3651_v31 = vsel %vm3637_vm7, %v23186_v14, %v3650_v50  ;;  %v3317_v33 = vadd.f32 %v18215_v10, %v3211_v51  ;;  %v1221_v49 = vmul.f32 %v18729_v15, %v18227_v21  ;;  %v1222_v52 = vmul.f32 %v23187_v38, %v18227_v21  ;;  %v18862_v50 = vld [vmem:[#allocation2 + $0x488] sm:$0xff]  ;;  %v18868_v51 = vld [vmem:[#allocation2 + $0x490] sm:$0xff] }
 0x16f   : > { %v3787_v53 = vmax.f32 %v18612_v41, %v3651_v31  ;;  %v3321_v37 = vadd.f32 %v18215_v10, %v3215_v61  ;;  %v1320_v34 = vadd.f32 %v1216_v2, %v1005_v18  ;;  %v1321_v13 = vadd.f32 %v1217_v30, %v1006_v58  ;;  %v23189_v14 = vld [vmem:[#allocation17_spill] sm:$0xff]  ;;  %v23190_v61 = vld [vmem:[#allocation15_spill] sm:$0xff] }
 0x170   : > { %v3421_v7 = vmax.f32 %v3317_v33, 0.0  ;;  %v1322_v17 = vadd.f32 %v1218_v47, %v1007_v45  ;;  %v1324_v43 = vadd.f32 %v1220_v12, %v1009_v36  ;;  %v1325_v3 = vadd.f32 %v1221_v49, %v1010_v0  ;;  %v18860_v45 = vld [vmem:[#allocation2 + $0x480] sm:$0xff] }
 0x171   : > { %v16848_v56 = vpack.c.bf16 %v3788_v28, %v3787_v53  ;;  %v3425_v41 = vmax.f32 %v3321_v37, 0.0  ;;  %v1326_v44 = vadd.f32 %v1222_v52, %v1011_v62  ;;  %v1532_v19 = vmul.f32 %v18691_v27, %v18266_v54 }
 0x172   : > { %v3522_v22 = vsel %vm3509_vm8, %v3421_v7, -inf  ;;  %v1533_v39 = vmul.f32 %v18693_v11, %v18266_v54  ;;  %v1534_v9 = vmul.f32 %v18695_v59, %v18266_v54  ;;  %v1536_v35 = vmul.f32 %v18266_v54, %v18836_v48  ;;  %v18892_v7 = vld [vmem:[#allocation2 + $0x810] sm:$0xff] }
 0x173   : > { %16850 = vmatprep.subr.msk.bf16.mxu1 %vm18514_vm11, %v16848_v56  ;;  %v3523_v27 = vsel %vm3509_vm8, %v3425_v41, -inf  ;;  %v1537_v32 = vmul.f32 %v18266_v54, %v18843_v4  ;;  %v1538_v8 = vmul.f32 %v18266_v54, %v18845_v42  ;;  %v1636_v29 = vadd.f32 %v1532_v19, %v1320_v34 }
 0x174   : > { %16853 = vmatpush3.bf16.msk.msra.mxu1 %vm18514_vm11, %v16848_v56  ;;  %v3524_v46 = vmax.f32 %v3522_v22, %v3523_v27  ;;  %v1637_v11 = vadd.f32 %v1533_v39, %v1321_v13  ;;  %v1638_v40 = vadd.f32 %v1534_v9, %v1322_v17  ;;  %v1640_v18 = vadd.f32 %v1536_v35, %v1324_v43  ;;  %v18888_v13 = vld [vmem:[#allocation2 + $0x800] sm:$0xff]  ;;  %v18890_v56 = vld [vmem:[#allocation2 + $0x808] sm:$0xff] }
 0x175   : > { %v1641_v59 = vadd.f32 %v1537_v32, %v1325_v3  ;;  %v1642_v58 = vadd.f32 %v1538_v8, %v1326_v44  ;;  %v1848_v5 = vmul.f32 %v18709_v26, %v18269_v55  ;;  %v1849_v36 = vmul.f32 %v18711_v60, %v18269_v55  ;;  %v18908_v32 = vld [vmem:[#allocation2 + $0x128] sm:$0xff]  ;;  %v18912_v8 = vld [vmem:[#allocation2 + $0x130] sm:$0xff] }
 0x176   : > { %v3657_v0 = vrot.slane %v3524_v46, 1  ;;  %v1850_v62 = vmul.f32 %v18713_v57, %v18269_v55  ;;  %v1852_v2 = vmul.f32 %v18269_v55, %v18860_v45  ;;  %v1853_v30 = vmul.f32 %v18269_v55, %v18862_v50  ;;  %v23191_v57 = vld [vmem:[#allocation20_spill] sm:$0xff] }
 0x177   : > { %16025 = vmatmul.mubr.msk.f32.vlgmr.msra.gmra.mrb[0].mxu1 %vm3833_vm6, %v23189_v14  ;;  %v1854_v26 = vmul.f32 %v18269_v55, %v18868_v51  ;;  %v1952_v31 = vadd.f32 %v1848_v5, %v1636_v29  ;;  %v1953_v60 = vadd.f32 %v1849_v36, %v1637_v11  ;;  %v2164_v28 = vmul.f32 %v18727_v16, %v18311_v24 }
 0x178   : > { %16046 = vmatprep.mubr.msk.f32.mxu1 %vm3833_vm6, %v23190_v61  ;;  %v23192_v47 = vrot.slane %v23191_v57, 1  ;;  %v3792_v33 = vmax.f32 %v3524_v46, %v3657_v0  ;;  %v1954_v12 = vadd.f32 %v1850_v62, %v1638_v40  ;;  %v1956_v49 = vadd.f32 %v1852_v2, %v1640_v18 }
 0x179   : > { %v1957_v52 = vadd.f32 %v1853_v30, %v1641_v59  ;;  %v1958_v34 = vadd.f32 %v1854_v26, %v1642_v58  ;;  %v2165_v16 = vmul.f32 %v18729_v15, %v18311_v24  ;;  %v2166_v17 = vmul.f32 %v23187_v38, %v18311_v24  ;;  %v18906_v38 = vld [vmem:[#allocation2 + $0x120] sm:$0xff]  ;;  %v18932_v26 = vld [vmem:[#allocation2 + $0x4a8] sm:$0xff] }
 0x17a   : > { %v3658_v53 = vsel %vm3637_vm7, %v23192_v47, %v3657_v0  ;;  %v2168_v43 = vmul.f32 %v18311_v24, %v18888_v13  ;;  %v2169_v41 = vmul.f32 %v18311_v24, %v18890_v56  ;;  %v2170_v3 = vmul.f32 %v18311_v24, %v18892_v7  ;;  %v18930_v30 = vld [vmem:[#allocation2 + $0x4a0] sm:$0xff] }
 0x17b   : > { %v3791_v37 = vmax.f32 %v23191_v57, %v3658_v53  ;;  %v2268_v19 = vadd.f32 %v2164_v28, %v1952_v31  ;;  %v2269_v22 = vadd.f32 %v2165_v16, %v1953_v60  ;;  %v2480_v39 = vmul.f32 %v18314_v25, %v18836_v48  ;;  %v18934_v60 = vld [vmem:[#allocation2 + $0x4b0] sm:$0xff]  ;;  %v18948_v16 = vld [vmem:[#allocation2 + $0x820] sm:$0xff] }
 0x17c   : > { %v2270_v9 = vadd.f32 %v2166_v17, %v1954_v12  ;;  %v2272_v15 = vadd.f32 %v2168_v43, %v1956_v49  ;;  %v2273_v35 = vadd.f32 %v2169_v41, %v1957_v52  ;;  %v2274_v27 = vadd.f32 %v2170_v3, %v1958_v34  ;;  %v18950_v17 = vld [vmem:[#allocation2 + $0x828] sm:$0xff]  ;;  %v18956_v3 = vld [vmem:[#allocation2 + $0x830] sm:$0xff] }
 0x17d   : > { %v16858_v44 = vpack.c.bf16 %v3792_v33, %v3791_v37  ;;  %v2481_v29 = vmul.f32 %v18314_v25, %v18843_v4  ;;  %v2482_v46 = vmul.f32 %v18314_v25, %v18845_v42  ;;  %v2484_v11 = vmul.f32 %v18314_v25, %v18906_v38 }
 0x17e   : > { %v2485_v40 = vmul.f32 %v18314_v25, %v18908_v32  ;;  %v2486_v18 = vmul.f32 %v18314_v25, %v18912_v8  ;;  %v2584_v59 = vadd.f32 %v2480_v39, %v2268_v19  ;;  %v2796_v58 = vmul.f32 %v18347_v63, %v18860_v45 }
 0x17f   : > { %16860 = vmatprep.subr.msk.bf16.mxu0 %vm18514_vm11, %v16858_v44  ;;  %v2797_v5 = vmul.f32 %v18347_v63, %v18862_v50  ;;  %v2585_v36 = vadd.f32 %v2481_v29, %v2269_v22  ;;  %v2586_v0 = vadd.f32 %v2482_v46, %v2270_v9  ;;  %v2588_v62 = vadd.f32 %v2484_v11, %v2272_v15 }
 0x180   : > { %16863 = vmatpush3.bf16.msk.msra.mxu0 %vm18514_vm11, %v16858_v44  ;;  %v2589_v2 = vadd.f32 %v2485_v40, %v2273_v35  ;;  %v2590_v31 = vadd.f32 %v2486_v18, %v2274_v27  ;;  %v2798_v28 = vmul.f32 %v18347_v63, %v18868_v51  ;;  %v2800_v57 = vmul.f32 %v18347_v63, %v18930_v30 }
 0x181   : > { %v2801_v47 = vmul.f32 %v18347_v63, %v18932_v26  ;;  %v2802_v53 = vmul.f32 %v18347_v63, %v18934_v60  ;;  %v2900_v33 = vadd.f32 %v2796_v58, %v2584_v59  ;;  %v2901_v12 = vadd.f32 %v2797_v5, %v2585_v36 }
 0x182   : > { %v3112_v49 = vmul.f32 %v18350_v1, %v18888_v13  ;;  %v2902_v37 = vadd.f32 %v2798_v28, %v2586_v0  ;;  %v2904_v52 = vadd.f32 %v2800_v57, %v2588_v62  ;;  %v3113_v43 = vmul.f32 %v18350_v1, %v18890_v56 }
 0x183   : > { %16036 = vmatmul.mubr.msk.f32.vlgmr.msra.gmra.mrb[2].mxu0 %vm3833_vm6, %v23189_v14  ;;  %v2905_v34 = vadd.f32 %v2801_v47, %v2589_v2  ;;  %v2906_v41 = vadd.f32 %v2802_v53, %v2590_v31  ;;  %v3114_v44 = vmul.f32 %v18350_v1, %v18892_v7  ;;  %v3116_v19 = vmul.f32 %v18350_v1, %v18948_v16 }
 0x184   : > { %16057 = vmatprep.mubr.msk.f32.mxu0 %vm3833_vm6, %v23190_v61  ;;  %v3117_v22 = vmul.f32 %v18350_v1, %v18950_v17  ;;  %v3118_v39 = vmul.f32 %v18350_v1, %v18956_v3  ;;  %v3216_v9 = vadd.f32 %v3112_v49, %v2900_v33  ;;  %v3217_v15 = vadd.f32 %v3113_v43, %v2901_v12  ;;  %v1436_v61 = vld [vmem:[#allocation2 + $0x138] sm:$0x3] }
 0x185   : > { %v698_v35 = vmul.f32 %v18836_v48, %v18205_v6  ;;  %v3218_v27 = vadd.f32 %v3114_v44, %v2902_v37  ;;  %v3220_v29 = vadd.f32 %v3116_v19, %v2904_v52  ;;  %v699_v11 = vmul.f32 %v18843_v4, %v18205_v6 }
 0x186   : > { %v3221_v46 = vadd.f32 %v3117_v22, %v2905_v34  ;;  %v3222_v40 = vadd.f32 %v3118_v39, %v2906_v41  ;;  %v3322_v18 = vadd.f32 %v18215_v10, %v3216_v9  ;;  %v3323_v59 = vadd.f32 %v18215_v10, %v3217_v15 }
 0x187   : > { %v700_v58 = vmul.f32 %v18845_v42, %v18205_v6  ;;  %v3324_v5 = vadd.f32 %v18215_v10, %v3218_v27  ;;  %v3326_v36 = vadd.f32 %v18215_v10, %v3220_v29  ;;  %v702_v0 = vmul.f32 %v18906_v38, %v18205_v6 }
 0x188   : > { %v3327_v48 = vadd.f32 %v18215_v10, %v3221_v46  ;;  %v3328_v62 = vadd.f32 %v18215_v10, %v3222_v40  ;;  %v3426_v4 = vmax.f32 %v3322_v18, 0.0  ;;  %v3427_v2 = vmax.f32 %v3323_v59, 0.0 }
 0x189   : > { %v703_v31 = vmul.f32 %v18908_v32, %v18205_v6  ;;  %v3428_v28 = vmax.f32 %v3324_v5, 0.0  ;;  %v3430_v57 = vmax.f32 %v3326_v36, 0.0  ;;  %v704_v42 = vmul.f32 %v18912_v8, %v18205_v6  ;;  %v19015_v5 = vld [vmem:[#allocation2 + $0x140] sm:$0xff] }
 0x18a   : > { %v3431_v47 = vmax.f32 %v3327_v48, 0.0  ;;  %v3432_v53 = vmax.f32 %v3328_v62, 0.0  ;;  %v909_v33 = vmul.f32 %v18860_v45, %v18225_v20  ;;  %v910_v12 = vmul.f32 %v18862_v50, %v18225_v20  ;;  %v19019_v62 = vld [vmem:[#allocation2 + $0x150] sm:$0xff] }
 0x18b   : > { %v911_v49 = vmul.f32 %v18868_v51, %v18225_v20  ;;  %v3525_v37 = vmax.f32 %v3426_v4, %v3430_v57  ;;  %v913_v34 = vmul.f32 %v18930_v30, %v18225_v20  ;;  %v914_v43 = vmul.f32 %v18932_v26, %v18225_v20 }
 0x18c   : > { %v3526_v52 = vmax.f32 %v3427_v2, %v3431_v47  ;;  %v18994_v41 = vmax.f32 %v3428_v28, %v3432_v53  ;;  %v915_v44 = vmul.f32 %v18934_v60, %v18225_v20  ;;  %v1013_v45 = vadd.f32 %v909_v33, %v698_v35  ;;  %v19029_v33 = vld [vmem:[#allocation2 + $0x4c0] sm:$0xff] }
 0x18d   : > { %v1014_v19 = vadd.f32 %v910_v12, %v699_v11  ;;  %v3659_v22 = vrot.slane %v3525_v37, 1  ;;  %v1015_v39 = vadd.f32 %v911_v49, %v700_v58  ;;  %v1017_v9 = vadd.f32 %v913_v34, %v702_v0  ;;  %v19017_v0 = vld [vmem:[#allocation2 + $0x148] sm:$0xff] }
 0x18e   : > { %v3660_v50 = vrot.slane %v3526_v52, 1  ;;  %v23114_v51 = vrot.slane %v18994_v41, 1  ;;  %v1018_v15 = vadd.f32 %v914_v43, %v703_v31  ;;  %v1019_v27 = vadd.f32 %v915_v44, %v704_v42 }
 0x18f   : > { %v1224_v29 = vmul.f32 %v18888_v13, %v18227_v21  ;;  %v1225_v40 = vmul.f32 %v18890_v56, %v18227_v21  ;;  %v1226_v35 = vmul.f32 %v18892_v7, %v18227_v21  ;;  %v1228_v11 = vmul.f32 %v18948_v16, %v18227_v21 }
 0x190   : > { %v3661_v46 = vsel %vm3637_vm7, %v3659_v22, %v3660_v50  ;;  %v3663_v18 = vsel %vm3637_vm7, %v3660_v50, %v23114_v51  ;;  %v1229_v58 = vmul.f32 %v18950_v17, %v18227_v21  ;;  %v1230_v13 = vmul.f32 %v18956_v3, %v18227_v21 }
 0x191   : > { %v3793_v59 = vmax.f32 %v3525_v37, %v3661_v46  ;;  %v3794_v56 = vmax.f32 %v3526_v52, %v3663_v18  ;;  %v1328_v36 = vadd.f32 %v1224_v29, %v1013_v45  ;;  %v1329_v48 = vadd.f32 %v1225_v40, %v1014_v19  ;;  %v19037_v52 = vld [vmem:[#allocation2 + $0x4d0] sm:$0xff] }
 0x192   : > { %v1330_v7 = vadd.f32 %v1226_v35, %v1015_v39  ;;  %v1332_v4 = vadd.f32 %v1228_v11, %v1017_v9  ;;  %v1333_v2 = vadd.f32 %v1229_v58, %v1018_v15  ;;  %v1334_v31 = vadd.f32 %v1230_v13, %v1019_v27  ;;  %v19047_v39 = vld [vmem:[#allocation2 + $0x840] sm:$0xff]  ;;  %v19055_v29 = vld [vmem:[#allocation2 + $0x850] sm:$0xff] }
 0x193   : > { %v1540_v28 = vmul.f32 %v18906_v38, %v18266_v54  ;;  %v16864_v57 = vpack.c.bf16 %v3794_v56, %v3793_v59  ;;  %v1541_v47 = vmul.f32 %v18908_v32, %v18266_v54  ;;  %v1542_v42 = vmul.f32 %v18912_v8, %v18266_v54  ;;  %v19035_v38 = vld [vmem:[#allocation2 + $0x4c8] sm:$0xff] }
 0x194   : > { %v1544_v53 = vmul.f32 %v18266_v54, %v19015_v5  ;;  %v1545_v12 = vmul.f32 %v18266_v54, %v19017_v0  ;;  %v1546_v49 = vmul.f32 %v18266_v54, %v19019_v62  ;;  %v1856_v32 = vmul.f32 %v18930_v30, %v18269_v55 }
 0x195   : > { %v1644_v37 = vadd.f32 %v1540_v28, %v1328_v36  ;;  %16865 = vmatprep.subr.bf16.mxu1 %v16864_v57  ;;  %v1645_v8 = vadd.f32 %v1541_v47, %v1329_v48  ;;  %v1646_v34 = vadd.f32 %v1542_v42, %v1330_v7  ;;  %v1857_v44 = vmul.f32 %v18932_v26, %v18269_v55  ;;  %v19053_v26 = vld [vmem:[#allocation2 + $0x848] sm:$0xff] }
 0x196   : > { %v1648_v43 = vadd.f32 %v1544_v53, %v1332_v4  ;;  %16867 = vmatpush3.bf16.msra.mxu1 %v16864_v57  ;;  %v1649_v45 = vadd.f32 %v1545_v12, %v1333_v2  ;;  %v1650_v19 = vadd.f32 %v1546_v49, %v1334_v31  ;;  %v1858_v22 = vmul.f32 %v18934_v60, %v18269_v55  ;;  %v19069_v4 = vld [vmem:[#allocation2 + $0x160] sm:$0xff]  ;;  %v19075_v28 = vld [vmem:[#allocation2 + $0x168] sm:$0xff]  ;;  %v19077_v57 = vld [vmem:[#allocation2 + $0x170] sm:$0xff] }
 0x197   : > { %v1860_v50 = vmul.f32 %v18269_v55, %v19029_v33  ;;  %v1861_v30 = vmul.f32 %v18269_v55, %v19035_v38  ;;  %v1862_v9 = vmul.f32 %v18269_v55, %v19037_v52  ;;  %v1960_v15 = vadd.f32 %v1856_v32, %v1644_v37 }
 0x198   : > { %v1961_v27 = vadd.f32 %v1857_v44, %v1645_v8  ;;  %v1962_v46 = vadd.f32 %v1858_v22, %v1646_v34  ;;  %v2172_v60 = vmul.f32 %v18948_v16, %v18311_v24  ;;  %v2173_v35 = vmul.f32 %v18950_v17, %v18311_v24  ;;  %v19087_v34 = vld [vmem:[#allocation2 + $0x4e0] sm:$0xff]  ;;  %v19093_v22 = vld [vmem:[#allocation2 + $0x4e8] sm:$0xff] }
 0x199   : > { %v1964_v40 = vadd.f32 %v1860_v50, %v1648_v43  ;;  %v1965_v11 = vadd.f32 %v1861_v30, %v1649_v45  ;;  %v1966_v18 = vadd.f32 %v1862_v9, %v1650_v19  ;;  %v2174_v59 = vmul.f32 %v18956_v3, %v18311_v24  ;;  %v19095_v50 = vld [vmem:[#allocation2 + $0x4f0] sm:$0xff] }
 0x19a   : > { %v2176_v58 = vmul.f32 %v18311_v24, %v19047_v39  ;;  %v2177_v13 = vmul.f32 %v18311_v24, %v19053_v26  ;;  %v2178_v56 = vmul.f32 %v18311_v24, %v19055_v29  ;;  %v2276_v36 = vadd.f32 %v2172_v60, %v1960_v15 }
 0x19b   : > { %v2277_v48 = vadd.f32 %v2173_v35, %v1961_v27  ;;  %v2278_v16 = vadd.f32 %v2174_v59, %v1962_v46  ;;  %v2488_v17 = vmul.f32 %v18314_v25, %v19015_v5  ;;  %v2489_v3 = vmul.f32 %v18314_v25, %v19017_v0 }
 0x19c   : > { %v2280_v7 = vadd.f32 %v2176_v58, %v1964_v40  ;;  %v2281_v2 = vadd.f32 %v2177_v13, %v1965_v11  ;;  %v2282_v31 = vadd.f32 %v2178_v56, %v1966_v18  ;;  %v2490_v47 = vmul.f32 %v18314_v25, %v19019_v62  ;;  %v19105_v11 = vld [vmem:[#allocation2 + $0x860] sm:$0xff]  ;;  %v586_v58 = vld [vmem:[#allocation2 + $0xd8] sm:$0x3] }
 0x19d   : > { %v2492_v42 = vmul.f32 %v18314_v25, %v19069_v4  ;;  %v2493_v53 = vmul.f32 %v18314_v25, %v19075_v28  ;;  %v2494_v12 = vmul.f32 %v18314_v25, %v19077_v57  ;;  %v2592_v49 = vadd.f32 %v2488_v17, %v2276_v36  ;;  %v590_v13 = vld [vmem:[#allocation2 + $0xf8] sm:$0x3] }
 0x19e   : > { %v2593_v37 = vadd.f32 %v2489_v3, %v2277_v48  ;;  %v2594_v32 = vadd.f32 %v2490_v47, %v2278_v16  ;;  %v2804_v43 = vmul.f32 %v18347_v63, %v19029_v33  ;;  %v2805_v44 = vmul.f32 %v18347_v63, %v19035_v38  ;;  %v19111_v48 = vld [vmem:[#allocation2 + $0x868] sm:$0xff]  ;;  %v19113_v16 = vld [vmem:[#allocation2 + $0x870] sm:$0xff] }
 0x19f   : > { %v2596_v8 = vadd.f32 %v2492_v42, %v2280_v7  ;;  %v2597_v45 = vadd.f32 %v2493_v53, %v2281_v2  ;;  %v2598_v19 = vadd.f32 %v2494_v12, %v2282_v31  ;;  %v2806_v30 = vmul.f32 %v18347_v63, %v19037_v52  ;;  %v797_v42 = vld [vmem:[#allocation2 + $0x458] sm:$0x3] }
 0x1a0   : > { %v2808_v9 = vmul.f32 %v18347_v63, %v19087_v34  ;;  %v2809_v15 = vmul.f32 %v18347_v63, %v19093_v22  ;;  %v2810_v27 = vmul.f32 %v18347_v63, %v19095_v50  ;;  %v2908_v46 = vadd.f32 %v2804_v43, %v2592_v49  ;;  %v801_v53 = vld [vmem:[#allocation2 + $0x478] sm:$0x3] }
 0x1a1   : > { %v2909_v40 = vadd.f32 %v2805_v44, %v2593_v37  ;;  %v2910_v60 = vadd.f32 %v2806_v30, %v2594_v32  ;;  %v3120_v18 = vmul.f32 %v18350_v1, %v19047_v39  ;;  %v3121_v59 = vmul.f32 %v18350_v1, %v19053_v26 }
 0x1a2   : > { %v2912_v35 = vadd.f32 %v2808_v9, %v2596_v8  ;;  %v2913_v56 = vadd.f32 %v2809_v15, %v2597_v45  ;;  %v2914_v36 = vadd.f32 %v2810_v27, %v2598_v19  ;;  %v3122_v7 = vmul.f32 %v18350_v1, %v19055_v29  ;;  %v1112_v27 = vld [vmem:[#allocation2 + $0x7d8] sm:$0x3] }
 0x1a3   : > { %v3124_v17 = vmul.f32 %v18350_v1, %v19105_v11  ;;  %v3125_v3 = vmul.f32 %v18350_v1, %v19111_v48  ;;  %v3126_v2 = vmul.f32 %v18350_v1, %v19113_v16  ;;  %v3224_v31 = vadd.f32 %v3120_v18, %v2908_v46  ;;  %v1116_v46 = vld [vmem:[#allocation2 + $0x7f8] sm:$0x3] }
 0x1a4   : > { %v3225_v47 = vadd.f32 %v3121_v59, %v2909_v40  ;;  %v3226_v12 = vadd.f32 %v3122_v7, %v2910_v60  ;;  %v693_v37 = vmul.f32 %v18205_v6, %v586_v58  ;;  %v697_v32 = vmul.f32 %v18205_v6, %v590_v13  ;;  %v1428_v40 = vld [vmem:[#allocation2 + $0xf8] sm:$0x3] }
 0x1a5   : > { %v3228_v49 = vadd.f32 %v3124_v17, %v2912_v35  ;;  %v3229_v8 = vadd.f32 %v3125_v3, %v2913_v56  ;;  %v3230_v43 = vadd.f32 %v3126_v2, %v2914_v36  ;;  %v3330_v44 = vadd.f32 %v18215_v10, %v3224_v31  ;;  %v1432_v58 = vld [vmem:[#allocation2 + $0x118] sm:$0x3] }
 0x1a6   : > { %v3331_v45 = vadd.f32 %v18215_v10, %v3225_v47  ;;  %v3332_v19 = vadd.f32 %v18215_v10, %v3226_v12  ;;  %v904_v9 = vmul.f32 %v18225_v20, %v797_v42  ;;  %v908_v15 = vmul.f32 %v18225_v20, %v801_v53  ;;  %v1744_v13 = vld [vmem:[#allocation2 + $0x478] sm:$0x3] }
 0x1a7   : > { %v3334_v30 = vadd.f32 %v18215_v10, %v3228_v49  ;;  %v3335_v60 = vadd.f32 %v18215_v10, %v3229_v8  ;;  %v3336_v35 = vadd.f32 %v18215_v10, %v3230_v43  ;;  %v3434_v18 = vmax.f32 %v3330_v44, 0.0  ;;  %v1748_v3 = vld [vmem:[#allocation2 + $0x498] sm:$0x3] }
 0x1a8   : > { %v3435_v59 = vmax.f32 %v3331_v45, 0.0  ;;  %v3436_v56 = vmax.f32 %v3332_v19, 0.0  ;;  %v1008_v7 = vadd.f32 %v904_v9, %v693_v37  ;;  %v1012_v17 = vadd.f32 %v908_v15, %v697_v32  ;;  %v2060_v53 = vld [vmem:[#allocation2 + $0x7f8] sm:$0x3] }
 0x1a9   : > { %v3438_v36 = vmax.f32 %v3334_v30, 0.0  ;;  %v3439_v2 = vmax.f32 %v3335_v60, 0.0  ;;  %v3440_v31 = vmax.f32 %v3336_v35, 0.0  ;;  %v1219_v47 = vmul.f32 %v18227_v21, %v1112_v27  ;;  %v2064_v12 = vld [vmem:[#allocation2 + $0x818] sm:$0x3] }
 0x1aa   : > { %v1223_v42 = vmul.f32 %v18227_v21, %v1116_v46  ;;  %v1535_v8 = vmul.f32 %v18266_v54, %v1428_v40  ;;  %v1539_v43 = vmul.f32 %v18266_v54, %v1432_v58  ;;  %v1851_v44 = vmul.f32 %v18269_v55, %v1744_v13  ;;  %v2376_v45 = vld [vmem:[#allocation2 + $0x118] sm:$0x3] }
 0x1ab   : > { %v3531_v49 = vmax.f32 %v3434_v18, %v3438_v36  ;;  %v3532_v19 = vmax.f32 %v3435_v59, %v3439_v2  ;;  %v19138_v37 = vmax.f32 %v3436_v56, %v3440_v31  ;;  %v1323_v32 = vadd.f32 %v1219_v47, %v1008_v7  ;;  %v2380_v9 = vld [vmem:[#allocation2 + $0x138] sm:$0x3] }
 0x1ac   : > { %v1327_v30 = vadd.f32 %v1223_v42, %v1012_v17  ;;  %v2692_v15 = vld [vmem:[#allocation2 + $0x498] sm:$0x3]  ;;  %v1855_v46 = vmul.f32 %v18269_v55, %v1748_v3  ;;  %v2167_v35 = vmul.f32 %v18311_v24, %v2060_v53  ;;  %v2171_v40 = vmul.f32 %v18311_v24, %v2064_v12 }
 0x1ad   : > { %23193 = vst [vmem:[#allocation19_spill] sm:$0xff] %v19138_v37  ;;  %v2696_v27 = vld [vmem:[#allocation2 + $0x4b8] sm:$0x3]  ;;  %v3666_v60 = vrot.slane %v3531_v49, 1  ;;  %v3667_v18 = vrot.slane %v3532_v19, 1  ;;  %v3669_v58 = vrot.slane %v19138_v37, 1  ;;  %v1639_v13 = vadd.f32 %v1535_v8, %v1323_v32 }
 0x1ae   : > { %v1643_v36 = vadd.f32 %v1539_v43, %v1327_v30  ;;  %v3008_v59 = vld [vmem:[#allocation2 + $0x818] sm:$0x3]  ;;  %v2483_v7 = vmul.f32 %v18314_v25, %v2376_v45  ;;  %v2487_v17 = vmul.f32 %v18314_v25, %v2380_v9  ;;  %v2799_v2 = vmul.f32 %v18347_v63, %v2692_v15 }
 0x1af   : > { %v3012_v56 = vld [vmem:[#allocation2 + $0x838] sm:$0x3]  ;;  %v2803_v31 = vmul.f32 %v18347_v63, %v2696_v27  ;;  %v3668_v42 = vsel %vm3637_vm7, %v3666_v60, %v3667_v18  ;;  %v3670_v53 = vsel %vm3637_vm7, %v3667_v18, %v3669_v58  ;;  %v1955_v12 = vadd.f32 %v1851_v44, %v1639_v13 }
 0x1b0   : > { %v594_v3 = vld [vmem:[#allocation2 + $0x118] sm:$0x3]  ;;  %v1959_v8 = vadd.f32 %v1855_v46, %v1643_v36  ;;  %v3797_v45 = vmax.f32 %v3531_v49, %v3668_v42  ;;  %v3798_v51 = vmax.f32 %v3532_v19, %v3670_v53  ;;  %v3115_v9 = vmul.f32 %v18350_v1, %v3008_v59 }
 0x1b1   : > { %v598_v47 = vld [vmem:[#allocation2 + $0x138] sm:$0x3]  ;;  %v3119_v15 = vmul.f32 %v18350_v1, %v3012_v56  ;;  %v2271_v14 = vadd.f32 %v2167_v35, %v1955_v12  ;;  %v701_v60 = vmul.f32 %v18205_v6, %v594_v3 }
 0x1b2   : > { %v805_v43 = vld [vmem:[#allocation2 + $0x498] sm:$0x3]  ;;  %v2275_v23 = vadd.f32 %v2171_v40, %v1959_v8  ;;  %v705_v37 = vmul.f32 %v18205_v6, %v598_v47  ;;  %v16874_v46 = vpack.c.bf16 %v3798_v51, %v3797_v45  ;;  %v1543_v40 = vmul.f32 %v18266_v54, %v1436_v61 }
 0x1b3   : > { %v809_v32 = vld [vmem:[#allocation2 + $0x4b8] sm:$0x3]  ;;  %v912_v13 = vmul.f32 %v18225_v20, %v805_v43  ;;  %v2587_v56 = vadd.f32 %v2483_v7, %v2271_v14 }
 0x1b4   : > { %v1120_v30 = vld [vmem:[#allocation2 + $0x818] sm:$0x3]  ;;  %v916_v49 = vmul.f32 %v18225_v20, %v809_v32  ;;  %v2591_v42 = vadd.f32 %v2487_v17, %v2275_v23  ;;  %16875 = vmatprep.subr.bf16.mxu0 %v16874_v46 }
 0x1b5   : > { %v1124_v27 = vld [vmem:[#allocation2 + $0x838] sm:$0x3]  ;;  %v1227_v19 = vmul.f32 %v18227_v21, %v1120_v30  ;;  %v1016_v47 = vadd.f32 %v912_v13, %v701_v60  ;;  %16877 = vmatpush3.bf16.msra.mxu0 %v16874_v46  ;;  %v2903_v30 = vadd.f32 %v2799_v2, %v2587_v56 }
 0x1b6   : > { %v1440_v18 = vld [vmem:[#allocation2 + $0x158] sm:$0x3]  ;;  %v1231_v35 = vmul.f32 %v18227_v21, %v1124_v27  ;;  %v1020_v12 = vadd.f32 %v916_v49, %v705_v37  ;;  %v2907_v45 = vadd.f32 %v2803_v31, %v2591_v42 }
 0x1b7   : > { %v1752_v44 = vld [vmem:[#allocation2 + $0x4b8] sm:$0x3]  ;;  %v1547_v51 = vmul.f32 %v18266_v54, %v1440_v18  ;;  %v1331_v17 = vadd.f32 %v1227_v19, %v1016_v47  ;;  %v3219_v13 = vadd.f32 %v3115_v9, %v2903_v30  ;;  %v706_v9 = vmul.f32 %v19015_v5, %v18205_v6 }
 0x1b8   : > { %v1756_v36 = vld [vmem:[#allocation2 + $0x4d8] sm:$0x3]  ;;  %v1859_v8 = vmul.f32 %v18269_v55, %v1752_v44  ;;  %v1335_v27 = vadd.f32 %v1231_v35, %v1020_v12  ;;  %v3223_v44 = vadd.f32 %v3119_v15, %v2907_v45  ;;  %v710_v12 = vmul.f32 %v19069_v4, %v18205_v6 }
 0x1b9   : > { %v2068_v59 = vld [vmem:[#allocation2 + $0x838] sm:$0x3]  ;;  %v1863_v23 = vmul.f32 %v18269_v55, %v1756_v36  ;;  %v1647_v31 = vadd.f32 %v1543_v40, %v1331_v17  ;;  %v3325_v19 = vadd.f32 %v18215_v10, %v3219_v13  ;;  %v708_v40 = vmul.f32 %v19019_v62, %v18205_v6 }
 0x1ba   : > { %v2072_v3 = vld [vmem:[#allocation2 + $0x858] sm:$0x3]  ;;  %v2175_v14 = vmul.f32 %v18311_v24, %v2068_v59  ;;  %v1651_v46 = vadd.f32 %v1547_v51, %v1335_v27  ;;  %v3329_v56 = vadd.f32 %v18215_v10, %v3223_v44  ;;  %v711_v51 = vmul.f32 %v19075_v28, %v18205_v6 }
 0x1bb   : > { %v2384_v53 = vld [vmem:[#allocation2 + $0x158] sm:$0x3]  ;;  %v2179_v60 = vmul.f32 %v18311_v24, %v2072_v3  ;;  %v1963_v15 = vadd.f32 %v1859_v8, %v1647_v31  ;;  %v707_v3 = vmul.f32 %v19017_v0, %v18205_v6  ;;  %v712_v5 = vmul.f32 %v19077_v57, %v18205_v6 }
 0x1bc   : > { %v2388_v43 = vld [vmem:[#allocation2 + $0x178] sm:$0x3]  ;;  %v2491_v37 = vmul.f32 %v18314_v25, %v2384_v53  ;;  %v1967_v35 = vadd.f32 %v1863_v23, %v1651_v46  ;;  %v3429_v53 = vmax.f32 %v3325_v19, 0.0  ;;  %v3433_v47 = vmax.f32 %v3329_v56, 0.0 }
 0x1bd   : > { %v2700_v32 = vld [vmem:[#allocation2 + $0x4d8] sm:$0x3]  ;;  %v2495_v49 = vmul.f32 %v18314_v25, %v2388_v43  ;;  %v2279_v43 = vadd.f32 %v2175_v14, %v1963_v15  ;;  %v917_v8 = vmul.f32 %v19029_v33, %v18225_v20  ;;  %v918_v30 = vmul.f32 %v19035_v38, %v18225_v20 }
 0x1be   : > { %v2704_v7 = vld [vmem:[#allocation2 + $0x4f8] sm:$0x3]  ;;  %v2807_v2 = vmul.f32 %v18347_v63, %v2700_v32  ;;  %v2283_v32 = vadd.f32 %v2179_v60, %v1967_v35  ;;  %v3528_v0 = vsel %vm3509_vm8, %v3429_v53, -inf  ;;  %v3529_v62 = vsel %vm3509_vm8, %v3433_v47, -inf }
 0x1bf   : > { %v3016_v61 = vld [vmem:[#allocation2 + $0x858] sm:$0x3]  ;;  %v2811_v36 = vmul.f32 %v18347_v63, %v2704_v7  ;;  %v919_v45 = vmul.f32 %v19037_v52, %v18225_v20  ;;  %v3530_v23 = vmax.f32 %v3528_v0, %v3529_v62  ;;  %v2595_v7 = vadd.f32 %v2491_v37, %v2279_v43  ;;  %v19222_v0 = vld [vmem:[#allocation2 + $0x188] sm:$0xff] }
 0x1c0   : > { %v3020_v18 = vld [vmem:[#allocation2 + $0x878] sm:$0x3]  ;;  %v3123_v59 = vmul.f32 %v18350_v1, %v3016_v61  ;;  %v2599_v14 = vadd.f32 %v2495_v49, %v2283_v32  ;;  %v921_v61 = vmul.f32 %v19087_v34, %v18225_v20  ;;  %v922_v17 = vmul.f32 %v19093_v22, %v18225_v20 }
 0x1c1   : > { %v3127_v42 = vmul.f32 %v18350_v1, %v3020_v18  ;;  %v923_v33 = vmul.f32 %v19095_v50, %v18225_v20  ;;  %v1021_v27 = vadd.f32 %v917_v8, %v706_v9  ;;  %v1022_v60 = vadd.f32 %v918_v30, %v707_v3  ;;  %v19220_v8 = vld [vmem:[#allocation2 + $0x180] sm:$0xff] }
 0x1c2   : > { %v3664_v18 = vrot.slane %v3530_v23, 1  ;;  %v2911_v13 = vadd.f32 %v2807_v2, %v2595_v7  ;;  %v2915_v38 = vadd.f32 %v2811_v36, %v2599_v14  ;;  %v1023_v44 = vadd.f32 %v919_v45, %v708_v40  ;;  %v19234_v14 = vld [vmem:[#allocation2 + $0x190] sm:$0xff] }
 0x1c3   : > { %v1025_v31 = vadd.f32 %v921_v61, %v710_v12  ;;  %v1026_v52 = vadd.f32 %v922_v17, %v711_v51  ;;  %v1027_v46 = vadd.f32 %v923_v33, %v712_v5  ;;  %v1232_v37 = vmul.f32 %v19047_v39, %v18227_v21 }
 0x1c4   : > { %v23194_v49 = vrot.slane %v18994_v41, 1  ;;  %v3796_v56 = vmax.f32 %v3530_v23, %v3664_v18  ;;  %v3227_v15 = vadd.f32 %v3123_v59, %v2911_v13  ;;  %v3231_v35 = vadd.f32 %v3127_v42, %v2915_v38 }
 0x1c5   : > { %v1233_v2 = vmul.f32 %v19053_v26, %v18227_v21  ;;  %v1234_v36 = vmul.f32 %v19055_v29, %v18227_v21  ;;  %v1236_v3 = vmul.f32 %v19105_v11, %v18227_v21  ;;  %v1237_v53 = vmul.f32 %v19111_v48, %v18227_v21 }
 0x1c6   : > { %v3665_v19 = vsel %vm3637_vm7, %v23194_v49, %v3664_v18  ;;  %v3333_v39 = vadd.f32 %v18215_v10, %v3227_v15  ;;  %v3337_v40 = vadd.f32 %v18215_v10, %v3231_v35  ;;  %v1238_v59 = vmul.f32 %v19113_v16, %v18227_v21 }
 0x1c7   : > { %v3795_v9 = vmax.f32 %v18994_v41, %v3665_v19  ;;  %v1336_v42 = vadd.f32 %v1232_v37, %v1021_v27  ;;  %v1337_v47 = vadd.f32 %v1233_v2, %v1022_v60  ;;  %v1338_v26 = vadd.f32 %v1234_v36, %v1023_v44  ;;  %v23196_v19 = vld [vmem:[#allocation17_spill] sm:$0xff] }
 0x1c8   : > { %v3437_v12 = vmax.f32 %v3333_v39, 0.0  ;;  %v3441_v51 = vmax.f32 %v3337_v40, 0.0  ;;  %v1340_v29 = vadd.f32 %v1236_v3, %v1025_v31  ;;  %v1341_v43 = vadd.f32 %v1237_v53, %v1026_v52  ;;  %v19244_v31 = vld [vmem:[#allocation2 + $0x500] sm:$0xff]  ;;  %v19246_v52 = vld [vmem:[#allocation2 + $0x508] sm:$0xff] }
 0x1c9   : > { %v16868_v41 = vpack.c.bf16 %v3796_v56, %v3795_v9  ;;  %v1342_v5 = vadd.f32 %v1238_v59, %v1027_v46  ;;  %v1548_v62 = vmul.f32 %v19069_v4, %v18266_v54  ;;  %v1549_v30 = vmul.f32 %v19075_v28, %v18266_v54  ;;  %v19248_v46 = vld [vmem:[#allocation2 + $0x510] sm:$0xff]  ;;  %v23197_v9 = vld [vmem:[#allocation15_spill] sm:$0xff] }
 0x1ca   : > { %v1550_v45 = vmul.f32 %v19077_v57, %v18266_v54  ;;  %v3534_v23 = vsel %vm3509_vm8, %v3437_v12, -inf  ;;  %v3535_v7 = vsel %vm3509_vm8, %v3441_v51, -inf  ;;  %v1552_v61 = vmul.f32 %v18266_v54, %v19220_v8 }
 0x1cb   : > { %16870 = vmatprep.subr.msk.bf16.mxu1 %vm18514_vm11, %v16868_v41  ;;  %v1553_v4 = vmul.f32 %v18266_v54, %v19222_v0  ;;  %v3536_v17 = vmax.f32 %v3534_v23, %v3535_v7  ;;  %v1554_v28 = vmul.f32 %v18266_v54, %v19234_v14  ;;  %v1652_v57 = vadd.f32 %v1548_v62, %v1336_v42  ;;  %v19270_v42 = vld [vmem:[#allocation2 + $0x888] sm:$0xff]  ;;  %v19290_v7 = vld [vmem:[#allocation2 + $0x1a0] sm:$0xff] }
 0x1cc   : > { %16873 = vmatpush3.bf16.msk.msra.mxu1 %vm18514_vm11, %v16868_v41  ;;  %v1653_v33 = vadd.f32 %v1549_v30, %v1337_v47  ;;  %v1654_v27 = vadd.f32 %v1550_v45, %v1338_v26  ;;  %v1656_v60 = vadd.f32 %v1552_v61, %v1340_v29  ;;  %v1864_v13 = vmul.f32 %v19087_v34, %v18269_v55  ;;  %v19268_v41 = vld [vmem:[#allocation2 + $0x880] sm:$0xff]  ;;  %v19272_v47 = vld [vmem:[#allocation2 + $0x890] sm:$0xff]  ;;  %v19292_v61 = vld [vmem:[#allocation2 + $0x1a8] sm:$0xff] }
 0x1cd   : > { %v1657_v18 = vadd.f32 %v1553_v4, %v1341_v43  ;;  %v3671_v38 = vrot.slane %v3536_v17, 1  ;;  %v1658_v44 = vadd.f32 %v1554_v28, %v1342_v5  ;;  %v1865_v37 = vmul.f32 %v19093_v22, %v18269_v55  ;;  %v23198_v22 = vld [vmem:[#allocation19_spill] sm:$0xff]  ;;  %v19294_v4 = vld [vmem:[#allocation2 + $0x1b0] sm:$0xff] }
 0x1ce   : > { %v1866_v49 = vmul.f32 %v19095_v50, %v18269_v55  ;;  %v1868_v34 = vmul.f32 %v18269_v55, %v19244_v31  ;;  %v1869_v56 = vmul.f32 %v18269_v55, %v19246_v52  ;;  %v1870_v15 = vmul.f32 %v18269_v55, %v19248_v46 }
 0x1cf   : > { %16047 = vmatmul.mubr.msk.f32.vlgmr.msra.gmra.mrb[2].mxu1 %vm3833_vm6, %v23196_v19  ;;  %v1968_v35 = vadd.f32 %v1864_v13, %v1652_v57  ;;  %v3672_v50 = vsel %vm3637_vm7, %v3669_v58, %v3671_v38  ;;  %v3800_v2 = vmax.f32 %v3536_v17, %v3671_v38  ;;  %v1969_v36 = vadd.f32 %v1865_v37, %v1653_v33 }
 0x1d0   : > { %16068 = vmatprep.mubr.msk.f32.mxu1 %vm3833_vm6, %v23197_v9  ;;  %v1970_v3 = vadd.f32 %v1866_v49, %v1654_v27  ;;  %v3799_v39 = vmax.f32 %v23198_v22, %v3672_v50  ;;  %v1972_v40 = vadd.f32 %v1868_v34, %v1656_v60  ;;  %v1973_v53 = vadd.f32 %v1869_v56, %v1657_v18  ;;  %v19312_v56 = vld [vmem:[#allocation2 + $0x520] sm:$0xff] }
 0x1d1   : > { %v1974_v59 = vadd.f32 %v1870_v15, %v1658_v44  ;;  %v2180_v26 = vmul.f32 %v19105_v11, %v18311_v24  ;;  %v2181_v58 = vmul.f32 %v19111_v48, %v18311_v24  ;;  %v2182_v12 = vmul.f32 %v19113_v16, %v18311_v24  ;;  %v19314_v15 = vld [vmem:[#allocation2 + $0x528] sm:$0xff] }
 0x1d2   : > { %v2184_v51 = vmul.f32 %v18311_v24, %v19268_v41  ;;  %v16878_v29 = vpack.c.bf16 %v3800_v2, %v3799_v39  ;;  %v2185_v43 = vmul.f32 %v18311_v24, %v19270_v42  ;;  %v2186_v5 = vmul.f32 %v18311_v24, %v19272_v47 }
 0x1d3   : > { %v2496_v62 = vmul.f32 %v18314_v25, %v19220_v8  ;;  %v2284_v11 = vadd.f32 %v2180_v26, %v1968_v35  ;;  %v2285_v30 = vadd.f32 %v2181_v58, %v1969_v36  ;;  %v2286_v45 = vadd.f32 %v2182_v12, %v1970_v3  ;;  %v19316_v35 = vld [vmem:[#allocation2 + $0x530] sm:$0xff] }
 0x1d4   : > { %v2288_v48 = vadd.f32 %v2184_v51, %v1972_v40  ;;  %16880 = vmatprep.subr.msk.bf16.mxu0 %vm18514_vm11, %v16878_v29  ;;  %v2289_v16 = vadd.f32 %v2185_v43, %v1973_v53  ;;  %v2290_v23 = vadd.f32 %v2186_v5, %v1974_v59  ;;  %v2497_v17 = vmul.f32 %v18314_v25, %v19222_v0  ;;  %v19334_v51 = vld [vmem:[#allocation2 + $0x8a0] sm:$0xff]  ;;  %v19338_v43 = vld [vmem:[#allocation2 + $0x8b0] sm:$0xff] }
 0x1d5   : > { %v2498_v28 = vmul.f32 %v18314_v25, %v19234_v14  ;;  %16883 = vmatpush3.bf16.msk.msra.mxu0 %vm18514_vm11, %v16878_v29  ;;  %v2500_v57 = vmul.f32 %v18314_v25, %v19290_v7  ;;  %v2501_v33 = vmul.f32 %v18314_v25, %v19292_v61  ;;  %v2502_v27 = vmul.f32 %v18314_v25, %v19294_v4  ;;  %v19336_v29 = vld [vmem:[#allocation2 + $0x8a8] sm:$0xff] }
 0x1d6   : > { %v2600_v60 = vadd.f32 %v2496_v62, %v2284_v11  ;;  %v2601_v18 = vadd.f32 %v2497_v17, %v2285_v30  ;;  %v2812_v38 = vmul.f32 %v18347_v63, %v19244_v31  ;;  %v2813_v44 = vmul.f32 %v18347_v63, %v19246_v52 }
 0x1d7   : > { %v2602_v13 = vadd.f32 %v2498_v28, %v2286_v45  ;;  %v2604_v37 = vadd.f32 %v2500_v57, %v2288_v48  ;;  %v2605_v49 = vadd.f32 %v2501_v33, %v2289_v16  ;;  %v2606_v34 = vadd.f32 %v2502_v27, %v2290_v23 }
 0x1d8   : > { %v2814_v22 = vmul.f32 %v18347_v63, %v19248_v46  ;;  %v2816_v50 = vmul.f32 %v18347_v63, %v19312_v56  ;;  %v2817_v2 = vmul.f32 %v18347_v63, %v19314_v15  ;;  %v2818_v36 = vmul.f32 %v18347_v63, %v19316_v35  ;;  %16058 = vmatmul.mubr.msk.f32.vlgmr.msra.gmra.mrb[4].mxu0 %vm3833_vm6, %v23196_v19 }
 0x1d9   : > { %v2916_v3 = vadd.f32 %v2812_v38, %v2600_v60  ;;  %v2917_v39 = vadd.f32 %v2813_v44, %v2601_v18  ;;  %v3128_v53 = vmul.f32 %v18350_v1, %v19268_v41  ;;  %v3129_v59 = vmul.f32 %v18350_v1, %v19270_v42  ;;  %16079 = vmatprep.mubr.msk.f32.mxu0 %vm3833_vm6, %v23197_v9  ;;  %v1452_v9 = vld [vmem:[#allocation2 + $0x1b8] sm:$0x3] }
 0x1da   : > { %v2918_v40 = vadd.f32 %v2814_v22, %v2602_v13  ;;  %v2920_v26 = vadd.f32 %v2816_v50, %v2604_v37  ;;  %v2921_v58 = vadd.f32 %v2817_v2, %v2605_v49  ;;  %v2922_v12 = vadd.f32 %v2818_v36, %v2606_v34 }
 0x1db   : > { %v3130_v5 = vmul.f32 %v18350_v1, %v19272_v47  ;;  %v3132_v62 = vmul.f32 %v18350_v1, %v19334_v51  ;;  %v3133_v11 = vmul.f32 %v18350_v1, %v19336_v29  ;;  %v3134_v30 = vmul.f32 %v18350_v1, %v19338_v43 }
 0x1dc   : > { %v3232_v45 = vadd.f32 %v3128_v53, %v2916_v3  ;;  %v3233_v48 = vadd.f32 %v3129_v59, %v2917_v39  ;;  %v714_v23 = vmul.f32 %v19220_v8, %v18205_v6  ;;  %v715_v17 = vmul.f32 %v19222_v0, %v18205_v6 }
 0x1dd   : > { %v3234_v16 = vadd.f32 %v3130_v5, %v2918_v40  ;;  %v3236_v28 = vadd.f32 %v3132_v62, %v2920_v26  ;;  %v3237_v57 = vadd.f32 %v3133_v11, %v2921_v58  ;;  %v3238_v33 = vadd.f32 %v3134_v30, %v2922_v12 }
 0x1de   : > { %v3338_v27 = vadd.f32 %v18215_v10, %v3232_v45  ;;  %v3339_v60 = vadd.f32 %v18215_v10, %v3233_v48  ;;  %v716_v13 = vmul.f32 %v19234_v14, %v18205_v6  ;;  %v718_v38 = vmul.f32 %v19290_v7, %v18205_v6 }
 0x1df   : > { %v3340_v18 = vadd.f32 %v18215_v10, %v3234_v16  ;;  %v3342_v8 = vadd.f32 %v18215_v10, %v3236_v28  ;;  %v3343_v44 = vadd.f32 %v18215_v10, %v3237_v57  ;;  %v3344_v0 = vadd.f32 %v18215_v10, %v3238_v33 }
 0x1e0   : > { %v3442_v37 = vmax.f32 %v3338_v27, 0.0  ;;  %v3443_v49 = vmax.f32 %v3339_v60, 0.0  ;;  %v719_v22 = vmul.f32 %v19292_v61, %v18205_v6  ;;  %v720_v50 = vmul.f32 %v19294_v4, %v18205_v6 }
 0x1e1   : > { %v3444_v34 = vmax.f32 %v3340_v18, 0.0  ;;  %v3446_v2 = vmax.f32 %v3342_v8, 0.0  ;;  %v3447_v14 = vmax.f32 %v3343_v44, 0.0  ;;  %v3448_v36 = vmax.f32 %v3344_v0, 0.0  ;;  %v19401_v8 = vld [vmem:[#allocation2 + $0x1d0] sm:$0xff] }
 0x1e2   : > { %v925_v3 = vmul.f32 %v19244_v31, %v18225_v20  ;;  %v926_v39 = vmul.f32 %v19246_v52, %v18225_v20  ;;  %v927_v40 = vmul.f32 %v19248_v46, %v18225_v20  ;;  %v929_v53 = vmul.f32 %v19312_v56, %v18225_v20 }
 0x1e3   : > { %v930_v59 = vmul.f32 %v19314_v15, %v18225_v20  ;;  %v3537_v26 = vmax.f32 %v3442_v37, %v3446_v2  ;;  %v3538_v58 = vmax.f32 %v3443_v49, %v3447_v14  ;;  %v19376_v12 = vmax.f32 %v3444_v34, %v3448_v36 }
 0x1e4   : > { %v931_v5 = vmul.f32 %v19316_v35, %v18225_v20  ;;  %v1029_v31 = vadd.f32 %v925_v3, %v714_v23  ;;  %v1030_v62 = vadd.f32 %v926_v39, %v715_v17  ;;  %v1031_v11 = vadd.f32 %v927_v40, %v716_v13  ;;  %v19415_v40 = vld [vmem:[#allocation2 + $0x540] sm:$0xff] }
 0x1e5   : > { %v1033_v52 = vadd.f32 %v929_v53, %v718_v38  ;;  %v3673_v30 = vrot.slane %v3537_v26, 1  ;;  %v3674_v45 = vrot.slane %v3538_v58, 1  ;;  %v23120_v46 = vrot.slane %v19376_v12, 1  ;;  %v19397_v38 = vld [vmem:[#allocation2 + $0x1c0] sm:$0xff]  ;;  %v19417_v53 = vld [vmem:[#allocation2 + $0x548] sm:$0xff] }
 0x1e6   : > { %v1034_v48 = vadd.f32 %v930_v59, %v719_v22  ;;  %v1035_v16 = vadd.f32 %v931_v5, %v720_v50  ;;  %v1240_v28 = vmul.f32 %v19268_v41, %v18227_v21  ;;  %v1241_v57 = vmul.f32 %v19270_v42, %v18227_v21 }
 0x1e7   : > { %v1242_v33 = vmul.f32 %v19272_v47, %v18227_v21  ;;  %v3675_v23 = vsel %vm3637_vm7, %v3673_v30, %v3674_v45  ;;  %v3677_v17 = vsel %vm3637_vm7, %v3674_v45, %v23120_v46  ;;  %v1244_v27 = vmul.f32 %v19334_v51, %v18227_v21  ;;  %v19399_v47 = vld [vmem:[#allocation2 + $0x1c8] sm:$0xff]  ;;  %v19433_v45 = vld [vmem:[#allocation2 + $0x8c0] sm:$0xff]  ;;  %v1140_v46 = vld [vmem:[#allocation2 + $0x8b8] sm:$0x3] }
 0x1e8   : > { %v1245_v60 = vmul.f32 %v19336_v29, %v18227_v21  ;;  %v3801_v18 = vmax.f32 %v3537_v26, %v3675_v23  ;;  %v3802_v41 = vmax.f32 %v3538_v58, %v3677_v17  ;;  %v1246_v42 = vmul.f32 %v19338_v43, %v18227_v21 }
 0x1e9   : > { %v1344_v13 = vadd.f32 %v1240_v28, %v1029_v31  ;;  %v1345_v44 = vadd.f32 %v1241_v57, %v1030_v62  ;;  %v1346_v0 = vadd.f32 %v1242_v33, %v1031_v11  ;;  %v1348_v37 = vadd.f32 %v1244_v27, %v1033_v52 }
 0x1ea   : > { %v1349_v49 = vadd.f32 %v1245_v60, %v1034_v48  ;;  %v16884_v34 = vpack.c.bf16 %v3802_v41, %v3801_v18  ;;  %v1350_v22 = vadd.f32 %v1246_v42, %v1035_v16  ;;  %v1556_v50 = vmul.f32 %v19290_v7, %v18266_v54  ;;  %v19419_v7 = vld [vmem:[#allocation2 + $0x550] sm:$0xff] }
 0x1eb   : > { %v1557_v2 = vmul.f32 %v19292_v61, %v18266_v54  ;;  %v1558_v14 = vmul.f32 %v19294_v4, %v18266_v54  ;;  %v1560_v36 = vmul.f32 %v18266_v54, %v19397_v38  ;;  %v1561_v3 = vmul.f32 %v18266_v54, %v19399_v47  ;;  %v19437_v48 = vld [vmem:[#allocation2 + $0x8d0] sm:$0xff] }
 0x1ec   : > { %v1562_v39 = vmul.f32 %v18266_v54, %v19401_v8  ;;  %16885 = vmatprep.subr.bf16.mxu1 %v16884_v34  ;;  %v1660_v61 = vadd.f32 %v1556_v50, %v1344_v13  ;;  %v1872_v4 = vmul.f32 %v19312_v56, %v18269_v55  ;;  %v1873_v26 = vmul.f32 %v19314_v15, %v18269_v55  ;;  %v19435_v15 = vld [vmem:[#allocation2 + $0x8c8] sm:$0xff]  ;;  %v19459_v50 = vld [vmem:[#allocation2 + $0x1f0] sm:$0xff] }
 0x1ed   : > { %v1661_v59 = vadd.f32 %v1557_v2, %v1345_v44  ;;  %16887 = vmatpush3.bf16.msra.mxu1 %v16884_v34  ;;  %v1662_v58 = vadd.f32 %v1558_v14, %v1346_v0  ;;  %v1664_v5 = vadd.f32 %v1560_v36, %v1348_v37  ;;  %v1665_v31 = vadd.f32 %v1561_v3, %v1349_v49  ;;  %v19455_v34 = vld [vmem:[#allocation2 + $0x1e0] sm:$0xff] }
 0x1ee   : > { %v1666_v62 = vadd.f32 %v1562_v39, %v1350_v22  ;;  %v1874_v11 = vmul.f32 %v19316_v35, %v18269_v55  ;;  %v1876_v52 = vmul.f32 %v18269_v55, %v19415_v40  ;;  %v1877_v30 = vmul.f32 %v18269_v55, %v19417_v53  ;;  %v19457_v22 = vld [vmem:[#allocation2 + $0x1e8] sm:$0xff] }
 0x1ef   : > { %v1878_v56 = vmul.f32 %v18269_v55, %v19419_v7  ;;  %v1976_v16 = vadd.f32 %v1872_v4, %v1660_v61  ;;  %v1977_v28 = vadd.f32 %v1873_v26, %v1661_v59  ;;  %v2188_v35 = vmul.f32 %v19334_v51, %v18311_v24 }
 0x1f0   : > { %v2189_v57 = vmul.f32 %v19336_v29, %v18311_v24  ;;  %v1978_v33 = vadd.f32 %v1874_v11, %v1662_v58  ;;  %v1980_v23 = vadd.f32 %v1876_v52, %v1664_v5  ;;  %v1981_v17 = vadd.f32 %v1877_v30, %v1665_v31  ;;  %v19475_v11 = vld [vmem:[#allocation2 + $0x568] sm:$0xff]  ;;  %v19477_v52 = vld [vmem:[#allocation2 + $0x570] sm:$0xff] }
 0x1f1   : > { %v1982_v27 = vadd.f32 %v1878_v56, %v1666_v62  ;;  %v2190_v60 = vmul.f32 %v19338_v43, %v18311_v24  ;;  %v2192_v18 = vmul.f32 %v18311_v24, %v19433_v45  ;;  %v2193_v41 = vmul.f32 %v18311_v24, %v19435_v15  ;;  %v19473_v62 = vld [vmem:[#allocation2 + $0x560] sm:$0xff] }
 0x1f2   : > { %v2194_v42 = vmul.f32 %v18311_v24, %v19437_v48  ;;  %v2292_v51 = vadd.f32 %v2188_v35, %v1976_v16  ;;  %v2293_v13 = vadd.f32 %v2189_v57, %v1977_v28  ;;  %v2504_v29 = vmul.f32 %v18314_v25, %v19397_v38 }
 0x1f3   : > { %v2505_v44 = vmul.f32 %v18314_v25, %v19399_v47  ;;  %v2294_v0 = vadd.f32 %v2190_v60, %v1978_v33  ;;  %v2296_v37 = vadd.f32 %v2192_v18, %v1980_v23  ;;  %v2297_v43 = vadd.f32 %v2193_v41, %v1981_v17  ;;  %v602_v17 = vld [vmem:[#allocation2 + $0x158] sm:$0x3] }
 0x1f4   : > { %v2298_v49 = vadd.f32 %v2194_v42, %v1982_v27  ;;  %v2506_v2 = vmul.f32 %v18314_v25, %v19401_v8  ;;  %v2508_v14 = vmul.f32 %v18314_v25, %v19455_v34  ;;  %v2509_v36 = vmul.f32 %v18314_v25, %v19457_v22  ;;  %v606_v27 = vld [vmem:[#allocation2 + $0x178] sm:$0x3] }
 0x1f5   : > { %v2510_v3 = vmul.f32 %v18314_v25, %v19459_v50  ;;  %v2608_v39 = vadd.f32 %v2504_v29, %v2292_v51  ;;  %v2609_v61 = vadd.f32 %v2505_v44, %v2293_v13  ;;  %v2820_v59 = vmul.f32 %v18347_v63, %v19415_v40  ;;  %v19491_v51 = vld [vmem:[#allocation2 + $0x8e0] sm:$0xff]  ;;  %v19493_v13 = vld [vmem:[#allocation2 + $0x8e8] sm:$0xff]  ;;  %v19495_v29 = vld [vmem:[#allocation2 + $0x8f0] sm:$0xff] }
 0x1f6   : > { %v2821_v4 = vmul.f32 %v18347_v63, %v19417_v53  ;;  %v2610_v26 = vadd.f32 %v2506_v2, %v2294_v0  ;;  %v2612_v58 = vadd.f32 %v2508_v14, %v2296_v37  ;;  %v2613_v5 = vadd.f32 %v2509_v36, %v2297_v43  ;;  %23199 = vst [vmem:[#allocation20_spill] sm:$0xff] %v19495_v29  ;;  %v817_v2 = vld [vmem:[#allocation2 + $0x4f8] sm:$0x3] }
 0x1f7   : > { %v2614_v31 = vadd.f32 %v2510_v3, %v2298_v49  ;;  %v2822_v30 = vmul.f32 %v18347_v63, %v19419_v7  ;;  %v2824_v56 = vmul.f32 %v18347_v63, %v19473_v62  ;;  %v2825_v16 = vmul.f32 %v18347_v63, %v19475_v11  ;;  %v813_v49 = vld [vmem:[#allocation2 + $0x4d8] sm:$0x3] }
 0x1f8   : > { %v2826_v28 = vmul.f32 %v18347_v63, %v19477_v52  ;;  %v2924_v35 = vadd.f32 %v2820_v59, %v2608_v39  ;;  %v2925_v57 = vadd.f32 %v2821_v4, %v2609_v61  ;;  %v3136_v33 = vmul.f32 %v18350_v1, %v19433_v45 }
 0x1f9   : > { %v3137_v23 = vmul.f32 %v18350_v1, %v19435_v15  ;;  %v2926_v60 = vadd.f32 %v2822_v30, %v2610_v26  ;;  %v2928_v18 = vadd.f32 %v2824_v56, %v2612_v58  ;;  %v2929_v41 = vadd.f32 %v2825_v16, %v2613_v5  ;;  %v1128_v56 = vld [vmem:[#allocation2 + $0x858] sm:$0x3] }
 0x1fa   : > { %v2930_v42 = vadd.f32 %v2826_v28, %v2614_v31  ;;  %v3138_v44 = vmul.f32 %v18350_v1, %v19437_v48  ;;  %v3140_v0 = vmul.f32 %v18350_v1, %v19491_v51  ;;  %v3141_v37 = vmul.f32 %v18350_v1, %v19493_v13 }
 0x1fb   : > { %v3142_v43 = vmul.f32 %v18350_v1, %v19495_v29  ;;  %v3240_v14 = vadd.f32 %v3136_v33, %v2924_v35  ;;  %v3241_v36 = vadd.f32 %v3137_v23, %v2925_v57  ;;  %v709_v3 = vmul.f32 %v18205_v6, %v602_v17  ;;  %v1132_v33 = vld [vmem:[#allocation2 + $0x878] sm:$0x3] }
 0x1fc   : > { %v713_v39 = vmul.f32 %v18205_v6, %v606_v27  ;;  %v3242_v61 = vadd.f32 %v3138_v44, %v2926_v60  ;;  %v3244_v59 = vadd.f32 %v3140_v0, %v2928_v18  ;;  %v3245_v4 = vadd.f32 %v3141_v37, %v2929_v41  ;;  %v1444_v23 = vld [vmem:[#allocation2 + $0x178] sm:$0x3] }
 0x1fd   : > { %v3246_v26 = vadd.f32 %v3142_v43, %v2930_v42  ;;  %v3346_v58 = vadd.f32 %v18215_v10, %v3240_v14  ;;  %v3347_v5 = vadd.f32 %v18215_v10, %v3241_v36  ;;  %v920_v31 = vmul.f32 %v18225_v20, %v813_v49  ;;  %v1448_v17 = vld [vmem:[#allocation2 + $0x198] sm:$0x3] }
 0x1fe   : > { %v924_v30 = vmul.f32 %v18225_v20, %v817_v2  ;;  %v3348_v16 = vadd.f32 %v18215_v10, %v3242_v61  ;;  %v3350_v28 = vadd.f32 %v18215_v10, %v3244_v59  ;;  %v3351_v35 = vadd.f32 %v18215_v10, %v3245_v4  ;;  %v1760_v42 = vld [vmem:[#allocation2 + $0x4f8] sm:$0x3] }
 0x1ff   : > { %v3352_v57 = vadd.f32 %v18215_v10, %v3246_v26  ;;  %v3450_v27 = vmax.f32 %v3346_v58, 0.0  ;;  %v3451_v60 = vmax.f32 %v3347_v5, 0.0  ;;  %v1024_v18 = vadd.f32 %v920_v31, %v709_v3  ;;  %v1764_v44 = vld [vmem:[#allocation2 + $0x518] sm:$0x3] }
 0x200   : > { %v1028_v41 = vadd.f32 %v924_v30, %v713_v39  ;;  %v3452_v0 = vmax.f32 %v3348_v16, 0.0  ;;  %v3454_v37 = vmax.f32 %v3350_v28, 0.0  ;;  %v3455_v43 = vmax.f32 %v3351_v35, 0.0  ;;  %v2076_v2 = vld [vmem:[#allocation2 + $0x878] sm:$0x3] }
 0x201   : > { %v3456_v49 = vmax.f32 %v3352_v57, 0.0  ;;  %v1235_v14 = vmul.f32 %v18227_v21, %v1128_v56  ;;  %v1239_v36 = vmul.f32 %v18227_v21, %v1132_v33  ;;  %v1551_v61 = vmul.f32 %v18266_v54, %v1444_v23  ;;  %v2080_v4 = vld [vmem:[#allocation2 + $0x898] sm:$0x3] }
 0x202   : > { %v1555_v59 = vmul.f32 %v18266_v54, %v1448_v17  ;;  %v3543_v26 = vmax.f32 %v3450_v27, %v3454_v37  ;;  %v3544_v58 = vmax.f32 %v3451_v60, %v3455_v43  ;;  %v1867_v39 = vmul.f32 %v18269_v55, %v1760_v42  ;;  %v2392_v5 = vld [vmem:[#allocation2 + $0x198] sm:$0x3] }
 0x203   : > { %v19519_v3 = vmax.f32 %v3452_v0, %v3456_v49  ;;  %v2396_v31 = vld [vmem:[#allocation2 + $0x1b8] sm:$0x3]  ;;  %v1339_v30 = vadd.f32 %v1235_v14, %v1024_v18  ;;  %v1343_v16 = vadd.f32 %v1239_v36, %v1028_v41  ;;  %v1871_v28 = vmul.f32 %v18269_v55, %v1764_v44 }
 0x204   : > { %v2183_v56 = vmul.f32 %v18311_v24, %v2076_v2  ;;  %v2708_v35 = vld [vmem:[#allocation2 + $0x518] sm:$0x3]  ;;  %v3680_v33 = vrot.slane %v3543_v26, 1  ;;  %v3681_v23 = vrot.slane %v3544_v58, 1  ;;  %v2187_v27 = vmul.f32 %v18311_v24, %v2080_v4 }
 0x205   : > { %23200 = vst [vmem:[#allocation19_spill] sm:$0xff] %v19519_v3  ;;  %v2712_v57 = vld [vmem:[#allocation2 + $0x538] sm:$0x3]  ;;  %v23125_v17 = vrot.slane %v19519_v3, 1  ;;  %v1655_v0 = vadd.f32 %v1551_v61, %v1339_v30  ;;  %v1659_v37 = vadd.f32 %v1555_v59, %v1343_v16  ;;  %v2499_v42 = vmul.f32 %v18314_v25, %v2392_v5 }
 0x206   : > { %v610_v60 = vld [vmem:[#allocation2 + $0x198] sm:$0x3]  ;;  %v2503_v18 = vmul.f32 %v18314_v25, %v2396_v31  ;;  %v3682_v49 = vsel %vm3637_vm7, %v3680_v33, %v3681_v23  ;;  %v2815_v14 = vmul.f32 %v18347_v63, %v2708_v35  ;;  %v2819_v36 = vmul.f32 %v18347_v63, %v2712_v57 }
 0x207   : > { %v3024_v41 = vld [vmem:[#allocation2 + $0x898] sm:$0x3]  ;;  %v3684_v2 = vsel %vm3637_vm7, %v3681_v23, %v23125_v17  ;;  %v3805_v59 = vmax.f32 %v3543_v26, %v3682_v49  ;;  %v1971_v5 = vadd.f32 %v1867_v39, %v1655_v0  ;;  %v1975_v16 = vadd.f32 %v1871_v28, %v1659_v37 }
 0x208   : > { %v3028_v43 = vld [vmem:[#allocation2 + $0x8b8] sm:$0x3]  ;;  %v3806_v30 = vmax.f32 %v3544_v58, %v3684_v2  ;;  %v3131_v19 = vmul.f32 %v18350_v1, %v3024_v41  ;;  %v717_v3 = vmul.f32 %v18205_v6, %v610_v60  ;;  %v1247_v41 = vmul.f32 %v18227_v21, %v1140_v46 }
 0x209   : > { %v614_v44 = vld [vmem:[#allocation2 + $0x1b8] sm:$0x3]  ;;  %v3135_v33 = vmul.f32 %v18350_v1, %v3028_v43  ;;  %v2287_v57 = vadd.f32 %v2183_v56, %v1971_v5  ;;  %v2291_v32 = vadd.f32 %v2187_v27, %v1975_v16  ;;  %v1559_v43 = vmul.f32 %v18266_v54, %v1452_v9 }
 0x20a   : > { %v821_v4 = vld [vmem:[#allocation2 + $0x518] sm:$0x3]  ;;  %v721_v23 = vmul.f32 %v18205_v6, %v614_v44  ;;  %v16894_v17 = vpack.c.bf16 %v3806_v30, %v3805_v59 }
 0x20b   : > { %v825_v61 = vld [vmem:[#allocation2 + $0x538] sm:$0x3]  ;;  %v928_v26 = vmul.f32 %v18225_v20, %v821_v4  ;;  %v2603_v44 = vadd.f32 %v2499_v42, %v2287_v57  ;;  %v2607_v49 = vadd.f32 %v2503_v18, %v2291_v32 }
 0x20c   : > { %v1136_v31 = vld [vmem:[#allocation2 + $0x898] sm:$0x3]  ;;  %v932_v0 = vmul.f32 %v18225_v20, %v825_v61  ;;  %16895 = vmatprep.subr.bf16.mxu0 %v16894_v17 }
 0x20d   : > { %v1456_v35 = vld [vmem:[#allocation2 + $0x1d8] sm:$0x3]  ;;  %v1243_v37 = vmul.f32 %v18227_v21, %v1136_v31  ;;  %v1032_v2 = vadd.f32 %v928_v26, %v717_v3  ;;  %16897 = vmatpush3.bf16.msra.mxu0 %v16894_v17  ;;  %v2919_v9 = vadd.f32 %v2815_v14, %v2603_v44  ;;  %v2923_v31 = vadd.f32 %v2819_v36, %v2607_v49 }
 0x20e   : > { %v1768_v58 = vld [vmem:[#allocation2 + $0x538] sm:$0x3]  ;;  %v1563_v56 = vmul.f32 %v18266_v54, %v1456_v35  ;;  %v1036_v30 = vadd.f32 %v932_v0, %v721_v23  ;;  %v722_v0 = vmul.f32 %v19397_v38, %v18205_v6  ;;  %v727_v44 = vmul.f32 %v19457_v22, %v18205_v6 }
 0x20f   : > { %v1772_v39 = vld [vmem:[#allocation2 + $0x558] sm:$0x3]  ;;  %v1875_v61 = vmul.f32 %v18269_v55, %v1768_v58  ;;  %v1347_v29 = vadd.f32 %v1243_v37, %v1032_v2  ;;  %v3235_v57 = vadd.f32 %v3131_v19, %v2919_v9  ;;  %v3239_v26 = vadd.f32 %v3135_v33, %v2923_v31 }
 0x210   : > { %v2084_v28 = vld [vmem:[#allocation2 + $0x8b8] sm:$0x3]  ;;  %v1879_v5 = vmul.f32 %v18269_v55, %v1772_v39  ;;  %v1351_v18 = vadd.f32 %v1247_v41, %v1036_v30  ;;  %v723_v19 = vmul.f32 %v19399_v47, %v18205_v6  ;;  %v933_v47 = vmul.f32 %v19415_v40, %v18225_v20 }
 0x211   : > { %v2088_v60 = vld [vmem:[#allocation2 + $0x8d8] sm:$0x3]  ;;  %v2191_v46 = vmul.f32 %v18311_v24, %v2084_v28  ;;  %v1663_v58 = vadd.f32 %v1559_v43, %v1347_v29  ;;  %v3341_v37 = vadd.f32 %v18215_v10, %v3235_v57  ;;  %v3345_v41 = vadd.f32 %v18215_v10, %v3239_v26 }
 0x212   : > { %v2400_v27 = vld [vmem:[#allocation2 + $0x1d8] sm:$0x3]  ;;  %v2195_v32 = vmul.f32 %v18311_v24, %v2088_v60  ;;  %v1667_v28 = vadd.f32 %v1563_v56, %v1351_v18  ;;  %v724_v29 = vmul.f32 %v19401_v8, %v18205_v6  ;;  %v726_v43 = vmul.f32 %v19455_v34, %v18205_v6 }
 0x213   : > { %v2404_v4 = vld [vmem:[#allocation2 + $0x1f8] sm:$0x3]  ;;  %v2507_v35 = vmul.f32 %v18314_v25, %v2400_v27  ;;  %v1979_v60 = vadd.f32 %v1875_v61, %v1663_v58  ;;  %v3445_v49 = vmax.f32 %v3341_v37, 0.0  ;;  %v3449_v38 = vmax.f32 %v3345_v41, 0.0 }
 0x214   : > { %v2716_v59 = vld [vmem:[#allocation2 + $0x558] sm:$0x3]  ;;  %v2511_v17 = vmul.f32 %v18314_v25, %v2404_v4  ;;  %v1983_v33 = vadd.f32 %v1879_v5, %v1667_v28  ;;  %v728_v56 = vmul.f32 %v19459_v50, %v18205_v6  ;;  %v934_v4 = vmul.f32 %v19417_v53, %v18225_v20 }
 0x215   : > { %v2720_v16 = vld [vmem:[#allocation2 + $0x578] sm:$0x3]  ;;  %v2823_v23 = vmul.f32 %v18347_v63, %v2716_v59  ;;  %v2295_v2 = vadd.f32 %v2191_v46, %v1979_v60  ;;  %v935_v8 = vmul.f32 %v19419_v7, %v18225_v20  ;;  %v3540_v59 = vsel %vm3509_vm8, %v3445_v49, -inf }
 0x216   : > { %v3032_v3 = vld [vmem:[#allocation2 + $0x8d8] sm:$0x3]  ;;  %v2827_v39 = vmul.f32 %v18347_v63, %v2720_v16  ;;  %v2299_v27 = vadd.f32 %v2195_v32, %v1983_v33  ;;  %v3541_v30 = vsel %vm3509_vm8, %v3449_v38, -inf  ;;  %v937_v5 = vmul.f32 %v19473_v62, %v18225_v20 }
 0x217   : > { %v3036_v42 = vld [vmem:[#allocation2 + $0x8f8] sm:$0x3]  ;;  %v3139_v14 = vmul.f32 %v18350_v1, %v3032_v3  ;;  %v2611_v61 = vadd.f32 %v2507_v35, %v2295_v2  ;;  %v3542_v46 = vmax.f32 %v3540_v59, %v3541_v30  ;;  %v938_v9 = vmul.f32 %v19475_v11, %v18225_v20  ;;  %v19609_v59 = vld [vmem:[#allocation2 + $0x210] sm:$0xff] }
 0x218   : > { %v3143_v36 = vmul.f32 %v18350_v1, %v3036_v42  ;;  %v2615_v16 = vadd.f32 %v2511_v17, %v2299_v27  ;;  %v939_v40 = vmul.f32 %v19477_v52, %v18225_v20  ;;  %v1037_v31 = vadd.f32 %v933_v47, %v722_v0 }
 0x219   : > { %v2927_v53 = vadd.f32 %v2823_v23, %v2611_v61  ;;  %v1038_v32 = vadd.f32 %v934_v4, %v723_v19  ;;  %v1039_v7 = vadd.f32 %v935_v8, %v724_v29  ;;  %v3678_v3 = vrot.slane %v3542_v46, 1  ;;  %v23202_v19 = vld [vmem:[#allocation20_spill] sm:$0xff] }
 0x21a   : > { %v2931_v42 = vadd.f32 %v2827_v39, %v2615_v16  ;;  %v1041_v18 = vadd.f32 %v937_v5, %v726_v43  ;;  %v1042_v57 = vadd.f32 %v938_v9, %v727_v44  ;;  %v1043_v26 = vadd.f32 %v939_v40, %v728_v56  ;;  %v19600_v56 = vld [vmem:[#allocation2 + $0x200] sm:$0xff]  ;;  %v19607_v8 = vld [vmem:[#allocation2 + $0x208] sm:$0xff] }
 0x21b   : > { %v3243_v35 = vadd.f32 %v3139_v14, %v2927_v53  ;;  %v1248_v58 = vmul.f32 %v19433_v45, %v18227_v21  ;;  %v1249_v17 = vmul.f32 %v19435_v15, %v18227_v21  ;;  %v23201_v28 = vrot.slane %v19376_v12, 1 }
 0x21c   : > { %v3804_v23 = vmax.f32 %v3542_v46, %v3678_v3  ;;  %v3247_v0 = vadd.f32 %v3143_v36, %v2931_v42  ;;  %v1250_v41 = vmul.f32 %v19437_v48, %v18227_v21  ;;  %v1252_v60 = vmul.f32 %v19491_v51, %v18227_v21 }
 0x21d   : > { %v3679_v37 = vsel %vm3637_vm7, %v23201_v28, %v3678_v3  ;;  %v3349_v14 = vadd.f32 %v18215_v10, %v3243_v35  ;;  %v1253_v45 = vmul.f32 %v19493_v13, %v18227_v21  ;;  %v1254_v33 = vmul.f32 %v23202_v19, %v18227_v21  ;;  %v19626_v3 = vld [vmem:[#allocation2 + $0x588] sm:$0xff]  ;;  %v19632_v35 = vld [vmem:[#allocation2 + $0x590] sm:$0xff] }
 0x21e   : > { %v3803_v39 = vmax.f32 %v19376_v12, %v3679_v37  ;;  %v3353_v15 = vadd.f32 %v18215_v10, %v3247_v0  ;;  %v1352_v29 = vadd.f32 %v1248_v58, %v1037_v31  ;;  %v1353_v36 = vadd.f32 %v1249_v17, %v1038_v32  ;;  %v23204_v28 = vld [vmem:[#allocation17_spill] sm:$0xff]  ;;  %v23205_v0 = vld [vmem:[#allocation15_spill] sm:$0xff] }
 0x21f   : > { %v3453_v44 = vmax.f32 %v3349_v14, 0.0  ;;  %v1354_v48 = vadd.f32 %v1250_v41, %v1039_v7  ;;  %v1356_v49 = vadd.f32 %v1252_v60, %v1041_v18  ;;  %v1357_v38 = vadd.f32 %v1253_v45, %v1042_v57  ;;  %v19624_v7 = vld [vmem:[#allocation2 + $0x580] sm:$0xff] }
 0x220   : > { %v16888_v43 = vpack.c.bf16 %v3804_v23, %v3803_v39  ;;  %v3457_v12 = vmax.f32 %v3353_v15, 0.0  ;;  %v1358_v2 = vadd.f32 %v1254_v33, %v1043_v26  ;;  %v1564_v27 = vmul.f32 %v19455_v34, %v18266_v54 }
 0x221   : > { %v3546_v4 = vsel %vm3509_vm8, %v3453_v44, -inf  ;;  %v1565_v30 = vmul.f32 %v19457_v22, %v18266_v54  ;;  %v1566_v61 = vmul.f32 %v19459_v50, %v18266_v54  ;;  %v1568_v5 = vmul.f32 %v18266_v54, %v19600_v56  ;;  %v19656_v44 = vld [vmem:[#allocation2 + $0x910] sm:$0xff] }
 0x222   : > { %16890 = vmatprep.subr.msk.bf16.mxu1 %vm18514_vm11, %v16888_v43  ;;  %v3547_v34 = vsel %vm3509_vm8, %v3457_v12, -inf  ;;  %v1569_v46 = vmul.f32 %v18266_v54, %v19607_v8  ;;  %v1570_v16 = vmul.f32 %v18266_v54, %v19609_v59  ;;  %v1668_v9 = vadd.f32 %v1564_v27, %v1352_v29 }
 0x223   : > { %16893 = vmatpush3.bf16.msk.msra.mxu1 %vm18514_vm11, %v16888_v43  ;;  %v3548_v40 = vmax.f32 %v3546_v4, %v3547_v34  ;;  %v1669_v22 = vadd.f32 %v1565_v30, %v1353_v36  ;;  %v1670_v53 = vadd.f32 %v1566_v61, %v1354_v48  ;;  %v1672_v31 = vadd.f32 %v1568_v5, %v1356_v49  ;;  %v19652_v36 = vld [vmem:[#allocation2 + $0x900] sm:$0xff]  ;;  %v19654_v43 = vld [vmem:[#allocation2 + $0x908] sm:$0xff] }
 0x224   : > { %v1673_v50 = vadd.f32 %v1569_v46, %v1357_v38  ;;  %v1674_v32 = vadd.f32 %v1570_v16, %v1358_v2  ;;  %v1880_v42 = vmul.f32 %v19473_v62, %v18269_v55  ;;  %v1881_v18 = vmul.f32 %v19475_v11, %v18269_v55  ;;  %v19672_v46 = vld [vmem:[#allocation2 + $0x228] sm:$0xff]  ;;  %v19676_v16 = vld [vmem:[#allocation2 + $0x230] sm:$0xff] }
 0x225   : > { %v3685_v57 = vrot.slane %v3548_v40, 1  ;;  %v1882_v26 = vmul.f32 %v19477_v52, %v18269_v55  ;;  %v1884_v58 = vmul.f32 %v18269_v55, %v19624_v7  ;;  %v1885_v17 = vmul.f32 %v18269_v55, %v19626_v3  ;;  %v23206_v52 = vld [vmem:[#allocation19_spill] sm:$0xff] }
 0x226   : > { %16069 = vmatmul.mubr.msk.f32.vlgmr.msra.gmra.mrb[4].mxu1 %vm3833_vm6, %v23204_v28  ;;  %v1886_v62 = vmul.f32 %v18269_v55, %v19632_v35  ;;  %v1984_v37 = vadd.f32 %v1880_v42, %v1668_v9  ;;  %v1985_v11 = vadd.f32 %v1881_v18, %v1669_v22  ;;  %v2196_v23 = vmul.f32 %v19491_v51, %v18311_v24 }
 0x227   : > { %16090 = vmatprep.mubr.msk.f32.mxu1 %vm3833_vm6, %v23205_v0  ;;  %v23207_v41 = vrot.slane %v23206_v52, 1  ;;  %v3808_v14 = vmax.f32 %v3548_v40, %v3685_v57  ;;  %v1986_v60 = vadd.f32 %v1882_v26, %v1670_v53  ;;  %v1988_v45 = vadd.f32 %v1884_v58, %v1672_v31 }
 0x228   : > { %v1989_v33 = vadd.f32 %v1885_v17, %v1673_v50  ;;  %v1990_v29 = vadd.f32 %v1886_v62, %v1674_v32  ;;  %v2197_v51 = vmul.f32 %v19493_v13, %v18311_v24  ;;  %v2198_v48 = vmul.f32 %v23202_v19, %v18311_v24  ;;  %v19670_v19 = vld [vmem:[#allocation2 + $0x220] sm:$0xff]  ;;  %v19696_v62 = vld [vmem:[#allocation2 + $0x5a8] sm:$0xff] }
 0x229   : > { %v3686_v39 = vsel %vm3637_vm7, %v23207_v41, %v3685_v57  ;;  %v2200_v49 = vmul.f32 %v18311_v24, %v19652_v36  ;;  %v2201_v12 = vmul.f32 %v18311_v24, %v19654_v43  ;;  %v2202_v38 = vmul.f32 %v18311_v24, %v19656_v44  ;;  %v19694_v17 = vld [vmem:[#allocation2 + $0x5a0] sm:$0xff] }
 0x22a   : > { %v3807_v15 = vmax.f32 %v23206_v52, %v3686_v39  ;;  %v2300_v27 = vadd.f32 %v2196_v23, %v1984_v37  ;;  %v2301_v4 = vadd.f32 %v2197_v51, %v1985_v11  ;;  %v2512_v30 = vmul.f32 %v18314_v25, %v19600_v56  ;;  %v19698_v11 = vld [vmem:[#allocation2 + $0x5b0] sm:$0xff]  ;;  %v19712_v51 = vld [vmem:[#allocation2 + $0x920] sm:$0xff] }
 0x22b   : > { %v2302_v61 = vadd.f32 %v2198_v48, %v1986_v60  ;;  %v2304_v13 = vadd.f32 %v2200_v49, %v1988_v45  ;;  %v2305_v5 = vadd.f32 %v2201_v12, %v1989_v33  ;;  %v2306_v34 = vadd.f32 %v2202_v38, %v1990_v29  ;;  %v19714_v48 = vld [vmem:[#allocation2 + $0x928] sm:$0xff]  ;;  %v19720_v38 = vld [vmem:[#allocation2 + $0x930] sm:$0xff] }
 0x22c   : > { %v16898_v2 = vpack.c.bf16 %v3808_v14, %v3807_v15  ;;  %v2513_v9 = vmul.f32 %v18314_v25, %v19607_v8  ;;  %v2514_v40 = vmul.f32 %v18314_v25, %v19609_v59  ;;  %v2516_v22 = vmul.f32 %v18314_v25, %v19670_v19 }
 0x22d   : > { %v2517_v53 = vmul.f32 %v18314_v25, %v19672_v46  ;;  %v2518_v31 = vmul.f32 %v18314_v25, %v19676_v16  ;;  %v2616_v50 = vadd.f32 %v2512_v30, %v2300_v27  ;;  %v2828_v32 = vmul.f32 %v18347_v63, %v19624_v7 }
 0x22e   : > { %16900 = vmatprep.subr.msk.bf16.mxu0 %vm18514_vm11, %v16898_v2  ;;  %v2829_v42 = vmul.f32 %v18347_v63, %v19626_v3  ;;  %v2617_v18 = vadd.f32 %v2513_v9, %v2301_v4  ;;  %v2618_v57 = vadd.f32 %v2514_v40, %v2302_v61  ;;  %v2620_v26 = vadd.f32 %v2516_v22, %v2304_v13 }
 0x22f   : > { %16903 = vmatpush3.bf16.msk.msra.mxu0 %vm18514_vm11, %v16898_v2  ;;  %v2621_v58 = vadd.f32 %v2517_v53, %v2305_v5  ;;  %v2622_v37 = vadd.f32 %v2518_v31, %v2306_v34  ;;  %v2830_v23 = vmul.f32 %v18347_v63, %v19632_v35  ;;  %v2832_v52 = vmul.f32 %v18347_v63, %v19694_v17 }
 0x230   : > { %v2833_v41 = vmul.f32 %v18347_v63, %v19696_v62  ;;  %v2834_v39 = vmul.f32 %v18347_v63, %v19698_v11  ;;  %v2932_v14 = vadd.f32 %v2828_v32, %v2616_v50  ;;  %v2933_v60 = vadd.f32 %v2829_v42, %v2617_v18 }
 0x231   : > { %v3144_v45 = vmul.f32 %v18350_v1, %v19652_v36  ;;  %v2934_v15 = vadd.f32 %v2830_v23, %v2618_v57  ;;  %v2936_v33 = vadd.f32 %v2832_v52, %v2620_v26  ;;  %v3145_v49 = vmul.f32 %v18350_v1, %v19654_v43 }
 0x232   : > { %16080 = vmatmul.mubr.msk.f32.vlgmr.msra.gmra.mrb[6].mxu0 %vm3833_vm6, %v23204_v28  ;;  %v2937_v29 = vadd.f32 %v2833_v41, %v2621_v58  ;;  %v2938_v12 = vadd.f32 %v2834_v39, %v2622_v37  ;;  %v3146_v2 = vmul.f32 %v18350_v1, %v19656_v44  ;;  %v3148_v27 = vmul.f32 %v18350_v1, %v19712_v51 }
 0x233   : > { %16101 = vmatprep.mubr.msk.f32.mxu0 %vm3833_vm6, %v23205_v0  ;;  %v3149_v4 = vmul.f32 %v18350_v1, %v19714_v48  ;;  %v3150_v30 = vmul.f32 %v18350_v1, %v19720_v38  ;;  %v3248_v61 = vadd.f32 %v3144_v45, %v2932_v14  ;;  %v3249_v13 = vadd.f32 %v3145_v49, %v2933_v60  ;;  %v1468_v0 = vld [vmem:[#allocation2 + $0x238] sm:$0x3] }
 0x234   : > { %v730_v5 = vmul.f32 %v19600_v56, %v18205_v6  ;;  %v3250_v34 = vadd.f32 %v3146_v2, %v2934_v15  ;;  %v3252_v9 = vadd.f32 %v3148_v27, %v2936_v33  ;;  %v731_v22 = vmul.f32 %v19607_v8, %v18205_v6 }
 0x235   : > { %v3253_v40 = vadd.f32 %v3149_v4, %v2937_v29  ;;  %v3254_v53 = vadd.f32 %v3150_v30, %v2938_v12  ;;  %v3354_v31 = vadd.f32 %v18215_v10, %v3248_v61  ;;  %v3355_v50 = vadd.f32 %v18215_v10, %v3249_v13 }
 0x236   : > { %v732_v32 = vmul.f32 %v19609_v59, %v18205_v6  ;;  %v3356_v42 = vadd.f32 %v18215_v10, %v3250_v34  ;;  %v3358_v18 = vadd.f32 %v18215_v10, %v3252_v9  ;;  %v734_v57 = vmul.f32 %v19670_v19, %v18205_v6 }
 0x237   : > { %v3359_v56 = vadd.f32 %v18215_v10, %v3253_v40  ;;  %v3360_v26 = vadd.f32 %v18215_v10, %v3254_v53  ;;  %v3458_v8 = vmax.f32 %v3354_v31, 0.0  ;;  %v3459_v58 = vmax.f32 %v3355_v50, 0.0 }
 0x238   : > { %v735_v37 = vmul.f32 %v19672_v46, %v18205_v6  ;;  %v3460_v23 = vmax.f32 %v3356_v42, 0.0  ;;  %v3462_v52 = vmax.f32 %v3358_v18, 0.0  ;;  %v736_v59 = vmul.f32 %v19676_v16, %v18205_v6  ;;  %v19779_v42 = vld [vmem:[#allocation2 + $0x240] sm:$0xff] }
 0x239   : > { %v3463_v41 = vmax.f32 %v3359_v56, 0.0  ;;  %v3464_v39 = vmax.f32 %v3360_v26, 0.0  ;;  %v941_v14 = vmul.f32 %v19624_v7, %v18225_v20  ;;  %v942_v60 = vmul.f32 %v19626_v3, %v18225_v20  ;;  %v19783_v26 = vld [vmem:[#allocation2 + $0x250] sm:$0xff] }
 0x23a   : > { %v943_v45 = vmul.f32 %v19632_v35, %v18225_v20  ;;  %v3549_v15 = vmax.f32 %v3458_v8, %v3462_v52  ;;  %v945_v29 = vmul.f32 %v19694_v17, %v18225_v20  ;;  %v946_v49 = vmul.f32 %v19696_v62, %v18225_v20 }
 0x23b   : > { %v3550_v33 = vmax.f32 %v3459_v58, %v3463_v41  ;;  %v19758_v12 = vmax.f32 %v3460_v23, %v3464_v39  ;;  %v947_v2 = vmul.f32 %v19698_v11, %v18225_v20  ;;  %v1045_v7 = vadd.f32 %v941_v14, %v730_v5  ;;  %v19793_v14 = vld [vmem:[#allocation2 + $0x5c0] sm:$0xff] }
 0x23c   : > { %v1046_v27 = vadd.f32 %v942_v60, %v731_v22  ;;  %v3687_v4 = vrot.slane %v3549_v15, 1  ;;  %v1047_v30 = vadd.f32 %v943_v45, %v732_v32  ;;  %v1049_v61 = vadd.f32 %v945_v29, %v734_v57  ;;  %v19781_v57 = vld [vmem:[#allocation2 + $0x248] sm:$0xff] }
 0x23d   : > { %v3688_v3 = vrot.slane %v3550_v33, 1  ;;  %v23129_v35 = vrot.slane %v19758_v12, 1  ;;  %v1050_v13 = vadd.f32 %v946_v49, %v735_v37  ;;  %v1051_v34 = vadd.f32 %v947_v2, %v736_v59 }
 0x23e   : > { %v1256_v9 = vmul.f32 %v19652_v36, %v18227_v21  ;;  %v1257_v53 = vmul.f32 %v19654_v43, %v18227_v21  ;;  %v1258_v5 = vmul.f32 %v19656_v44, %v18227_v21  ;;  %v1260_v22 = vmul.f32 %v19712_v51, %v18227_v21 }
 0x23f   : > { %v3689_v40 = vsel %vm3637_vm7, %v3687_v4, %v3688_v3  ;;  %v3691_v31 = vsel %vm3637_vm7, %v3688_v3, %v23129_v35  ;;  %v1261_v32 = vmul.f32 %v19714_v48, %v18227_v21  ;;  %v1262_v36 = vmul.f32 %v19720_v38, %v18227_v21 }
 0x240   : > { %v3809_v50 = vmax.f32 %v3549_v15, %v3689_v40  ;;  %v3810_v43 = vmax.f32 %v3550_v33, %v3691_v31  ;;  %v1360_v18 = vadd.f32 %v1256_v9, %v1045_v7  ;;  %v1361_v56 = vadd.f32 %v1257_v53, %v1046_v27  ;;  %v19801_v33 = vld [vmem:[#allocation2 + $0x5d0] sm:$0xff] }
 0x241   : > { %v1362_v44 = vadd.f32 %v1258_v5, %v1047_v30  ;;  %v1364_v8 = vadd.f32 %v1260_v22, %v1049_v61  ;;  %v1365_v58 = vadd.f32 %v1261_v32, %v1050_v13  ;;  %v1366_v37 = vadd.f32 %v1262_v36, %v1051_v34  ;;  %v19811_v30 = vld [vmem:[#allocation2 + $0x940] sm:$0xff]  ;;  %v19819_v9 = vld [vmem:[#allocation2 + $0x950] sm:$0xff] }
 0x242   : > { %v1572_v23 = vmul.f32 %v19670_v19, %v18266_v54  ;;  %v16904_v52 = vpack.c.bf16 %v3810_v43, %v3809_v50  ;;  %v1573_v41 = vmul.f32 %v19672_v46, %v18266_v54  ;;  %v1574_v59 = vmul.f32 %v19676_v16, %v18266_v54  ;;  %v19799_v19 = vld [vmem:[#allocation2 + $0x5c8] sm:$0xff] }
 0x243   : > { %v1576_v39 = vmul.f32 %v18266_v54, %v19779_v42  ;;  %v1577_v60 = vmul.f32 %v18266_v54, %v19781_v57  ;;  %v1578_v45 = vmul.f32 %v18266_v54, %v19783_v26  ;;  %v1888_v46 = vmul.f32 %v19694_v17, %v18269_v55 }
 0x244   : > { %v1676_v15 = vadd.f32 %v1572_v23, %v1360_v18  ;;  %16905 = vmatprep.subr.bf16.mxu1 %v16904_v52  ;;  %v1677_v16 = vadd.f32 %v1573_v41, %v1361_v56  ;;  %v1678_v29 = vadd.f32 %v1574_v59, %v1362_v44  ;;  %v1889_v2 = vmul.f32 %v19696_v62, %v18269_v55  ;;  %v19817_v62 = vld [vmem:[#allocation2 + $0x948] sm:$0xff] }
 0x245   : > { %v1680_v49 = vadd.f32 %v1576_v39, %v1364_v8  ;;  %16907 = vmatpush3.bf16.msra.mxu1 %v16904_v52  ;;  %v1681_v7 = vadd.f32 %v1577_v60, %v1365_v58  ;;  %v1682_v27 = vadd.f32 %v1578_v45, %v1366_v37  ;;  %v1890_v4 = vmul.f32 %v19698_v11, %v18269_v55  ;;  %v19833_v8 = vld [vmem:[#allocation2 + $0x260] sm:$0xff]  ;;  %v19839_v23 = vld [vmem:[#allocation2 + $0x268] sm:$0xff]  ;;  %v19841_v52 = vld [vmem:[#allocation2 + $0x270] sm:$0xff] }
 0x246   : > { %v1892_v3 = vmul.f32 %v18269_v55, %v19793_v14  ;;  %v1893_v17 = vmul.f32 %v18269_v55, %v19799_v19  ;;  %v1894_v61 = vmul.f32 %v18269_v55, %v19801_v33  ;;  %v1992_v13 = vadd.f32 %v1888_v46, %v1676_v15 }
 0x247   : > { %v1993_v34 = vadd.f32 %v1889_v2, %v1677_v16  ;;  %v1994_v40 = vadd.f32 %v1890_v4, %v1678_v29  ;;  %v2204_v11 = vmul.f32 %v19712_v51, %v18311_v24  ;;  %v2205_v5 = vmul.f32 %v19714_v48, %v18311_v24  ;;  %v19851_v29 = vld [vmem:[#allocation2 + $0x5e0] sm:$0xff]  ;;  %v19857_v4 = vld [vmem:[#allocation2 + $0x5e8] sm:$0xff] }
 0x248   : > { %v1996_v53 = vadd.f32 %v1892_v3, %v1680_v49  ;;  %v1997_v22 = vadd.f32 %v1893_v17, %v1681_v7  ;;  %v1998_v31 = vadd.f32 %v1894_v61, %v1682_v27  ;;  %v2206_v50 = vmul.f32 %v19720_v38, %v18311_v24  ;;  %v19859_v3 = vld [vmem:[#allocation2 + $0x5f0] sm:$0xff] }
 0x249   : > { %v2208_v32 = vmul.f32 %v18311_v24, %v19811_v30  ;;  %v2209_v36 = vmul.f32 %v18311_v24, %v19817_v62  ;;  %v2210_v43 = vmul.f32 %v18311_v24, %v19819_v9  ;;  %v2308_v18 = vadd.f32 %v2204_v11, %v1992_v13 }
 0x24a   : > { %v2309_v56 = vadd.f32 %v2205_v5, %v1993_v34  ;;  %v2310_v51 = vadd.f32 %v2206_v50, %v1994_v40  ;;  %v2520_v48 = vmul.f32 %v18314_v25, %v19779_v42  ;;  %v2521_v38 = vmul.f32 %v18314_v25, %v19781_v57 }
 0x24b   : > { %v2312_v44 = vadd.f32 %v2208_v32, %v1996_v53  ;;  %v2313_v58 = vadd.f32 %v2209_v36, %v1997_v22  ;;  %v2314_v37 = vadd.f32 %v2210_v43, %v1998_v31  ;;  %v2522_v41 = vmul.f32 %v18314_v25, %v19783_v26  ;;  %v19869_v22 = vld [vmem:[#allocation2 + $0x960] sm:$0xff]  ;;  %v618_v32 = vld [vmem:[#allocation2 + $0x1d8] sm:$0x3] }
 0x24c   : > { %v2524_v59 = vmul.f32 %v18314_v25, %v19833_v8  ;;  %v2525_v39 = vmul.f32 %v18314_v25, %v19839_v23  ;;  %v2526_v60 = vmul.f32 %v18314_v25, %v19841_v52  ;;  %v2624_v45 = vadd.f32 %v2520_v48, %v2308_v18  ;;  %v622_v36 = vld [vmem:[#allocation2 + $0x1f8] sm:$0x3] }
 0x24d   : > { %v2625_v15 = vadd.f32 %v2521_v38, %v2309_v56  ;;  %v2626_v46 = vadd.f32 %v2522_v41, %v2310_v51  ;;  %v2836_v49 = vmul.f32 %v18347_v63, %v19793_v14  ;;  %v2837_v2 = vmul.f32 %v18347_v63, %v19799_v19  ;;  %v19875_v56 = vld [vmem:[#allocation2 + $0x968] sm:$0xff]  ;;  %v19877_v51 = vld [vmem:[#allocation2 + $0x970] sm:$0xff] }
 0x24e   : > { %v2628_v16 = vadd.f32 %v2524_v59, %v2312_v44  ;;  %v2629_v7 = vadd.f32 %v2525_v39, %v2313_v58  ;;  %v2630_v27 = vadd.f32 %v2526_v60, %v2314_v37  ;;  %v2838_v17 = vmul.f32 %v18347_v63, %v19801_v33  ;;  %v829_v59 = vld [vmem:[#allocation2 + $0x558] sm:$0x3] }
 0x24f   : > { %v2840_v61 = vmul.f32 %v18347_v63, %v19851_v29  ;;  %v2841_v13 = vmul.f32 %v18347_v63, %v19857_v4  ;;  %v2842_v34 = vmul.f32 %v18347_v63, %v19859_v3  ;;  %v2940_v40 = vadd.f32 %v2836_v49, %v2624_v45  ;;  %v833_v39 = vld [vmem:[#allocation2 + $0x578] sm:$0x3] }
 0x250   : > { %v2941_v53 = vadd.f32 %v2837_v2, %v2625_v15  ;;  %v2942_v11 = vadd.f32 %v2838_v17, %v2626_v46  ;;  %v3152_v31 = vmul.f32 %v18350_v1, %v19811_v30  ;;  %v3153_v50 = vmul.f32 %v18350_v1, %v19817_v62 }
 0x251   : > { %v2944_v5 = vadd.f32 %v2840_v61, %v2628_v16  ;;  %v2945_v43 = vadd.f32 %v2841_v13, %v2629_v7  ;;  %v2946_v18 = vadd.f32 %v2842_v34, %v2630_v27  ;;  %v3154_v44 = vmul.f32 %v18350_v1, %v19819_v9  ;;  %v1144_v34 = vld [vmem:[#allocation2 + $0x8d8] sm:$0x3] }
 0x252   : > { %v3156_v48 = vmul.f32 %v18350_v1, %v19869_v22  ;;  %v3157_v38 = vmul.f32 %v18350_v1, %v19875_v56  ;;  %v3158_v58 = vmul.f32 %v18350_v1, %v19877_v51  ;;  %v3256_v37 = vadd.f32 %v3152_v31, %v2940_v40  ;;  %v1148_v40 = vld [vmem:[#allocation2 + $0x8f8] sm:$0x3] }
 0x253   : > { %v3257_v41 = vadd.f32 %v3153_v50, %v2941_v53  ;;  %v3258_v60 = vadd.f32 %v3154_v44, %v2942_v11  ;;  %v725_v15 = vmul.f32 %v18205_v6, %v618_v32  ;;  %v729_v46 = vmul.f32 %v18205_v6, %v622_v36  ;;  %v1460_v53 = vld [vmem:[#allocation2 + $0x1f8] sm:$0x3] }
 0x254   : > { %v3260_v45 = vadd.f32 %v3156_v48, %v2944_v5  ;;  %v3261_v16 = vadd.f32 %v3157_v38, %v2945_v43  ;;  %v3262_v49 = vadd.f32 %v3158_v58, %v2946_v18  ;;  %v3362_v2 = vadd.f32 %v18215_v10, %v3256_v37  ;;  %v1464_v32 = vld [vmem:[#allocation2 + $0x218] sm:$0x3] }
 0x255   : > { %v3363_v7 = vadd.f32 %v18215_v10, %v3257_v41  ;;  %v3364_v27 = vadd.f32 %v18215_v10, %v3258_v60  ;;  %v936_v61 = vmul.f32 %v18225_v20, %v829_v59  ;;  %v940_v13 = vmul.f32 %v18225_v20, %v833_v39  ;;  %v1776_v36 = vld [vmem:[#allocation2 + $0x578] sm:$0x3] }
 0x256   : > { %v3366_v17 = vadd.f32 %v18215_v10, %v3260_v45  ;;  %v3367_v11 = vadd.f32 %v18215_v10, %v3261_v16  ;;  %v3368_v5 = vadd.f32 %v18215_v10, %v3262_v49  ;;  %v3466_v31 = vmax.f32 %v3362_v2, 0.0  ;;  %v1780_v38 = vld [vmem:[#allocation2 + $0x598] sm:$0x3] }
 0x257   : > { %v3467_v50 = vmax.f32 %v3363_v7, 0.0  ;;  %v3468_v43 = vmax.f32 %v3364_v27, 0.0  ;;  %v1040_v44 = vadd.f32 %v936_v61, %v725_v15  ;;  %v1044_v48 = vadd.f32 %v940_v13, %v729_v46  ;;  %v2092_v39 = vld [vmem:[#allocation2 + $0x8f8] sm:$0x3] }
 0x258   : > { %v3470_v18 = vmax.f32 %v3366_v17, 0.0  ;;  %v3471_v58 = vmax.f32 %v3367_v11, 0.0  ;;  %v3472_v37 = vmax.f32 %v3368_v5, 0.0  ;;  %v1251_v41 = vmul.f32 %v18227_v21, %v1144_v34  ;;  %v2096_v60 = vld [vmem:[#allocation2 + $0x918] sm:$0x3] }
 0x259   : > { %v1255_v59 = vmul.f32 %v18227_v21, %v1148_v40  ;;  %v1567_v16 = vmul.f32 %v18266_v54, %v1460_v53  ;;  %v1571_v49 = vmul.f32 %v18266_v54, %v1464_v32  ;;  %v1883_v2 = vmul.f32 %v18269_v55, %v1776_v36  ;;  %v2408_v7 = vld [vmem:[#allocation2 + $0x218] sm:$0x3] }
 0x25a   : > { %v3555_v45 = vmax.f32 %v3466_v31, %v3470_v18  ;;  %v3556_v27 = vmax.f32 %v3467_v50, %v3471_v58  ;;  %v19902_v15 = vmax.f32 %v3468_v43, %v3472_v37  ;;  %v1355_v46 = vadd.f32 %v1251_v41, %v1040_v44  ;;  %v2412_v61 = vld [vmem:[#allocation2 + $0x238] sm:$0x3] }
 0x25b   : > { %v1359_v17 = vadd.f32 %v1255_v59, %v1044_v48  ;;  %v2724_v13 = vld [vmem:[#allocation2 + $0x598] sm:$0x3]  ;;  %v1887_v40 = vmul.f32 %v18269_v55, %v1780_v38  ;;  %v2199_v5 = vmul.f32 %v18311_v24, %v2092_v39  ;;  %v2203_v53 = vmul.f32 %v18311_v24, %v2096_v60 }
 0x25c   : > { %23208 = vst [vmem:[#allocation20_spill] sm:$0xff] %v19902_v15  ;;  %v2728_v34 = vld [vmem:[#allocation2 + $0x5b8] sm:$0x3]  ;;  %v3694_v11 = vrot.slane %v3555_v45, 1  ;;  %v3695_v31 = vrot.slane %v3556_v27, 1  ;;  %v3697_v32 = vrot.slane %v19902_v15, 1  ;;  %v1671_v36 = vadd.f32 %v1567_v16, %v1355_v46 }
 0x25d   : > { %v1675_v18 = vadd.f32 %v1571_v49, %v1359_v17  ;;  %v3040_v50 = vld [vmem:[#allocation2 + $0x918] sm:$0x3]  ;;  %v2515_v44 = vmul.f32 %v18314_v25, %v2408_v7  ;;  %v2519_v48 = vmul.f32 %v18314_v25, %v2412_v61  ;;  %v2831_v58 = vmul.f32 %v18347_v63, %v2724_v13 }
 0x25e   : > { %v3044_v43 = vld [vmem:[#allocation2 + $0x938] sm:$0x3]  ;;  %v2835_v37 = vmul.f32 %v18347_v63, %v2728_v34  ;;  %v3696_v59 = vsel %vm3637_vm7, %v3694_v11, %v3695_v31  ;;  %v3698_v39 = vsel %vm3637_vm7, %v3695_v31, %v3697_v32  ;;  %v1987_v60 = vadd.f32 %v1883_v2, %v1671_v36 }
 0x25f   : > { %v626_v38 = vld [vmem:[#allocation2 + $0x218] sm:$0x3]  ;;  %v1991_v16 = vadd.f32 %v1887_v40, %v1675_v18  ;;  %v3813_v7 = vmax.f32 %v3555_v45, %v3696_v59  ;;  %v3814_v35 = vmax.f32 %v3556_v27, %v3698_v39  ;;  %v3147_v61 = vmul.f32 %v18350_v1, %v3040_v50 }
 0x260   : > { %v630_v41 = vld [vmem:[#allocation2 + $0x238] sm:$0x3]  ;;  %v3151_v13 = vmul.f32 %v18350_v1, %v3044_v43  ;;  %v2303_v28 = vadd.f32 %v2199_v5, %v1987_v60  ;;  %v733_v11 = vmul.f32 %v18205_v6, %v626_v38 }
 0x261   : > { %v837_v49 = vld [vmem:[#allocation2 + $0x598] sm:$0x3]  ;;  %v2307_v47 = vadd.f32 %v2203_v53, %v1991_v16  ;;  %v737_v15 = vmul.f32 %v18205_v6, %v630_v41  ;;  %v16914_v40 = vpack.c.bf16 %v3814_v35, %v3813_v7  ;;  %v1575_v53 = vmul.f32 %v18266_v54, %v1468_v0 }
 0x262   : > { %v841_v46 = vld [vmem:[#allocation2 + $0x5b8] sm:$0x3]  ;;  %v944_v36 = vmul.f32 %v18225_v20, %v837_v49  ;;  %v2619_v43 = vadd.f32 %v2515_v44, %v2303_v28 }
 0x263   : > { %v1152_v17 = vld [vmem:[#allocation2 + $0x918] sm:$0x3]  ;;  %v948_v45 = vmul.f32 %v18225_v20, %v841_v46  ;;  %v2623_v59 = vadd.f32 %v2519_v48, %v2307_v47  ;;  %16915 = vmatprep.subr.bf16.mxu0 %v16914_v40 }
 0x264   : > { %v1156_v34 = vld [vmem:[#allocation2 + $0x938] sm:$0x3]  ;;  %v1259_v27 = vmul.f32 %v18227_v21, %v1152_v17  ;;  %v1048_v41 = vadd.f32 %v944_v36, %v733_v11  ;;  %16917 = vmatpush3.bf16.msra.mxu0 %v16914_v40  ;;  %v2935_v17 = vadd.f32 %v2831_v58, %v2619_v43 }
 0x265   : > { %v1472_v31 = vld [vmem:[#allocation2 + $0x258] sm:$0x3]  ;;  %v1263_v5 = vmul.f32 %v18227_v21, %v1156_v34  ;;  %v1052_v60 = vadd.f32 %v948_v45, %v737_v15  ;;  %v2939_v7 = vadd.f32 %v2835_v37, %v2623_v59 }
 0x266   : > { %v1784_v2 = vld [vmem:[#allocation2 + $0x5b8] sm:$0x3]  ;;  %v1579_v35 = vmul.f32 %v18266_v54, %v1472_v31  ;;  %v1363_v48 = vadd.f32 %v1259_v27, %v1048_v41  ;;  %v3251_v36 = vadd.f32 %v3147_v61, %v2935_v17  ;;  %v738_v61 = vmul.f32 %v19779_v42, %v18205_v6 }
 0x267   : > { %v1788_v18 = vld [vmem:[#allocation2 + $0x5d8] sm:$0x3]  ;;  %v1891_v16 = vmul.f32 %v18269_v55, %v1784_v2  ;;  %v1367_v34 = vadd.f32 %v1263_v5, %v1052_v60  ;;  %v3255_v2 = vadd.f32 %v3151_v13, %v2939_v7  ;;  %v742_v60 = vmul.f32 %v19833_v8, %v18205_v6 }
 0x268   : > { %v2100_v50 = vld [vmem:[#allocation2 + $0x938] sm:$0x3]  ;;  %v1895_v47 = vmul.f32 %v18269_v55, %v1788_v18  ;;  %v1679_v37 = vadd.f32 %v1575_v53, %v1363_v48  ;;  %v3357_v27 = vadd.f32 %v18215_v10, %v3251_v36  ;;  %v740_v53 = vmul.f32 %v19783_v26, %v18205_v6 }
 0x269   : > { %v2104_v38 = vld [vmem:[#allocation2 + $0x958] sm:$0x3]  ;;  %v2207_v28 = vmul.f32 %v18311_v24, %v2100_v50  ;;  %v1683_v40 = vadd.f32 %v1579_v35, %v1367_v34  ;;  %v3361_v43 = vadd.f32 %v18215_v10, %v3255_v2  ;;  %v743_v35 = vmul.f32 %v19839_v23, %v18205_v6 }
 0x26a   : > { %v2416_v39 = vld [vmem:[#allocation2 + $0x258] sm:$0x3]  ;;  %v2211_v11 = vmul.f32 %v18311_v24, %v2104_v38  ;;  %v1995_v13 = vadd.f32 %v1891_v16, %v1679_v37  ;;  %v739_v38 = vmul.f32 %v19781_v57, %v18205_v6  ;;  %v744_v42 = vmul.f32 %v19841_v52, %v18205_v6 }
 0x26b   : > { %v2420_v49 = vld [vmem:[#allocation2 + $0x278] sm:$0x3]  ;;  %v2523_v15 = vmul.f32 %v18314_v25, %v2416_v39  ;;  %v1999_v5 = vadd.f32 %v1895_v47, %v1683_v40  ;;  %v3461_v39 = vmax.f32 %v3357_v27, 0.0  ;;  %v3465_v41 = vmax.f32 %v3361_v43, 0.0 }
 0x26c   : > { %v2732_v46 = vld [vmem:[#allocation2 + $0x5d8] sm:$0x3]  ;;  %v2527_v45 = vmul.f32 %v18314_v25, %v2420_v49  ;;  %v2311_v49 = vadd.f32 %v2207_v28, %v1995_v13  ;;  %v949_v16 = vmul.f32 %v19793_v14, %v18225_v20  ;;  %v950_v17 = vmul.f32 %v19799_v19, %v18225_v20 }
 0x26d   : > { %v2736_v44 = vld [vmem:[#allocation2 + $0x5f8] sm:$0x3]  ;;  %v2839_v58 = vmul.f32 %v18347_v63, %v2732_v46  ;;  %v2315_v46 = vadd.f32 %v2211_v11, %v1999_v5  ;;  %v3552_v57 = vsel %vm3509_vm8, %v3461_v39, -inf  ;;  %v3553_v26 = vsel %vm3509_vm8, %v3465_v41, -inf }
 0x26e   : > { %v3048_v0 = vld [vmem:[#allocation2 + $0x958] sm:$0x3]  ;;  %v2843_v18 = vmul.f32 %v18347_v63, %v2736_v44  ;;  %v951_v7 = vmul.f32 %v19801_v33, %v18225_v20  ;;  %v3554_v47 = vmax.f32 %v3552_v57, %v3553_v26  ;;  %v2627_v44 = vadd.f32 %v2523_v15, %v2311_v49  ;;  %v19986_v57 = vld [vmem:[#allocation2 + $0x288] sm:$0xff] }
 0x26f   : > { %v3052_v31 = vld [vmem:[#allocation2 + $0x978] sm:$0x3]  ;;  %v3155_v50 = vmul.f32 %v18350_v1, %v3048_v0  ;;  %v2631_v28 = vadd.f32 %v2527_v45, %v2315_v46  ;;  %v953_v0 = vmul.f32 %v19851_v29, %v18225_v20  ;;  %v954_v48 = vmul.f32 %v19857_v4, %v18225_v20 }
 0x270   : > { %v3159_v59 = vmul.f32 %v18350_v1, %v3052_v31  ;;  %v955_v14 = vmul.f32 %v19859_v3, %v18225_v20  ;;  %v1053_v34 = vadd.f32 %v949_v16, %v738_v61  ;;  %v1054_v11 = vadd.f32 %v950_v17, %v739_v38  ;;  %v19984_v16 = vld [vmem:[#allocation2 + $0x280] sm:$0xff] }
 0x271   : > { %v3692_v31 = vrot.slane %v3554_v47, 1  ;;  %v2943_v36 = vadd.f32 %v2839_v58, %v2627_v44  ;;  %v2947_v19 = vadd.f32 %v2843_v18, %v2631_v28  ;;  %v1055_v2 = vadd.f32 %v951_v7, %v740_v53  ;;  %v19998_v28 = vld [vmem:[#allocation2 + $0x290] sm:$0xff] }
 0x272   : > { %v1057_v37 = vadd.f32 %v953_v0, %v742_v60  ;;  %v1058_v33 = vadd.f32 %v954_v48, %v743_v35  ;;  %v1059_v40 = vadd.f32 %v955_v14, %v744_v42  ;;  %v1264_v15 = vmul.f32 %v19811_v30, %v18227_v21 }
 0x273   : > { %v23209_v45 = vrot.slane %v19758_v12, 1  ;;  %v3812_v43 = vmax.f32 %v3554_v47, %v3692_v31  ;;  %v3259_v13 = vadd.f32 %v3155_v50, %v2943_v36  ;;  %v3263_v5 = vadd.f32 %v3159_v59, %v2947_v19 }
 0x274   : > { %v1265_v58 = vmul.f32 %v19817_v62, %v18227_v21  ;;  %v1266_v18 = vmul.f32 %v19819_v9, %v18227_v21  ;;  %v1268_v38 = vmul.f32 %v19869_v22, %v18227_v21  ;;  %v1269_v39 = vmul.f32 %v19875_v56, %v18227_v21 }
 0x275   : > { %v3693_v27 = vsel %vm3637_vm7, %v23209_v45, %v3692_v31  ;;  %v3365_v30 = vadd.f32 %v18215_v10, %v3259_v13  ;;  %v3369_v53 = vadd.f32 %v18215_v10, %v3263_v5  ;;  %v1270_v50 = vmul.f32 %v19877_v51, %v18227_v21 }
 0x276   : > { %v3811_v61 = vmax.f32 %v19758_v12, %v3693_v27  ;;  %v1368_v59 = vadd.f32 %v1264_v15, %v1053_v34  ;;  %v1369_v41 = vadd.f32 %v1265_v58, %v1054_v11  ;;  %v1370_v62 = vadd.f32 %v1266_v18, %v1055_v2  ;;  %v23211_v27 = vld [vmem:[#allocation17_spill] sm:$0xff] }
 0x277   : > { %v3469_v60 = vmax.f32 %v3365_v30, 0.0  ;;  %v3473_v35 = vmax.f32 %v3369_v53, 0.0  ;;  %v1372_v9 = vadd.f32 %v1268_v38, %v1057_v37  ;;  %v1373_v49 = vadd.f32 %v1269_v39, %v1058_v33  ;;  %v20008_v37 = vld [vmem:[#allocation2 + $0x600] sm:$0xff]  ;;  %v20010_v33 = vld [vmem:[#allocation2 + $0x608] sm:$0xff] }
 0x278   : > { %v16908_v12 = vpack.c.bf16 %v3812_v43, %v3811_v61  ;;  %v1374_v42 = vadd.f32 %v1270_v50, %v1059_v40  ;;  %v1580_v26 = vmul.f32 %v19833_v8, %v18266_v54  ;;  %v1581_v17 = vmul.f32 %v19839_v23, %v18266_v54  ;;  %v20012_v40 = vld [vmem:[#allocation2 + $0x610] sm:$0xff]  ;;  %v23212_v61 = vld [vmem:[#allocation15_spill] sm:$0xff] }
 0x279   : > { %v1582_v7 = vmul.f32 %v19841_v52, %v18266_v54  ;;  %v3558_v47 = vsel %vm3509_vm8, %v3469_v60, -inf  ;;  %v3559_v44 = vsel %vm3509_vm8, %v3473_v35, -inf  ;;  %v1584_v0 = vmul.f32 %v18266_v54, %v19984_v16 }
 0x27a   : > { %16910 = vmatprep.subr.msk.bf16.mxu1 %vm18514_vm11, %v16908_v12  ;;  %v1585_v8 = vmul.f32 %v18266_v54, %v19986_v57  ;;  %v3560_v48 = vmax.f32 %v3558_v47, %v3559_v44  ;;  %v1586_v23 = vmul.f32 %v18266_v54, %v19998_v28  ;;  %v1684_v52 = vadd.f32 %v1580_v26, %v1368_v59  ;;  %v20034_v59 = vld [vmem:[#allocation2 + $0x988] sm:$0xff]  ;;  %v20054_v44 = vld [vmem:[#allocation2 + $0x2a0] sm:$0xff] }
 0x27b   : > { %16913 = vmatpush3.bf16.msk.msra.mxu1 %vm18514_vm11, %v16908_v12  ;;  %v1685_v14 = vadd.f32 %v1581_v17, %v1369_v41  ;;  %v1686_v34 = vadd.f32 %v1582_v7, %v1370_v62  ;;  %v1688_v11 = vadd.f32 %v1584_v0, %v1372_v9  ;;  %v1896_v36 = vmul.f32 %v19851_v29, %v18269_v55  ;;  %v20032_v12 = vld [vmem:[#allocation2 + $0x980] sm:$0xff]  ;;  %v20036_v41 = vld [vmem:[#allocation2 + $0x990] sm:$0xff]  ;;  %v20056_v0 = vld [vmem:[#allocation2 + $0x2a8] sm:$0xff] }
 0x27c   : > { %v1689_v31 = vadd.f32 %v1585_v8, %v1373_v49  ;;  %v3699_v19 = vrot.slane %v3560_v48, 1  ;;  %v1690_v2 = vadd.f32 %v1586_v23, %v1374_v42  ;;  %v1897_v15 = vmul.f32 %v19857_v4, %v18269_v55  ;;  %v23213_v4 = vld [vmem:[#allocation20_spill] sm:$0xff]  ;;  %v20058_v8 = vld [vmem:[#allocation2 + $0x2b0] sm:$0xff] }
 0x27d   : > { %v1898_v45 = vmul.f32 %v19859_v3, %v18269_v55  ;;  %v1900_v29 = vmul.f32 %v18269_v55, %v20008_v37  ;;  %v1901_v43 = vmul.f32 %v18269_v55, %v20010_v33  ;;  %v1902_v13 = vmul.f32 %v18269_v55, %v20012_v40 }
 0x27e   : > { %16091 = vmatmul.mubr.msk.f32.vlgmr.msra.gmra.mrb[6].mxu1 %vm3833_vm6, %v23211_v27  ;;  %v2000_v5 = vadd.f32 %v1896_v36, %v1684_v52  ;;  %v3700_v3 = vsel %vm3637_vm7, %v3697_v32, %v3699_v19  ;;  %v3816_v58 = vmax.f32 %v3560_v48, %v3699_v19  ;;  %v2001_v18 = vadd.f32 %v1897_v15, %v1685_v14 }
 0x27f   : > { %16112 = vmatprep.mubr.msk.f32.mxu1 %vm3833_vm6, %v23212_v61  ;;  %v2002_v38 = vadd.f32 %v1898_v45, %v1686_v34  ;;  %v3815_v30 = vmax.f32 %v23213_v4, %v3700_v3  ;;  %v2004_v53 = vadd.f32 %v1900_v29, %v1688_v11  ;;  %v2005_v39 = vadd.f32 %v1901_v43, %v1689_v31  ;;  %v20076_v43 = vld [vmem:[#allocation2 + $0x620] sm:$0xff] }
 0x280   : > { %v2006_v50 = vadd.f32 %v1902_v13, %v1690_v2  ;;  %v2212_v62 = vmul.f32 %v19869_v22, %v18311_v24  ;;  %v2213_v32 = vmul.f32 %v19875_v56, %v18311_v24  ;;  %v2214_v60 = vmul.f32 %v19877_v51, %v18311_v24  ;;  %v20078_v13 = vld [vmem:[#allocation2 + $0x628] sm:$0xff] }
 0x281   : > { %v2216_v35 = vmul.f32 %v18311_v24, %v20032_v12  ;;  %v16918_v9 = vpack.c.bf16 %v3816_v58, %v3815_v30  ;;  %v2217_v49 = vmul.f32 %v18311_v24, %v20034_v59  ;;  %v2218_v42 = vmul.f32 %v18311_v24, %v20036_v41 }
 0x282   : > { %v2528_v26 = vmul.f32 %v18314_v25, %v19984_v16  ;;  %v2316_v22 = vadd.f32 %v2212_v62, %v2000_v5  ;;  %v2317_v17 = vadd.f32 %v2213_v32, %v2001_v18  ;;  %v2318_v7 = vadd.f32 %v2214_v60, %v2002_v38  ;;  %v20080_v5 = vld [vmem:[#allocation2 + $0x630] sm:$0xff] }
 0x283   : > { %v2320_v56 = vadd.f32 %v2216_v35, %v2004_v53  ;;  %16920 = vmatprep.subr.msk.bf16.mxu0 %vm18514_vm11, %v16918_v9  ;;  %v2321_v51 = vadd.f32 %v2217_v49, %v2005_v39  ;;  %v2322_v47 = vadd.f32 %v2218_v42, %v2006_v50  ;;  %v2529_v48 = vmul.f32 %v18314_v25, %v19986_v57  ;;  %v20098_v35 = vld [vmem:[#allocation2 + $0x9a0] sm:$0xff]  ;;  %v20102_v49 = vld [vmem:[#allocation2 + $0x9b0] sm:$0xff] }
 0x284   : > { %v2530_v23 = vmul.f32 %v18314_v25, %v19998_v28  ;;  %16923 = vmatpush3.bf16.msk.msra.mxu0 %vm18514_vm11, %v16918_v9  ;;  %v2532_v52 = vmul.f32 %v18314_v25, %v20054_v44  ;;  %v2533_v14 = vmul.f32 %v18314_v25, %v20056_v0  ;;  %v2534_v34 = vmul.f32 %v18314_v25, %v20058_v8  ;;  %v20100_v9 = vld [vmem:[#allocation2 + $0x9a8] sm:$0xff] }
 0x285   : > { %v2632_v11 = vadd.f32 %v2528_v26, %v2316_v22  ;;  %v2633_v31 = vadd.f32 %v2529_v48, %v2317_v17  ;;  %v2844_v19 = vmul.f32 %v18347_v63, %v20008_v37  ;;  %v2845_v2 = vmul.f32 %v18347_v63, %v20010_v33 }
 0x286   : > { %v2634_v36 = vadd.f32 %v2530_v23, %v2318_v7  ;;  %v2636_v15 = vadd.f32 %v2532_v52, %v2320_v56  ;;  %v2637_v45 = vadd.f32 %v2533_v14, %v2321_v51  ;;  %v2638_v29 = vadd.f32 %v2534_v34, %v2322_v47 }
 0x287   : > { %v2846_v4 = vmul.f32 %v18347_v63, %v20012_v40  ;;  %v2848_v3 = vmul.f32 %v18347_v63, %v20076_v43  ;;  %v2849_v58 = vmul.f32 %v18347_v63, %v20078_v13  ;;  %v2850_v18 = vmul.f32 %v18347_v63, %v20080_v5  ;;  %16102 = vmatmul.mubr.msk.f32.vlgmr.msra.gmra.mrb[8].mxu0 %vm3833_vm6, %v23211_v27 }
 0x288   : > { %v2948_v38 = vadd.f32 %v2844_v19, %v2632_v11  ;;  %v2949_v30 = vadd.f32 %v2845_v2, %v2633_v31  ;;  %v3160_v39 = vmul.f32 %v18350_v1, %v20032_v12  ;;  %v3161_v50 = vmul.f32 %v18350_v1, %v20034_v59  ;;  %16123 = vmatprep.mubr.msk.f32.mxu0 %vm3833_vm6, %v23212_v61 }
 0x289   : > { %v2950_v53 = vadd.f32 %v2846_v4, %v2634_v36  ;;  %v2952_v62 = vadd.f32 %v2848_v3, %v2636_v15  ;;  %v2953_v32 = vadd.f32 %v2849_v58, %v2637_v45  ;;  %v2954_v60 = vadd.f32 %v2850_v18, %v2638_v29 }
 0x28a   : > { %v3162_v42 = vmul.f32 %v18350_v1, %v20036_v41  ;;  %v3164_v26 = vmul.f32 %v18350_v1, %v20098_v35  ;;  %v3165_v22 = vmul.f32 %v18350_v1, %v20100_v9  ;;  %v3166_v17 = vmul.f32 %v18350_v1, %v20102_v49 }
 0x28b   : > { %v3264_v7 = vadd.f32 %v3160_v39, %v2948_v38  ;;  %v3265_v56 = vadd.f32 %v3161_v50, %v2949_v30  ;;  %v746_v47 = vmul.f32 %v19984_v16, %v18205_v6  ;;  %v747_v48 = vmul.f32 %v19986_v57, %v18205_v6 }
 0x28c   : > { %v3266_v51 = vadd.f32 %v3162_v42, %v2950_v53  ;;  %v3268_v23 = vadd.f32 %v3164_v26, %v2952_v62  ;;  %v3269_v52 = vadd.f32 %v3165_v22, %v2953_v32  ;;  %v3270_v14 = vadd.f32 %v3166_v17, %v2954_v60 }
 0x28d   : > { %v3370_v34 = vadd.f32 %v18215_v10, %v3264_v7  ;;  %v3371_v11 = vadd.f32 %v18215_v10, %v3265_v56  ;;  %v748_v36 = vmul.f32 %v19998_v28, %v18205_v6  ;;  %v750_v19 = vmul.f32 %v20054_v44, %v18205_v6 }
 0x28e   : > { %v3372_v31 = vadd.f32 %v18215_v10, %v3266_v51  ;;  %v3374_v16 = vadd.f32 %v18215_v10, %v3268_v23  ;;  %v3375_v2 = vadd.f32 %v18215_v10, %v3269_v52  ;;  %v3376_v57 = vadd.f32 %v18215_v10, %v3270_v14 }
 0x28f   : > { %v3474_v15 = vmax.f32 %v3370_v34, 0.0  ;;  %v3475_v45 = vmax.f32 %v3371_v11, 0.0  ;;  %v751_v4 = vmul.f32 %v20056_v0, %v18205_v6  ;;  %v752_v3 = vmul.f32 %v20058_v8, %v18205_v6 }
 0x290   : > { %v3476_v29 = vmax.f32 %v3372_v31, 0.0  ;;  %v3478_v58 = vmax.f32 %v3374_v16, 0.0  ;;  %v3479_v28 = vmax.f32 %v3375_v2, 0.0  ;;  %v3480_v18 = vmax.f32 %v3376_v57, 0.0  ;;  %v20165_v16 = vld [vmem:[#allocation2 + $0x2d0] sm:$0xff] }
 0x291   : > { %v957_v38 = vmul.f32 %v20008_v37, %v18225_v20  ;;  %v958_v30 = vmul.f32 %v20010_v33, %v18225_v20  ;;  %v959_v53 = vmul.f32 %v20012_v40, %v18225_v20  ;;  %v961_v39 = vmul.f32 %v20076_v43, %v18225_v20 }
 0x292   : > { %v962_v50 = vmul.f32 %v20078_v13, %v18225_v20  ;;  %v3561_v62 = vmax.f32 %v3474_v15, %v3478_v58  ;;  %v3562_v32 = vmax.f32 %v3475_v45, %v3479_v28  ;;  %v20140_v60 = vmax.f32 %v3476_v29, %v3480_v18 }
 0x293   : > { %v963_v42 = vmul.f32 %v20080_v5, %v18225_v20  ;;  %v1061_v37 = vadd.f32 %v957_v38, %v746_v47  ;;  %v1062_v26 = vadd.f32 %v958_v30, %v747_v48  ;;  %v1063_v22 = vadd.f32 %v959_v53, %v748_v36  ;;  %v20179_v53 = vld [vmem:[#allocation2 + $0x640] sm:$0xff] }
 0x294   : > { %v1065_v33 = vadd.f32 %v961_v39, %v750_v19  ;;  %v3701_v17 = vrot.slane %v3561_v62, 1  ;;  %v3702_v7 = vrot.slane %v3562_v32, 1  ;;  %v23135_v40 = vrot.slane %v20140_v60, 1  ;;  %v20161_v19 = vld [vmem:[#allocation2 + $0x2c0] sm:$0xff]  ;;  %v20181_v39 = vld [vmem:[#allocation2 + $0x648] sm:$0xff] }
 0x295   : > { %v1066_v56 = vadd.f32 %v962_v50, %v751_v4  ;;  %v1067_v51 = vadd.f32 %v963_v42, %v752_v3  ;;  %v1272_v23 = vmul.f32 %v20032_v12, %v18227_v21  ;;  %v1273_v52 = vmul.f32 %v20034_v59, %v18227_v21 }
 0x296   : > { %v1274_v14 = vmul.f32 %v20036_v41, %v18227_v21  ;;  %v3703_v47 = vsel %vm3637_vm7, %v3701_v17, %v3702_v7  ;;  %v3705_v48 = vsel %vm3637_vm7, %v3702_v7, %v23135_v40  ;;  %v1276_v34 = vmul.f32 %v20098_v35, %v18227_v21  ;;  %v20163_v41 = vld [vmem:[#allocation2 + $0x2c8] sm:$0xff]  ;;  %v20197_v7 = vld [vmem:[#allocation2 + $0x9c0] sm:$0xff]  ;;  %v3060_v40 = vld [vmem:[#allocation2 + $0x9b8] sm:$0x3] }
 0x297   : > { %v1277_v11 = vmul.f32 %v20100_v9, %v18227_v21  ;;  %v3817_v31 = vmax.f32 %v3561_v62, %v3703_v47  ;;  %v3818_v12 = vmax.f32 %v3562_v32, %v3705_v48  ;;  %v1278_v59 = vmul.f32 %v20102_v49, %v18227_v21 }
 0x298   : > { %v1376_v36 = vadd.f32 %v1272_v23, %v1061_v37  ;;  %v1377_v2 = vadd.f32 %v1273_v52, %v1062_v26  ;;  %v1378_v57 = vadd.f32 %v1274_v14, %v1063_v22  ;;  %v1380_v15 = vadd.f32 %v1276_v34, %v1065_v33 }
 0x299   : > { %v1381_v45 = vadd.f32 %v1277_v11, %v1066_v56  ;;  %v16924_v29 = vpack.c.bf16 %v3818_v12, %v3817_v31  ;;  %v1382_v4 = vadd.f32 %v1278_v59, %v1067_v51  ;;  %v1588_v3 = vmul.f32 %v20054_v44, %v18266_v54  ;;  %v20183_v44 = vld [vmem:[#allocation2 + $0x650] sm:$0xff] }
 0x29a   : > { %v1589_v58 = vmul.f32 %v20056_v0, %v18266_v54  ;;  %v1590_v28 = vmul.f32 %v20058_v8, %v18266_v54  ;;  %v1592_v18 = vmul.f32 %v18266_v54, %v20161_v19  ;;  %v1593_v38 = vmul.f32 %v18266_v54, %v20163_v41  ;;  %v20201_v56 = vld [vmem:[#allocation2 + $0x9d0] sm:$0xff] }
 0x29b   : > { %v1594_v30 = vmul.f32 %v18266_v54, %v20165_v16  ;;  %16925 = vmatprep.subr.bf16.mxu1 %v16924_v29  ;;  %v1692_v0 = vadd.f32 %v1588_v3, %v1376_v36  ;;  %v1904_v8 = vmul.f32 %v20076_v43, %v18269_v55  ;;  %v1905_v62 = vmul.f32 %v20078_v13, %v18269_v55  ;;  %v20199_v13 = vld [vmem:[#allocation2 + $0x9c8] sm:$0xff]  ;;  %v20223_v3 = vld [vmem:[#allocation2 + $0x2f0] sm:$0xff] }
 0x29c   : > { %v1693_v50 = vadd.f32 %v1589_v58, %v1377_v2  ;;  %16927 = vmatpush3.bf16.msra.mxu1 %v16924_v29  ;;  %v1694_v32 = vadd.f32 %v1590_v28, %v1378_v57  ;;  %v1696_v42 = vadd.f32 %v1592_v18, %v1380_v15  ;;  %v1697_v37 = vadd.f32 %v1593_v38, %v1381_v45  ;;  %v20219_v29 = vld [vmem:[#allocation2 + $0x2e0] sm:$0xff] }
 0x29d   : > { %v1698_v26 = vadd.f32 %v1594_v30, %v1382_v4  ;;  %v1906_v22 = vmul.f32 %v20080_v5, %v18269_v55  ;;  %v1908_v33 = vmul.f32 %v18269_v55, %v20179_v53  ;;  %v1909_v17 = vmul.f32 %v18269_v55, %v20181_v39  ;;  %v20221_v4 = vld [vmem:[#allocation2 + $0x2e8] sm:$0xff] }
 0x29e   : > { %v1910_v43 = vmul.f32 %v18269_v55, %v20183_v44  ;;  %v2008_v51 = vadd.f32 %v1904_v8, %v1692_v0  ;;  %v2009_v23 = vadd.f32 %v1905_v62, %v1693_v50  ;;  %v2220_v5 = vmul.f32 %v20098_v35, %v18311_v24 }
 0x29f   : > { %v2221_v52 = vmul.f32 %v20100_v9, %v18311_v24  ;;  %v2010_v14 = vadd.f32 %v1906_v22, %v1694_v32  ;;  %v2012_v47 = vadd.f32 %v1908_v33, %v1696_v42  ;;  %v2013_v48 = vadd.f32 %v1909_v17, %v1697_v37  ;;  %v20239_v22 = vld [vmem:[#allocation2 + $0x668] sm:$0xff]  ;;  %v20241_v33 = vld [vmem:[#allocation2 + $0x670] sm:$0xff] }
 0x2a0   : > { %v2014_v34 = vadd.f32 %v1910_v43, %v1698_v26  ;;  %v2222_v11 = vmul.f32 %v20102_v49, %v18311_v24  ;;  %v2224_v31 = vmul.f32 %v18311_v24, %v20197_v7  ;;  %v2225_v12 = vmul.f32 %v18311_v24, %v20199_v13  ;;  %v20237_v26 = vld [vmem:[#allocation2 + $0x660] sm:$0xff] }
 0x2a1   : > { %v2226_v59 = vmul.f32 %v18311_v24, %v20201_v56  ;;  %v2324_v35 = vadd.f32 %v2220_v5, %v2008_v51  ;;  %v2325_v36 = vadd.f32 %v2221_v52, %v2009_v23  ;;  %v2536_v9 = vmul.f32 %v18314_v25, %v20161_v19 }
 0x2a2   : > { %v2537_v2 = vmul.f32 %v18314_v25, %v20163_v41  ;;  %v2326_v57 = vadd.f32 %v2222_v11, %v2010_v14  ;;  %v2328_v15 = vadd.f32 %v2224_v31, %v2012_v47  ;;  %v2329_v49 = vadd.f32 %v2225_v12, %v2013_v48  ;;  %v634_v48 = vld [vmem:[#allocation2 + $0x258] sm:$0x3] }
 0x2a3   : > { %v2330_v45 = vadd.f32 %v2226_v59, %v2014_v34  ;;  %v2538_v58 = vmul.f32 %v18314_v25, %v20165_v16  ;;  %v2540_v28 = vmul.f32 %v18314_v25, %v20219_v29  ;;  %v2541_v18 = vmul.f32 %v18314_v25, %v20221_v4  ;;  %v638_v34 = vld [vmem:[#allocation2 + $0x278] sm:$0x3] }
 0x2a4   : > { %v2542_v38 = vmul.f32 %v18314_v25, %v20223_v3  ;;  %v2640_v30 = vadd.f32 %v2536_v9, %v2324_v35  ;;  %v2641_v0 = vadd.f32 %v2537_v2, %v2325_v36  ;;  %v2852_v50 = vmul.f32 %v18347_v63, %v20179_v53  ;;  %v20255_v35 = vld [vmem:[#allocation2 + $0x9e0] sm:$0xff]  ;;  %v20257_v36 = vld [vmem:[#allocation2 + $0x9e8] sm:$0xff]  ;;  %v20259_v9 = vld [vmem:[#allocation2 + $0x9f0] sm:$0xff] }
 0x2a5   : > { %v2853_v8 = vmul.f32 %v18347_v63, %v20181_v39  ;;  %v2642_v62 = vadd.f32 %v2538_v58, %v2326_v57  ;;  %v2644_v32 = vadd.f32 %v2540_v28, %v2328_v15  ;;  %v2645_v42 = vadd.f32 %v2541_v18, %v2329_v49  ;;  %23214 = vst [vmem:[#allocation19_spill] sm:$0xff] %v20259_v9  ;;  %v849_v58 = vld [vmem:[#allocation2 + $0x5f8] sm:$0x3] }
 0x2a6   : > { %v2646_v37 = vadd.f32 %v2542_v38, %v2330_v45  ;;  %v2854_v17 = vmul.f32 %v18347_v63, %v20183_v44  ;;  %v2856_v43 = vmul.f32 %v18347_v63, %v20237_v26  ;;  %v2857_v51 = vmul.f32 %v18347_v63, %v20239_v22  ;;  %v845_v45 = vld [vmem:[#allocation2 + $0x5d8] sm:$0x3] }
 0x2a7   : > { %v2858_v23 = vmul.f32 %v18347_v63, %v20241_v33  ;;  %v2956_v5 = vadd.f32 %v2852_v50, %v2640_v30  ;;  %v2957_v52 = vadd.f32 %v2853_v8, %v2641_v0  ;;  %v3168_v14 = vmul.f32 %v18350_v1, %v20197_v7 }
 0x2a8   : > { %v3169_v47 = vmul.f32 %v18350_v1, %v20199_v13  ;;  %v2958_v11 = vadd.f32 %v2854_v17, %v2642_v62  ;;  %v2960_v31 = vadd.f32 %v2856_v43, %v2644_v32  ;;  %v2961_v12 = vadd.f32 %v2857_v51, %v2645_v42  ;;  %v1160_v43 = vld [vmem:[#allocation2 + $0x958] sm:$0x3] }
 0x2a9   : > { %v2962_v59 = vadd.f32 %v2858_v23, %v2646_v37  ;;  %v3170_v2 = vmul.f32 %v18350_v1, %v20201_v56  ;;  %v3172_v57 = vmul.f32 %v18350_v1, %v20255_v35  ;;  %v3173_v15 = vmul.f32 %v18350_v1, %v20257_v36 }
 0x2aa   : > { %v3174_v49 = vmul.f32 %v18350_v1, %v20259_v9  ;;  %v3272_v28 = vadd.f32 %v3168_v14, %v2956_v5  ;;  %v3273_v18 = vadd.f32 %v3169_v47, %v2957_v52  ;;  %v741_v38 = vmul.f32 %v18205_v6, %v634_v48  ;;  %v1164_v14 = vld [vmem:[#allocation2 + $0x978] sm:$0x3] }
 0x2ab   : > { %v745_v30 = vmul.f32 %v18205_v6, %v638_v34  ;;  %v3274_v0 = vadd.f32 %v3170_v2, %v2958_v11  ;;  %v3276_v50 = vadd.f32 %v3172_v57, %v2960_v31  ;;  %v3277_v8 = vadd.f32 %v3173_v15, %v2961_v12  ;;  %v1476_v47 = vld [vmem:[#allocation2 + $0x278] sm:$0x3] }
 0x2ac   : > { %v3278_v62 = vadd.f32 %v3174_v49, %v2962_v59  ;;  %v3378_v32 = vadd.f32 %v18215_v10, %v3272_v28  ;;  %v3379_v42 = vadd.f32 %v18215_v10, %v3273_v18  ;;  %v952_v37 = vmul.f32 %v18225_v20, %v845_v45  ;;  %v1480_v48 = vld [vmem:[#allocation2 + $0x298] sm:$0x3] }
 0x2ad   : > { %v956_v17 = vmul.f32 %v18225_v20, %v849_v58  ;;  %v3380_v51 = vadd.f32 %v18215_v10, %v3274_v0  ;;  %v3382_v23 = vadd.f32 %v18215_v10, %v3276_v50  ;;  %v3383_v5 = vadd.f32 %v18215_v10, %v3277_v8  ;;  %v1792_v59 = vld [vmem:[#allocation2 + $0x5f8] sm:$0x3] }
 0x2ae   : > { %v3384_v52 = vadd.f32 %v18215_v10, %v3278_v62  ;;  %v3482_v34 = vmax.f32 %v3378_v32, 0.0  ;;  %v3483_v11 = vmax.f32 %v3379_v42, 0.0  ;;  %v1056_v31 = vadd.f32 %v952_v37, %v741_v38  ;;  %v1796_v2 = vld [vmem:[#allocation2 + $0x618] sm:$0x3] }
 0x2af   : > { %v1060_v12 = vadd.f32 %v956_v17, %v745_v30  ;;  %v3484_v57 = vmax.f32 %v3380_v51, 0.0  ;;  %v3486_v15 = vmax.f32 %v3382_v23, 0.0  ;;  %v3487_v49 = vmax.f32 %v3383_v5, 0.0  ;;  %v2108_v58 = vld [vmem:[#allocation2 + $0x978] sm:$0x3] }
 0x2b0   : > { %v3488_v45 = vmax.f32 %v3384_v52, 0.0  ;;  %v1267_v28 = vmul.f32 %v18227_v21, %v1160_v43  ;;  %v1271_v18 = vmul.f32 %v18227_v21, %v1164_v14  ;;  %v1583_v0 = vmul.f32 %v18266_v54, %v1476_v47  ;;  %v2112_v8 = vld [vmem:[#allocation2 + $0x998] sm:$0x3] }
 0x2b1   : > { %v1587_v50 = vmul.f32 %v18266_v54, %v1480_v48  ;;  %v2424_v62 = vld [vmem:[#allocation2 + $0x298] sm:$0x3]  ;;  %v20283_v38 = vmax.f32 %v3482_v34, %v3486_v15  ;;  %v20285_v30 = vmax.f32 %v3483_v11, %v3487_v49  ;;  %v1899_v42 = vmul.f32 %v18269_v55, %v1792_v59  ;;  %v16015_v34 = vpop.f32.mrb[0].mxu0  ;;  %v16026_v11 = vpop.f32.mrb[0].mxu1 }
 0x2b2   : > { %v20287_v32 = vmax.f32 %v3484_v57, %v3488_v45  ;;  %v2428_v37 = vld [vmem:[#allocation2 + $0x2b8] sm:$0x3]  ;;  %v1371_v51 = vadd.f32 %v1267_v28, %v1056_v31  ;;  %v1375_v23 = vadd.f32 %v1271_v18, %v1060_v12  ;;  %v1903_v5 = vmul.f32 %v18269_v55, %v1796_v2  ;;  %v3910_v49 = vpop.f32.mrb[1].mxu0  ;;  %v3988_v2 = vpop.f32.mrb[1].mxu1  ;;  %4859 = vst [vmem:[%s20315_s23 + $0x8] sm:$0x7] %v16015_v34 }
 0x2b3   : > { %v2740_v17 = vld [vmem:[#allocation2 + $0x618] sm:$0x3]  ;;  %v20292_v52 = vmul.f32 %v18311_v24, %v2108_v58  ;;  %v3708_v57 = vrot.slane %v20283_v38, 1  ;;  %v3709_v59 = vrot.slane %v20285_v30, 1  ;;  %v2219_v31 = vmul.f32 %v18311_v24, %v2112_v8  ;;  %v16037_v61 = vpop.f32.mrb[2].mxu0  ;;  %v16048_v27 = vpop.f32.mrb[2].mxu1  ;;  %4858 = vst [vmem:[%s20315_s23] sm:$0xff] %v3910_v49 }
 0x2b4   : > { %v2744_v43 = vld [vmem:[#allocation2 + $0x638] sm:$0x3]  ;;  %v3711_v15 = vrot.slane %v20287_v32, 1  ;;  %v1687_v45 = vadd.f32 %v1583_v0, %v1371_v51  ;;  %v1691_v58 = vadd.f32 %v1587_v50, %v1375_v23  ;;  %v20300_v28 = vmul.f32 %v18314_v25, %v2424_v62  ;;  %14946 = vst [vmem:[%s20315_s23 + $0xd7] sm:$0xf] %v16015_v34  ;;  %4860 = vst [vmem:[%s20315_s23 + $0x10] sm:$0xff] %v3988_v2 }
 0x2b5   : > { %v3056_v14 = vld [vmem:[#allocation2 + $0x998] sm:$0x3]  ;;  %v20303_v18 = vmul.f32 %v18314_v25, %v2428_v37  ;;  %v3710_v46 = vsel %vm3637_vm7, %v3708_v57, %v3709_v59  ;;  %v20310_v9 = vmul.f32 %v18347_v63, %v2740_v17  ;;  %v20313_v0 = vmul.f32 %v18347_v63, %v2744_v43  ;;  %14973 = vst [vmem:[%s20315_s23 + $0x1a6] sm:$0x1f] %v16015_v34  ;;  %v4066_v37 = vpop.f32.mrb[3].mxu0  ;;  %v4144_v17 = vpop.f32.mrb[3].mxu1 }
 0x2b6   : > { %v642_v47 = vld [vmem:[#allocation2 + $0x298] sm:$0x3]  ;;  %v3712_v8 = vsel %vm3637_vm7, %v3709_v59, %v3711_v15  ;;  %14945 = vst [vmem:[%s20315_s23 + $0xcf] sm:$0xfe] %v3910_v49  ;;  %14972 = vst [vmem:[%s20315_s23 + $0x19e] sm:$0xfc] %v3910_v49  ;;  %v3821_v43 = vmax.f32 %v20283_v38, %v3710_v46  ;;  %v2003_v23 = vadd.f32 %v1899_v42, %v1687_v45 }
 0x2b7   : > { %v646_v48 = vld [vmem:[#allocation2 + $0x2b8] sm:$0x3]  ;;  %4861 = vst [vmem:[%s20315_s23 + $0x18] sm:$0x7] %v16026_v11  ;;  %14948 = vst [vmem:[%s20315_s23 + $0xe7] sm:$0xf] %v16026_v11  ;;  %v3822_v51 = vmax.f32 %v20285_v30, %v3712_v8  ;;  %v3167_v46 = vmul.f32 %v18350_v1, %v3060_v40  ;;  %v749_v38 = vmul.f32 %v18205_v6, %v642_v47 }
 0x2b8   : > { %v853_v12 = vld [vmem:[#allocation2 + $0x618] sm:$0x3]  ;;  %14975 = vst [vmem:[%s20315_s23 + $0x1b6] sm:$0x1f] %v16026_v11  ;;  %4863 = vst [vmem:[%s20315_s23 + $0x28] sm:$0x7] %v16037_v61  ;;  %v753_v30 = vmul.f32 %v18205_v6, %v646_v48  ;;  %v2319_v49 = vadd.f32 %v20292_v52, %v2003_v23 }
 0x2b9   : > { %v857_v50 = vld [vmem:[#allocation2 + $0x638] sm:$0x3]  ;;  %14950 = vst [vmem:[%s20315_s23 + $0xf7] sm:$0xf] %v16037_v61  ;;  %14977 = vst [vmem:[%s20315_s23 + $0x1c6] sm:$0x1f] %v16037_v61  ;;  %v2007_v61 = vadd.f32 %v1903_v5, %v1691_v58  ;;  %v16934_v59 = vpack.c.bf16 %v3822_v51, %v3821_v43 }
 0x2ba   : > { %v1168_v62 = vld [vmem:[#allocation2 + $0x998] sm:$0x3]  ;;  %14947 = vst [vmem:[%s20315_s23 + $0xdf] sm:$0xfe] %v3988_v2  ;;  %14974 = vst [vmem:[%s20315_s23 + $0x1ae] sm:$0xfc] %v3988_v2  ;;  %v964_v47 = vmul.f32 %v18225_v20, %v857_v50  ;;  %v2635_v52 = vadd.f32 %v20300_v28, %v2319_v49 }
 0x2bb   : > { %4865 = vst [vmem:[%s20315_s23 + $0x38] sm:$0x7] %v16048_v27  ;;  %14952 = vst [vmem:[%s20315_s23 + $0x107] sm:$0xf] %v16048_v27  ;;  %v1172_v34 = vld [vmem:[#allocation2 + $0x9b8] sm:$0x3]  ;;  %v2323_v2 = vadd.f32 %v2219_v31, %v2007_v61  ;;  %v1275_v48 = vmul.f32 %v18227_v21, %v1168_v62  ;;  %16935 = vmatprep.subr.bf16.mxu0 %v16934_v59 }
 0x2bc   : > { %14979 = vst [vmem:[%s20315_s23 + $0x1d6] sm:$0x1f] %v16048_v27  ;;  %v1484_v11 = vld [vmem:[#allocation2 + $0x2b8] sm:$0x3]  ;;  %4862 = vst [vmem:[%s20315_s23 + $0x20] sm:$0xff] %v4066_v37  ;;  %v16059_v57 = vpop.f32.mrb[4].mxu0  ;;  %v3163_v27 = vmul.f32 %v18350_v1, %v3056_v14  ;;  %v960_v14 = vmul.f32 %v18225_v20, %v853_v12  ;;  %v1279_v8 = vmul.f32 %v18227_v21, %v1172_v34  ;;  %16937 = vmatpush3.bf16.msra.mxu0 %v16934_v59 }
 0x2bd   : > { %14949 = vst [vmem:[%s20315_s23 + $0xef] sm:$0xfe] %v4066_v37  ;;  %14976 = vst [vmem:[%s20315_s23 + $0x1be] sm:$0xfc] %v4066_v37  ;;  %v1488_v42 = vld [vmem:[#allocation2 + $0x2d8] sm:$0x3]  ;;  %v1591_v37 = vmul.f32 %v18266_v54, %v1484_v11  ;;  %v2639_v31 = vadd.f32 %v20303_v18, %v2323_v2  ;;  %v1068_v50 = vadd.f32 %v964_v47, %v753_v30 }
 0x2be   : > { %4864 = vst [vmem:[%s20315_s23 + $0x30] sm:$0xff] %v4144_v17  ;;  %14951 = vst [vmem:[%s20315_s23 + $0xff] sm:$0xfe] %v4144_v17  ;;  %v4222_v5 = vpop.f32.mrb[5].mxu0  ;;  %v1800_v45 = vld [vmem:[#allocation2 + $0x638] sm:$0x3]  ;;  %v1064_v12 = vadd.f32 %v960_v14, %v749_v38  ;;  %v1595_v43 = vmul.f32 %v18266_v54, %v1488_v42 }
 0x2bf   : > { %14978 = vst [vmem:[%s20315_s23 + $0x1ce] sm:$0xfc] %v4144_v17  ;;  %4867 = vst [vmem:[%s20315_s23 + $0x48] sm:$0x7] %v16059_v57  ;;  %v1804_v58 = vld [vmem:[#allocation2 + $0x658] sm:$0x3]  ;;  %v1907_v62 = vmul.f32 %v18269_v55, %v1800_v45  ;;  %v2955_v28 = vadd.f32 %v20313_v0, %v2639_v31  ;;  %v1383_v2 = vadd.f32 %v1279_v8, %v1068_v50 }
 0x2c0   : > { %14954 = vst [vmem:[%s20315_s23 + $0x117] sm:$0xf] %v16059_v57  ;;  %14981 = vst [vmem:[%s20315_s23 + $0x1e6] sm:$0x1f] %v16059_v57  ;;  %v2116_v40 = vld [vmem:[#allocation2 + $0x9b8] sm:$0x3]  ;;  %v1911_v34 = vmul.f32 %v18269_v55, %v1804_v58  ;;  %v1379_v18 = vadd.f32 %v1275_v48, %v1064_v12  ;;  %v758_v12 = vmul.f32 %v20219_v29, %v18205_v6 }
 0x2c1   : > { %4866 = vst [vmem:[%s20315_s23 + $0x40] sm:$0xff] %v4222_v5  ;;  %14953 = vst [vmem:[%s20315_s23 + $0x10f] sm:$0xfe] %v4222_v5  ;;  %v2120_v17 = vld [vmem:[#allocation2 + $0x9d8] sm:$0x3]  ;;  %v2223_v11 = vmul.f32 %v18311_v24, %v2116_v40  ;;  %v3271_v58 = vadd.f32 %v3167_v46, %v2955_v28 }
 0x2c2   : > { %14980 = vst [vmem:[%s20315_s23 + $0x1de] sm:$0xfc] %v4222_v5  ;;  %v2432_v51 = vld [vmem:[#allocation2 + $0x2d8] sm:$0x3]  ;;  %v2951_v5 = vadd.f32 %v20310_v9, %v2635_v52  ;;  %v2227_v38 = vmul.f32 %v18311_v24, %v2120_v17  ;;  %v1695_v40 = vadd.f32 %v1591_v37, %v1379_v18  ;;  %v1699_v9 = vadd.f32 %v1595_v43, %v1383_v2 }
 0x2c3   : > { %v2436_v23 = vld [vmem:[#allocation2 + $0x2f8] sm:$0x3]  ;;  %v2539_v59 = vmul.f32 %v18314_v25, %v2432_v51  ;;  %v754_v17 = vmul.f32 %v20161_v19, %v18205_v6  ;;  %v3377_v52 = vadd.f32 %v18215_v10, %v3271_v58  ;;  %v756_v37 = vmul.f32 %v20165_v16, %v18205_v6 }
 0x2c4   : > { %v2748_v61 = vld [vmem:[#allocation2 + $0x658] sm:$0x3]  ;;  %v2543_v30 = vmul.f32 %v18314_v25, %v2436_v23  ;;  %v3267_v45 = vadd.f32 %v3163_v27, %v2951_v5  ;;  %v2011_v31 = vadd.f32 %v1907_v62, %v1695_v40  ;;  %v755_v27 = vmul.f32 %v20163_v41, %v18205_v6 }
 0x2c5   : > { %v2752_v57 = vld [vmem:[#allocation2 + $0x678] sm:$0x3]  ;;  %v2855_v14 = vmul.f32 %v18347_v63, %v2748_v61  ;;  %v2015_v46 = vadd.f32 %v1911_v34, %v1699_v9  ;;  %v759_v43 = vmul.f32 %v20221_v4, %v18205_v6  ;;  %v3481_v19 = vmax.f32 %v3377_v52, 0.0 }
 0x2c6   : > { %v3064_v42 = vld [vmem:[#allocation2 + $0x9d8] sm:$0x3]  ;;  %v2859_v47 = vmul.f32 %v18347_v63, %v2752_v57  ;;  %v3373_v8 = vadd.f32 %v18215_v10, %v3267_v45  ;;  %v2327_v23 = vadd.f32 %v2223_v11, %v2011_v31  ;;  %v760_v61 = vmul.f32 %v20223_v3, %v18205_v6 }
 0x2c7   : > { %v3068_v49 = vld [vmem:[#allocation2 + $0x9f8] sm:$0x3]  ;;  %v3171_v0 = vmul.f32 %v18350_v1, %v3064_v42  ;;  %v2331_v50 = vadd.f32 %v2227_v38, %v2015_v46  ;;  %v965_v41 = vmul.f32 %v20179_v53, %v18225_v20  ;;  %v966_v62 = vmul.f32 %v20181_v39, %v18225_v20 }
 0x2c8   : > { %v3175_v48 = vmul.f32 %v18350_v1, %v3068_v49  ;;  %v3477_v51 = vmax.f32 %v3373_v8, 0.0  ;;  %v967_v16 = vmul.f32 %v20183_v44, %v18225_v20  ;;  %v3565_v57 = vsel %vm3509_vm8, %v3481_v19, -inf }
 0x2c9   : > { %v2643_v5 = vadd.f32 %v2539_v59, %v2327_v23  ;;  %v969_v11 = vmul.f32 %v20237_v26, %v18225_v20  ;;  %v2647_v18 = vadd.f32 %v2543_v30, %v2331_v50  ;;  %v970_v38 = vmul.f32 %v20239_v22, %v18225_v20 }
 0x2ca   : > { %v3564_v34 = vsel %vm3509_vm8, %v3477_v51, -inf  ;;  %v971_v53 = vmul.f32 %v20241_v33, %v18225_v20  ;;  %v1069_v42 = vadd.f32 %v965_v41, %v754_v17  ;;  %v1070_v49 = vadd.f32 %v966_v62, %v755_v27  ;;  %v20420_v41 = vld [vmem:[#allocation2 + $0x300] sm:$0xff] }
 0x2cb   : > { %v3566_v28 = vmax.f32 %v3564_v34, %v3565_v57  ;;  %v2959_v39 = vadd.f32 %v2855_v14, %v2643_v5  ;;  %v1071_v44 = vadd.f32 %v967_v16, %v756_v37  ;;  %v2963_v45 = vadd.f32 %v2859_v47, %v2647_v18  ;;  %v23216_v37 = vld [vmem:[#allocation19_spill] sm:$0xff]  ;;  %v20427_v57 = vld [vmem:[#allocation2 + $0x308] sm:$0xff]  ;;  %v20429_v5 = vld [vmem:[#allocation2 + $0x310] sm:$0xff] }
 0x2cc   : > { %v1073_v58 = vadd.f32 %v969_v11, %v758_v12  ;;  %v1074_v40 = vadd.f32 %v970_v38, %v759_v43  ;;  %v1075_v9 = vadd.f32 %v971_v53, %v760_v61  ;;  %v1280_v8 = vmul.f32 %v20197_v7, %v18227_v21 }
 0x2cd   : > { %v3706_v2 = vrot.slane %v3566_v28, 1  ;;  %v3275_v59 = vadd.f32 %v3171_v0, %v2959_v39  ;;  %v1281_v30 = vmul.f32 %v20199_v13, %v18227_v21  ;;  %v23215_v52 = vrot.slane %v20140_v60, 1 }
 0x2ce   : > { %v3279_v17 = vadd.f32 %v3175_v48, %v2963_v45  ;;  %v1282_v27 = vmul.f32 %v20201_v56, %v18227_v21  ;;  %v1284_v46 = vmul.f32 %v20255_v35, %v18227_v21  ;;  %v1285_v7 = vmul.f32 %v20257_v36, %v18227_v21  ;;  %v20444_v45 = vld [vmem:[#allocation2 + $0x680] sm:$0xff] }
 0x2cf   : > { %v3707_v31 = vsel %vm3637_vm7, %v23215_v52, %v3706_v2  ;;  %v3820_v14 = vmax.f32 %v3566_v28, %v3706_v2  ;;  %v3381_v0 = vadd.f32 %v18215_v10, %v3275_v59  ;;  %v1286_v12 = vmul.f32 %v23216_v37, %v18227_v21 }
 0x2d0   : > { %v3819_v47 = vmax.f32 %v20140_v60, %v3707_v31  ;;  %v3385_v13 = vadd.f32 %v18215_v10, %v3279_v17  ;;  %v1384_v43 = vadd.f32 %v1280_v8, %v1069_v42  ;;  %v1385_v48 = vadd.f32 %v1281_v30, %v1070_v49  ;;  %v20452_v8 = vld [vmem:[#allocation2 + $0x690] sm:$0xff] }
 0x2d1   : > { %v3485_v19 = vmax.f32 %v3381_v0, 0.0  ;;  %v1386_v56 = vadd.f32 %v1282_v27, %v1071_v44  ;;  %v1388_v23 = vadd.f32 %v1284_v46, %v1073_v58  ;;  %v1389_v61 = vadd.f32 %v1285_v7, %v1074_v40  ;;  %v20446_v58 = vld [vmem:[#allocation2 + $0x688] sm:$0xff] }
 0x2d2   : > { %v16928_v51 = vpack.c.bf16 %v3820_v14, %v3819_v47  ;;  %v3489_v60 = vmax.f32 %v3385_v13, 0.0  ;;  %v1390_v50 = vadd.f32 %v1286_v12, %v1075_v9  ;;  %v1596_v62 = vmul.f32 %v20219_v29, %v18266_v54  ;;  %v23218_v14 = vld [vmem:[#allocation17_spill] sm:$0xff]  ;;  %v23219_v47 = vld [vmem:[#allocation15_spill] sm:$0xff] }
 0x2d3   : > { %v3570_v34 = vsel %vm3509_vm8, %v3485_v19, -inf  ;;  %v1597_v11 = vmul.f32 %v20221_v4, %v18266_v54  ;;  %v1598_v28 = vmul.f32 %v20223_v3, %v18266_v54  ;;  %v1600_v18 = vmul.f32 %v18266_v54, %v20420_v41  ;;  %v20476_v19 = vld [vmem:[#allocation2 + $0xa10] sm:$0xff] }
 0x2d4   : > { %16930 = vmatprep.subr.msk.bf16.mxu1 %vm18514_vm11, %v16928_v51  ;;  %v3571_v29 = vsel %vm3509_vm8, %v3489_v60, -inf  ;;  %v1601_v38 = vmul.f32 %v18266_v54, %v20427_v57  ;;  %v1602_v53 = vmul.f32 %v18266_v54, %v20429_v5  ;;  %v1700_v39 = vadd.f32 %v1596_v62, %v1384_v43 }
 0x2d5   : > { %16933 = vmatpush3.bf16.msk.msra.mxu1 %vm18514_vm11, %v16928_v51  ;;  %v3572_v42 = vmax.f32 %v3570_v34, %v3571_v29  ;;  %v1701_v4 = vadd.f32 %v1597_v11, %v1385_v48  ;;  %v1702_v49 = vadd.f32 %v1598_v28, %v1386_v56  ;;  %v1704_v44 = vadd.f32 %v1600_v18, %v1388_v23  ;;  %v20472_v48 = vld [vmem:[#allocation2 + $0xa00] sm:$0xff]  ;;  %v20474_v51 = vld [vmem:[#allocation2 + $0xa08] sm:$0xff]  ;;  %v20496_v29 = vld [vmem:[#allocation2 + $0x330] sm:$0xff] }
 0x2d6   : > { %v1705_v3 = vadd.f32 %v1601_v38, %v1389_v61  ;;  %v1706_v2 = vadd.f32 %v1602_v53, %v1390_v50  ;;  %v1912_v40 = vmul.f32 %v20237_v26, %v18269_v55  ;;  %v1913_v59 = vmul.f32 %v20239_v22, %v18269_v55  ;;  %v20492_v18 = vld [vmem:[#allocation2 + $0x328] sm:$0xff] }
 0x2d7   : > { %v3713_v9 = vrot.slane %v3572_v42, 1  ;;  %v1914_v30 = vmul.f32 %v20241_v33, %v18269_v55  ;;  %v1916_v52 = vmul.f32 %v18269_v55, %v20444_v45  ;;  %v1917_v31 = vmul.f32 %v18269_v55, %v20446_v58 }
 0x2d8   : > { %16113 = vmatmul.mubr.msk.f32.vlgmr.msra.gmra.mrb[8].mxu1 %vm3833_vm6, %v23218_v14  ;;  %v1918_v26 = vmul.f32 %v18269_v55, %v20452_v8  ;;  %v2016_v17 = vadd.f32 %v1912_v40, %v1700_v39  ;;  %v2017_v22 = vadd.f32 %v1913_v59, %v1701_v4  ;;  %v2228_v27 = vmul.f32 %v20255_v35, %v18311_v24 }
 0x2d9   : > { %16134 = vmatprep.mubr.msk.f32.mxu1 %vm3833_vm6, %v23219_v47  ;;  %v3714_v33 = vsel %vm3637_vm7, %v3711_v15, %v3713_v9  ;;  %v3824_v0 = vmax.f32 %v3572_v42, %v3713_v9  ;;  %v2018_v46 = vadd.f32 %v1914_v30, %v1702_v49  ;;  %v2020_v7 = vadd.f32 %v1916_v52, %v1704_v44  ;;  %v20514_v30 = vld [vmem:[#allocation2 + $0x6a0] sm:$0xff]  ;;  %v20516_v52 = vld [vmem:[#allocation2 + $0x6a8] sm:$0xff] }
 0x2da   : > { %v3823_v13 = vmax.f32 %v20287_v32, %v3714_v33  ;;  %v2021_v12 = vadd.f32 %v1917_v31, %v1705_v3  ;;  %v2022_v43 = vadd.f32 %v1918_v26, %v1706_v2  ;;  %v2229_v35 = vmul.f32 %v20257_v36, %v18311_v24  ;;  %v20518_v26 = vld [vmem:[#allocation2 + $0x6b0] sm:$0xff] }
 0x2db   : > { %v2230_v56 = vmul.f32 %v23216_v37, %v18311_v24  ;;  %v2232_v15 = vmul.f32 %v18311_v24, %v20472_v48  ;;  %v2233_v32 = vmul.f32 %v18311_v24, %v20474_v51  ;;  %v2234_v23 = vmul.f32 %v18311_v24, %v20476_v19  ;;  %v20490_v37 = vld [vmem:[#allocation2 + $0x320] sm:$0xff] }
 0x2dc   : > { %v16938_v60 = vpack.c.bf16 %v3824_v0, %v3823_v13  ;;  %v2332_v61 = vadd.f32 %v2228_v27, %v2016_v17  ;;  %v2333_v50 = vadd.f32 %v2229_v35, %v2017_v22  ;;  %v2544_v62 = vmul.f32 %v18314_v25, %v20420_v41  ;;  %v20532_v35 = vld [vmem:[#allocation2 + $0xa20] sm:$0xff] }
 0x2dd   : > { %v2334_v34 = vadd.f32 %v2230_v56, %v2018_v46  ;;  %v2336_v36 = vadd.f32 %v2232_v15, %v2020_v7  ;;  %v2337_v11 = vadd.f32 %v2233_v32, %v2021_v12  ;;  %v2338_v28 = vadd.f32 %v2234_v23, %v2022_v43  ;;  %v20534_v56 = vld [vmem:[#allocation2 + $0xa28] sm:$0xff]  ;;  %v20540_v23 = vld [vmem:[#allocation2 + $0xa30] sm:$0xff] }
 0x2de   : > { %16940 = vmatprep.subr.msk.bf16.mxu0 %vm18514_vm11, %v16938_v60  ;;  %v2545_v38 = vmul.f32 %v18314_v25, %v20427_v57  ;;  %v2546_v53 = vmul.f32 %v18314_v25, %v20429_v5  ;;  %v2548_v39 = vmul.f32 %v18314_v25, %v20490_v37  ;;  %v2549_v42 = vmul.f32 %v18314_v25, %v20492_v18 }
 0x2df   : > { %16943 = vmatpush3.bf16.msk.msra.mxu0 %vm18514_vm11, %v16938_v60  ;;  %v2550_v4 = vmul.f32 %v18314_v25, %v20496_v29  ;;  %v2648_v49 = vadd.f32 %v2544_v62, %v2332_v61  ;;  %v2860_v44 = vmul.f32 %v18347_v63, %v20444_v45  ;;  %v2861_v3 = vmul.f32 %v18347_v63, %v20446_v58 }
 0x2e0   : > { %v2649_v2 = vadd.f32 %v2545_v38, %v2333_v50  ;;  %v2650_v40 = vadd.f32 %v2546_v53, %v2334_v34  ;;  %v2652_v59 = vadd.f32 %v2548_v39, %v2336_v36  ;;  %v2653_v9 = vadd.f32 %v2549_v42, %v2337_v11 }
 0x2e1   : > { %v2654_v31 = vadd.f32 %v2550_v4, %v2338_v28  ;;  %v2862_v17 = vmul.f32 %v18347_v63, %v20452_v8  ;;  %v2864_v22 = vmul.f32 %v18347_v63, %v20514_v30  ;;  %v2865_v27 = vmul.f32 %v18347_v63, %v20516_v52 }
 0x2e2   : > { %v2866_v33 = vmul.f32 %v18347_v63, %v20518_v26  ;;  %v2964_v0 = vadd.f32 %v2860_v44, %v2648_v49  ;;  %v2965_v46 = vadd.f32 %v2861_v3, %v2649_v2  ;;  %v3176_v7 = vmul.f32 %v18350_v1, %v20472_v48  ;;  %16124 = vmatmul.mubr.msk.f32.vlgmr.msra.gmra.mrb[10].mxu0 %vm3833_vm6, %v23218_v14 }
 0x2e3   : > { %v2966_v13 = vadd.f32 %v2862_v17, %v2650_v40  ;;  %v2968_v12 = vadd.f32 %v2864_v22, %v2652_v59  ;;  %v2969_v43 = vadd.f32 %v2865_v27, %v2653_v9  ;;  %v3177_v15 = vmul.f32 %v18350_v1, %v20474_v51  ;;  %16145 = vmatprep.mubr.msk.f32.mxu0 %vm3833_vm6, %v23219_v47 }
 0x2e4   : > { %v2970_v32 = vadd.f32 %v2866_v33, %v2654_v31  ;;  %v3178_v60 = vmul.f32 %v18350_v1, %v20476_v19  ;;  %v3180_v61 = vmul.f32 %v18350_v1, %v20532_v35  ;;  %v3181_v50 = vmul.f32 %v18350_v1, %v20534_v56 }
 0x2e5   : > { %v3182_v62 = vmul.f32 %v18350_v1, %v20540_v23  ;;  %v3280_v34 = vadd.f32 %v3176_v7, %v2964_v0  ;;  %v3281_v36 = vadd.f32 %v3177_v15, %v2965_v46  ;;  %v762_v47 = vmul.f32 %v20420_v41, %v18205_v6 }
 0x2e6   : > { %v3282_v11 = vadd.f32 %v3178_v60, %v2966_v13  ;;  %v3284_v28 = vadd.f32 %v3180_v61, %v2968_v12  ;;  %v3285_v38 = vadd.f32 %v3181_v50, %v2969_v43  ;;  %v763_v53 = vmul.f32 %v20427_v57, %v18205_v6 }
 0x2e7   : > { %v3286_v39 = vadd.f32 %v3182_v62, %v2970_v32  ;;  %v3386_v42 = vadd.f32 %v18215_v10, %v3280_v34  ;;  %v3387_v4 = vadd.f32 %v18215_v10, %v3281_v36  ;;  %v764_v49 = vmul.f32 %v20429_v5, %v18205_v6 }
 0x2e8   : > { %v3388_v44 = vadd.f32 %v18215_v10, %v3282_v11  ;;  %v3390_v3 = vadd.f32 %v18215_v10, %v3284_v28  ;;  %v3391_v41 = vadd.f32 %v18215_v10, %v3285_v38  ;;  %v766_v2 = vmul.f32 %v20490_v37, %v18205_v6 }
 0x2e9   : > { %v3392_v40 = vadd.f32 %v18215_v10, %v3286_v39  ;;  %v3490_v57 = vmax.f32 %v3386_v42, 0.0  ;;  %v3491_v59 = vmax.f32 %v3387_v4, 0.0  ;;  %v767_v9 = vmul.f32 %v20492_v18, %v18205_v6 }
 0x2ea   : > { %v3492_v31 = vmax.f32 %v3388_v44, 0.0  ;;  %v3494_v17 = vmax.f32 %v3390_v3, 0.0  ;;  %v3495_v22 = vmax.f32 %v3391_v41, 0.0  ;;  %v768_v5 = vmul.f32 %v20496_v29, %v18205_v6 }
 0x2eb   : > { %v3496_v27 = vmax.f32 %v3392_v40, 0.0  ;;  %v973_v33 = vmul.f32 %v20444_v45, %v18225_v20  ;;  %v974_v0 = vmul.f32 %v20446_v58, %v18225_v20  ;;  %v975_v46 = vmul.f32 %v20452_v8, %v18225_v20 }
 0x2ec   : > { %v3573_v7 = vmax.f32 %v3490_v57, %v3494_v17  ;;  %v3574_v13 = vmax.f32 %v3491_v59, %v3495_v22  ;;  %v977_v12 = vmul.f32 %v20514_v30, %v18225_v20  ;;  %v978_v43 = vmul.f32 %v20516_v52, %v18225_v20 }
 0x2ed   : > { %v20578_v15 = vmax.f32 %v3492_v31, %v3496_v27  ;;  %v979_v32 = vmul.f32 %v20518_v26, %v18225_v20  ;;  %v1077_v45 = vadd.f32 %v973_v33, %v762_v47  ;;  %v1078_v60 = vadd.f32 %v974_v0, %v763_v53  ;;  %v1817_v27 = vld [vmem:[#allocation2 + $0x6c0] sm:$0xff] }
 0x2ee   : > { %v3715_v61 = vrot.slane %v3573_v7, 1  ;;  %v3716_v58 = vrot.slane %v3574_v13, 1  ;;  %v1079_v50 = vadd.f32 %v975_v46, %v764_v49  ;;  %v1081_v62 = vadd.f32 %v977_v12, %v766_v2  ;;  %v1501_v49 = vld [vmem:[#allocation2 + $0x340] sm:$0xff]  ;;  %v1503_v2 = vld [vmem:[#allocation2 + $0x350] sm:$0xff] }
 0x2ef   : > { %v3718_v8 = vrot.slane %v20578_v15, 1  ;;  %v1082_v34 = vadd.f32 %v978_v43, %v767_v9  ;;  %v1083_v36 = vadd.f32 %v979_v32, %v768_v5  ;;  %v1288_v11 = vmul.f32 %v20472_v48, %v18227_v21 }
 0x2f0   : > { %v3717_v28 = vsel %vm3637_vm7, %v3715_v61, %v3716_v58  ;;  %v1289_v38 = vmul.f32 %v20474_v51, %v18227_v21  ;;  %v1290_v47 = vmul.f32 %v20476_v19, %v18227_v21  ;;  %v1292_v53 = vmul.f32 %v20532_v35, %v18227_v21  ;;  %v1502_v19 = vld [vmem:[#allocation2 + $0x348] sm:$0xff] }
 0x2f1   : > { %v3719_v39 = vsel %vm3637_vm7, %v3716_v58, %v3718_v8  ;;  %v3825_v42 = vmax.f32 %v3573_v7, %v3717_v28  ;;  %v1293_v4 = vmul.f32 %v20534_v56, %v18227_v21  ;;  %v1294_v48 = vmul.f32 %v20540_v23, %v18227_v21  ;;  %v1818_v7 = vld [vmem:[#allocation2 + $0x6c8] sm:$0xff]  ;;  %v2133_v58 = vld [vmem:[#allocation2 + $0xa40] sm:$0xff] }
 0x2f2   : > { %v3826_v44 = vmax.f32 %v3574_v13, %v3719_v39  ;;  %v1392_v51 = vadd.f32 %v1288_v11, %v1077_v45  ;;  %v1393_v3 = vadd.f32 %v1289_v38, %v1078_v60  ;;  %v1394_v41 = vadd.f32 %v1290_v47, %v1079_v50  ;;  %v1819_v13 = vld [vmem:[#allocation2 + $0x6d0] sm:$0xff] }
 0x2f3   : > { %v1396_v40 = vadd.f32 %v1292_v53, %v1081_v62  ;;  %v1397_v57 = vadd.f32 %v1293_v4, %v1082_v34  ;;  %v1398_v59 = vadd.f32 %v1294_v48, %v1083_v36  ;;  %v1604_v9 = vmul.f32 %v20490_v37, %v18266_v54  ;;  %v2134_v36 = vld [vmem:[#allocation2 + $0xa48] sm:$0xff]  ;;  %v2135_v11 = vld [vmem:[#allocation2 + $0xa50] sm:$0xff]  ;;  %v2449_v4 = vld [vmem:[#allocation2 + $0x360] sm:$0xff] }
 0x2f4   : > { %v16944_v31 = vpack.c.bf16 %v3826_v44, %v3825_v42  ;;  %v1605_v17 = vmul.f32 %v20492_v18, %v18266_v54  ;;  %v1606_v22 = vmul.f32 %v20496_v29, %v18266_v54  ;;  %v1608_v5 = vmul.f32 %v18266_v54, %v1501_v49 }
 0x2f5   : > { %v1609_v33 = vmul.f32 %v18266_v54, %v1502_v19  ;;  %v1610_v0 = vmul.f32 %v18266_v54, %v1503_v2  ;;  %v1708_v46 = vadd.f32 %v1604_v9, %v1392_v51  ;;  %v1920_v37 = vmul.f32 %v20514_v30, %v18269_v55 }
 0x2f6   : > { %16945 = vmatprep.subr.bf16.mxu1 %v16944_v31  ;;  %v1709_v12 = vadd.f32 %v1605_v17, %v1393_v3  ;;  %v1710_v43 = vadd.f32 %v1606_v22, %v1394_v41  ;;  %v1712_v18 = vadd.f32 %v1608_v5, %v1396_v40  ;;  %v1921_v29 = vmul.f32 %v20516_v52, %v18269_v55  ;;  %v2450_v41 = vld [vmem:[#allocation2 + $0x368] sm:$0xff]  ;;  %v2451_v40 = vld [vmem:[#allocation2 + $0x370] sm:$0xff]  ;;  %v2765_v22 = vld [vmem:[#allocation2 + $0x6e0] sm:$0xff] }
 0x2f7   : > { %16947 = vmatpush3.bf16.msra.mxu1 %v16944_v31  ;;  %v1713_v32 = vadd.f32 %v1609_v33, %v1397_v57  ;;  %v1714_v45 = vadd.f32 %v1610_v0, %v1398_v59  ;;  %v1922_v60 = vmul.f32 %v20518_v26, %v18269_v55  ;;  %v1924_v61 = vmul.f32 %v18269_v55, %v1817_v27 }
 0x2f8   : > { %v1925_v50 = vmul.f32 %v18269_v55, %v1818_v7  ;;  %v1926_v30 = vmul.f32 %v18269_v55, %v1819_v13  ;;  %v2024_v62 = vadd.f32 %v1920_v37, %v1708_v46  ;;  %v2025_v34 = vadd.f32 %v1921_v29, %v1709_v12  ;;  %v2766_v37 = vld [vmem:[#allocation2 + $0x6e8] sm:$0xff] }
 0x2f9   : > { %v2026_v28 = vadd.f32 %v1922_v60, %v1710_v43  ;;  %v2028_v38 = vadd.f32 %v1924_v61, %v1712_v18  ;;  %v2236_v52 = vmul.f32 %v20532_v35, %v18311_v24  ;;  %v2237_v47 = vmul.f32 %v20534_v56, %v18311_v24  ;;  %v16070_v18 = vpop.f32.mrb[4].mxu1  ;;  %v3081_v61 = vld [vmem:[#allocation2 + $0xa60] sm:$0xff] }
 0x2fa   : > { %v2029_v26 = vadd.f32 %v1925_v50, %v1713_v32  ;;  %v2030_v53 = vadd.f32 %v1926_v30, %v1714_v45  ;;  %v2238_v39 = vmul.f32 %v20540_v23, %v18311_v24  ;;  %v2240_v42 = vmul.f32 %v18311_v24, %v2133_v58  ;;  %4869 = vst [vmem:[%s20315_s23 + $0x58] sm:$0x7] %v16070_v18  ;;  %v4300_v50 = vpop.f32.mrb[5].mxu1 }
 0x2fb   : > { %v2241_v48 = vmul.f32 %v18311_v24, %v2134_v36  ;;  %v2242_v44 = vmul.f32 %v18311_v24, %v2135_v11  ;;  %v2340_v51 = vadd.f32 %v2236_v52, %v2024_v62  ;;  %v2341_v3 = vadd.f32 %v2237_v47, %v2025_v34  ;;  %14956 = vst [vmem:[%s20315_s23 + $0x127] sm:$0xf] %v16070_v18  ;;  %v3082_v34 = vld [vmem:[#allocation2 + $0xa68] sm:$0xff] }
 0x2fc   : > { %v2342_v35 = vadd.f32 %v2238_v39, %v2026_v28  ;;  %v2344_v57 = vadd.f32 %v2240_v42, %v2028_v38  ;;  %v2552_v56 = vmul.f32 %v18314_v25, %v1501_v49  ;;  %v2553_v59 = vmul.f32 %v18314_v25, %v1502_v19  ;;  %v2767_v49 = vld [vmem:[#allocation2 + $0x6f0] sm:$0xff]  ;;  %14983 = vst [vmem:[%s20315_s23 + $0x1f6] sm:$0x1f] %v16070_v18 }
 0x2fd   : > { %v2345_v9 = vadd.f32 %v2241_v48, %v2029_v26  ;;  %v2346_v31 = vadd.f32 %v2242_v44, %v2030_v53  ;;  %v2554_v23 = vmul.f32 %v18314_v25, %v1503_v2  ;;  %v2556_v17 = vmul.f32 %v18314_v25, %v2449_v4  ;;  %v3083_v28 = vld [vmem:[#allocation2 + $0xa70] sm:$0xff]  ;;  %4868 = vst [vmem:[%s20315_s23 + $0x50] sm:$0xff] %v4300_v50  ;;  %v650_v26 = vld [vmem:[#allocation2 + $0x2d8] sm:$0x3] }
 0x2fe   : > { %v2557_v5 = vmul.f32 %v18314_v25, %v2450_v41  ;;  %v2558_v33 = vmul.f32 %v18314_v25, %v2451_v40  ;;  %v2656_v0 = vadd.f32 %v2552_v56, %v2340_v51  ;;  %v2657_v46 = vadd.f32 %v2553_v59, %v2341_v3  ;;  %14955 = vst [vmem:[%s20315_s23 + $0x11f] sm:$0xfe] %v4300_v50  ;;  %v654_v53 = vld [vmem:[#allocation2 + $0x2f8] sm:$0x3] }
 0x2ff   : > { %v2658_v12 = vadd.f32 %v2554_v23, %v2342_v35  ;;  %v2660_v19 = vadd.f32 %v2556_v17, %v2344_v57  ;;  %v2868_v43 = vmul.f32 %v18347_v63, %v1817_v27  ;;  %v2869_v2 = vmul.f32 %v18347_v63, %v1818_v7  ;;  %14982 = vst [vmem:[%s20315_s23 + $0x1ee] sm:$0xfc] %v4300_v50  ;;  %v861_v40 = vld [vmem:[#allocation2 + $0x658] sm:$0x3] }
 0x300   : > { %v2661_v29 = vadd.f32 %v2557_v5, %v2345_v9  ;;  %v2662_v32 = vadd.f32 %v2558_v33, %v2346_v31  ;;  %v2870_v45 = vmul.f32 %v18347_v63, %v1819_v13  ;;  %v2872_v60 = vmul.f32 %v18347_v63, %v2765_v22  ;;  %v865_v35 = vld [vmem:[#allocation2 + $0x678] sm:$0x3] }
 0x301   : > { %v2873_v30 = vmul.f32 %v18347_v63, %v2766_v37  ;;  %v2874_v27 = vmul.f32 %v18347_v63, %v2767_v49  ;;  %v2972_v7 = vadd.f32 %v2868_v43, %v2656_v0  ;;  %v2973_v62 = vadd.f32 %v2869_v2, %v2657_v46  ;;  %v1176_v33 = vld [vmem:[#allocation2 + $0x9d8] sm:$0x3] }
 0x302   : > { %v2974_v38 = vadd.f32 %v2870_v45, %v2658_v12  ;;  %v2976_v13 = vadd.f32 %v2872_v60, %v2660_v19  ;;  %v3184_v52 = vmul.f32 %v18350_v1, %v2133_v58  ;;  %v3185_v47 = vmul.f32 %v18350_v1, %v2134_v36  ;;  %v1180_v0 = vld [vmem:[#allocation2 + $0x9f8] sm:$0x3] }
 0x303   : > { %v2977_v39 = vadd.f32 %v2873_v30, %v2661_v29  ;;  %v2978_v42 = vadd.f32 %v2874_v27, %v2662_v32  ;;  %v3186_v4 = vmul.f32 %v18350_v1, %v2135_v11  ;;  %v3188_v48 = vmul.f32 %v18350_v1, %v3081_v61  ;;  %v1492_v46 = vld [vmem:[#allocation2 + $0x2f8] sm:$0x3] }
 0x304   : > { %v3189_v44 = vmul.f32 %v18350_v1, %v3082_v34  ;;  %v3190_v51 = vmul.f32 %v18350_v1, %v3083_v28  ;;  %v3288_v3 = vadd.f32 %v3184_v52, %v2972_v7  ;;  %v3289_v41 = vadd.f32 %v3185_v47, %v2973_v62  ;;  %v1496_v43 = vld [vmem:[#allocation2 + $0x318] sm:$0x3] }
 0x305   : > { %v3290_v57 = vadd.f32 %v3186_v4, %v2974_v38  ;;  %v3292_v58 = vadd.f32 %v3188_v48, %v2976_v13  ;;  %v757_v36 = vmul.f32 %v18205_v6, %v650_v26  ;;  %v761_v56 = vmul.f32 %v18205_v6, %v654_v53  ;;  %v1808_v2 = vld [vmem:[#allocation2 + $0x678] sm:$0x3]  ;;  %v16081_v34 = vpop.f32.mrb[6].mxu0 }
 0x306   : > { %v3293_v59 = vadd.f32 %v3189_v44, %v2977_v39  ;;  %v3294_v9 = vadd.f32 %v3190_v51, %v2978_v42  ;;  %v3394_v11 = vadd.f32 %v18215_v10, %v3288_v3  ;;  %v3395_v31 = vadd.f32 %v18215_v10, %v3289_v41  ;;  %v1812_v60 = vld [vmem:[#allocation2 + $0x698] sm:$0x3]  ;;  %4871 = vst [vmem:[%s20315_s23 + $0x68] sm:$0x7] %v16081_v34  ;;  %v4378_v47 = vpop.f32.mrb[7].mxu0 }
 0x307   : > { %v3396_v23 = vadd.f32 %v18215_v10, %v3290_v57  ;;  %v3398_v17 = vadd.f32 %v18215_v10, %v3292_v58  ;;  %v968_v22 = vmul.f32 %v18225_v20, %v861_v40  ;;  %v972_v5 = vmul.f32 %v18225_v20, %v865_v35  ;;  %v2124_v61 = vld [vmem:[#allocation2 + $0x9f8] sm:$0x3]  ;;  %14958 = vst [vmem:[%s20315_s23 + $0x137] sm:$0xf] %v16081_v34 }
 0x308   : > { %v3399_v37 = vadd.f32 %v18215_v10, %v3293_v59  ;;  %v3400_v49 = vadd.f32 %v18215_v10, %v3294_v9  ;;  %v3498_v12 = vmax.f32 %v3394_v11, 0.0  ;;  %v3499_v19 = vmax.f32 %v3395_v31, 0.0  ;;  %v2128_v62 = vld [vmem:[#allocation2 + $0xa18] sm:$0x3]  ;;  %14985 = vst [vmem:[%s20315_s23 + $0x206] sm:$0x1f] %v16081_v34 }
 0x309   : > { %v3500_v18 = vmax.f32 %v3396_v23, 0.0  ;;  %v3502_v29 = vmax.f32 %v3398_v17, 0.0  ;;  %v1072_v32 = vadd.f32 %v968_v22, %v757_v36  ;;  %v1076_v45 = vadd.f32 %v972_v5, %v761_v56  ;;  %v2440_v4 = vld [vmem:[#allocation2 + $0x318] sm:$0x3]  ;;  %4870 = vst [vmem:[%s20315_s23 + $0x60] sm:$0xff] %v4378_v47 }
 0x30a   : > { %v3503_v50 = vmax.f32 %v3399_v37, 0.0  ;;  %v3504_v30 = vmax.f32 %v3400_v49, 0.0  ;;  %v1283_v27 = vmul.f32 %v18227_v21, %v1176_v33  ;;  %v1287_v7 = vmul.f32 %v18227_v21, %v1180_v0  ;;  %v2444_v48 = vld [vmem:[#allocation2 + $0x338] sm:$0x3]  ;;  %14957 = vst [vmem:[%s20315_s23 + $0x12f] sm:$0xfe] %v4378_v47 }
 0x30b   : > { %v3579_v28 = vmax.f32 %v3498_v12, %v3502_v29  ;;  %v1599_v38 = vmul.f32 %v18266_v54, %v1492_v46  ;;  %v1603_v13 = vmul.f32 %v18266_v54, %v1496_v43  ;;  %v1915_v52 = vmul.f32 %v18269_v55, %v1808_v2  ;;  %v2756_v44 = vld [vmem:[#allocation2 + $0x698] sm:$0x3]  ;;  %14984 = vst [vmem:[%s20315_s23 + $0x1fe] sm:$0xfc] %v4378_v47 }
 0x30c   : > { %v3580_v26 = vmax.f32 %v3499_v19, %v3503_v50  ;;  %v20668_v53 = vmax.f32 %v3500_v18, %v3504_v30  ;;  %v1387_v39 = vadd.f32 %v1283_v27, %v1072_v32  ;;  %v1391_v42 = vadd.f32 %v1287_v7, %v1076_v45  ;;  %v2760_v56 = vld [vmem:[#allocation2 + $0x6b8] sm:$0x3] }
 0x30d   : > { %v3722_v51 = vrot.slane %v3579_v28, 1  ;;  %v1919_v3 = vmul.f32 %v18269_v55, %v1812_v60  ;;  %v2231_v41 = vmul.f32 %v18311_v24, %v2124_v61  ;;  %v2235_v40 = vmul.f32 %v18311_v24, %v2128_v62  ;;  %v3072_v59 = vld [vmem:[#allocation2 + $0xa18] sm:$0x3] }
 0x30e   : > { %v3723_v35 = vrot.slane %v3580_v26, 1  ;;  %v3725_v57 = vrot.slane %v20668_v53, 1  ;;  %v1703_v58 = vadd.f32 %v1599_v38, %v1387_v39  ;;  %v1707_v36 = vadd.f32 %v1603_v13, %v1391_v42  ;;  %v658_v23 = vld [vmem:[#allocation2 + $0x318] sm:$0x3] }
 0x30f   : > { %v2547_v9 = vmul.f32 %v18314_v25, %v2440_v4  ;;  %v2551_v11 = vmul.f32 %v18314_v25, %v2444_v48  ;;  %v2863_v31 = vmul.f32 %v18347_v63, %v2756_v44  ;;  %v662_v17 = vld [vmem:[#allocation2 + $0x338] sm:$0x3]  ;;  %v2867_v43 = vmul.f32 %v18347_v63, %v2760_v56 }
 0x310   : > { %v3724_v22 = vsel %vm3637_vm7, %v3722_v51, %v3723_v35  ;;  %v3726_v5 = vsel %vm3637_vm7, %v3723_v35, %v3725_v57  ;;  %v2019_v33 = vadd.f32 %v1915_v52, %v1703_v58  ;;  %v2023_v0 = vadd.f32 %v1919_v3, %v1707_v36  ;;  %v869_v46 = vld [vmem:[#allocation2 + $0x698] sm:$0x3] }
 0x311   : > { %v873_v37 = vld [vmem:[#allocation2 + $0x6b8] sm:$0x3]  ;;  %v3829_v12 = vmax.f32 %v3579_v28, %v3724_v22  ;;  %v3830_v19 = vmax.f32 %v3580_v26, %v3726_v5  ;;  %v3179_v18 = vmul.f32 %v18350_v1, %v3072_v59  ;;  %v765_v60 = vmul.f32 %v18205_v6, %v658_v23 }
 0x312   : > { %v1184_v49 = vld [vmem:[#allocation2 + $0xa18] sm:$0x3]  ;;  %v2335_v32 = vadd.f32 %v2231_v41, %v2019_v33  ;;  %v2339_v45 = vadd.f32 %v2235_v40, %v2023_v0  ;;  %v769_v61 = vmul.f32 %v18205_v6, %v662_v17  ;;  %v976_v7 = vmul.f32 %v18225_v20, %v869_v46 }
 0x313   : > { %v3076_v2 = vld [vmem:[#allocation2 + $0xa38] sm:$0x3]  ;;  %v16954_v27 = vpack.c.bf16 %v3830_v19, %v3829_v12  ;;  %v980_v62 = vmul.f32 %v18225_v20, %v873_v37  ;;  %v1291_v34 = vmul.f32 %v18227_v21, %v1184_v49 }
 0x314   : > { %v1188_v29 = vld [vmem:[#allocation2 + $0xa38] sm:$0x3]  ;;  %v2651_v28 = vadd.f32 %v2547_v9, %v2335_v32  ;;  %v2655_v38 = vadd.f32 %v2551_v11, %v2339_v45  ;;  %v3183_v13 = vmul.f32 %v18350_v1, %v3076_v2  ;;  %v1080_v39 = vadd.f32 %v976_v7, %v765_v60 }
 0x315   : > { %v1500_v50 = vld [vmem:[#allocation2 + $0x338] sm:$0x3]  ;;  %v1295_v52 = vmul.f32 %v18227_v21, %v1188_v29  ;;  %16955 = vmatprep.subr.bf16.mxu0 %v16954_v27  ;;  %v1084_v6 = vadd.f32 %v980_v62, %v769_v61 }
 0x316   : > { %v1504_v30 = vld [vmem:[#allocation2 + $0x358] sm:$0x3]  ;;  %v1607_v42 = vmul.f32 %v18266_v54, %v1500_v50  ;;  %16957 = vmatpush3.bf16.msra.mxu0 %v16954_v27  ;;  %v2967_v48 = vadd.f32 %v2863_v31, %v2651_v28  ;;  %v2971_v20 = vadd.f32 %v2867_v43, %v2655_v38  ;;  %v1395_v3 = vadd.f32 %v1291_v34, %v1080_v39 }
 0x317   : > { %v1816_v47 = vld [vmem:[#allocation2 + $0x6b8] sm:$0x3]  ;;  %v1611_v4 = vmul.f32 %v18266_v54, %v1504_v30  ;;  %v1399_v41 = vadd.f32 %v1295_v52, %v1084_v6 }
 0x318   : > { %v1820_v26 = vld [vmem:[#allocation2 + $0x6d8] sm:$0x3]  ;;  %v1923_v40 = vmul.f32 %v18269_v55, %v1816_v47  ;;  %v3283_v35 = vadd.f32 %v3179_v18, %v2967_v48  ;;  %v3287_v58 = vadd.f32 %v3183_v13, %v2971_v20  ;;  %v1711_v59 = vadd.f32 %v1607_v42, %v1395_v3 }
 0x319   : > { %v2132_v44 = vld [vmem:[#allocation2 + $0xa38] sm:$0x3]  ;;  %v1927_v21 = vmul.f32 %v18269_v55, %v1820_v26  ;;  %v1715_v9 = vadd.f32 %v1611_v4, %v1399_v41 }
 0x31a   : > { %v2136_v51 = vld [vmem:[#allocation2 + $0xa58] sm:$0x3]  ;;  %v2239_v11 = vmul.f32 %v18311_v24, %v2132_v44  ;;  %v3389_v31 = vadd.f32 %v18215_v10, %v3283_v35  ;;  %v3393_v23 = vadd.f32 %v18215_v10, %v3287_v58  ;;  %v2027_v5 = vadd.f32 %v1923_v40, %v1711_v59 }
 0x31b   : > { %v2448_v36 = vld [vmem:[#allocation2 + $0x358] sm:$0x3]  ;;  %v2243_v54 = vmul.f32 %v18311_v24, %v2136_v51  ;;  %v2031_v33 = vadd.f32 %v1927_v21, %v1715_v9 }
 0x31c   : > { %v2452_v56 = vld [vmem:[#allocation2 + $0x378] sm:$0x3]  ;;  %v2555_v55 = vmul.f32 %v18314_v25, %v2448_v36  ;;  %v3493_v37 = vmax.f32 %v3389_v31, 0.0  ;;  %v3497_v49 = vmax.f32 %v3393_v23, 0.0  ;;  %v2343_v19 = vadd.f32 %v2239_v11, %v2027_v5 }
 0x31d   : > { %v2764_v17 = vld [vmem:[#allocation2 + $0x6d8] sm:$0x3]  ;;  %v2559_v0 = vmul.f32 %v18314_v25, %v2452_v56  ;;  %v2347_v43 = vadd.f32 %v2243_v54, %v2031_v33 }
 0x31e   : > { %v2768_v22 = vld [vmem:[#allocation2 + $0x6f8] sm:$0x3]  ;;  %v2871_v24 = vmul.f32 %v18347_v63, %v2764_v17  ;;  %v3576_v18 = vsel %vm3509_vm8, %v3493_v37, -inf  ;;  %v3577_v29 = vsel %vm3509_vm8, %v3497_v49, -inf  ;;  %v2659_v60 = vadd.f32 %v2555_v55, %v2343_v19 }
 0x31f   : > { %v3080_v46 = vld [vmem:[#allocation2 + $0xa58] sm:$0x3]  ;;  %v2875_v2 = vmul.f32 %v18347_v63, %v2768_v22  ;;  %v3578_v45 = vmax.f32 %v3576_v18, %v3577_v29  ;;  %v2663_v61 = vadd.f32 %v2559_v0, %v2347_v43 }
 0x320   : > { %v3084_v12 = vld [vmem:[#allocation2 + $0xa78] sm:$0x3]  ;;  %v3187_v32 = vmul.f32 %v18350_v1, %v3080_v46  ;;  %v2975_v30 = vadd.f32 %v2871_v24, %v2659_v60 }
 0x321   : > { %v3191_v25 = vmul.f32 %v18350_v1, %v3084_v12  ;;  %v3720_v50 = vrot.slane %v3578_v45, 1  ;;  %v2979_v27 = vadd.f32 %v2875_v2, %v2663_v61 }
 0x322   : > { %v3291_v63 = vadd.f32 %v3187_v32, %v2975_v30 }
 0x323   : > { %v3721_v7 = vsel %vm3637_vm7, %v3718_v8, %v3720_v50  ;;  %v3828_v62 = vmax.f32 %v3578_v45, %v3720_v50  ;;  %v3295_v34 = vadd.f32 %v3191_v25, %v2979_v27 }
 0x324   : > { %v3827_v28 = vmax.f32 %v20578_v15, %v3721_v7  ;;  %v3397_v38 = vadd.f32 %v18215_v10, %v3291_v63 }
 0x325   : > { %v3401_v13 = vadd.f32 %v18215_v10, %v3295_v34 }
 0x326   : > { %v16948_v52 = vpack.c.bf16 %v3828_v62, %v3827_v28  ;;  %v3501_v47 = vmax.f32 %v3397_v38, 0.0 }
 0x327   : > { %v3505_v26 = vmax.f32 %v3401_v13, 0.0 }
 0x328   : > { %16950 = vmatprep.subr.msk.bf16.mxu1 %vm18514_vm11, %v16948_v52  ;;  %v3582_v1 = vsel %vm3509_vm8, %v3501_v47, -inf }
 0x329   : > { %16953 = vmatpush3.bf16.msk.msra.mxu1 %vm18514_vm11, %v16948_v52  ;;  %v3583_v15 = vsel %vm3509_vm8, %v3505_v26, -inf }
 0x32a   : > { %v3584_v8 = vmax.f32 %v3582_v1, %v3583_v15 }
 0x32c   : > { %v3727_v10 = vrot.slane %v3584_v8, 1  ;;  %16135 = vmatmul.mubr.msk.f32.vlgmr.msra.gmra.mrb[10].mxu1 %vm3833_vm6, %v23218_v14 }
 0x32e   : > { %v3728_v39 = vsel %vm3637_vm7, %v3725_v57, %v3727_v10  ;;  %v3832_v6 = vmax.f32 %v3584_v8, %v3727_v10 }
 0x32f   : > { %v3831_v42 = vmax.f32 %v20668_v53, %v3728_v39 }
 0x331   : > { %v16958_v4 = vpack.c.bf16 %v3832_v6, %v3831_v42 }
 0x333   : > { %16960 = vmatprep.subr.msk.bf16.mxu0 %vm18514_vm11, %v16958_v4 }
 0x334   : > { %16963 = vmatpush3.bf16.msk.msra.mxu0 %vm18514_vm11, %v16958_v4 }
 0x337   : > { %16146 = vmatmul.mubr.msk.f32.vlgmr.msra.gmra.mrb[12].mxu0 %vm3833_vm6, %v23218_v14 }
 0x351   : > { %v16092_v57 = vpop.f32.mrb[6].mxu1 }
 0x352   : > { %4873 = vst [vmem:[%s20315_s23 + $0x78] sm:$0x7] %v16092_v57  ;;  %14960 = vst [vmem:[%s20315_s23 + $0x147] sm:$0xf] %v16092_v57  ;;  %v4456_v53 = vpop.f32.mrb[7].mxu1 }
 0x353   : > { %14987 = vst [vmem:[%s20315_s23 + $0x216] sm:$0x1f] %v16092_v57  ;;  %4872 = vst [vmem:[%s20315_s23 + $0x70] sm:$0xff] %v4456_v53 }
 0x354   : > { %14959 = vst [vmem:[%s20315_s23 + $0x13f] sm:$0xfe] %v4456_v53  ;;  %14986 = vst [vmem:[%s20315_s23 + $0x20e] sm:$0xfc] %v4456_v53 }
 0x35a   : > { %v16103_v16 = vpop.f32.mrb[8].mxu0 }
 0x35b   : > { %4875 = vst [vmem:[%s20315_s23 + $0x88] sm:$0x7] %v16103_v16  ;;  %14962 = vst [vmem:[%s20315_s23 + $0x157] sm:$0xf] %v16103_v16  ;;  %v4534_v14 = vpop.f32.mrb[9].mxu0 }
 0x35c   : > { %14989 = vst [vmem:[%s20315_s23 + $0x226] sm:$0x1f] %v16103_v16  ;;  %4874 = vst [vmem:[%s20315_s23 + $0x80] sm:$0xff] %v4534_v14 }
 0x35d   : > { %14961 = vst [vmem:[%s20315_s23 + $0x14f] sm:$0xfe] %v4534_v14  ;;  %14988 = vst [vmem:[%s20315_s23 + $0x21e] sm:$0xfc] %v4534_v14 }
 0x3ab   : > { %v16114_v48 = vpop.f32.mrb[8].mxu1 }
 0x3ac   : > { %4877 = vst [vmem:[%s20315_s23 + $0x98] sm:$0x7] %v16114_v48  ;;  %14964 = vst [vmem:[%s20315_s23 + $0x167] sm:$0xf] %v16114_v48  ;;  %v4612_v20 = vpop.f32.mrb[9].mxu1 }
 0x3ad   : > { %14991 = vst [vmem:[%s20315_s23 + $0x236] sm:$0x1f] %v16114_v48  ;;  %4876 = vst [vmem:[%s20315_s23 + $0x90] sm:$0xff] %v4612_v20 }
 0x3ae   : > { %14963 = vst [vmem:[%s20315_s23 + $0x15f] sm:$0xfe] %v4612_v20  ;;  %14990 = vst [vmem:[%s20315_s23 + $0x22e] sm:$0xfc] %v4612_v20 }
 0x3b5   : > { %v16125_v44 = vpop.f32.mrb[10].mxu0 }
 0x3b6   : > { %4879 = vst [vmem:[%s20315_s23 + $0xa8] sm:$0x7] %v16125_v44  ;;  %14966 = vst [vmem:[%s20315_s23 + $0x177] sm:$0xf] %v16125_v44  ;;  %v4690_v51 = vpop.f32.mrb[11].mxu0 }
 0x3b7   : > { %14993 = vst [vmem:[%s20315_s23 + $0x246] sm:$0x1f] %v16125_v44  ;;  %4878 = vst [vmem:[%s20315_s23 + $0xa0] sm:$0xff] %v4690_v51 }
 0x3b8   : > { %14965 = vst [vmem:[%s20315_s23 + $0x16f] sm:$0xfe] %v4690_v51  ;;  %14992 = vst [vmem:[%s20315_s23 + $0x23e] sm:$0xfc] %v4690_v51 }
 0x3ff   : > { %v16136_v3 = vpop.f32.mrb[10].mxu1 }
 0x400   : > { %4881 = vst [vmem:[%s20315_s23 + $0xb8] sm:$0x7] %v16136_v3  ;;  %14968 = vst [vmem:[%s20315_s23 + $0x187] sm:$0xf] %v16136_v3  ;;  %v4768_v41 = vpop.f32.mrb[11].mxu1 }
 0x401   : > { %14995 = vst [vmem:[%s20315_s23 + $0x256] sm:$0x1f] %v16136_v3  ;;  %4880 = vst [vmem:[%s20315_s23 + $0xb0] sm:$0xff] %v4768_v41 }
 0x402   : > { %14967 = vst [vmem:[%s20315_s23 + $0x17f] sm:$0xfe] %v4768_v41  ;;  %14994 = vst [vmem:[%s20315_s23 + $0x24e] sm:$0xfc] %v4768_v41 }
 0x407   :  { %557 = sbr.rel (!%p555_p6) target bundleno = 224 (0xe0), region = 114 }
 0x40a   : > { %v16147_v40 = vpop.f32.mrb[12].mxu0 }
 0x40b   : > { %4883 = vst [vmem:[%s20315_s23 + $0xc8] sm:$0x7] %v16147_v40  ;;  %14970 = vst [vmem:[%s20315_s23 + $0x197] sm:$0xf] %v16147_v40  ;;  %v4846_v21 = vpop.f32.mrb[13].mxu0 }
 0x40c   : > { %14997 = vst [vmem:[%s20315_s23 + $0x266] sm:$0x1f] %v16147_v40  ;;  %4882 = vst [vmem:[%s20315_s23 + $0xc0] sm:$0xff] %v4846_v21 }
 0x40d   : > { %14969 = vst [vmem:[%s20315_s23 + $0x18f] sm:$0xfe] %v4846_v21  ;;  %14996 = vst [vmem:[%s20315_s23 + $0x25e] sm:$0xfc] %v4846_v21 }
 0x40e LB: > { %v20777_v35 = vmov 0.0   ;;  %v20779_v58 = vmov 0.0   ;;  %v20781_v36 = vmov 0.0   ;;  %v20783_v56 = vmov 0.0   ;;  %s20817_s25 = smov 0   ;;  %s17659_s24 = sphi %s20772_s24, %s4947_s24  }
 0x40f   : > { %v20785_v59 = vmov 0.0   ;;  %v20787_v9 = vmov 0.0   ;;  %v20789_v11 = vmov 0.0   ;;  %v20791_v54 = vmov 0.0  }
 0x410   : > { %v20793_v31 = vmov 0.0   ;;  %v20795_v23 = vmov 0.0   ;;  %v20797_v17 = vmov 0.0   ;;  %v20799_v22 = vmov 0.0  }
 0x411   : > { %v20801_v5 = vmov 0.0   ;;  %v20803_v33 = vmov 0.0   ;;  %v20805_v55 = vmov 0.0   ;;  %v20807_v0 = vmov 0.0  }
 0x412   : > { %v20809_v46 = vmov 0.0   ;;  %v20811_v37 = vmov 0.0   ;;  %v20813_v49 = vmov 0.0   ;;  %v20815_v12 = vmov 0.0  }
 0x413 LB: >> { %s20883_s26 = smul.u32 9, %s17743_s25  ;;  %s17743_s25 = sphi %s20817_s25, %s4953_s25   ;;  %v17739_v12 = vphi %v20815_v12, %v23308_v12   ;;  %v17735_v49 = vphi %v20813_v49, %v23307_v49   ;;  %v17731_v37 = vphi %v20811_v37, %v23306_v37   ;;  %v17727_v46 = vphi %v20809_v46, %v23305_v46   ;;  %v17723_v0 = vphi %v20807_v0, %v23304_v0   ;;  %v17719_v55 = vphi %v20805_v55, %v23303_v55   ;;  %v17715_v33 = vphi %v20803_v33, %v23302_v33   ;;  %v17711_v5 = vphi %v20801_v5, %v23301_v5   ;;  %v17707_v22 = vphi %v20799_v22, %v23300_v22   ;;  %v17703_v17 = vphi %v20797_v17, %v23299_v17   ;;  %v17699_v23 = vphi %v20795_v23, %v23298_v23   ;;  %v17695_v31 = vphi %v20793_v31, %v23297_v31   ;;  %v17691_v54 = vphi %v20791_v54, %v23296_v54   ;;  %v17687_v11 = vphi %v20789_v11, %v23295_v11   ;;  %v17683_v9 = vphi %v20787_v9, %v23294_v9   ;;  %v17679_v59 = vphi %v20785_v59, %v23293_v59   ;;  %v17675_v56 = vphi %v20783_v56, %v23292_v56   ;;  %v17671_v36 = vphi %v20781_v36, %v23291_v36   ;;  %v17667_v58 = vphi %v20779_v58, %v23290_v58   ;;  %v17663_v35 = vphi %v20777_v35, %v23289_v35  }
 0x414   : >> { %s14999_s27 = smul.u32 624, %s17743_s25  ;;  %s4953_s25 = sadd.s32 1, %s17743_s25  }
 0x415   : >> { %s4977_s3 = sshra.s32 %s20883_s26, 7  ;;  %s4982_s0 = sand.u32 127, %s20883_s26 }
 0x416   : >> { %s4979_s4 = sadd.s32 %s17659_s24, %s4977_s3  ;;  %s5055_s29 = sadd.s32 1, %s20883_s26 }
 0x417   : >> { %s14998_s28 = sshll.u32 %s4979_s4, 7  ;;  %s5056_s10 = sshra.s32 %s5055_s29, 7 }
 0x418   : >> { %s4983_s30 = sadd.s32 %s14998_s28, %s4982_s0  ;;  %s5058_s12 = sadd.s32 %s17659_s24, %s5056_s10 }
 0x419   : >> { %s4984_s11 = sld [smem:[#allocation9 + %s4983_s30]]  ;;  %s5134_s13 = sadd.s32 2, %s20883_s26 }
 0x41a   : >> { %s20892_s14 = scalar_lea.vmem [#allocation3], %s14999_s27  ;;  %s20896_s15 = sshll.u32 %s5058_s12, 7 }
 0x41b   : >> { %v4988_v19 = vld [vmem:[%s20892_s14] sm:$0xff]  ;;  %v4989_v43 = vld [vmem:[%s20892_s14 + $0x8] sm:$0x7]  ;;  %s20898_s16 = sand.u32 127, %s5055_s29  ;;  %v20901_v24 = vld [vmem:[%s20892_s14 + $0x10] sm:$0xff]  ;;  %s20914_s17 = sshra.s32 %s5134_s13, 7 }
 0x41c   : >> { %v4991_v2 = vld [vmem:[%s20892_s14 + $0x18] sm:$0x7]  ;;  %v20905_v18 = vld [vmem:[%s20892_s14 + $0x20] sm:$0xff]  ;;  %v4993_v29 = vld [vmem:[%s20892_s14 + $0x28] sm:$0x7]  ;;  %s5062_s2 = sadd.s32 %s20896_s15, %s20898_s16  ;;  %s5213_s1 = sadd.s32 3, %s20883_s26 }
 0x41d   : >> { %v20909_v32 = vld [vmem:[%s20892_s14 + $0x30] sm:$0xff]  ;;  %v4995_v45 = vld [vmem:[%s20892_s14 + $0x38] sm:$0x7]  ;;  %v20917_v60 = vld [vmem:[%s20892_s14 + $0x40] sm:$0xff]  ;;  %s20933_s18 = sshra.s32 %s5213_s1, 7  ;;  %s5137_s19 = sadd.s32 %s17659_s24, %s20914_s17 }
 0x41e   : >> { %v4997_v61 = vld [vmem:[%s20892_s14 + $0x48] sm:$0x7]  ;;  %v20921_v25 = vld [vmem:[%s20892_s14 + $0x50] sm:$0xff]  ;;  %v4999_v30 = vld [vmem:[%s20892_s14 + $0x58] sm:$0x7]  ;;  %s20952_s20 = sld [smem:[#allocation9 + %s5062_s2]]  ;;  %s5216_s21 = sadd.s32 %s17659_s24, %s20933_s18 }
 0x41f   : >> { %v5010_v50 = vstv %s4984_s11  ;;  %v20928_v27 = vld [vmem:[%s20892_s14 + $0x60] sm:$0xff]  ;;  %v5001_v7 = vld [vmem:[%s20892_s14 + $0x68] sm:$0x7]  ;;  %v20936_v62 = vld [vmem:[%s20892_s14 + $0x70] sm:$0xff]  ;;  %s5291_s22 = sadd.s32 4, %s20883_s26  ;;  %s20961_s23 = sshll.u32 %s5137_s19, 7 }
 0x420   : >> { %v5003_v63 = vld [vmem:[%s20892_s14 + $0x78] sm:$0x7]  ;;  %v20940_v34 = vld [vmem:[%s20892_s14 + $0x80] sm:$0xff]  ;;  %v5011_v28 = vmul.f32 %v5010_v50, %v4988_v19  ;;  %v5012_v38 = vmul.f32 %v5010_v50, %v4989_v43  ;;  %v5013_v13 = vmul.f32 %v5010_v50, %v20901_v24  ;;  %v5014_v52 = vmul.f32 %v5010_v50, %v4991_v2  ;;  %v5005_v47 = vld [vmem:[%s20892_s14 + $0x88] sm:$0x7]  ;;  %s5292_s27 = sshra.s32 %s5291_s22, 7 }
 0x421   : >> { %23220 = vst [vmem:[#allocation21_spill] sm:$0xff] %v20940_v34  ;;  %v20947_v26 = vld [vmem:[%s20892_s14 + $0x90] sm:$0xff]  ;;  %v5007_v1 = vld [vmem:[%s20892_s14 + $0x98] sm:$0x7]  ;;  %v5015_v15 = vmul.f32 %v5010_v50, %v20905_v18  ;;  %v5016_v8 = vmul.f32 %v5010_v50, %v4993_v29  ;;  %v5017_v10 = vmul.f32 %v5010_v50, %v20909_v32  ;;  %v5018_v39 = vmul.f32 %v5010_v50, %v4995_v45  ;;  %s20967_s3 = sand.u32 127, %s5134_s13  ;;  %s5294_s0 = sadd.s32 %s17659_s24, %s5292_s27  ;;  %v21003_v29 = vld [vmem:[%s20892_s14 + $0xe0] sm:$0xff] }
 0x422   : >> { %23221 = vst [vmem:[#allocation22_spill] sm:$0xff] %v20947_v26  ;;  %v5019_v6 = vmul.f32 %v5010_v50, %v20917_v60  ;;  %v5020_v42 = vmul.f32 %v5010_v50, %v4997_v61  ;;  %v5021_v4 = vmul.f32 %v5010_v50, %v20921_v25  ;;  %v5022_v57 = vmul.f32 %v5010_v50, %v4999_v30  ;;  %v15003_v43 = vld [vmem:[%s20892_s14 + $0xd8] sm:$0x7]  ;;  %s20983_s4 = sshll.u32 %s5216_s21, 7  ;;  %s20987_s28 = sand.u32 127, %s5213_s1  ;;  %v15002_v2 = vld [vmem:[%s20892_s14 + $0xd0] sm:$0xff] }
 0x423   : >> { %v5023_v53 = vmul.f32 %v5010_v50, %v20928_v27  ;;  %v5024_v16 = vmul.f32 %v5010_v50, %v5001_v7  ;;  %v5025_v14 = vmul.f32 %v5010_v50, %v20936_v62  ;;  %v5026_v48 = vmul.f32 %v5010_v50, %v5003_v63  ;;  %23222 = vst [vmem:[#allocation23_spill] sm:$0xff] %v21003_v29  ;;  %v15005_v45 = vld [vmem:[%s20892_s14 + $0xe8] sm:$0x7]  ;;  %s21006_s29 = sshll.u32 %s5294_s0, 7  ;;  %s21008_s30 = sand.u32 127, %s5291_s22  ;;  %v21023_v61 = vld [vmem:[%s20892_s14 + $0xf0] sm:$0xff] }
 0x424   : >> { %v5027_v20 = vmul.f32 %v5010_v50, %v20940_v34  ;;  %v5028_v44 = vmul.f32 %v5010_v50, %v5005_v47  ;;  %v5029_v51 = vmul.f32 %v5010_v50, %v20947_v26  ;;  %v5030_v3 = vmul.f32 %v5010_v50, %v5007_v1  ;;  %23223 = vst [vmem:[#allocation24_spill] sm:$0xff] %v21023_v61  ;;  %v15007_v50 = vld [vmem:[%s20892_s14 + $0xf8] sm:$0x7]  ;;  %v21027_v30 = vld [vmem:[%s20892_s14 + $0x100] sm:$0xff]  ;;  %v15009_v7 = vld [vmem:[%s20892_s14 + $0x108] sm:$0x7]  ;;  %s5141_s10 = sadd.s32 %s20961_s23, %s20967_s3  ;;  %s5220_s11 = sadd.s32 %s20983_s4, %s20987_s28 }
 0x425   : >> { %v20971_v41 = vadd.f32 %v17739_v12, %v5011_v28  ;;  %v20974_v40 = vadd.f32 %v17735_v49, %v5012_v38  ;;  %v20977_v21 = vadd.f32 %v17731_v37, %v5013_v13  ;;  %v20980_v19 = vadd.f32 %v17727_v46, %v5014_v52  ;;  %23224 = vst [vmem:[#allocation25_spill] sm:$0xff] %v21027_v30  ;;  %v21043_v63 = vld [vmem:[%s20892_s14 + $0x110] sm:$0xff]  ;;  %v15011_v28 = vld [vmem:[%s20892_s14 + $0x118] sm:$0x7]  ;;  %v15013_v38 = vld [vmem:[%s20892_s14 + $0x128] sm:$0x7]  ;;  %s5298_s12 = sadd.s32 %s21006_s29, %s21008_s30 }
 0x426   : >> { %v20990_v12 = vadd.f32 %v17723_v0, %v5015_v15  ;;  %v20993_v49 = vadd.f32 %v17719_v55, %v5016_v8  ;;  %v20996_v37 = vadd.f32 %v17715_v33, %v5017_v10  ;;  %v20999_v46 = vadd.f32 %v17711_v5, %v5018_v39  ;;  %23225 = vst [vmem:[#allocation26_spill] sm:$0xff] %v21043_v63  ;;  %v21062_v13 = vld [vmem:[%s20892_s14 + $0x130] sm:$0xff]  ;;  %v15015_v47 = vld [vmem:[%s20892_s14 + $0x138] sm:$0x7]  ;;  %v15017_v1 = vld [vmem:[%s20892_s14 + $0x148] sm:$0x7] }
 0x427   : >> { %v21011_v55 = vadd.f32 %v17707_v22, %v5019_v6  ;;  %v21014_v33 = vadd.f32 %v17703_v17, %v5020_v42  ;;  %v21017_v5 = vadd.f32 %v17699_v23, %v5021_v4  ;;  %v21020_v0 = vadd.f32 %v17695_v31, %v5022_v57  ;;  %23227 = vst [vmem:[#allocation28_spill] sm:$0xff] %v21062_v13  ;;  %v21079_v10 = vld [vmem:[%s20892_s14 + $0x150] sm:$0xff]  ;;  %v15019_v39 = vld [vmem:[%s20892_s14 + $0x158] sm:$0x7]  ;;  %v21083_v6 = vld [vmem:[%s20892_s14 + $0x160] sm:$0xff]  ;;  %s21087_s13 = sld [smem:[#allocation9 + %s5141_s10]] }
 0x428   : >> { %v21030_v17 = vadd.f32 %v17691_v54, %v5023_v53  ;;  %v21033_v23 = vadd.f32 %v17687_v11, %v5024_v16  ;;  %v21036_v31 = vadd.f32 %v17683_v9, %v5025_v14  ;;  %v21039_v22 = vadd.f32 %v17679_v59, %v5026_v48  ;;  %v21058_v59 = vld [vmem:[%s20892_s14 + $0x120] sm:$0xff]  ;;  %23229 = vst [vmem:[#allocation30_spill] sm:$0xff] %v21079_v10  ;;  %v15021_v53 = vld [vmem:[%s20892_s14 + $0x168] sm:$0x7]  ;;  %s21092_s15 = sld [smem:[#allocation9 + %s5220_s11]]  ;;  %s5369_s17 = sadd.s32 5, %s20883_s26 }
 0x429   : >> { %v21049_v54 = vadd.f32 %v17675_v56, %v5027_v20  ;;  %v21052_v11 = vadd.f32 %v17671_v36, %v5028_v44  ;;  %v21055_v9 = vadd.f32 %v17667_v58, %v5029_v51  ;;  %23226 = vst [vmem:[#allocation27_spill] sm:$0xff] %v21058_v59  ;;  %v5089_v52 = vstv %s20952_s20  ;;  %v21074_v36 = vld [vmem:[%s20892_s14 + $0x140] sm:$0xff]  ;;  %23230 = vst [vmem:[#allocation31_spill] sm:$0xff] %v21083_v6  ;;  %s21094_s16 = sld [smem:[#allocation9 + %s5298_s12]]  ;;  %s5447_s2 = sadd.s32 6, %s20883_s26 }
 0x42a   : >> { %v21070_v56 = vadd.f32 %v17663_v35, %v5030_v3  ;;  %23228 = vst [vmem:[#allocation29_spill] sm:$0xff] %v21074_v36  ;;  %v5090_v15 = vmul.f32 %v15002_v2, %v5089_v52  ;;  %v5091_v58 = vmul.f32 %v15003_v43, %v5089_v52  ;;  %v5092_v8 = vmul.f32 %v21003_v29, %v5089_v52  ;;  %s21233_s1 = sshra.s32 %s5369_s17, 7  ;;  %s5525_s18 = sadd.s32 7, %s20883_s26 }
 0x42b   : >> { %v5093_v42 = vmul.f32 %v15005_v45, %v5089_v52  ;;  %v5094_v4 = vmul.f32 %v21023_v61, %v5089_v52  ;;  %v5095_v57 = vmul.f32 %v15007_v50, %v5089_v52  ;;  %v5096_v35 = vmul.f32 %v21027_v30, %v5089_v52  ;;  %s5603_s19 = sadd.s32 8, %s20883_s26  ;;  %s21265_s20 = sshra.s32 %s5447_s2, 7 }
 0x42c   : >> { %v5097_v16 = vmul.f32 %v15009_v7, %v5089_v52  ;;  %v5098_v14 = vmul.f32 %v21043_v63, %v5089_v52  ;;  %v5099_v48 = vmul.f32 %v15011_v28, %v5089_v52  ;;  %v5100_v20 = vmul.f32 %v21058_v59, %v5089_v52  ;;  %s5372_s21 = sadd.s32 %s17659_s24, %s21233_s1  ;;  %s21284_s22 = sshra.s32 %s5525_s18, 7 }
 0x42d   : >> { %v5101_v44 = vmul.f32 %v15013_v38, %v5089_v52  ;;  %v5102_v51 = vmul.f32 %v21062_v13, %v5089_v52  ;;  %v5103_v3 = vmul.f32 %v15015_v47, %v5089_v52  ;;  %v5104_v43 = vmul.f32 %v21074_v36, %v5089_v52  ;;  %s21296_s23 = sshra.s32 %s5603_s19, 7  ;;  %s5450_s27 = sadd.s32 %s17659_s24, %s21265_s20 }
 0x42e   : >> { %v5105_v2 = vmul.f32 %v15017_v1, %v5089_v52  ;;  %v5106_v45 = vmul.f32 %v21079_v10, %v5089_v52  ;;  %v5107_v50 = vmul.f32 %v15019_v39, %v5089_v52  ;;  %v5108_v7 = vmul.f32 %v21083_v6, %v5089_v52  ;;  %v21195_v6 = vld [vmem:[%s20892_s14 + $0x230] sm:$0xff]  ;;  %s21317_s3 = sshll.u32 %s5372_s21, 7  ;;  %s5528_s0 = sadd.s32 %s17659_s24, %s21284_s22 }
 0x42f   : >> { %v5109_v28 = vmul.f32 %v15021_v53, %v5089_v52  ;;  %v21101_v59 = vadd.f32 %v5090_v15, %v20971_v41  ;;  %v21104_v38 = vadd.f32 %v5091_v58, %v20974_v40  ;;  %v21107_v47 = vadd.f32 %v5092_v8, %v20977_v21  ;;  %v15024_v15 = vld [vmem:[%s20892_s14 + $0x1a0] sm:$0xff]  ;;  %v15025_v40 = vld [vmem:[%s20892_s14 + $0x1a8] sm:$0x7]  ;;  %v21124_v58 = vld [vmem:[%s20892_s14 + $0x1b0] sm:$0xff]  ;;  %23239 = vst [vmem:[#allocation40_spill] sm:$0xff] %v21195_v6  ;;  %s21329_s4 = sand.u32 127, %s5369_s17  ;;  %s5606_s28 = sadd.s32 %s17659_s24, %s21296_s23 }
 0x430   : >> { %v21110_v1 = vadd.f32 %v5093_v42, %v20980_v19  ;;  %v21113_v39 = vadd.f32 %v5094_v4, %v20990_v12  ;;  %v21116_v52 = vadd.f32 %v5095_v57, %v20993_v49  ;;  %v21119_v41 = vadd.f32 %v5096_v35, %v20996_v37  ;;  %23231 = vst [vmem:[#allocation32_spill] sm:$0xff] %v21124_v58  ;;  %v15027_v21 = vld [vmem:[%s20892_s14 + $0x1b8] sm:$0x7]  ;;  %v21138_v37 = vld [vmem:[%s20892_s14 + $0x1c0] sm:$0xff]  ;;  %v15029_v42 = vld [vmem:[%s20892_s14 + $0x1c8] sm:$0x7]  ;;  %s5376_s26 = sadd.s32 %s21317_s3, %s21329_s4 }
 0x431   : >> { %v5119_v19 = vadd.f32 %v5097_v16, %v20999_v46  ;;  %v21129_v8 = vadd.f32 %v5098_v14, %v21011_v55  ;;  %v21132_v12 = vadd.f32 %v5099_v48, %v21014_v33  ;;  %v21135_v49 = vadd.f32 %v5100_v20, %v21017_v5  ;;  %23232 = vst [vmem:[#allocation33_spill] sm:$0xff] %v21138_v37  ;;  %v21142_v4 = vld [vmem:[%s20892_s14 + $0x1d0] sm:$0xff]  ;;  %v15031_v57 = vld [vmem:[%s20892_s14 + $0x1d8] sm:$0x7]  ;;  %v21156_v35 = vld [vmem:[%s20892_s14 + $0x1e0] sm:$0xff]  ;;  %s21339_s29 = sshll.u32 %s5450_s27, 7 }
 0x432   : >> { %23233 = vst [vmem:[#allocation34_spill] sm:$0xff] %v21142_v4  ;;  %v5123_v46 = vadd.f32 %v5101_v44, %v21020_v0  ;;  %v21146_v55 = vadd.f32 %v5102_v51, %v21030_v17  ;;  %v21149_v33 = vadd.f32 %v5103_v3, %v21033_v23  ;;  %v21152_v5 = vadd.f32 %v5104_v43, %v21036_v31  ;;  %v15033_v53 = vld [vmem:[%s20892_s14 + $0x1e8] sm:$0x7]  ;;  %v21170_v31 = vld [vmem:[%s20892_s14 + $0x1f0] sm:$0xff]  ;;  %v15035_v14 = vld [vmem:[%s20892_s14 + $0x1f8] sm:$0x7] }
 0x433   : >> { %23234 = vst [vmem:[#allocation35_spill] sm:$0xff] %v21156_v35  ;;  %v5127_v0 = vadd.f32 %v5105_v2, %v21039_v22  ;;  %v21161_v17 = vadd.f32 %v5106_v45, %v21049_v54  ;;  %v21164_v16 = vadd.f32 %v5107_v50, %v21052_v11  ;;  %v21167_v23 = vadd.f32 %v5108_v7, %v21055_v9  ;;  %v21174_v48 = vld [vmem:[%s20892_s14 + $0x200] sm:$0xff]  ;;  %v15037_v22 = vld [vmem:[%s20892_s14 + $0x208] sm:$0x7]  ;;  %v21186_v11 = vld [vmem:[%s20892_s14 + $0x210] sm:$0xff]  ;;  %s21343_s30 = sand.u32 127, %s5447_s2 }
 0x434   : >> { %23235 = vst [vmem:[#allocation36_spill] sm:$0xff] %v21170_v31  ;;  %23236 = vst [vmem:[#allocation37_spill] sm:$0xff] %v21174_v48  ;;  %v5131_v20 = vadd.f32 %v5109_v28, %v21070_v56  ;;  %v5168_v44 = vstv %s21087_s13  ;;  %v21180_v54 = vstv %s21092_s15  ;;  %v21183_v51 = vstv %s21094_s16  ;;  %v15039_v9 = vld [vmem:[%s20892_s14 + $0x218] sm:$0x7]  ;;  %s21357_s10 = sshll.u32 %s5528_s0, 7  ;;  %s21361_s11 = sand.u32 127, %s5525_s18 }
 0x435   : >> { %23237 = vst [vmem:[#allocation38_spill] sm:$0xff] %v21186_v11  ;;  %v21190_v3 = vld [vmem:[%s20892_s14 + $0x220] sm:$0xff]  ;;  %v5169_v43 = vmul.f32 %v15024_v15, %v5168_v44  ;;  %v5170_v2 = vmul.f32 %v15025_v40, %v5168_v44  ;;  %v5171_v45 = vmul.f32 %v21124_v58, %v5168_v44  ;;  %v5172_v50 = vmul.f32 %v15027_v21, %v5168_v44  ;;  %v15041_v7 = vld [vmem:[%s20892_s14 + $0x228] sm:$0x7]  ;;  %v15043_v56 = vld [vmem:[%s20892_s14 + $0x238] sm:$0x7]  ;;  %s5454_s15 = sadd.s32 %s21339_s29, %s21343_s30  ;;  %s5532_s16 = sadd.s32 %s21357_s10, %s21361_s11 }
 0x436   : >> { %23238 = vst [vmem:[#allocation39_spill] sm:$0xff] %v21190_v3  ;;  %v5173_v28 = vmul.f32 %v21138_v37, %v5168_v44  ;;  %v5174_v10 = vmul.f32 %v15029_v42, %v5168_v44  ;;  %v5175_v36 = vmul.f32 %v21142_v4, %v5168_v44  ;;  %v5176_v13 = vmul.f32 %v15031_v57, %v5168_v44  ;;  %s21367_s12 = sshll.u32 %s5606_s28, 7  ;;  %s21371_s13 = sand.u32 127, %s5603_s19 }
 0x437   : >> { %v5177_v63 = vmul.f32 %v21156_v35, %v5168_v44  ;;  %v5178_v30 = vmul.f32 %v15033_v53, %v5168_v44  ;;  %v5179_v15 = vmul.f32 %v21170_v31, %v5168_v44  ;;  %v5180_v40 = vmul.f32 %v15035_v14, %v5168_v44  ;;  %s5610_s17 = sadd.s32 %s21367_s12, %s21371_s13  ;;  %s21418_s2 = sld [smem:[#allocation9 + %s5376_s26]] }
 0x438   : >> { %v5181_v21 = vmul.f32 %v21174_v48, %v5168_v44  ;;  %v5182_v58 = vmul.f32 %v15037_v22, %v5168_v44  ;;  %v5183_v61 = vmul.f32 %v21186_v11, %v5168_v44  ;;  %v5184_v29 = vmul.f32 %v15039_v9, %v5168_v44  ;;  %s21420_s1 = sld [smem:[#allocation9 + %s5454_s15]]  ;;  %p21626_p7 = scmp.ge.s32.totalorder %s4953_s25, 8  }
 0x439   : >> { %v5185_v42 = vmul.f32 %v21190_v3, %v5168_v44  ;;  %v5186_v4 = vmul.f32 %v15041_v7, %v5168_v44  ;;  %v5187_v57 = vmul.f32 %v21195_v6, %v5168_v44  ;;  %v5188_v35 = vmul.f32 %v15043_v56, %v5168_v44  ;;  %s21428_s18 = sld [smem:[#allocation9 + %s5532_s16]]  ;;  %s6160_s25 = smul.u32 (%p21626_p7), 40, %s17659_s24 }
 0x43a   : >> { %v21208_v53 = vadd.f32 %v5169_v43, %v21101_v59  ;;  %v21211_v14 = vadd.f32 %v5170_v2, %v21104_v38  ;;  %v21214_v22 = vadd.f32 %v5171_v45, %v21107_v47  ;;  %v21217_v9 = vadd.f32 %v5172_v50, %v21110_v1  ;;  %s21430_s19 = sld [smem:[#allocation9 + %s5610_s17]] }
 0x43b   : >> { %v21221_v7 = vadd.f32 %v5173_v28, %v21113_v39  ;;  %v21224_v44 = vadd.f32 %v5174_v10, %v21116_v52  ;;  %v21227_v59 = vadd.f32 %v5175_v36, %v21119_v41  ;;  %v21229_v38 = vadd.f32 %v5176_v13, %v5119_v19  ;;  %v15046_v13 = vld [vmem:[%s20892_s14 + $0x18] sm:$0x7]  ;;  %v15048_v39 = vld [vmem:[%s20892_s14 + $0x28] sm:$0x7]  ;;  %s5681_s20 = sld [smem:[#allocation10 + %s17659_s24]] (%p21626_p7)  ;;  %s6161_s21 = scalar_lea.vmem (%p21626_p7), [#allocation4], %s6160_s25 }
 0x43c   : >> { %v21237_v47 = vadd.f32 %v5177_v63, %v21129_v8  ;;  %v21240_v1 = vadd.f32 %v5178_v30, %v21132_v12  ;;  %v21243_v10 = vadd.f32 %v5179_v15, %v21135_v49  ;;  %v21245_v36 = vadd.f32 %v5180_v40, %v5123_v46  ;;  %v15050_v19 = vld [vmem:[%s20892_s14 + $0x38] sm:$0x7]  ;;  %v15052_v8 = vld [vmem:[%s20892_s14 + $0x48] sm:$0x7]  ;;  %s4947_s24 = sadd.s32 (%p21626_p7), 1, %s17659_s24  }
 0x43d   : >> { %v21251_v63 = vadd.f32 %v5181_v21, %v21146_v55  ;;  %v21254_v30 = vadd.f32 %v5182_v58, %v21149_v33  ;;  %v21257_v52 = vadd.f32 %v5183_v61, %v21152_v5  ;;  %v21259_v41 = vadd.f32 %v5184_v29, %v5127_v0  ;;  %v15054_v58 = vld [vmem:[%s20892_s14 + $0x58] sm:$0x7]  ;;  %v15056_v46 = vld [vmem:[%s20892_s14 + $0x68] sm:$0x7]  ;;  %p4944_p8 = scmp.ge.s32.totalorder (%p21626_p7), %s4947_s24, 16  }
 0x43e   : >> { %v21268_v12 = vadd.f32 %v5185_v42, %v21161_v17  ;;  %v21271_v49 = vadd.f32 %v5186_v4, %v21164_v16  ;;  %v21274_v61 = vadd.f32 %v5187_v57, %v21167_v23  ;;  %v21276_v29 = vadd.f32 %v5188_v35, %v5131_v20  ;;  %v15058_v55 = vld [vmem:[%s20892_s14 + $0x78] sm:$0x7]  ;;  %v15060_v33 = vld [vmem:[%s20892_s14 + $0x88] sm:$0x7]  ;;  %v21300_v16 = vld [vmem:[%s20892_s14 + $0xa0] sm:$0xff] }
 0x43f   : >> { %v5247_v4 = vmul.f32 %v21180_v54, %v20901_v24  ;;  %v5248_v5 = vmul.f32 %v15046_v13, %v21180_v54  ;;  %v5249_v0 = vmul.f32 %v21180_v54, %v20905_v18  ;;  %v5250_v35 = vmul.f32 %v15048_v39, %v21180_v54  ;;  %v15062_v17 = vld [vmem:[%s20892_s14 + $0x98] sm:$0x7]  ;;  %23240 = vst [vmem:[#allocation41_spill] sm:$0xff] %v21300_v16  ;;  %v15064_v23 = vld [vmem:[%s20892_s14 + $0xa8] sm:$0x7] }
 0x440   : >> { %v5251_v24 = vmul.f32 %v21180_v54, %v20909_v32  ;;  %v5252_v20 = vmul.f32 %v15050_v19, %v21180_v54  ;;  %v5253_v43 = vmul.f32 %v21180_v54, %v20917_v60  ;;  %v5254_v2 = vmul.f32 %v15052_v8, %v21180_v54 }
 0x441   : >> { %v5255_v45 = vmul.f32 %v21180_v54, %v20921_v25  ;;  %v5256_v50 = vmul.f32 %v15054_v58, %v21180_v54  ;;  %v5257_v56 = vmul.f32 %v21180_v54, %v20928_v27  ;;  %v5258_v28 = vmul.f32 %v15056_v46, %v21180_v54 }
 0x442   : >> { %v5259_v15 = vmul.f32 %v21180_v54, %v20936_v62  ;;  %v5260_v40 = vmul.f32 %v15058_v55, %v21180_v54  ;;  %v5261_v21 = vmul.f32 %v21180_v54, %v20940_v34  ;;  %v5262_v42 = vmul.f32 %v15060_v33, %v21180_v54  ;;  %v15068_v33 = vld [vmem:[%s20892_s14 + $0xe8] sm:$0x7] }
 0x443   : >> { %v5263_v57 = vmul.f32 %v21180_v54, %v20947_v26  ;;  %v5264_v13 = vmul.f32 %v15062_v17, %v21180_v54  ;;  %v5265_v39 = vmul.f32 %v21300_v16, %v21180_v54  ;;  %v5266_v19 = vmul.f32 %v15064_v23, %v21180_v54  ;;  %v15076_v17 = vld [vmem:[%s20892_s14 + $0x128] sm:$0x7]  ;;  %v15078_v23 = vld [vmem:[%s20892_s14 + $0x138] sm:$0x7] }
 0x444   : >> { %v21346_v8 = vadd.f32 %v5247_v4, %v21208_v53  ;;  %v21349_v58 = vadd.f32 %v5248_v5, %v21211_v14  ;;  %v21352_v46 = vadd.f32 %v5249_v0, %v21214_v22  ;;  %v21355_v55 = vadd.f32 %v5250_v35, %v21217_v9 }
 0x445   : >> { %v5273_v54 = vadd.f32 %v5251_v24, %v21221_v7  ;;  %v5274_v53 = vadd.f32 %v5252_v20, %v21224_v44  ;;  %v5275_v14 = vadd.f32 %v5253_v43, %v21227_v59  ;;  %v5276_v22 = vadd.f32 %v5254_v2, %v21229_v38  ;;  %v15070_v38 = vld [vmem:[%s20892_s14 + $0xf8] sm:$0x7]  ;;  %v15084_v24 = vld [vmem:[%s20892_s14 + $0x168] sm:$0x7] }
 0x446   : >> { %v5277_v9 = vadd.f32 %v5255_v45, %v21237_v47  ;;  %v5278_v7 = vadd.f32 %v5256_v50, %v21240_v1  ;;  %v5279_v44 = vadd.f32 %v5257_v56, %v21243_v10  ;;  %v5280_v59 = vadd.f32 %v5258_v28, %v21245_v36  ;;  %v15072_v10 = vld [vmem:[%s20892_s14 + $0x108] sm:$0x7]  ;;  %v15074_v36 = vld [vmem:[%s20892_s14 + $0x118] sm:$0x7] }
 0x447   : >> { %v5281_v4 = vadd.f32 %v5259_v15, %v21251_v63  ;;  %v5282_v5 = vadd.f32 %v5260_v40, %v21254_v30  ;;  %v5283_v47 = vadd.f32 %v5261_v21, %v21257_v52  ;;  %v5284_v1 = vadd.f32 %v5262_v42, %v21259_v41  ;;  %v15080_v52 = vld [vmem:[%s20892_s14 + $0x148] sm:$0x7]  ;;  %v15082_v41 = vld [vmem:[%s20892_s14 + $0x158] sm:$0x7]  ;;  %v23245_v15 = vld [vmem:[#allocation26_spill] sm:$0xff] }
 0x448   : >> { %v5285_v0 = vadd.f32 %v5263_v57, %v21268_v12  ;;  %v5286_v35 = vadd.f32 %v5264_v13, %v21271_v49  ;;  %v5287_v63 = vadd.f32 %v5265_v39, %v21274_v61  ;;  %v5288_v30 = vadd.f32 %v5266_v19, %v21276_v29  ;;  %v23241_v20 = vld [vmem:[#allocation23_spill] sm:$0xff]  ;;  %v23242_v12 = vld [vmem:[#allocation24_spill] sm:$0xff]  ;;  %v15086_v29 = vld [vmem:[%s20892_s14 + $0x178] sm:$0x7] }
 0x449   : >> { %v5325_v43 = vmul.f32 %v23241_v20, %v21183_v51  ;;  %v5326_v2 = vmul.f32 %v15068_v33, %v21183_v51  ;;  %v5327_v45 = vmul.f32 %v23242_v12, %v21183_v51  ;;  %v5328_v49 = vmul.f32 %v15070_v38, %v21183_v51  ;;  %v21409_v61 = vld [vmem:[%s20892_s14 + $0x170] sm:$0xff]  ;;  %v23244_v50 = vld [vmem:[#allocation25_spill] sm:$0xff]  ;;  %v23246_v42 = vld [vmem:[#allocation27_spill] sm:$0xff] }
 0x44a   : >> { %23243 = vst [vmem:[#allocation23_spill] sm:$0xff] %v21409_v61  ;;  %v5329_v56 = vmul.f32 %v23244_v50, %v21183_v51  ;;  %v5330_v28 = vmul.f32 %v15072_v10, %v21183_v51  ;;  %v5331_v40 = vmul.f32 %v23245_v15, %v21183_v51  ;;  %v5332_v21 = vmul.f32 %v15074_v36, %v21183_v51  ;;  %v23247_v39 = vld [vmem:[#allocation28_spill] sm:$0xff]  ;;  %v23248_v38 = vld [vmem:[#allocation29_spill] sm:$0xff]  ;;  %v23249_v20 = vld [vmem:[#allocation30_spill] sm:$0xff] }
 0x44b   : >> { %v5333_v57 = vmul.f32 %v23246_v42, %v21183_v51  ;;  %v5334_v13 = vmul.f32 %v15076_v17, %v21183_v51  ;;  %v5335_v19 = vmul.f32 %v23247_v39, %v21183_v51  ;;  %v5336_v33 = vmul.f32 %v15078_v23, %v21183_v51  ;;  %v23250_v17 = vld [vmem:[#allocation31_spill] sm:$0xff] }
 0x44c   : >> { %v5337_v10 = vmul.f32 %v23248_v38, %v21183_v51  ;;  %v5338_v36 = vmul.f32 %v15080_v52, %v21183_v51  ;;  %v5339_v15 = vmul.f32 %v23249_v20, %v21183_v51  ;;  %v5340_v42 = vmul.f32 %v15082_v41, %v21183_v51 }
 0x44d   : >> { %v5341_v50 = vmul.f32 %v23250_v17, %v21183_v51  ;;  %v5342_v39 = vmul.f32 %v15084_v24, %v21183_v51  ;;  %v5343_v23 = vmul.f32 %v21409_v61, %v21183_v51  ;;  %v5344_v12 = vmul.f32 %v15086_v29, %v21183_v51  ;;  %v15104_v29 = vld [vmem:[%s20892_s14 + $0x228] sm:$0x7] }
 0x44e   : >> { %v5347_v16 = vadd.f32 %v5325_v43, %v21346_v8  ;;  %v5348_v52 = vadd.f32 %v5326_v2, %v21349_v58  ;;  %v5349_v20 = vadd.f32 %v5327_v45, %v21352_v46  ;;  %v5350_v41 = vadd.f32 %v5328_v49, %v21355_v55  ;;  %v15098_v2 = vld [vmem:[%s20892_s14 + $0x1f8] sm:$0x7] }
 0x44f   : >> { %v5351_v38 = vadd.f32 %v5329_v56, %v5273_v54  ;;  %v5352_v17 = vadd.f32 %v5330_v28, %v5274_v53  ;;  %v5353_v26 = vadd.f32 %v5331_v40, %v5275_v14  ;;  %v5354_v24 = vadd.f32 %v5332_v21, %v5276_v22  ;;  %v15090_v54 = vld [vmem:[%s20892_s14 + $0x1b8] sm:$0x7]  ;;  %v15092_v53 = vld [vmem:[%s20892_s14 + $0x1c8] sm:$0x7]  ;;  %v23251_v56 = vld [vmem:[#allocation32_spill] sm:$0xff] }
 0x450   : >> { %v5355_v34 = vadd.f32 %v5333_v57, %v5277_v9  ;;  %v5356_v61 = vadd.f32 %v5334_v13, %v5278_v7  ;;  %v5357_v51 = vadd.f32 %v5335_v19, %v5279_v44  ;;  %v5358_v8 = vadd.f32 %v5336_v33, %v5280_v59  ;;  %v15094_v14 = vld [vmem:[%s20892_s14 + $0x1d8] sm:$0x7]  ;;  %v15096_v59 = vld [vmem:[%s20892_s14 + $0x1e8] sm:$0x7] }
 0x451   : >> { %v5359_v58 = vadd.f32 %v5337_v10, %v5281_v4  ;;  %v5360_v43 = vadd.f32 %v5338_v36, %v5282_v5  ;;  %v5361_v46 = vadd.f32 %v5339_v15, %v5283_v47  ;;  %v5362_v55 = vadd.f32 %v5340_v42, %v5284_v1  ;;  %v15100_v4 = vld [vmem:[%s20892_s14 + $0x208] sm:$0x7]  ;;  %v15102_v49 = vld [vmem:[%s20892_s14 + $0x218] sm:$0x7]  ;;  %v23253_v15 = vld [vmem:[#allocation34_spill] sm:$0xff] }
 0x452   : >> { %v5363_v22 = vadd.f32 %v5341_v50, %v5285_v0  ;;  %v5364_v9 = vadd.f32 %v5342_v39, %v5286_v35  ;;  %v5365_v7 = vadd.f32 %v5343_v23, %v5287_v63  ;;  %v5366_v44 = vadd.f32 %v5344_v12, %v5288_v30  ;;  %v15106_v30 = vld [vmem:[%s20892_s14 + $0x238] sm:$0x7]  ;;  %v21470_v12 = vld [vmem:[%s20892_s14 + $0x240] sm:$0xff]  ;;  %v15108_v28 = vld [vmem:[%s20892_s14 + $0x248] sm:$0x7] }
 0x453   : >> { %v5402_v45 = vstv %s21418_s2  ;;  %v21456_v5 = vstv %s21420_s1  ;;  %v21459_v47 = vstv %s21428_s18  ;;  %v21462_v1 = vstv %s21430_s19  ;;  %23252 = vst [vmem:[#allocation32_spill] sm:$0xff] %v21470_v12  ;;  %v23254_v42 = vld [vmem:[#allocation35_spill] sm:$0xff] }
 0x454   : >> { %v5403_v0 = vmul.f32 %v23251_v56, %v5402_v45  ;;  %v5404_v35 = vmul.f32 %v15090_v54, %v5402_v45  ;;  %v5405_v63 = vmul.f32 %v21138_v37, %v5402_v45  ;;  %v5406_v50 = vmul.f32 %v15092_v53, %v5402_v45 }
 0x455   : >> { %v5407_v40 = vmul.f32 %v23253_v15, %v5402_v45  ;;  %v5408_v21 = vmul.f32 %v15094_v14, %v5402_v45  ;;  %v5409_v57 = vmul.f32 %v23254_v42, %v5402_v45  ;;  %v5410_v13 = vmul.f32 %v15096_v59, %v5402_v45 }
 0x456   : >> { %v5411_v39 = vmul.f32 %v21170_v31, %v5402_v45  ;;  %v5412_v19 = vmul.f32 %v15098_v2, %v5402_v45  ;;  %v5413_v33 = vmul.f32 %v21174_v48, %v5402_v45  ;;  %v5414_v10 = vmul.f32 %v15100_v4, %v5402_v45 }
 0x457   : >> { %v5415_v36 = vmul.f32 %v21186_v11, %v5402_v45  ;;  %v5416_v23 = vmul.f32 %v15102_v49, %v5402_v45  ;;  %v5417_v54 = vmul.f32 %v21190_v3, %v5402_v45  ;;  %v5418_v53 = vmul.f32 %v15104_v29, %v5402_v45 }
 0x458   : >> { %v5419_v56 = vmul.f32 %v21195_v6, %v5402_v45  ;;  %v5420_v15 = vmul.f32 %v15106_v30, %v5402_v45  ;;  %v5421_v14 = vmul.f32 %v21470_v12, %v5402_v45  ;;  %v5422_v59 = vmul.f32 %v15108_v28, %v5402_v45  ;;  %v15111_v12 = vld [vmem:[%s20892_s14 + $0x28] sm:$0x7]  ;;  %v15113_v45 = vld [vmem:[%s20892_s14 + $0x38] sm:$0x7] }
 0x459   : >> { %v5425_v42 = vadd.f32 %v5403_v0, %v5347_v16  ;;  %v5426_v31 = vadd.f32 %v5404_v35, %v5348_v52  ;;  %v5427_v2 = vadd.f32 %v5405_v63, %v5349_v20  ;;  %v5428_v48 = vadd.f32 %v5406_v50, %v5350_v41  ;;  %v15119_v0 = vld [vmem:[%s20892_s14 + $0x68] sm:$0x7]  ;;  %v15128_v50 = vld [vmem:[%s20892_s14 + $0xb0] sm:$0xff] }
 0x45a   : >> { %v5429_v4 = vadd.f32 %v5407_v40, %v5351_v38  ;;  %v5430_v11 = vadd.f32 %v5408_v21, %v5352_v17  ;;  %v5431_v49 = vadd.f32 %v5409_v57, %v5353_v26  ;;  %v5432_v37 = vadd.f32 %v5410_v13, %v5354_v24  ;;  %v15115_v38 = vld [vmem:[%s20892_s14 + $0x48] sm:$0x7]  ;;  %v15117_v26 = vld [vmem:[%s20892_s14 + $0x58] sm:$0x7]  ;;  %v23256_v57 = vld [vmem:[#allocation22_spill] sm:$0xff] }
 0x45b   : >> { %v5433_v3 = vadd.f32 %v5411_v39, %v5355_v34  ;;  %v5434_v29 = vadd.f32 %v5412_v19, %v5356_v61  ;;  %v5435_v6 = vadd.f32 %v5413_v33, %v5357_v51  ;;  %v5436_v30 = vadd.f32 %v5414_v10, %v5358_v8  ;;  %v15121_v51 = vld [vmem:[%s20892_s14 + $0x78] sm:$0x7]  ;;  %v15123_v35 = vld [vmem:[%s20892_s14 + $0x88] sm:$0x7] }
 0x45c   : >> { %v5437_v16 = vadd.f32 %v5415_v36, %v5359_v58  ;;  %v5438_v52 = vadd.f32 %v5416_v23, %v5360_v43  ;;  %v5439_v20 = vadd.f32 %v5417_v54, %v5361_v46  ;;  %v5440_v41 = vadd.f32 %v5418_v53, %v5362_v55  ;;  %v15125_v8 = vld [vmem:[%s20892_s14 + $0x98] sm:$0x7]  ;;  %v15127_v55 = vld [vmem:[%s20892_s14 + $0xa8] sm:$0x7] }
 0x45d   : >> { %v5441_v17 = vadd.f32 %v5419_v56, %v5363_v22  ;;  %v5442_v34 = vadd.f32 %v5420_v15, %v5364_v9  ;;  %v5443_v24 = vadd.f32 %v5421_v14, %v5365_v7  ;;  %v5444_v61 = vadd.f32 %v5422_v59, %v5366_v44  ;;  %v15129_v22 = vld [vmem:[%s20892_s14 + $0xb8] sm:$0x7] }
 0x45e   : >> { %v5481_v63 = vmul.f32 %v21456_v5, %v20905_v18  ;;  %v5482_v58 = vmul.f32 %v15111_v12, %v21456_v5  ;;  %v5483_v43 = vmul.f32 %v21456_v5, %v20909_v32  ;;  %v5484_v46 = vmul.f32 %v15113_v45, %v21456_v5  ;;  %v23255_v40 = vld [vmem:[#allocation21_spill] sm:$0xff] }
 0x45f   : >> { %v5485_v9 = vmul.f32 %v21456_v5, %v20917_v60  ;;  %v5486_v7 = vmul.f32 %v15115_v38, %v21456_v5  ;;  %v5487_v44 = vmul.f32 %v21456_v5, %v20921_v25  ;;  %v5488_v18 = vmul.f32 %v15117_v26, %v21456_v5  ;;  %v23257_v39 = vld [vmem:[#allocation41_spill] sm:$0xff] }
 0x460   : >> { %v5489_v12 = vmul.f32 %v21456_v5, %v20928_v27  ;;  %v5490_v32 = vmul.f32 %v15119_v0, %v21456_v5  ;;  %v5491_v28 = vmul.f32 %v21456_v5, %v20936_v62  ;;  %v5492_v15 = vmul.f32 %v15121_v51, %v21456_v5  ;;  %v15133_v51 = vld [vmem:[%s20892_s14 + $0xf8] sm:$0x7] }
 0x461   : >> { %v5493_v60 = vmul.f32 %v21456_v5, %v23255_v40  ;;  %v5494_v21 = vmul.f32 %v15123_v35, %v21456_v5  ;;  %v5495_v25 = vmul.f32 %v21456_v5, %v23256_v57  ;;  %v5496_v13 = vmul.f32 %v15125_v8, %v21456_v5  ;;  %v15141_v35 = vld [vmem:[%s20892_s14 + $0x138] sm:$0x7] }
 0x462   : >> { %v5497_v27 = vmul.f32 %v23257_v39, %v21456_v5  ;;  %v5498_v19 = vmul.f32 %v15127_v55, %v21456_v5  ;;  %v5499_v62 = vmul.f32 %v15128_v50, %v21456_v5  ;;  %v5500_v33 = vmul.f32 %v15129_v22, %v21456_v5  ;;  %v15135_v5 = vld [vmem:[%s20892_s14 + $0x108] sm:$0x7]  ;;  %v15145_v8 = vld [vmem:[%s20892_s14 + $0x158] sm:$0x7] }
 0x463   : >> { %v5503_v10 = vadd.f32 %v5481_v63, %v5425_v42  ;;  %v5504_v36 = vadd.f32 %v5482_v58, %v5426_v31  ;;  %v5505_v23 = vadd.f32 %v5483_v43, %v5427_v2  ;;  %v5506_v54 = vadd.f32 %v5484_v46, %v5428_v48  ;;  %v23258_v63 = vld [vmem:[#allocation24_spill] sm:$0xff]  ;;  %v15149_v43 = vld [vmem:[%s20892_s14 + $0x178] sm:$0x7]  ;;  %v15150_v46 = vld [vmem:[%s20892_s14 + $0x180] sm:$0xff] }
 0x464   : >> { %v5507_v53 = vadd.f32 %v5485_v9, %v5429_v4  ;;  %v5508_v56 = vadd.f32 %v5486_v7, %v5430_v11  ;;  %v5509_v14 = vadd.f32 %v5487_v44, %v5431_v49  ;;  %v5510_v59 = vadd.f32 %v5488_v18, %v5432_v37  ;;  %v15137_v4 = vld [vmem:[%s20892_s14 + $0x118] sm:$0x7]  ;;  %v15139_v11 = vld [vmem:[%s20892_s14 + $0x128] sm:$0x7]  ;;  %v23262_v9 = vld [vmem:[#allocation28_spill] sm:$0xff] }
 0x465   : >> { %v5511_v45 = vadd.f32 %v5489_v12, %v5433_v3  ;;  %v5512_v38 = vadd.f32 %v5490_v32, %v5434_v29  ;;  %v5513_v26 = vadd.f32 %v5491_v28, %v5435_v6  ;;  %v5514_v0 = vadd.f32 %v5492_v15, %v5436_v30  ;;  %v15143_v6 = vld [vmem:[%s20892_s14 + $0x148] sm:$0x7]  ;;  %v23263_v18 = vld [vmem:[#allocation29_spill] sm:$0xff]  ;;  %v23264_v28 = vld [vmem:[#allocation30_spill] sm:$0xff] }
 0x466   : >> { %v5515_v42 = vadd.f32 %v5493_v60, %v5437_v16  ;;  %v5516_v31 = vadd.f32 %v5494_v21, %v5438_v52  ;;  %v5517_v2 = vadd.f32 %v5495_v25, %v5439_v20  ;;  %v5518_v48 = vadd.f32 %v5496_v13, %v5440_v41  ;;  %v15147_v30 = vld [vmem:[%s20892_s14 + $0x168] sm:$0x7]  ;;  %v23259_v52 = vld [vmem:[#allocation25_spill] sm:$0xff] }
 0x467   : >> { %v5519_v37 = vadd.f32 %v5497_v27, %v5441_v17  ;;  %v5520_v3 = vadd.f32 %v5498_v19, %v5442_v34  ;;  %v5521_v49 = vadd.f32 %v5499_v62, %v5443_v24  ;;  %v5522_v29 = vadd.f32 %v5500_v33, %v5444_v61  ;;  %v15151_v17 = vld [vmem:[%s20892_s14 + $0x188] sm:$0x7]  ;;  %v23260_v34 = vld [vmem:[#allocation26_spill] sm:$0xff] }
 0x468   : >> { %v5559_v58 = vmul.f32 %v23258_v63, %v21459_v47  ;;  %v5560_v16 = vmul.f32 %v15133_v51, %v21459_v47  ;;  %v5561_v20 = vmul.f32 %v23259_v52, %v21459_v47  ;;  %v5562_v41 = vmul.f32 %v15135_v5, %v21459_v47  ;;  %v23261_v55 = vld [vmem:[#allocation27_spill] sm:$0xff] }
 0x469   : >> { %v5563_v24 = vmul.f32 %v23260_v34, %v21459_v47  ;;  %v5564_v61 = vmul.f32 %v15137_v4, %v21459_v47  ;;  %v5565_v50 = vmul.f32 %v23261_v55, %v21459_v47  ;;  %v5566_v22 = vmul.f32 %v15139_v11, %v21459_v47  ;;  %v23265_v60 = vld [vmem:[#allocation31_spill] sm:$0xff]  ;;  %v23270_v34 = vld [vmem:[#allocation36_spill] sm:$0xff]  ;;  %v23271_v55 = vld [vmem:[#allocation37_spill] sm:$0xff] }
 0x46a   : >> { %v5567_v7 = vmul.f32 %v23262_v9, %v21459_v47  ;;  %v5568_v44 = vmul.f32 %v15141_v35, %v21459_v47  ;;  %v5569_v12 = vmul.f32 %v23263_v18, %v21459_v47  ;;  %v5570_v32 = vmul.f32 %v15143_v6, %v21459_v47  ;;  %v23266_v25 = vld [vmem:[#allocation23_spill] sm:$0xff]  ;;  %v23272_v9 = vld [vmem:[#allocation38_spill] sm:$0xff] }
 0x46b   : >> { %v5571_v15 = vmul.f32 %v23264_v28, %v21459_v47  ;;  %v5572_v40 = vmul.f32 %v15145_v8, %v21459_v47  ;;  %v5573_v21 = vmul.f32 %v23265_v60, %v21459_v47  ;;  %v5574_v57 = vmul.f32 %v15147_v30, %v21459_v47  ;;  %v23273_v18 = vld [vmem:[#allocation39_spill] sm:$0xff]  ;;  %v23274_v28 = vld [vmem:[#allocation40_spill] sm:$0xff] }
 0x46c   : >> { %v5575_v13 = vmul.f32 %v23266_v25, %v21459_v47  ;;  %v5576_v39 = vmul.f32 %v15149_v43, %v21459_v47  ;;  %v5577_v27 = vmul.f32 %v15150_v46, %v21459_v47  ;;  %v5578_v19 = vmul.f32 %v15151_v17, %v21459_v47  ;;  %v15155_v43 = vld [vmem:[%s20892_s14 + $0x1c8] sm:$0x7]  ;;  %v15157_v47 = vld [vmem:[%s20892_s14 + $0x1d8] sm:$0x7]  ;;  %v15172_v17 = vld [vmem:[%s20892_s14 + $0x250] sm:$0xff] }
 0x46d   : >> { %v5581_v62 = vadd.f32 %v5559_v58, %v5503_v10  ;;  %v5582_v33 = vadd.f32 %v5560_v16, %v5504_v36  ;;  %v5583_v51 = vadd.f32 %v5561_v20, %v5505_v23  ;;  %v5584_v5 = vadd.f32 %v5562_v41, %v5506_v54  ;;  %v15163_v58 = vld [vmem:[%s20892_s14 + $0x208] sm:$0x7]  ;;  %v23267_v20 = vld [vmem:[#allocation33_spill] sm:$0xff]  ;;  %v23275_v60 = vld [vmem:[#allocation32_spill] sm:$0xff] }
 0x46e   : >> { %v5585_v4 = vadd.f32 %v5563_v24, %v5507_v53  ;;  %v5586_v11 = vadd.f32 %v5564_v61, %v5508_v56  ;;  %v5587_v35 = vadd.f32 %v5565_v50, %v5509_v14  ;;  %v5588_v6 = vadd.f32 %v5566_v22, %v5510_v59  ;;  %v15159_v53 = vld [vmem:[%s20892_s14 + $0x1e8] sm:$0x7]  ;;  %v15161_v56 = vld [vmem:[%s20892_s14 + $0x1f8] sm:$0x7] }
 0x46f   : >> { %v5589_v8 = vadd.f32 %v5567_v7, %v5511_v45  ;;  %v5590_v30 = vadd.f32 %v5568_v44, %v5512_v38  ;;  %v5591_v63 = vadd.f32 %v5569_v12, %v5513_v26  ;;  %v5592_v52 = vadd.f32 %v5570_v32, %v5514_v0  ;;  %v15165_v26 = vld [vmem:[%s20892_s14 + $0x218] sm:$0x7]  ;;  %v15167_v16 = vld [vmem:[%s20892_s14 + $0x228] sm:$0x7] }
 0x470   : >> { %v5593_v10 = vadd.f32 %v5571_v15, %v5515_v42  ;;  %v5594_v36 = vadd.f32 %v5572_v40, %v5516_v31  ;;  %v5595_v23 = vadd.f32 %v5573_v21, %v5517_v2  ;;  %v5596_v54 = vadd.f32 %v5574_v57, %v5518_v48  ;;  %v15169_v0 = vld [vmem:[%s20892_s14 + $0x238] sm:$0x7]  ;;  %v23268_v31 = vld [vmem:[#allocation34_spill] sm:$0xff]  ;;  %v15171_v46 = vld [vmem:[%s20892_s14 + $0x248] sm:$0x7] }
 0x471   : >> { %v5597_v14 = vadd.f32 %v5575_v13, %v5519_v37  ;;  %v5598_v59 = vadd.f32 %v5576_v39, %v5520_v3  ;;  %v5599_v45 = vadd.f32 %v5577_v27, %v5521_v49  ;;  %v5600_v38 = vadd.f32 %v5578_v19, %v5522_v29  ;;  %v15173_v37 = vld [vmem:[%s20892_s14 + $0x258] sm:$0x7]  ;;  %v23269_v3 = vld [vmem:[#allocation35_spill] sm:$0xff] }
 0x472   : >> { %v5637_v41 = vmul.f32 %v23267_v20, %v21462_v1  ;;  %v5638_v42 = vmul.f32 %v15155_v43, %v21462_v1  ;;  %v5639_v2 = vmul.f32 %v23268_v31, %v21462_v1  ;;  %v5640_v48 = vmul.f32 %v15157_v47, %v21462_v1 }
 0x473   : >> { %v5641_v49 = vmul.f32 %v23269_v3, %v21462_v1  ;;  %v5642_v29 = vmul.f32 %v15159_v53, %v21462_v1  ;;  %v5643_v24 = vmul.f32 %v23270_v34, %v21462_v1  ;;  %v5644_v61 = vmul.f32 %v15161_v56, %v21462_v1 }
 0x474   : >> { %v5645_v50 = vmul.f32 %v23271_v55, %v21462_v1  ;;  %v5646_v22 = vmul.f32 %v15163_v58, %v21462_v1  ;;  %v5647_v7 = vmul.f32 %v23272_v9, %v21462_v1  ;;  %v5648_v44 = vmul.f32 %v15165_v26, %v21462_v1 }
 0x475   : >> { %v5649_v12 = vmul.f32 %v23273_v18, %v21462_v1  ;;  %v5650_v32 = vmul.f32 %v15167_v16, %v21462_v1  ;;  %v5651_v15 = vmul.f32 %v23274_v28, %v21462_v1  ;;  %v5652_v40 = vmul.f32 %v15169_v0, %v21462_v1 }
 0x476   : >> { %v5653_v21 = vmul.f32 %v23275_v60, %v21462_v1  ;;  %v5654_v57 = vmul.f32 %v15171_v46, %v21462_v1  ;;  %v5655_v25 = vmul.f32 %v15172_v17, %v21462_v1  ;;  %v5656_v13 = vmul.f32 %v15173_v37, %v21462_v1 }
 0x477   : >> { %v5659_v39 = vadd.f32 %v5637_v41, %v5581_v62   ;;  %v5660_v27 = vadd.f32 %v5638_v42, %v5582_v33   ;;  %v5661_v19 = vadd.f32 %v5639_v2, %v5583_v51   ;;  %v5662_v43 = vadd.f32 %v5640_v48, %v5584_v5  }
 0x478   : >> { %v5663_v47 = vadd.f32 %v5641_v49, %v5585_v4   ;;  %v5664_v53 = vadd.f32 %v5642_v29, %v5586_v11   ;;  %v5665_v26 = vadd.f32 %v5643_v24, %v5587_v35   ;;  %v5666_v16 = vadd.f32 %v5644_v61, %v5588_v6  }
 0x479   : >> { %v21601_v56 = vadd.f32 %v5645_v50, %v5589_v8   ;;  %v21603_v17 = vadd.f32 %v5646_v22, %v5590_v30   ;;  %v21605_v58 = vadd.f32 %v5647_v7, %v5591_v63   ;;  %v21607_v31 = vadd.f32 %v5648_v44, %v5592_v52  }
 0x47a   : >> { %v21609_v0 = vadd.f32 %v5649_v12, %v5593_v10   ;;  %v21611_v11 = vadd.f32 %v5650_v32, %v5594_v36   ;;  %v21613_v9 = vadd.f32 %v5651_v15, %v5595_v23   ;;  %v21615_v33 = vadd.f32 %v5652_v40, %v5596_v54  }
 0x47b   : >> { %v23276_v20 = vmov %v21601_v56  ;;  %v23277_v3 = vmov %v21603_v17  ;;  %v23278_v34 = vmov %v21605_v58  ;;  %v23279_v18 = vmov %v21607_v31 }
 0x47c   : >> { %v23280_v28 = vmov %v21609_v0  ;;  %v23281_v1 = vmov %v21611_v11  ;;  %v23282_v62 = vmov %v21613_v9  ;;  %v23283_v51 = vmov %v21615_v33 }
 0x47d   : >> { %v21617_v56 = vadd.f32 %v5653_v21, %v5597_v14   ;;  %v21619_v36 = vadd.f32 %v5654_v57, %v5598_v59   ;;  %v21621_v58 = vadd.f32 %v5655_v25, %v5599_v45   ;;  %v21623_v35 = vadd.f32 %v5656_v13, %v5600_v38   ;;  %4952 = sbr.rel (!%p21626_p7) target bundleno = 1043 (0x413), region = 125 }
 0x47e   : >> { %v23293_v59 = vmov %v23283_v51  ;;  %v23294_v9 = vmov %v23282_v62  ;;  %v23295_v11 = vmov %v23281_v1  ;;  %v23296_v54 = vmov %v23280_v28 }
 0x47f   : >> { %v23284_v4 = vmov %v21617_v56  ;;  %v23285_v6 = vmov %v21619_v36  ;;  %v23286_v8 = vmov %v21621_v58  ;;  %v23287_v30 = vmov %v21623_v35 }
 0x480   : >> { %v23289_v35 = vmov %v23287_v30  ;;  %v23290_v58 = vmov %v23286_v8  ;;  %v23291_v36 = vmov %v23285_v6  ;;  %v23292_v56 = vmov %v23284_v4 }
 0x481   : >> { %v23297_v31 = vmov %v23279_v18  ;;  %v23298_v23 = vmov %v23278_v34  ;;  %v23299_v17 = vmov %v23277_v3  ;;  %v23300_v22 = vmov %v23276_v20 }
 0x482   : >> { %v23301_v5 = vmov %v5666_v16  ;;  %v23302_v33 = vmov %v5665_v26  ;;  %v23303_v55 = vmov %v5664_v53  ;;  %v23304_v0 = vmov %v5663_v47 }
 0x483   : >> { %v23305_v46 = vmov %v5662_v43  ;;  %v23306_v37 = vmov %v5661_v19  ;;  %v23307_v49 = vmov %v5660_v27  ;;  %v23308_v12 = vmov %v5659_v39 }
 0x484   : > { %v17753_v63 = vmov 0.0|0.0   ;;  %vm17754_vm12 = vmmov 0   ;;  %v17755_v52 = vmov 0.0   ;;  %v21693_v10 = vstv %s5681_s20 }
 0x485   : > { %16964 = vmatprep.subr.bf16.mxu0 %v17753_v63  ;;  %16968 = vmatprep.subr.bf16.mxu1 %v17753_v63  ;;  %vm5724_vm13 = vcmask 1042432   ;;  %v5683_v14 = vadd.f32 %v21693_v10, %v5659_v39  ;;  %v5684_v5 = vadd.f32 %v21693_v10, %v5660_v27  ;;  %v5685_v11 = vadd.f32 %v21693_v10, %v5661_v19 }
 0x486   : > { %16152 = vmatprep.mubr.msk.f32.mxu0 %vm17754_vm12, %v17755_v52  ;;  %16159 = vmatprep.mubr.msk.f32.mxu1 %vm17754_vm12, %v17755_v52  ;;  %v5686_v35 = vadd.f32 %v21693_v10, %v5662_v43  ;;  %v5687_v36 = vadd.f32 %v21693_v10, %v5663_v47  ;;  %v5688_v23 = vadd.f32 %v21693_v10, %v5664_v53  ;;  %vm5790_vm14 = vcmask 80896  }
 0x487   : > { %v5689_v54 = vadd.f32 %v21693_v10, %v5665_v26  ;;  %v5690_v59 = vadd.f32 %v21693_v10, %v5666_v16  ;;  %v5703_v45 = vmax.f32 %v5683_v14, 0.0  ;;  %v5704_v38 = vmax.f32 %v5684_v5, 0.0  ;;  %v6408_v16 = vld [vmem:[%s23097_s5 + $0x508] sm:$0xff] (%p4944_p8) }
 0x488   : > { %v5705_v41 = vmax.f32 %v5685_v11, 0.0  ;;  %v5706_v42 = vmax.f32 %v5686_v35, 0.0  ;;  %v5707_v31 = vmax.f32 %v5687_v36, 0.0  ;;  %v5708_v2 = vmax.f32 %v5688_v23, 0.0 }
 0x489   : > { %v5709_v48 = vmax.f32 %v5689_v54, 0.0  ;;  %v5710_v46 = vmax.f32 %v5690_v59, 0.0  ;;  %v5725_v37 = vsel %vm5724_vm13, %v5704_v38, -inf  ;;  %v5691_v29 = vadd.f32 %v21693_v10, %v23276_v20 }
 0x48a   : > { %v5723_v17 = vmax.f32 %v5703_v45, %v5705_v41  ;;  %v5726_v49 = vsel %vm5724_vm13, %v5706_v42, -inf  ;;  %v5729_v55 = vsel %vm5724_vm13, %v5708_v2, -inf  ;;  %v5692_v7 = vadd.f32 %v21693_v10, %v23277_v3  ;;  %v23311_v41 = vld [vmem:[#allocation16_spill] sm:$0xff] }
 0x48b   : > { %v5727_v24 = vmax.f32 %v5725_v37, %v5726_v49  ;;  %v5728_v61 = vmax.f32 %v5707_v31, %v5709_v48  ;;  %v5730_v50 = vsel %vm5724_vm13, %v5710_v46, -inf  ;;  %v5693_v44 = vadd.f32 %v21693_v10, %v23278_v34 }
 0x48c   : > { %v5755_v22 = vrot.slane %v5723_v17, 1  ;;  %v5731_v9 = vmax.f32 %v5729_v55, %v5730_v50  ;;  %v5694_v15 = vadd.f32 %v21693_v10, %v23279_v18  ;;  %v5711_v40 = vmax.f32 %v5691_v29, 0.0 }
 0x48d   : > { %v5756_v12 = vrot.slane %v5727_v24, 1  ;;  %v5758_v32 = vrot.slane %v5728_v61, 1  ;;  %v5712_v21 = vmax.f32 %v5692_v7, 0.0  ;;  %v5713_v57 = vmax.f32 %v5693_v44, 0.0 }
 0x48e   : > { %v5759_v60 = vrot.slane %v5731_v9, 1  ;;  %v5695_v25 = vadd.f32 %v21693_v10, %v23280_v28  ;;  %v5714_v27 = vmax.f32 %v5694_v15, 0.0  ;;  %v5696_v19 = vadd.f32 %v21693_v10, %v23281_v1 }
 0x48f   : > { %v5757_v13 = vsel %vm3637_vm7, %v5755_v22, %v5756_v12  ;;  %v5781_v39 = vmax.f32 %v5727_v24, %v5756_v12  ;;  %v5732_v26 = vmax.f32 %v5711_v40, %v5713_v57  ;;  %vm17756_vm15 = vmmov 1  }
 0x490   : > { %v5780_v43 = vmax.f32 %v5723_v17, %v5757_v13  ;;  %v5760_v47 = vsel %vm3637_vm7, %v5758_v32, %v5759_v60  ;;  %v5783_v53 = vmax.f32 %v5731_v9, %v5759_v60  ;;  %vm21722_vm0 = vmpackc.low %vm3509_vm8, %vm17756_vm15  ;;  %v5733_v20 = vsel %vm5724_vm13, %v5712_v21, -inf }
 0x491   : > { %v5782_v56 = vmax.f32 %v5728_v61, %v5760_v47  ;;  %v5734_v3 = vsel %vm5724_vm13, %v5714_v27, -inf  ;;  %v5697_v58 = vadd.f32 %v21693_v10, %v23282_v62  ;;  %v5761_v0 = vrot.slane %v5732_v26, 1  ;;  %v6407_v47 = vld [vmem:[%s23097_s5 + $0x500] sm:$0xff] (%p4944_p8) }
 0x492   : > { %v16965_v34 = vpack.c.bf16 %v5781_v39, %v5780_v43  ;;  %v5735_v18 = vmax.f32 %v5733_v20, %v5734_v3  ;;  %v5698_v28 = vadd.f32 %v21693_v10, %v23283_v51  ;;  %v5715_v33 = vmax.f32 %v5695_v25, 0.0  ;;  %v6247_v43 = vld [vmem:[%s23097_s5] sm:$0xff] (%p4944_p8)  ;;  %v6249_v20 = vld [vmem:[%s23097_s5 + $0x10] sm:$0xff] (%p4944_p8) }
 0x493   : > { %v16969_v1 = vpack.c.bf16 %v5783_v53, %v5782_v56  ;;  %v5716_v14 = vmax.f32 %v5696_v19, 0.0  ;;  %v5717_v5 = vmax.f32 %v5697_v58, 0.0  ;;  %v5699_v36 = vadd.f32 %v21693_v10, %v23284_v4  ;;  %v6248_v53 = vld [vmem:[%s23097_s5 + $0x8] sm:$0xff] (%p4944_p8)  ;;  %v6409_v3 = vld [vmem:[%s23097_s5 + $0x510] sm:$0xff] (%p4944_p8)  ;;  %v6250_v58 = vld [vmem:[%s23097_s5 + $0x18] sm:$0xff] (%p4944_p8) }
 0x494   : > { %16967 = vmatpush3.bf16.msk.msra.mxu0 %vm21722_vm0, %v16965_v34  ;;  %v5762_v11 = vrot.slane %v5735_v18, 1  ;;  %v5718_v35 = vmax.f32 %v5698_v28, 0.0  ;;  %v5700_v62 = vadd.f32 %v21693_v10, %v23285_v6  ;;  %v5701_v54 = vadd.f32 %v21693_v10, %v23286_v8  ;;  %v6411_v28 = vld [vmem:[%s23097_s5 + $0x520] sm:$0xff] (%p4944_p8) }
 0x495   : > { %16972 = vmatprep.subr.bf16.mxu0 %v17753_v63  ;;  %16971 = vmatpush3.bf16.msk.msra.mxu1 %vm21722_vm0, %v16969_v1  ;;  %v5736_v51 = vmax.f32 %v5715_v33, %v5717_v5  ;;  %v5737_v23 = vsel %vm5724_vm13, %v5716_v14, -inf  ;;  %v5702_v59 = vadd.f32 %v21693_v10, %v23287_v30  ;;  %v5719_v38 = vmax.f32 %v5699_v36, 0.0  ;;  %v6252_v33 = vld [vmem:[%s23097_s5 + $0x28] sm:$0xff] (%p4944_p8)  ;;  %v6253_v5 = vld [vmem:[%s23097_s5 + $0x30] sm:$0xff] (%p4944_p8)  ;;  %v6254_v36 = vld [vmem:[%s23097_s5 + $0x38] sm:$0xff] (%p4944_p8) }
 0x496   : > { %v5763_v45 = vsel %vm3637_vm7, %v5761_v0, %v5762_v11  ;;  %v5785_v4 = vmax.f32 %v5735_v18, %v5762_v11  ;;  %16976 = vmatprep.subr.bf16.mxu1 %v17753_v63  ;;  %v5738_v6 = vsel %vm5724_vm13, %v5718_v35, -inf  ;;  %v5720_v48 = vmax.f32 %v5700_v62, 0.0  ;;  %v6410_v18 = vld [vmem:[%s23097_s5 + $0x518] sm:$0xff] (%p4944_p8)  ;;  %v6251_v0 = vld [vmem:[%s23097_s5 + $0x20] sm:$0xff] (%p4944_p8)  ;;  %v6412_v14 = vld [vmem:[%s23097_s5 + $0x528] sm:$0xff] (%p4944_p8) }
 0x497   : > { %16153 = vmatmul.mubr.msk.f32.vlgmr.msra.gmra.mrb[0].mxu0 %vm5790_vm14, %v23311_v41  ;;  %v5784_v42 = vmax.f32 %v5732_v26, %v5763_v45  ;;  %v5739_v31 = vmax.f32 %v5737_v23, %v5738_v6  ;;  %v5764_v2 = vrot.slane %v5736_v51, 1  ;;  %v5721_v8 = vmax.f32 %v5701_v54, 0.0  ;;  %v6413_v11 = vld [vmem:[%s23097_s5 + $0x530] sm:$0xff] (%p4944_p8)  ;;  %v6255_v23 = vld [vmem:[%s23097_s5 + $0x40] sm:$0xff] (%p4944_p8)  ;;  %v6416_v45 = vld [vmem:[%s23097_s5 + $0x548] sm:$0xff] (%p4944_p8) }
 0x498   : > { %16166 = vmatprep.mubr.msk.f32.mxu0 %vm17754_vm12, %v17755_v52  ;;  %16160 = vmatmul.mubr.msk.f32.vlgmr.msra.gmra.mrb[0].mxu1 %vm5790_vm14, %v23311_v41  ;;  %v5722_v30 = vmax.f32 %v5702_v59, 0.0  ;;  %v5741_v17 = vsel %vm5724_vm13, %v5720_v48, -inf  ;;  %vm6567_vm1 = vcmask (%p4944_p8), 64512   ;;  %v6415_v54 = vld [vmem:[%s23097_s5 + $0x540] sm:$0xff] (%p4944_p8)  ;;  %v6256_v59 = vld [vmem:[%s23097_s5 + $0x48] sm:$0xff] (%p4944_p8)  ;;  %v6417_v6 = vld [vmem:[%s23097_s5 + $0x550] sm:$0xff] (%p4944_p8) }
 0x499   : > { %v16973_v10 = vpack.c.bf16 %v5785_v4, %v5784_v42  ;;  %v5765_v46 = vrot.slane %v5739_v31, 1  ;;  %16173 = vmatprep.mubr.msk.f32.mxu1 %vm17754_vm12, %v17755_v52  ;;  %v5740_v37 = vmax.f32 %v5719_v38, %v5721_v8  ;;  %v6257_v4 = vld [vmem:[%s23097_s5 + $0x50] sm:$0xff] (%p4944_p8)  ;;  %v6419_v48 = vld [vmem:[%s23097_s5 + $0x560] sm:$0xff] (%p4944_p8)  ;;  %v6260_v8 = vld [vmem:[%s23097_s5 + $0x68] sm:$0xff] (%p4944_p8)  ;;  %vm14690_vm2 = vcmask (%p4944_p8), 261120  }
 0x49a   : > { %v5742_v49 = vsel %vm5724_vm13, %v5722_v30, -inf  ;;  %v6420_v30 = vld [vmem:[%s23097_s5 + $0x568] sm:$0xff] (%p4944_p8) }
 0x49b   : > { %16975 = vmatpush3.bf16.msk.msra.mxu0 %vm21722_vm0, %v16973_v10  ;;  %v5766_v29 = vsel %vm3637_vm7, %v5764_v2, %v5765_v46  ;;  %v5787_v24 = vmax.f32 %v5739_v31, %v5765_v46  ;;  %v5743_v61 = vmax.f32 %v5741_v17, %v5742_v49  ;;  %v5767_v50 = vrot.slane %v5740_v37, 1  ;;  %v6418_v31 = vld [vmem:[%s23097_s5 + $0x558] sm:$0xff] (%p4944_p8)  ;;  %v6259_v2 = vld [vmem:[%s23097_s5 + $0x60] sm:$0xff] (%p4944_p8)  ;;  %v6261_v10 = vld [vmem:[%s23097_s5 + $0x70] sm:$0xff] (%p4944_p8) }
 0x49c   : > { %16980 = vmatprep.subr.bf16.mxu0 %v17753_v63  ;;  %v5786_v55 = vmax.f32 %v5736_v51, %v5766_v29  ;;  %v6414_v51 = vld [vmem:[%s23097_s5 + $0x538] sm:$0xff] (%p4944_p8)  ;;  %v6421_v46 = vld [vmem:[%s23097_s5 + $0x570] sm:$0xff] (%p4944_p8) }
 0x49d   : > { %v5768_v22 = vrot.slane %v5743_v61, 1  ;;  %v6422_v29 = vld [vmem:[%s23097_s5 + $0x578] sm:$0xff] (%p4944_p8) }
 0x49e   : > { %16167 = vmatmul.mubr.msk.f32.vlgmr.msra.gmra.mrb[2].mxu0 %vm5790_vm14, %v23311_v41  ;;  %v16977_v9 = vpack.c.bf16 %v5787_v24, %v5786_v55  ;;  %v6263_v24 = vld [vmem:[%s23097_s5 + $0x80] sm:$0xff] (%p4944_p8)  ;;  %v6264_v55 = vld [vmem:[%s23097_s5 + $0x88] sm:$0xff] (%p4944_p8) }
 0x49f   : > { %v5769_v7 = vsel %vm3637_vm7, %v5767_v50, %v5768_v22  ;;  %v5789_v44 = vmax.f32 %v5743_v61, %v5768_v22  ;;  %16180 = vmatprep.mubr.msk.f32.mxu0 %vm17754_vm12, %v17755_v52  ;;  %v6423_v61 = vld [vmem:[%s23097_s5 + $0x580] sm:$0xff] (%p4944_p8)  ;;  %v6424_v50 = vld [vmem:[%s23097_s5 + $0x588] sm:$0xff] (%p4944_p8)  ;;  %v6265_v22 = vld [vmem:[%s23097_s5 + $0x90] sm:$0xff] (%p4944_p8) }
 0x4a0   : > { %16979 = vmatpush3.bf16.msk.msra.mxu1 %vm21722_vm0, %v16977_v9  ;;  %v5788_v12 = vmax.f32 %v5740_v37, %v5769_v7  ;;  %v6262_v37 = vld [vmem:[%s23097_s5 + $0x78] sm:$0xff] (%p4944_p8)  ;;  %v6425_v9 = vld [vmem:[%s23097_s5 + $0x590] sm:$0xff] (%p4944_p8) }
 0x4a2   : > { %v16981_v32 = vpack.c.bf16 %v5789_v44, %v5788_v12  ;;  %v6266_v44 = vld [vmem:[%s23097_s5 + $0x98] sm:$0xff] (%p4944_p8) }
 0x4a3   : > { %16174 = vmatmul.mubr.msk.f32.vlgmr.msra.gmra.mrb[2].mxu1 %vm5790_vm14, %v23311_v41 }
 0x4a4   : > { %16983 = vmatpush3.bf16.msk.msra.mxu0 %vm21722_vm0, %v16981_v32  ;;  %16185 = vmatprep.mubr.msk.f32.mxu1 (%p4944_p8), %vm6567_vm1, %v6247_v43  ;;  %v6426_v32 = vld [vmem:[%s23097_s5 + $0x598] sm:$0xff] (%p4944_p8)  ;;  %v6272_v43 = vld [vmem:[%s23097_s5 + $0xc8] sm:$0xff] (%p4944_p8) }
 0x4a7   : > { %16181 = vmatmul.mubr.msk.f32.vlgmr.msra.gmra.mrb[4].mxu0 %vm5790_vm14, %v23311_v41  ;;  %v6258_v41 = vld [vmem:[%s23097_s5 + $0x58] sm:$0xff] (%p4944_p8) }
 0x4a8   :  { %16505 = vmatprep.mubr.msk.f32.mxu0 (%p4944_p8), %vm6567_vm1, %v6407_v47  ;;  %v6432_v47 = vld [vmem:[%s23097_s5 + $0x5c8] sm:$0xff] (%p4944_p8) }
 0x56a   : > { %v5864_v63 = vpop.f32.mrb[0].mxu0 }
 0x56b   : > { %6162 = vst [vmem:[%s6161_s21] sm:$0xff] %v5864_v63  ;;  %v16154_v15 = vpop.f32.mrb[1].mxu0  ;;  %v5937_v52 = vpop.f32.mrb[0].mxu1  ;;  %v6267_v63 = vld [vmem:[%s23097_s5 + $0xa0] sm:$0xff] (%p4944_p8) }
 0x56c   : > { %6163 = vst [vmem:[%s6161_s21 + $0x8] sm:$0xff] %v5937_v52  ;;  %v16161_v40 = vpop.f32.mrb[1].mxu1  ;;  %v6427_v15 = vld [vmem:[%s23097_s5 + $0x5a0] sm:$0xff] (%p4944_p8)  ;;  %v6268_v52 = vld [vmem:[%s23097_s5 + $0xa8] sm:$0xff] (%p4944_p8) }
 0x56d   :  { %v6428_v40 = vld [vmem:[%s23097_s5 + $0x5a8] sm:$0xff] (%p4944_p8) }
 0x571   : > { %v6010_v60 = vpop.f32.mrb[2].mxu0 }
 0x572   : > { %6164 = vst [vmem:[%s6161_s21 + $0x10] sm:$0xff] %v6010_v60  ;;  %v16168_v21 = vpop.f32.mrb[3].mxu0  ;;  %v6269_v60 = vld [vmem:[%s23097_s5 + $0xb0] sm:$0xff] (%p4944_p8) }
 0x573   :  { %v6429_v21 = vld [vmem:[%s23097_s5 + $0x5b0] sm:$0xff] (%p4944_p8) }
 0x575   :  { %4946 = sbr.rel (!%p4944_p8) target bundleno = 1038 (0x40e), region = 136 }
 0x576   : > { %v6083_v57 = vpop.f32.mrb[2].mxu1 }
 0x577   : > { %6165 = vst [vmem:[%s6161_s21 + $0x18] sm:$0xff] %v6083_v57  ;;  %v16175_v25 = vpop.f32.mrb[3].mxu1 }
 0x578   :  { %v6270_v25 = vld [vmem:[%s23097_s5 + $0xb8] sm:$0xff] (%p4944_p8) }
 0x57a   : > { %v6156_v13 = vpop.f32.mrb[4].mxu0 }
 0x57b   : > { %6166 = vst [vmem:[%s6161_s21 + $0x20] sm:$0xff] %v6156_v13  ;;  %v16182_v39 = vpop.f32.mrb[5].mxu0 }
 0x57c   :  { %v6430_v39 = vld [vmem:[%s23097_s5 + $0x5b8] sm:$0xff] }
 0x582   :  { %v6167_v27 = vld [vmem:[#allocation4] sm:$0xff]  ;;  %v6168_v26 = vld [vmem:[#allocation4 + $0x8] sm:$0xff]  ;;  %v6169_v34 = vld [vmem:[#allocation4 + $0x10] sm:$0xff] }
 0x583   :  { %v6207_v19 = vld [vmem:[#allocation4 + $0x140] sm:$0xff]  ;;  %16183 = vmatprep.subr.mxu1 %v6167_v27  ;;  %v6208_v56 = vld [vmem:[#allocation4 + $0x148] sm:$0xff]  ;;  %v6209_v1 = vld [vmem:[#allocation4 + $0x150] sm:$0xff] }
 0x584   :  { %16503 = vmatprep.subr.mxu0 %v6207_v19  ;;  %16184 = vmatpush3.msra.mxu1 %v6167_v27  ;;  %v6170_v35 = vld [vmem:[#allocation4 + $0x18] sm:$0xff]  ;;  %v6171_v38 = vld [vmem:[#allocation4 + $0x20] sm:$0xff]  ;;  %v6172_v17 = vld [vmem:[#allocation4 + $0x28] sm:$0xff] }
 0x585   :  { %16504 = vmatpush3.msra.mxu0 %v6207_v19  ;;  %16186 = vmatmul.mubr.msk.f32.vlgmr.msra.gmra.mrb[0].mxu1 %vm6567_vm1, %v6248_v53  ;;  %v6210_v62 = vld [vmem:[#allocation4 + $0x158] sm:$0xff]  ;;  %v6211_v42 = vld [vmem:[#allocation4 + $0x160] sm:$0xff]  ;;  %v6212_v49 = vld [vmem:[#allocation4 + $0x168] sm:$0xff] }
 0x586   :  { %16191 = vmatprep.subr.mxu1 %v6168_v26  ;;  %16506 = vmatmul.mubr.msk.f32.vlgmr.msra.gmra.mrb[0].mxu0 %vm6567_vm1, %v6408_v16  ;;  %v6173_v7 = vld [vmem:[#allocation4 + $0x30] sm:$0xff]  ;;  %v6174_v57 = vld [vmem:[#allocation4 + $0x38] sm:$0xff]  ;;  %v6271_v27 = vld [vmem:[%s23097_s5 + $0xc0] sm:$0xff] }
 0x587   :  { %16511 = vmatprep.subr.mxu0 %v6208_v56  ;;  %16192 = vmatpush3.msra.mxu1 %v6168_v26  ;;  %v6213_v12 = vld [vmem:[#allocation4 + $0x170] sm:$0xff]  ;;  %v6214_v13 = vld [vmem:[#allocation4 + $0x178] sm:$0xff]  ;;  %v6431_v19 = vld [vmem:[%s23097_s5 + $0x5c0] sm:$0xff] }
 0x588   :  { %16512 = vmatpush3.msra.mxu0 %v6208_v56  ;;  %16188 = vmatprep.mubr.msk.f32.mxu1 %vm6567_vm1, %v6249_v20  ;;  %v6273_v53 = vld [vmem:[%s23097_s5 + $0xd0] sm:$0xff]  ;;  %v6175_v16 = vld [vmem:[#allocation4 + $0x40] sm:$0xff]  ;;  %v6274_v56 = vld [vmem:[%s23097_s5 + $0xd8] sm:$0xff] }
 0x589   :  { %16508 = vmatprep.mubr.msk.f32.mxu0 %vm6567_vm1, %v6409_v3  ;;  %16189 = vmatmul.mubr.msk.f32.gmra.mrb[2].mxu1 %vm6567_vm1, %v6250_v58  ;;  %v6433_v26 = vld [vmem:[%s23097_s5 + $0x5d0] sm:$0xff]  ;;  %v6215_v20 = vld [vmem:[#allocation4 + $0x180] sm:$0xff]  ;;  %v6434_v3 = vld [vmem:[%s23097_s5 + $0x5d8] sm:$0xff] }
 0x58a   :  { %16199 = vmatprep.subr.mxu1 %v6169_v34  ;;  %16509 = vmatmul.mubr.msk.f32.gmra.mrb[2].mxu0 %vm6567_vm1, %v6410_v18  ;;  %v6275_v58 = vld [vmem:[%s23097_s5 + $0xe0] sm:$0xff]  ;;  %v6276_v18 = vld [vmem:[%s23097_s5 + $0xe8] sm:$0xff] }
 0x58b   :  { %16193 = vmatprep.mubr.msk.f32.mxu1 %vm6567_vm1, %v6251_v0  ;;  %16513 = vmatprep.mubr.msk.f32.mxu0 %vm6567_vm1, %v6411_v28  ;;  %v6436_v0 = vld [vmem:[%s23097_s5 + $0x5e8] sm:$0xff]  ;;  %v6277_v28 = vld [vmem:[%s23097_s5 + $0xf0] sm:$0xff] }
 0x58c   :  { %16519 = vmatprep.subr.mxu0 %v6209_v1 }
 0x58d   :  { %16194 = vmatmul.mubr.msk.f32.vlgmr.msra.gmra.mrb[0].mxu1 %vm6567_vm1, %v6252_v33  ;;  %v6176_v33 = vld [vmem:[#allocation4 + $0x48] sm:$0xff] }
 0x58e   :  { %16514 = vmatmul.mubr.msk.f32.vlgmr.msra.gmra.mrb[0].mxu0 %vm6567_vm1, %v6412_v14  ;;  %16200 = vmatpush3.msra.mxu1 %v6169_v34  ;;  %v6435_v34 = vld [vmem:[%s23097_s5 + $0x5e0] sm:$0xff]  ;;  %v6278_v14 = vld [vmem:[%s23097_s5 + $0xf8] sm:$0xff] }
 0x58f   :  { %16520 = vmatpush3.msra.mxu0 %v6209_v1  ;;  %16196 = vmatprep.mubr.msk.f32.mxu1 %vm6567_vm1, %v6253_v5  ;;  %v6437_v1 = vld [vmem:[%s23097_s5 + $0x5f0] sm:$0xff]  ;;  %v6216_v5 = vld [vmem:[#allocation4 + $0x188] sm:$0xff] }
 0x590   :  { %16516 = vmatprep.mubr.msk.f32.mxu0 %vm6567_vm1, %v6413_v11  ;;  %16207 = vmatprep.subr.mxu1 %v6170_v35  ;;  %v6438_v11 = vld [vmem:[%s23097_s5 + $0x5f8] sm:$0xff] }
 0x591   :  { %16197 = vmatmul.mubr.msk.f32.gmra.mrb[2].mxu1 %vm6567_vm1, %v6254_v36  ;;  %16527 = vmatprep.subr.mxu0 %v6210_v62  ;;  %v6439_v36 = vld [vmem:[%s23097_s5 + $0x600] sm:$0xff] }
 0x592   :  { %16517 = vmatmul.mubr.msk.f32.gmra.mrb[2].mxu0 %vm6567_vm1, %v6414_v51  ;;  %16201 = vmatprep.mubr.msk.f32.mxu1 %vm6567_vm1, %v6255_v23  ;;  %v6440_v51 = vld [vmem:[%s23097_s5 + $0x608] sm:$0xff]  ;;  %v6281_v23 = vld [vmem:[%s23097_s5 + $0x110] sm:$0xff] }
 0x593   :  { %16521 = vmatprep.mubr.msk.f32.mxu0 %vm6567_vm1, %v6415_v54  ;;  %v6441_v54 = vld [vmem:[%s23097_s5 + $0x610] sm:$0xff] }
 0x595   :  { %16202 = vmatmul.mubr.msk.f32.vlgmr.msra.gmra.mrb[0].mxu1 %vm6567_vm1, %v6256_v59  ;;  %v6177_v59 = vld [vmem:[#allocation4 + $0x50] sm:$0xff] }
 0x596   :  { %16522 = vmatmul.mubr.msk.f32.vlgmr.msra.gmra.mrb[0].mxu0 %vm6567_vm1, %v6416_v45  ;;  %16208 = vmatpush3.msra.mxu1 %v6170_v35  ;;  %v6279_v35 = vld [vmem:[%s23097_s5 + $0x100] sm:$0xff]  ;;  %v6282_v45 = vld [vmem:[%s23097_s5 + $0x118] sm:$0xff] }
 0x597   :  { %16528 = vmatpush3.msra.mxu0 %v6210_v62  ;;  %16204 = vmatprep.mubr.msk.f32.mxu1 %vm6567_vm1, %v6257_v4  ;;  %v6280_v62 = vld [vmem:[%s23097_s5 + $0x108] sm:$0xff]  ;;  %v6217_v4 = vld [vmem:[#allocation4 + $0x190] sm:$0xff] }
 0x598   :  { %16524 = vmatprep.mubr.msk.f32.mxu0 %vm6567_vm1, %v6417_v6  ;;  %16215 = vmatprep.subr.mxu1 %v6171_v38  ;;  %v6442_v6 = vld [vmem:[%s23097_s5 + $0x618] sm:$0xff] }
 0x599   :  { %16205 = vmatmul.mubr.msk.f32.gmra.mrb[2].mxu1 %vm6567_vm1, %v6258_v41  ;;  %16535 = vmatprep.subr.mxu0 %v6211_v42  ;;  %v6443_v41 = vld [vmem:[%s23097_s5 + $0x620] sm:$0xff] }
 0x59a   :  { %16525 = vmatmul.mubr.msk.f32.gmra.mrb[2].mxu0 %vm6567_vm1, %v6418_v31  ;;  %16209 = vmatprep.mubr.msk.f32.mxu1 %vm6567_vm1, %v6259_v2  ;;  %v6444_v31 = vld [vmem:[%s23097_s5 + $0x628] sm:$0xff]  ;;  %v6285_v2 = vld [vmem:[%s23097_s5 + $0x130] sm:$0xff] }
 0x59b   :  { %16529 = vmatprep.mubr.msk.f32.mxu0 %vm6567_vm1, %v6419_v48  ;;  %v6445_v48 = vld [vmem:[%s23097_s5 + $0x630] sm:$0xff] }
 0x59d   :  { %16210 = vmatmul.mubr.msk.f32.vlgmr.msra.gmra.mrb[0].mxu1 %vm6567_vm1, %v6260_v8  ;;  %v6178_v8 = vld [vmem:[#allocation4 + $0x58] sm:$0xff] }
 0x59e   :  { %16530 = vmatmul.mubr.msk.f32.vlgmr.msra.gmra.mrb[0].mxu0 %vm6567_vm1, %v6420_v30  ;;  %16216 = vmatpush3.msra.mxu1 %v6171_v38  ;;  %v6283_v38 = vld [vmem:[%s23097_s5 + $0x120] sm:$0xff]  ;;  %v6286_v30 = vld [vmem:[%s23097_s5 + $0x138] sm:$0xff] }
 0x59f   :  { %16536 = vmatpush3.msra.mxu0 %v6211_v42  ;;  %16212 = vmatprep.mubr.msk.f32.mxu1 %vm6567_vm1, %v6261_v10  ;;  %v6284_v42 = vld [vmem:[%s23097_s5 + $0x128] sm:$0xff]  ;;  %v6218_v10 = vld [vmem:[#allocation4 + $0x198] sm:$0xff] }
 0x5a0   :  { %16532 = vmatprep.mubr.msk.f32.mxu0 %vm6567_vm1, %v6421_v46  ;;  %16223 = vmatprep.subr.mxu1 %v6172_v17  ;;  %v6446_v46 = vld [vmem:[%s23097_s5 + $0x638] sm:$0xff] }
 0x5a1   :  { %16213 = vmatmul.mubr.msk.f32.gmra.mrb[2].mxu1 %vm6567_vm1, %v6262_v37  ;;  %16543 = vmatprep.subr.mxu0 %v6212_v49  ;;  %v6447_v37 = vld [vmem:[%s23097_s5 + $0x640] sm:$0xff] }
 0x5a2   :  { %16533 = vmatmul.mubr.msk.f32.gmra.mrb[2].mxu0 %vm6567_vm1, %v6422_v29  ;;  %16217 = vmatprep.mubr.msk.f32.mxu1 %vm6567_vm1, %v6263_v24  ;;  %v6448_v29 = vld [vmem:[%s23097_s5 + $0x648] sm:$0xff]  ;;  %v6289_v24 = vld [vmem:[%s23097_s5 + $0x150] sm:$0xff] }
 0x5a3   :  { %16537 = vmatprep.mubr.msk.f32.mxu0 %vm6567_vm1, %v6423_v61  ;;  %v6449_v61 = vld [vmem:[%s23097_s5 + $0x650] sm:$0xff] }
 0x5a5   :  { %16218 = vmatmul.mubr.msk.f32.vlgmr.msra.gmra.mrb[0].mxu1 %vm6567_vm1, %v6264_v55  ;;  %v6179_v55 = vld [vmem:[#allocation4 + $0x60] sm:$0xff] }
 0x5a6   :  { %16538 = vmatmul.mubr.msk.f32.vlgmr.msra.gmra.mrb[0].mxu0 %vm6567_vm1, %v6424_v50  ;;  %16224 = vmatpush3.msra.mxu1 %v6172_v17  ;;  %v6287_v17 = vld [vmem:[%s23097_s5 + $0x140] sm:$0xff]  ;;  %v6290_v50 = vld [vmem:[%s23097_s5 + $0x158] sm:$0xff] }
 0x5a7   :  { %16544 = vmatpush3.msra.mxu0 %v6212_v49  ;;  %16220 = vmatprep.mubr.msk.f32.mxu1 %vm6567_vm1, %v6265_v22  ;;  %v6288_v49 = vld [vmem:[%s23097_s5 + $0x148] sm:$0xff]  ;;  %v6219_v22 = vld [vmem:[#allocation4 + $0x1a0] sm:$0xff] }
 0x5a8   :  { %16540 = vmatprep.mubr.msk.f32.mxu0 %vm6567_vm1, %v6425_v9  ;;  %16231 = vmatprep.subr.mxu1 %v6173_v7  ;;  %v6450_v9 = vld [vmem:[%s23097_s5 + $0x658] sm:$0xff] }
 0x5a9   :  { %16221 = vmatmul.mubr.msk.f32.gmra.mrb[2].mxu1 %vm6567_vm1, %v6266_v44  ;;  %16551 = vmatprep.subr.mxu0 %v6213_v12  ;;  %v6451_v44 = vld [vmem:[%s23097_s5 + $0x660] sm:$0xff] }
 0x5aa   :  { %16541 = vmatmul.mubr.msk.f32.gmra.mrb[2].mxu0 %vm6567_vm1, %v6426_v32  ;;  %16225 = vmatprep.mubr.msk.f32.mxu1 %vm6567_vm1, %v6267_v63  ;;  %v6452_v32 = vld [vmem:[%s23097_s5 + $0x668] sm:$0xff]  ;;  %v6293_v63 = vld [vmem:[%s23097_s5 + $0x170] sm:$0xff] }
 0x5ab   :  { %16545 = vmatprep.mubr.msk.f32.mxu0 %vm6567_vm1, %v6427_v15  ;;  %v6453_v15 = vld [vmem:[%s23097_s5 + $0x670] sm:$0xff] }
 0x5ad   :  { %16226 = vmatmul.mubr.msk.f32.vlgmr.msra.gmra.mrb[0].mxu1 %vm6567_vm1, %v6268_v52  ;;  %v6180_v52 = vld [vmem:[#allocation4 + $0x68] sm:$0xff] }
 0x5ae   :  { %16546 = vmatmul.mubr.msk.f32.vlgmr.msra.gmra.mrb[0].mxu0 %vm6567_vm1, %v6428_v40  ;;  %16232 = vmatpush3.msra.mxu1 %v6173_v7  ;;  %v6291_v7 = vld [vmem:[%s23097_s5 + $0x160] sm:$0xff]  ;;  %v6294_v40 = vld [vmem:[%s23097_s5 + $0x178] sm:$0xff] }
 0x5af   :  { %16552 = vmatpush3.msra.mxu0 %v6213_v12  ;;  %16228 = vmatprep.mubr.msk.f32.mxu1 %vm6567_vm1, %v6269_v60  ;;  %v6292_v12 = vld [vmem:[%s23097_s5 + $0x168] sm:$0xff] }
 0x5b0   :  { %16548 = vmatprep.mubr.msk.f32.mxu0 %vm6567_vm1, %v6429_v21  ;;  %16239 = vmatprep.subr.mxu1 %v6174_v57  ;;  %v6220_v60 = vld [vmem:[#allocation4 + $0x1a8] sm:$0xff]  ;;  %v6454_v21 = vld [vmem:[%s23097_s5 + $0x678] sm:$0xff] }
 0x5b1   :  { %16229 = vmatmul.mubr.msk.f32.gmra.mrb[2].mxu1 %vm6567_vm1, %v6270_v25  ;;  %16559 = vmatprep.subr.mxu0 %v6214_v13  ;;  %v6455_v25 = vld [vmem:[%s23097_s5 + $0x680] sm:$0xff] }
 0x5b2   :  { %16549 = vmatmul.mubr.msk.f32.gmra.mrb[2].mxu0 %vm6567_vm1, %v6430_v39  ;;  %16233 = vmatprep.mubr.msk.f32.mxu1 %vm6567_vm1, %v6271_v27  ;;  %v6456_v39 = vld [vmem:[%s23097_s5 + $0x688] sm:$0xff]  ;;  %v6297_v27 = vld [vmem:[%s23097_s5 + $0x190] sm:$0xff] }
 0x5b3   :  { %16553 = vmatprep.mubr.msk.f32.mxu0 %vm6567_vm1, %v6431_v19  ;;  %v6457_v19 = vld [vmem:[%s23097_s5 + $0x690] sm:$0xff] }
 0x5b5   :  { %16234 = vmatmul.mubr.msk.f32.vlgmr.msra.gmra.mrb[0].mxu1 %vm6567_vm1, %v6272_v43  ;;  %v6181_v43 = vld [vmem:[#allocation4 + $0x70] sm:$0xff] }
 0x5b6   :  { %16554 = vmatmul.mubr.msk.f32.vlgmr.msra.gmra.mrb[0].mxu0 %vm6567_vm1, %v6432_v47  ;;  %16240 = vmatpush3.msra.mxu1 %v6174_v57  ;;  %v6295_v57 = vld [vmem:[%s23097_s5 + $0x180] sm:$0xff]  ;;  %v6298_v47 = vld [vmem:[%s23097_s5 + $0x198] sm:$0xff] }
 0x5b7   :  { %16560 = vmatpush3.msra.mxu0 %v6214_v13  ;;  %16236 = vmatprep.mubr.msk.f32.mxu1 %vm6567_vm1, %v6273_v53  ;;  %v6296_v13 = vld [vmem:[%s23097_s5 + $0x188] sm:$0xff]  ;;  %v6221_v53 = vld [vmem:[#allocation4 + $0x1b0] sm:$0xff] }
 0x5b8   :  { %16556 = vmatprep.mubr.msk.f32.mxu0 %vm6567_vm1, %v6433_v26  ;;  %16247 = vmatprep.subr.mxu1 %v6175_v16  ;;  %v6458_v26 = vld [vmem:[%s23097_s5 + $0x698] sm:$0xff] }
 0x5b9   :  { %16237 = vmatmul.mubr.msk.f32.gmra.mrb[2].mxu1 %vm6567_vm1, %v6274_v56  ;;  %16567 = vmatprep.subr.mxu0 %v6215_v20  ;;  %v6459_v56 = vld [vmem:[%s23097_s5 + $0x6a0] sm:$0xff] }
 0x5ba   :  { %16557 = vmatmul.mubr.msk.f32.gmra.mrb[2].mxu0 %vm6567_vm1, %v6434_v3  ;;  %16241 = vmatprep.mubr.msk.f32.mxu1 %vm6567_vm1, %v6275_v58  ;;  %v6460_v3 = vld [vmem:[%s23097_s5 + $0x6a8] sm:$0xff]  ;;  %v6301_v58 = vld [vmem:[%s23097_s5 + $0x1b0] sm:$0xff] }
 0x5bb   :  { %16561 = vmatprep.mubr.msk.f32.mxu0 %vm6567_vm1, %v6435_v34  ;;  %v6461_v34 = vld [vmem:[%s23097_s5 + $0x6b0] sm:$0xff] }
 0x5bd   :  { %16242 = vmatmul.mubr.msk.f32.vlgmr.msra.gmra.mrb[0].mxu1 %vm6567_vm1, %v6276_v18  ;;  %v6182_v18 = vld [vmem:[#allocation4 + $0x78] sm:$0xff] }
 0x5be   :  { %16562 = vmatmul.mubr.msk.f32.vlgmr.msra.gmra.mrb[0].mxu0 %vm6567_vm1, %v6436_v0  ;;  %16248 = vmatpush3.msra.mxu1 %v6175_v16  ;;  %v6299_v16 = vld [vmem:[%s23097_s5 + $0x1a0] sm:$0xff]  ;;  %v6302_v0 = vld [vmem:[%s23097_s5 + $0x1b8] sm:$0xff] }
 0x5bf   :  { %16568 = vmatpush3.msra.mxu0 %v6215_v20  ;;  %16244 = vmatprep.mubr.msk.f32.mxu1 %vm6567_vm1, %v6277_v28  ;;  %v6300_v20 = vld [vmem:[%s23097_s5 + $0x1a8] sm:$0xff]  ;;  %v6222_v28 = vld [vmem:[#allocation4 + $0x1b8] sm:$0xff] }
 0x5c0   :  { %16564 = vmatprep.mubr.msk.f32.mxu0 %vm6567_vm1, %v6437_v1  ;;  %16255 = vmatprep.subr.mxu1 %v6176_v33  ;;  %v6462_v1 = vld [vmem:[%s23097_s5 + $0x6b8] sm:$0xff] }
 0x5c1   :  { %16245 = vmatmul.mubr.msk.f32.gmra.mrb[2].mxu1 %vm6567_vm1, %v6278_v14  ;;  %16575 = vmatprep.subr.mxu0 %v6216_v5  ;;  %v6463_v14 = vld [vmem:[%s23097_s5 + $0x6c0] sm:$0xff] }
 0x5c2   :  { %16565 = vmatmul.mubr.msk.f32.gmra.mrb[2].mxu0 %vm6567_vm1, %v6438_v11  ;;  %16249 = vmatprep.mubr.msk.f32.mxu1 %vm6567_vm1, %v6279_v35  ;;  %v6464_v11 = vld [vmem:[%s23097_s5 + $0x6c8] sm:$0xff]  ;;  %v6305_v35 = vld [vmem:[%s23097_s5 + $0x1d0] sm:$0xff] }
 0x5c3   :  { %16569 = vmatprep.mubr.msk.f32.mxu0 %vm6567_vm1, %v6439_v36  ;;  %v6465_v36 = vld [vmem:[%s23097_s5 + $0x6d0] sm:$0xff] }
 0x5c5   :  { %16250 = vmatmul.mubr.msk.f32.vlgmr.msra.gmra.mrb[0].mxu1 %vm6567_vm1, %v6280_v62  ;;  %v6183_v62 = vld [vmem:[#allocation4 + $0x80] sm:$0xff] }
 0x5c6   :  { %16570 = vmatmul.mubr.msk.f32.vlgmr.msra.gmra.mrb[0].mxu0 %vm6567_vm1, %v6440_v51  ;;  %16256 = vmatpush3.msra.mxu1 %v6176_v33  ;;  %v6303_v33 = vld [vmem:[%s23097_s5 + $0x1c0] sm:$0xff]  ;;  %v6306_v51 = vld [vmem:[%s23097_s5 + $0x1d8] sm:$0xff] }
 0x5c7   :  { %16576 = vmatpush3.msra.mxu0 %v6216_v5  ;;  %16252 = vmatprep.mubr.msk.f32.mxu1 %vm6567_vm1, %v6281_v23  ;;  %v6304_v5 = vld [vmem:[%s23097_s5 + $0x1c8] sm:$0xff]  ;;  %v6223_v23 = vld [vmem:[#allocation4 + $0x1c0] sm:$0xff] }
 0x5c8   :  { %16572 = vmatprep.mubr.msk.f32.mxu0 %vm6567_vm1, %v6441_v54  ;;  %16263 = vmatprep.subr.mxu1 %v6177_v59  ;;  %v6466_v54 = vld [vmem:[%s23097_s5 + $0x6d8] sm:$0xff] }
 0x5c9   :  { %16253 = vmatmul.mubr.msk.f32.gmra.mrb[2].mxu1 %vm6567_vm1, %v6282_v45  ;;  %16583 = vmatprep.subr.mxu0 %v6217_v4  ;;  %v6467_v45 = vld [vmem:[%s23097_s5 + $0x6e0] sm:$0xff] }
 0x5ca   :  { %16573 = vmatmul.mubr.msk.f32.gmra.mrb[2].mxu0 %vm6567_vm1, %v6442_v6  ;;  %16257 = vmatprep.mubr.msk.f32.mxu1 %vm6567_vm1, %v6283_v38  ;;  %v6468_v6 = vld [vmem:[%s23097_s5 + $0x6e8] sm:$0xff]  ;;  %v6309_v38 = vld [vmem:[%s23097_s5 + $0x1f0] sm:$0xff] }
 0x5cb   :  { %16577 = vmatprep.mubr.msk.f32.mxu0 %vm6567_vm1, %v6443_v41  ;;  %v6469_v41 = vld [vmem:[%s23097_s5 + $0x6f0] sm:$0xff] }
 0x5cd   :  { %16258 = vmatmul.mubr.msk.f32.vlgmr.msra.gmra.mrb[0].mxu1 %vm6567_vm1, %v6284_v42  ;;  %v6184_v42 = vld [vmem:[#allocation4 + $0x88] sm:$0xff] }
 0x5ce   :  { %16578 = vmatmul.mubr.msk.f32.vlgmr.msra.gmra.mrb[0].mxu0 %vm6567_vm1, %v6444_v31  ;;  %16264 = vmatpush3.msra.mxu1 %v6177_v59  ;;  %v6307_v59 = vld [vmem:[%s23097_s5 + $0x1e0] sm:$0xff]  ;;  %v6310_v31 = vld [vmem:[%s23097_s5 + $0x1f8] sm:$0xff] }
 0x5cf   :  { %16584 = vmatpush3.msra.mxu0 %v6217_v4  ;;  %16260 = vmatprep.mubr.msk.f32.mxu1 %vm6567_vm1, %v6285_v2  ;;  %v6308_v4 = vld [vmem:[%s23097_s5 + $0x1e8] sm:$0xff] }
 0x5d0   :  { %16580 = vmatprep.mubr.msk.f32.mxu0 %vm6567_vm1, %v6445_v48  ;;  %16271 = vmatprep.subr.mxu1 %v6178_v8  ;;  %v6224_v2 = vld [vmem:[#allocation4 + $0x1c8] sm:$0xff]  ;;  %v6470_v48 = vld [vmem:[%s23097_s5 + $0x6f8] sm:$0xff] }
 0x5d1   :  { %16261 = vmatmul.mubr.msk.f32.gmra.mrb[2].mxu1 %vm6567_vm1, %v6286_v30  ;;  %16591 = vmatprep.subr.mxu0 %v6218_v10  ;;  %v6471_v30 = vld [vmem:[%s23097_s5 + $0x700] sm:$0xff] }
 0x5d2   :  { %16581 = vmatmul.mubr.msk.f32.gmra.mrb[2].mxu0 %vm6567_vm1, %v6446_v46  ;;  %16265 = vmatprep.mubr.msk.f32.mxu1 %vm6567_vm1, %v6287_v17  ;;  %v6472_v46 = vld [vmem:[%s23097_s5 + $0x708] sm:$0xff]  ;;  %v6313_v17 = vld [vmem:[%s23097_s5 + $0x210] sm:$0xff] }
 0x5d3   :  { %16585 = vmatprep.mubr.msk.f32.mxu0 %vm6567_vm1, %v6447_v37  ;;  %v6473_v37 = vld [vmem:[%s23097_s5 + $0x710] sm:$0xff] }
 0x5d5   :  { %16266 = vmatmul.mubr.msk.f32.vlgmr.msra.gmra.mrb[0].mxu1 %vm6567_vm1, %v6288_v49  ;;  %v6185_v49 = vld [vmem:[#allocation4 + $0x90] sm:$0xff] }
 0x5d6   :  { %16586 = vmatmul.mubr.msk.f32.vlgmr.msra.gmra.mrb[0].mxu0 %vm6567_vm1, %v6448_v29  ;;  %16272 = vmatpush3.msra.mxu1 %v6178_v8  ;;  %v6311_v8 = vld [vmem:[%s23097_s5 + $0x200] sm:$0xff]  ;;  %v6314_v29 = vld [vmem:[%s23097_s5 + $0x218] sm:$0xff] }
 0x5d7   :  { %16592 = vmatpush3.msra.mxu0 %v6218_v10  ;;  %16268 = vmatprep.mubr.msk.f32.mxu1 %vm6567_vm1, %v6289_v24  ;;  %v6312_v10 = vld [vmem:[%s23097_s5 + $0x208] sm:$0xff]  ;;  %v6225_v24 = vld [vmem:[#allocation4 + $0x1d0] sm:$0xff] }
 0x5d8   :  { %16588 = vmatprep.mubr.msk.f32.mxu0 %vm6567_vm1, %v6449_v61  ;;  %16279 = vmatprep.subr.mxu1 %v6179_v55  ;;  %v6474_v61 = vld [vmem:[%s23097_s5 + $0x718] sm:$0xff] }
 0x5d9   :  { %16269 = vmatmul.mubr.msk.f32.gmra.mrb[2].mxu1 %vm6567_vm1, %v6290_v50  ;;  %16599 = vmatprep.subr.mxu0 %v6219_v22  ;;  %v6475_v50 = vld [vmem:[%s23097_s5 + $0x720] sm:$0xff] }
 0x5da   :  { %16589 = vmatmul.mubr.msk.f32.gmra.mrb[2].mxu0 %vm6567_vm1, %v6450_v9  ;;  %16273 = vmatprep.mubr.msk.f32.mxu1 %vm6567_vm1, %v6291_v7  ;;  %v6476_v9 = vld [vmem:[%s23097_s5 + $0x728] sm:$0xff]  ;;  %v6317_v7 = vld [vmem:[%s23097_s5 + $0x230] sm:$0xff] }
 0x5db   :  { %16593 = vmatprep.mubr.msk.f32.mxu0 %vm6567_vm1, %v6451_v44  ;;  %v6477_v44 = vld [vmem:[%s23097_s5 + $0x730] sm:$0xff] }
 0x5dd   :  { %16274 = vmatmul.mubr.msk.f32.vlgmr.msra.gmra.mrb[0].mxu1 %vm6567_vm1, %v6292_v12  ;;  %v6186_v12 = vld [vmem:[#allocation4 + $0x98] sm:$0xff] }
 0x5de   :  { %16594 = vmatmul.mubr.msk.f32.vlgmr.msra.gmra.mrb[0].mxu0 %vm6567_vm1, %v6452_v32  ;;  %16280 = vmatpush3.msra.mxu1 %v6179_v55  ;;  %v6315_v55 = vld [vmem:[%s23097_s5 + $0x220] sm:$0xff]  ;;  %v6318_v32 = vld [vmem:[%s23097_s5 + $0x238] sm:$0xff] }
 0x5df   :  { %16600 = vmatpush3.msra.mxu0 %v6219_v22  ;;  %16276 = vmatprep.mubr.msk.f32.mxu1 %vm6567_vm1, %v6293_v63  ;;  %v6316_v22 = vld [vmem:[%s23097_s5 + $0x228] sm:$0xff]  ;;  %v6226_v63 = vld [vmem:[#allocation4 + $0x1d8] sm:$0xff] }
 0x5e0   :  { %16596 = vmatprep.mubr.msk.f32.mxu0 %vm6567_vm1, %v6453_v15  ;;  %16287 = vmatprep.subr.mxu1 %v6180_v52  ;;  %v6478_v15 = vld [vmem:[%s23097_s5 + $0x738] sm:$0xff] }
 0x5e1   :  { %16277 = vmatmul.mubr.msk.f32.gmra.mrb[2].mxu1 %vm6567_vm1, %v6294_v40  ;;  %16607 = vmatprep.subr.mxu0 %v6220_v60  ;;  %v6479_v40 = vld [vmem:[%s23097_s5 + $0x740] sm:$0xff] }
 0x5e2   :  { %16597 = vmatmul.mubr.msk.f32.gmra.mrb[2].mxu0 %vm6567_vm1, %v6454_v21  ;;  %16281 = vmatprep.mubr.msk.f32.mxu1 %vm6567_vm1, %v6295_v57  ;;  %v6480_v21 = vld [vmem:[%s23097_s5 + $0x748] sm:$0xff]  ;;  %v6321_v57 = vld [vmem:[%s23097_s5 + $0x250] sm:$0xff] }
 0x5e3   :  { %16601 = vmatprep.mubr.msk.f32.mxu0 %vm6567_vm1, %v6455_v25  ;;  %v6481_v25 = vld [vmem:[%s23097_s5 + $0x750] sm:$0xff] }
 0x5e5   :  { %16282 = vmatmul.mubr.msk.f32.vlgmr.msra.gmra.mrb[0].mxu1 %vm6567_vm1, %v6296_v13  ;;  %v6187_v13 = vld [vmem:[#allocation4 + $0xa0] sm:$0xff] }
 0x5e6   :  { %16602 = vmatmul.mubr.msk.f32.vlgmr.msra.gmra.mrb[0].mxu0 %vm6567_vm1, %v6456_v39  ;;  %16288 = vmatpush3.msra.mxu1 %v6180_v52  ;;  %v6319_v52 = vld [vmem:[%s23097_s5 + $0x240] sm:$0xff]  ;;  %v6322_v39 = vld [vmem:[%s23097_s5 + $0x258] sm:$0xff] }
 0x5e7   :  { %16608 = vmatpush3.msra.mxu0 %v6220_v60  ;;  %16284 = vmatprep.mubr.msk.f32.mxu1 %vm6567_vm1, %v6297_v27  ;;  %v6320_v60 = vld [vmem:[%s23097_s5 + $0x248] sm:$0xff]  ;;  %v6227_v27 = vld [vmem:[#allocation4 + $0x1e0] sm:$0xff] }
 0x5e8   :  { %16604 = vmatprep.mubr.msk.f32.mxu0 %vm6567_vm1, %v6457_v19  ;;  %16295 = vmatprep.subr.mxu1 %v6181_v43  ;;  %v6482_v19 = vld [vmem:[%s23097_s5 + $0x758] sm:$0xff] }
 0x5e9   :  { %16285 = vmatmul.mubr.msk.f32.gmra.mrb[2].mxu1 %vm6567_vm1, %v6298_v47  ;;  %16615 = vmatprep.subr.mxu0 %v6221_v53  ;;  %v6483_v47 = vld [vmem:[%s23097_s5 + $0x760] sm:$0xff] }
 0x5ea   :  { %16605 = vmatmul.mubr.msk.f32.gmra.mrb[2].mxu0 %vm6567_vm1, %v6458_v26  ;;  %16289 = vmatprep.mubr.msk.f32.mxu1 %vm6567_vm1, %v6299_v16  ;;  %v6484_v26 = vld [vmem:[%s23097_s5 + $0x768] sm:$0xff]  ;;  %v6325_v16 = vld [vmem:[%s23097_s5 + $0x270] sm:$0xff] }
 0x5eb   :  { %16609 = vmatprep.mubr.msk.f32.mxu0 %vm6567_vm1, %v6459_v56  ;;  %v6485_v56 = vld [vmem:[%s23097_s5 + $0x770] sm:$0xff] }
 0x5ed   :  { %16290 = vmatmul.mubr.msk.f32.vlgmr.msra.gmra.mrb[0].mxu1 %vm6567_vm1, %v6300_v20  ;;  %v6188_v20 = vld [vmem:[#allocation4 + $0xa8] sm:$0xff] }
 0x5ee   :  { %16610 = vmatmul.mubr.msk.f32.vlgmr.msra.gmra.mrb[0].mxu0 %vm6567_vm1, %v6460_v3  ;;  %16296 = vmatpush3.msra.mxu1 %v6181_v43  ;;  %v6323_v43 = vld [vmem:[%s23097_s5 + $0x260] sm:$0xff]  ;;  %v6326_v3 = vld [vmem:[%s23097_s5 + $0x278] sm:$0xff] }
 0x5ef   :  { %16616 = vmatpush3.msra.mxu0 %v6221_v53  ;;  %16292 = vmatprep.mubr.msk.f32.mxu1 %vm6567_vm1, %v6301_v58  ;;  %v6324_v53 = vld [vmem:[%s23097_s5 + $0x268] sm:$0xff] }
 0x5f0   :  { %16612 = vmatprep.mubr.msk.f32.mxu0 %vm6567_vm1, %v6461_v34  ;;  %16303 = vmatprep.subr.mxu1 %v6182_v18  ;;  %v6228_v58 = vld [vmem:[#allocation4 + $0x1e8] sm:$0xff]  ;;  %v6486_v34 = vld [vmem:[%s23097_s5 + $0x778] sm:$0xff] }
 0x5f1   :  { %16293 = vmatmul.mubr.msk.f32.gmra.mrb[2].mxu1 %vm6567_vm1, %v6302_v0  ;;  %16623 = vmatprep.subr.mxu0 %v6222_v28  ;;  %v6487_v0 = vld [vmem:[%s23097_s5 + $0x780] sm:$0xff] }
 0x5f2   :  { %16613 = vmatmul.mubr.msk.f32.gmra.mrb[2].mxu0 %vm6567_vm1, %v6462_v1  ;;  %16297 = vmatprep.mubr.msk.f32.mxu1 %vm6567_vm1, %v6303_v33  ;;  %v6488_v1 = vld [vmem:[%s23097_s5 + $0x788] sm:$0xff]  ;;  %v6329_v33 = vld [vmem:[%s23097_s5 + $0x290] sm:$0xff] }
 0x5f3   :  { %16617 = vmatprep.mubr.msk.f32.mxu0 %vm6567_vm1, %v6463_v14  ;;  %v6489_v14 = vld [vmem:[%s23097_s5 + $0x790] sm:$0xff] }
 0x5f5   :  { %16298 = vmatmul.mubr.msk.f32.vlgmr.msra.gmra.mrb[0].mxu1 %vm6567_vm1, %v6304_v5  ;;  %v6189_v5 = vld [vmem:[#allocation4 + $0xb0] sm:$0xff] }
 0x5f6   :  { %16618 = vmatmul.mubr.msk.f32.vlgmr.msra.gmra.mrb[0].mxu0 %vm6567_vm1, %v6464_v11  ;;  %16304 = vmatpush3.msra.mxu1 %v6182_v18  ;;  %v6327_v18 = vld [vmem:[%s23097_s5 + $0x280] sm:$0xff]  ;;  %v6330_v11 = vld [vmem:[%s23097_s5 + $0x298] sm:$0xff] }
 0x5f7   :  { %16624 = vmatpush3.msra.mxu0 %v6222_v28  ;;  %16300 = vmatprep.mubr.msk.f32.mxu1 %vm6567_vm1, %v6305_v35  ;;  %v6328_v28 = vld [vmem:[%s23097_s5 + $0x288] sm:$0xff]  ;;  %v6229_v35 = vld [vmem:[#allocation4 + $0x1f0] sm:$0xff] }
 0x5f8   :  { %16620 = vmatprep.mubr.msk.f32.mxu0 %vm6567_vm1, %v6465_v36  ;;  %16311 = vmatprep.subr.mxu1 %v6183_v62  ;;  %v6490_v36 = vld [vmem:[%s23097_s5 + $0x798] sm:$0xff] }
 0x5f9   :  { %16301 = vmatmul.mubr.msk.f32.gmra.mrb[2].mxu1 %vm6567_vm1, %v6306_v51  ;;  %16631 = vmatprep.subr.mxu0 %v6223_v23  ;;  %v6491_v51 = vld [vmem:[%s23097_s5 + $0x7a0] sm:$0xff] }
 0x5fa   :  { %16621 = vmatmul.mubr.msk.f32.gmra.mrb[2].mxu0 %vm6567_vm1, %v6466_v54  ;;  %16305 = vmatprep.mubr.msk.f32.mxu1 %vm6567_vm1, %v6307_v59  ;;  %v6492_v54 = vld [vmem:[%s23097_s5 + $0x7a8] sm:$0xff]  ;;  %v6333_v59 = vld [vmem:[%s23097_s5 + $0x2b0] sm:$0xff] }
 0x5fb   :  { %16625 = vmatprep.mubr.msk.f32.mxu0 %vm6567_vm1, %v6467_v45  ;;  %v6493_v45 = vld [vmem:[%s23097_s5 + $0x7b0] sm:$0xff] }
 0x5fd   :  { %16306 = vmatmul.mubr.msk.f32.vlgmr.msra.gmra.mrb[0].mxu1 %vm6567_vm1, %v6308_v4  ;;  %v6190_v4 = vld [vmem:[#allocation4 + $0xb8] sm:$0xff] }
 0x5fe   :  { %16626 = vmatmul.mubr.msk.f32.vlgmr.msra.gmra.mrb[0].mxu0 %vm6567_vm1, %v6468_v6  ;;  %16312 = vmatpush3.msra.mxu1 %v6183_v62  ;;  %v6331_v62 = vld [vmem:[%s23097_s5 + $0x2a0] sm:$0xff]  ;;  %v6334_v6 = vld [vmem:[%s23097_s5 + $0x2b8] sm:$0xff] }
 0x5ff   :  { %16632 = vmatpush3.msra.mxu0 %v6223_v23  ;;  %16308 = vmatprep.mubr.msk.f32.mxu1 %vm6567_vm1, %v6309_v38  ;;  %v6332_v23 = vld [vmem:[%s23097_s5 + $0x2a8] sm:$0xff]  ;;  %v6230_v38 = vld [vmem:[#allocation4 + $0x1f8] sm:$0xff] }
 0x600   :  { %16628 = vmatprep.mubr.msk.f32.mxu0 %vm6567_vm1, %v6469_v41  ;;  %16319 = vmatprep.subr.mxu1 %v6184_v42  ;;  %v6494_v41 = vld [vmem:[%s23097_s5 + $0x7b8] sm:$0xff] }
 0x601   :  { %16309 = vmatmul.mubr.msk.f32.gmra.mrb[2].mxu1 %vm6567_vm1, %v6310_v31  ;;  %16639 = vmatprep.subr.mxu0 %v6224_v2  ;;  %v6495_v31 = vld [vmem:[%s23097_s5 + $0x7c0] sm:$0xff] }
 0x602   :  { %16629 = vmatmul.mubr.msk.f32.gmra.mrb[2].mxu0 %vm6567_vm1, %v6470_v48  ;;  %16313 = vmatprep.mubr.msk.f32.mxu1 %vm6567_vm1, %v6311_v8  ;;  %v6496_v48 = vld [vmem:[%s23097_s5 + $0x7c8] sm:$0xff]  ;;  %v6337_v8 = vld [vmem:[%s23097_s5 + $0x2d0] sm:$0xff] }
 0x603   :  { %16633 = vmatprep.mubr.msk.f32.mxu0 %vm6567_vm1, %v6471_v30  ;;  %v6497_v30 = vld [vmem:[%s23097_s5 + $0x7d0] sm:$0xff] }
 0x605   :  { %16314 = vmatmul.mubr.msk.f32.vlgmr.msra.gmra.mrb[0].mxu1 %vm6567_vm1, %v6312_v10  ;;  %v6191_v10 = vld [vmem:[#allocation4 + $0xc0] sm:$0xff] }
 0x606   :  { %16634 = vmatmul.mubr.msk.f32.vlgmr.msra.gmra.mrb[0].mxu0 %vm6567_vm1, %v6472_v46  ;;  %16320 = vmatpush3.msra.mxu1 %v6184_v42  ;;  %v6335_v42 = vld [vmem:[%s23097_s5 + $0x2c0] sm:$0xff]  ;;  %v6338_v46 = vld [vmem:[%s23097_s5 + $0x2d8] sm:$0xff] }
 0x607   :  { %16640 = vmatpush3.msra.mxu0 %v6224_v2  ;;  %16316 = vmatprep.mubr.msk.f32.mxu1 %vm6567_vm1, %v6313_v17  ;;  %v6336_v2 = vld [vmem:[%s23097_s5 + $0x2c8] sm:$0xff]  ;;  %v6231_v17 = vld [vmem:[#allocation4 + $0x200] sm:$0xff] }
 0x608   :  { %16636 = vmatprep.mubr.msk.f32.mxu0 %vm6567_vm1, %v6473_v37  ;;  %16327 = vmatprep.subr.mxu1 %v6185_v49  ;;  %v6498_v37 = vld [vmem:[%s23097_s5 + $0x7d8] sm:$0xff] }
 0x609   :  { %16317 = vmatmul.mubr.msk.f32.gmra.mrb[2].mxu1 %vm6567_vm1, %v6314_v29  ;;  %16647 = vmatprep.subr.mxu0 %v6225_v24  ;;  %v6499_v29 = vld [vmem:[%s23097_s5 + $0x7e0] sm:$0xff] }
 0x60a   :  { %16637 = vmatmul.mubr.msk.f32.gmra.mrb[2].mxu0 %vm6567_vm1, %v6474_v61  ;;  %16321 = vmatprep.mubr.msk.f32.mxu1 %vm6567_vm1, %v6315_v55  ;;  %v6500_v61 = vld [vmem:[%s23097_s5 + $0x7e8] sm:$0xff]  ;;  %v6341_v55 = vld [vmem:[%s23097_s5 + $0x2f0] sm:$0xff] }
 0x60b   :  { %16641 = vmatprep.mubr.msk.f32.mxu0 %vm6567_vm1, %v6475_v50  ;;  %v6501_v50 = vld [vmem:[%s23097_s5 + $0x7f0] sm:$0xff] }
 0x60d   :  { %16322 = vmatmul.mubr.msk.f32.vlgmr.msra.gmra.mrb[0].mxu1 %vm6567_vm1, %v6316_v22  ;;  %v6192_v22 = vld [vmem:[#allocation4 + $0xc8] sm:$0xff] }
 0x60e   :  { %16642 = vmatmul.mubr.msk.f32.vlgmr.msra.gmra.mrb[0].mxu0 %vm6567_vm1, %v6476_v9  ;;  %16328 = vmatpush3.msra.mxu1 %v6185_v49  ;;  %v6339_v49 = vld [vmem:[%s23097_s5 + $0x2e0] sm:$0xff]  ;;  %v6342_v9 = vld [vmem:[%s23097_s5 + $0x2f8] sm:$0xff] }
 0x60f   :  { %16648 = vmatpush3.msra.mxu0 %v6225_v24  ;;  %16324 = vmatprep.mubr.msk.f32.mxu1 %vm6567_vm1, %v6317_v7  ;;  %v6340_v24 = vld [vmem:[%s23097_s5 + $0x2e8] sm:$0xff] }
 0x610   :  { %16644 = vmatprep.mubr.msk.f32.mxu0 %vm6567_vm1, %v6477_v44  ;;  %16335 = vmatprep.subr.mxu1 %v6186_v12  ;;  %v6232_v7 = vld [vmem:[#allocation4 + $0x208] sm:$0xff]  ;;  %v6502_v44 = vld [vmem:[%s23097_s5 + $0x7f8] sm:$0xff] }
 0x611   :  { %16325 = vmatmul.mubr.msk.f32.gmra.mrb[2].mxu1 %vm6567_vm1, %v6318_v32  ;;  %16655 = vmatprep.subr.mxu0 %v6226_v63  ;;  %v6503_v32 = vld [vmem:[%s23097_s5 + $0x800] sm:$0xff] }
 0x612   :  { %16645 = vmatmul.mubr.msk.f32.gmra.mrb[2].mxu0 %vm6567_vm1, %v6478_v15  ;;  %16329 = vmatprep.mubr.msk.f32.mxu1 %vm6567_vm1, %v6319_v52  ;;  %v14644_v15 = vld [vmem:[%s23098_s6] sm:$0xff]  ;;  %v14646_v52 = vld [vmem:[%s23098_s6 + $0x10] sm:$0xff] }
 0x613   :  { %16649 = vmatprep.mubr.msk.f32.mxu0 %vm6567_vm1, %v6479_v40  ;;  %v6504_v40 = vld [vmem:[%s23097_s5 + $0x808] sm:$0xff] }
 0x615   :  { %16330 = vmatmul.mubr.msk.f32.vlgmr.msra.gmra.mrb[0].mxu1 %vm6567_vm1, %v6320_v60  ;;  %v17757_v60 = vmov 0  }
 0x616   :  { %16650 = vmatmul.mubr.msk.f32.vlgmr.msra.gmra.mrb[0].mxu0 %vm6567_vm1, %v6480_v21  ;;  %16336 = vmatpush3.msra.mxu1 %v6186_v12  ;;  %v6343_v12 = vld [vmem:[%s23097_s5 + $0x300] sm:$0xff]  ;;  %v6345_v21 = vld [vmem:[%s23097_s5 + $0x310] sm:$0xff] }
 0x617   :  { %16656 = vmatpush3.msra.mxu0 %v6226_v63  ;;  %16332 = vmatprep.mubr.msk.f32.mxu1 %vm6567_vm1, %v6321_v57  ;;  %v6344_v63 = vld [vmem:[%s23097_s5 + $0x308] sm:$0xff]  ;;  %v6505_v57 = vld [vmem:[%s23097_s5 + $0x810] sm:$0xff] }
 0x618   :  { %16652 = vmatprep.mubr.msk.f32.mxu0 %vm6567_vm1, %v6481_v25  ;;  %16343 = vmatprep.subr.mxu1 %v6187_v13  ;;  %v6193_v25 = vld [vmem:[#allocation4 + $0xd0] sm:$0xff] }
 0x619   :  { %16333 = vmatmul.mubr.msk.f32.gmra.mrb[2].mxu1 %vm6567_vm1, %v6322_v39  ;;  %16663 = vmatprep.subr.mxu0 %v6227_v27  ;;  %v6233_v39 = vld [vmem:[#allocation4 + $0x210] sm:$0xff] }
 0x61a   :  { %16653 = vmatmul.mubr.msk.f32.gmra.mrb[2].mxu0 %vm6567_vm1, %v6482_v19  ;;  %16337 = vmatprep.mubr.msk.f32.mxu1 %vm6567_vm1, %v6323_v43  ;;  %v6347_v19 = vld [vmem:[%s23097_s5 + $0x320] sm:$0xff] }
 0x61b   :  { %16657 = vmatprep.mubr.msk.f32.mxu0 %vm6567_vm1, %v6483_v47  ;;  %17505 = vset.pattern.permute.xlu0 %v17757_v60  ;;  %v6507_v43 = vld [vmem:[%s23097_s5 + $0x820] sm:$0xff]  ;;  %v14645_v47 = vld [vmem:[%s23098_s6 + $0x8] sm:$0xff] }
 0x61c   :  { %14650 = vperm.xlu0 %17505, %v14644_v15   ;;  %17506 = vset.pattern.permute.xlu1 %v17757_v60  ;;  %v6367_v15 = vld [vmem:[%s23097_s5 + $0x3c0] sm:$0xff]  ;;  %v6528_v60 = vld [vmem:[%s23097_s5 + $0x8c8] sm:$0xff] }
 0x61d   :  { %16338 = vmatmul.mubr.msk.f32.vlgmr.msra.gmra.mrb[0].mxu1 %vm6567_vm1, %v6324_v53  ;;  %14660 = vperm.xlu1 %17506, %v14646_v52   ;;  %v14647_v53 = vld [vmem:[%s23098_s6 + $0x18] sm:$0xff]  ;;  %v6527_v52 = vld [vmem:[%s23097_s5 + $0x8c0] sm:$0xff] }
 0x61e   :  { %16658 = vmatmul.mubr.msk.f32.vlgmr.msra.gmra.mrb[0].mxu0 %vm6567_vm1, %v6484_v26  ;;  %16344 = vmatpush3.msra.mxu1 %v6187_v13  ;;  %v6346_v13 = vld [vmem:[%s23097_s5 + $0x318] sm:$0xff]  ;;  %v6348_v26 = vld [vmem:[%s23097_s5 + $0x328] sm:$0xff] }
 0x61f   :  { %16664 = vmatpush3.msra.mxu0 %v6227_v27  ;;  %16340 = vmatprep.mubr.msk.f32.mxu1 %vm6567_vm1, %v6325_v16  ;;  %v6506_v27 = vld [vmem:[%s23097_s5 + $0x818] sm:$0xff]  ;;  %v6508_v16 = vld [vmem:[%s23097_s5 + $0x828] sm:$0xff] }
 0x620   :  { %16660 = vmatprep.mubr.msk.f32.mxu0 %vm6567_vm1, %v6485_v56  ;;  %16351 = vmatprep.subr.mxu1 %v6188_v20  ;;  %v6349_v56 = vld [vmem:[%s23097_s5 + $0x330] sm:$0xff] }
 0x621   :  { %16341 = vmatmul.mubr.msk.f32.gmra.mrb[2].mxu1 %vm6567_vm1, %v6326_v3  ;;  %16671 = vmatprep.subr.mxu0 %v6228_v58  ;;  %v6194_v3 = vld [vmem:[#allocation4 + $0xd8] sm:$0xff] }
 0x622   :  { %16661 = vmatmul.mubr.msk.f32.gmra.mrb[2].mxu0 %vm6567_vm1, %v6486_v34  ;;  %16345 = vmatprep.mubr.msk.f32.mxu1 %vm6567_vm1, %v6327_v18  ;;  %v6234_v34 = vld [vmem:[#allocation4 + $0x218] sm:$0xff] }
 0x623   :  { %16665 = vmatprep.mubr.msk.f32.mxu0 %vm6567_vm1, %v6487_v0  ;;  %14655 = vperm.xlu0 %17505, %v14645_v47   ;;  %v6510_v18 = vld [vmem:[%s23097_s5 + $0x838] sm:$0xff]  ;;  %v6351_v0 = vld [vmem:[%s23097_s5 + $0x340] sm:$0xff]  ;;  %v6372_v47 = vld [vmem:[%s23097_s5 + $0x3e8] sm:$0xff] }
 0x624   :  { %14665 = vperm.xlu1 %17506, %v14647_v53   ;;  %v6532_v53 = vld [vmem:[%s23097_s5 + $0x8e8] sm:$0xff] }
 0x625   :  { %16346 = vmatmul.mubr.msk.f32.vlgmr.msra.gmra.mrb[0].mxu1 %vm6567_vm1, %v6328_v28  ;;  %v6511_v28 = vld [vmem:[%s23097_s5 + $0x840] sm:$0xff] }
 0x626   :  { %16666 = vmatmul.mubr.msk.f32.vlgmr.msra.gmra.mrb[0].mxu0 %vm6567_vm1, %v6488_v1  ;;  %16352 = vmatpush3.msra.mxu1 %v6188_v20  ;;  %v6509_v20 = vld [vmem:[%s23097_s5 + $0x830] sm:$0xff]  ;;  %v14678_v1 = vld [vmem:[%s23100_s8] sm:$0xff] }
 0x627   :  { %16672 = vmatpush3.msra.mxu0 %v6228_v58  ;;  %16348 = vmatprep.mubr.msk.f32.mxu1 %vm6567_vm1, %v6329_v33  ;;  %v6350_v58 = vld [vmem:[%s23097_s5 + $0x338] sm:$0xff]  ;;  %v14679_v33 = vld [vmem:[%s23100_s8 + $0x8] sm:$0x3] }
 0x628   :  { %16668 = vmatprep.mubr.msk.f32.mxu0 %vm6567_vm1, %v6489_v14  ;;  %16359 = vmatprep.subr.mxu1 %v6189_v5  ;;  %v6352_v14 = vld [vmem:[%s23097_s5 + $0x348] sm:$0xff] }
 0x629   :  { %16349 = vmatmul.mubr.msk.f32.gmra.mrb[2].mxu1 %vm6567_vm1, %v6330_v11  ;;  %16679 = vmatprep.subr.mxu0 %v6229_v35  ;;  %v6353_v11 = vld [vmem:[%s23097_s5 + $0x350] sm:$0xff] }
 0x62a   :  { %16669 = vmatmul.mubr.msk.f32.gmra.mrb[2].mxu0 %vm6567_vm1, %v6490_v36  ;;  %16353 = vmatprep.mubr.msk.f32.mxu1 %vm6567_vm1, %v6331_v62  ;;  %v6195_v36 = vld [vmem:[#allocation4 + $0xe0] sm:$0xff]  ;;  %v6354_v62 = vld [vmem:[%s23097_s5 + $0x358] sm:$0xff] }
 0x62b   :  { %16673 = vmatprep.mubr.msk.f32.mxu0 %vm6567_vm1, %v6491_v51  ;;  %14682 = vperm.xlu0 %17505, %v14678_v1   ;;  %v6235_v51 = vld [vmem:[#allocation4 + $0x220] sm:$0xff]  ;;  %v6377_v1 = vld [vmem:[%s23097_s5 + $0x410] sm:$0xff] }
 0x62c   :  { %14687 = vperm.xlu1 %17506, %v14679_v33   ;;  %v6537_v33 = vld [vmem:[%s23097_s5 + $0x910] sm:$0xff] }
 0x62d   :  { %16354 = vmatmul.mubr.msk.f32.vlgmr.msra.gmra.mrb[0].mxu1 %vm6567_vm1, %v6332_v23  ;;  %v6514_v23 = vld [vmem:[%s23097_s5 + $0x858] sm:$0xff] }
 0x62e   :  { %16674 = vmatmul.mubr.msk.f32.vlgmr.msra.gmra.mrb[0].mxu0 %vm6567_vm1, %v6492_v54  ;;  %16360 = vmatpush3.msra.mxu1 %v6189_v5  ;;  %v6512_v5 = vld [vmem:[%s23097_s5 + $0x848] sm:$0xff]  ;;  %v6355_v54 = vld [vmem:[%s23097_s5 + $0x360] sm:$0xff] }
 0x62f   :  { %16680 = vmatpush3.msra.mxu0 %v6229_v35  ;;  %16356 = vmatprep.mubr.msk.f32.mxu1 %vm6567_vm1, %v6333_v59  ;;  %v6513_v35 = vld [vmem:[%s23097_s5 + $0x850] sm:$0xff]  ;;  %v6515_v59 = vld [vmem:[%s23097_s5 + $0x860] sm:$0xff] }
 0x630   :  { %16676 = vmatprep.mubr.msk.f32.mxu0 %vm6567_vm1, %v6493_v45  ;;  %16367 = vmatprep.subr.mxu1 %v6190_v4  ;;  %v6356_v45 = vld [vmem:[%s23097_s5 + $0x368] sm:$0xff] }
 0x631   :  { %16357 = vmatmul.mubr.msk.f32.gmra.mrb[2].mxu1 %vm6567_vm1, %v6334_v6  ;;  %16687 = vmatprep.subr.mxu0 %v6230_v38  ;;  %v6357_v6 = vld [vmem:[%s23097_s5 + $0x370] sm:$0xff] }
 0x632   :  { %16677 = vmatmul.mubr.msk.f32.gmra.mrb[2].mxu0 %vm6567_vm1, %v6494_v41  ;;  %16361 = vmatprep.mubr.msk.f32.mxu1 %vm6567_vm1, %v6335_v42  ;;  %v6196_v41 = vld [vmem:[#allocation4 + $0xe8] sm:$0xff]  ;;  %v6358_v42 = vld [vmem:[%s23097_s5 + $0x378] sm:$0xff] }
 0x633   :  { %16681 = vmatprep.mubr.msk.f32.mxu0 %vm6567_vm1, %v6495_v31  ;;  %v6236_v31 = vld [vmem:[#allocation4 + $0x228] sm:$0xff] }
 0x635   :  { %16362 = vmatmul.mubr.msk.f32.vlgmr.msra.gmra.mrb[0].mxu1 %vm6567_vm1, %v6336_v2  ;;  %v6518_v2 = vld [vmem:[%s23097_s5 + $0x878] sm:$0xff] }
 0x636   :  { %16682 = vmatmul.mubr.msk.f32.vlgmr.msra.gmra.mrb[0].mxu0 %vm6567_vm1, %v6496_v48  ;;  %16368 = vmatpush3.msra.mxu1 %v6190_v4  ;;  %v6516_v4 = vld [vmem:[%s23097_s5 + $0x868] sm:$0xff]  ;;  %v6359_v48 = vld [vmem:[%s23097_s5 + $0x380] sm:$0xff] }
 0x637   :  { %16688 = vmatpush3.msra.mxu0 %v6230_v38  ;;  %16364 = vmatprep.mubr.msk.f32.mxu1 %vm6567_vm1, %v6337_v8  ;;  %v6517_v38 = vld [vmem:[%s23097_s5 + $0x870] sm:$0xff]  ;;  %v6519_v8 = vld [vmem:[%s23097_s5 + $0x880] sm:$0xff] }
 0x638   :  { %16684 = vmatprep.mubr.msk.f32.mxu0 %vm6567_vm1, %v6497_v30  ;;  %16375 = vmatprep.subr.mxu1 %v6191_v10  ;;  %v6360_v30 = vld [vmem:[%s23097_s5 + $0x388] sm:$0xff] }
 0x639   :  { %16365 = vmatmul.mubr.msk.f32.gmra.mrb[2].mxu1 %vm6567_vm1, %v6338_v46  ;;  %16695 = vmatprep.subr.mxu0 %v6231_v17  ;;  %v6361_v46 = vld [vmem:[%s23097_s5 + $0x390] sm:$0xff] }
 0x63a   :  { %16685 = vmatmul.mubr.msk.f32.gmra.mrb[2].mxu0 %vm6567_vm1, %v6498_v37  ;;  %16369 = vmatprep.mubr.msk.f32.mxu1 %vm6567_vm1, %v6339_v49  ;;  %v6197_v37 = vld [vmem:[#allocation4 + $0xf0] sm:$0xff]  ;;  %v6362_v49 = vld [vmem:[%s23097_s5 + $0x398] sm:$0xff] }
 0x63b   :  { %16689 = vmatprep.mubr.msk.f32.mxu0 %vm6567_vm1, %v6499_v29  ;;  %v6237_v29 = vld [vmem:[#allocation4 + $0x230] sm:$0xff] }
 0x63d   :  { %16370 = vmatmul.mubr.msk.f32.vlgmr.msra.gmra.mrb[0].mxu1 %vm6567_vm1, %v6340_v24  ;;  %v6522_v24 = vld [vmem:[%s23097_s5 + $0x898] sm:$0xff] }
 0x63e   :  { %16690 = vmatmul.mubr.msk.f32.vlgmr.msra.gmra.mrb[0].mxu0 %vm6567_vm1, %v6500_v61  ;;  %16376 = vmatpush3.msra.mxu1 %v6191_v10  ;;  %v6520_v10 = vld [vmem:[%s23097_s5 + $0x888] sm:$0xff]  ;;  %v6363_v61 = vld [vmem:[%s23097_s5 + $0x3a0] sm:$0xff] }
 0x63f   :  { %16696 = vmatpush3.msra.mxu0 %v6231_v17  ;;  %16372 = vmatprep.mubr.msk.f32.mxu1 %vm6567_vm1, %v6341_v55  ;;  %v6521_v17 = vld [vmem:[%s23097_s5 + $0x890] sm:$0xff]  ;;  %v6523_v55 = vld [vmem:[%s23097_s5 + $0x8a0] sm:$0xff] }
 0x640   :  { %16692 = vmatprep.mubr.msk.f32.mxu0 %vm6567_vm1, %v6501_v50  ;;  %16383 = vmatprep.subr.mxu1 %v6192_v22  ;;  %v6364_v50 = vld [vmem:[%s23097_s5 + $0x3a8] sm:$0xff] }
 0x641   :  { %16373 = vmatmul.mubr.msk.f32.gmra.mrb[2].mxu1 %vm6567_vm1, %v6342_v9  ;;  %16703 = vmatprep.subr.mxu0 %v6232_v7  ;;  %v6365_v9 = vld [vmem:[%s23097_s5 + $0x3b0] sm:$0xff] }
 0x642   :  { %16693 = vmatmul.mubr.msk.f32.gmra.mrb[2].mxu0 %vm6567_vm1, %v6502_v44  ;;  %16377 = vmatprep.mubr.msk.f32.mxu1 %vm6567_vm1, %v6343_v12  ;;  %v6198_v44 = vld [vmem:[#allocation4 + $0xf8] sm:$0xff] }
 0x643   :  { %16697 = vmatprep.mubr.msk.f32.mxu0 %vm6567_vm1, %v6503_v32  ;;  %v6366_v12 = vld [vmem:[%s23097_s5 + $0x3b8] sm:$0xff] }
 0x644   :  { %v6238_v32 = vld [vmem:[#allocation4 + $0x238] sm:$0xff] }
 0x645   :  { %16378 = vmatmul.mubr.msk.f32.vlgmr.msra.gmra.mrb[0].mxu1 %vm6567_vm1, %v6344_v63  ;;  %v6526_v63 = vld [vmem:[%s23097_s5 + $0x8b8] sm:$0xff] }
 0x646   :  { %16698 = vmatmul.mubr.msk.f32.vlgmr.msra.gmra.mrb[0].mxu0 %vm6567_vm1, %v6504_v40  ;;  %16384 = vmatpush3.msra.mxu1 %v6192_v22  ;;  %v6524_v22 = vld [vmem:[%s23097_s5 + $0x8a8] sm:$0xff] }
 0x647   :  { %16704 = vmatpush3.msra.mxu0 %v6232_v7  ;;  %16380 = vmatprep.mubr.msk.f32.mxu1 %vm6567_vm1, %v6345_v21  ;;  %v6525_v7 = vld [vmem:[%s23097_s5 + $0x8b0] sm:$0xff]  ;;  %v6368_v40 = vld [vmem:[%s23097_s5 + $0x3c8] sm:$0xff] }
 0x648   :  { %16700 = vmatprep.mubr.msk.f32.mxu0 %vm6567_vm1, %v6505_v57  ;;  %16391 = vmatprep.subr.mxu1 %v6193_v25  ;;  %v6369_v21 = vld [vmem:[%s23097_s5 + $0x3d0] sm:$0xff] }
 0x649   :  { %16381 = vmatmul.mubr.msk.f32.gmra.mrb[2].mxu1 %vm6567_vm1, %v6346_v13  ;;  %16711 = vmatprep.subr.mxu0 %v6233_v39  ;;  %v6529_v57 = vld [vmem:[%s23097_s5 + $0x8d0] sm:$0xff]  ;;  %v6370_v13 = vld [vmem:[%s23097_s5 + $0x3d8] sm:$0xff] }
 0x64a   :  { %16701 = vmatmul.mubr.msk.f32.gmra.mrb[2].mxu0 %vm6567_vm1, %v6506_v27  ;;  %16385 = vmatprep.mubr.msk.f32.mxu1 %vm6567_vm1, %v6347_v19  ;;  %v6530_v27 = vld [vmem:[%s23097_s5 + $0x8d8] sm:$0xff]  ;;  %v6371_v19 = vld [vmem:[%s23097_s5 + $0x3e0] sm:$0xff] }
 0x64b   :  { %16705 = vmatprep.mubr.msk.f32.mxu0 %vm6567_vm1, %v6507_v43  ;;  %v6531_v43 = vld [vmem:[%s23097_s5 + $0x8e0] sm:$0xff] }
 0x64d   :  { %16386 = vmatmul.mubr.msk.f32.vlgmr.msra.gmra.mrb[0].mxu1 %vm6567_vm1, %v6348_v26  ;;  %v6373_v26 = vld [vmem:[%s23097_s5 + $0x3f0] sm:$0xff] }
 0x64e   :  { %16706 = vmatmul.mubr.msk.f32.vlgmr.msra.gmra.mrb[0].mxu0 %vm6567_vm1, %v6508_v16  ;;  %16392 = vmatpush3.msra.mxu1 %v6193_v25  ;;  %v6199_v25 = vld [vmem:[#allocation4 + $0x100] sm:$0xff]  ;;  %v6533_v16 = vld [vmem:[%s23097_s5 + $0x8f0] sm:$0xff] }
 0x64f   :  { %16712 = vmatpush3.msra.mxu0 %v6233_v39  ;;  %16388 = vmatprep.mubr.msk.f32.mxu1 %vm6567_vm1, %v6349_v56  ;;  %v6239_v39 = vld [vmem:[#allocation4 + $0x240] sm:$0xff]  ;;  %v6200_v56 = vld [vmem:[#allocation4 + $0x108] sm:$0xff] }
 0x650   :  { %16708 = vmatprep.mubr.msk.f32.mxu0 %vm6567_vm1, %v6509_v20  ;;  %16399 = vmatprep.subr.mxu1 %v6194_v3  ;;  %v6374_v20 = vld [vmem:[%s23097_s5 + $0x3f8] sm:$0xff] }
 0x651   :  { %16389 = vmatmul.mubr.msk.f32.gmra.mrb[2].mxu1 %vm6567_vm1, %v6350_v58  ;;  %16719 = vmatprep.subr.mxu0 %v6234_v34  ;;  %v6534_v58 = vld [vmem:[%s23097_s5 + $0x8f8] sm:$0xff] }
 0x652   :  { %16709 = vmatmul.mubr.msk.f32.gmra.mrb[2].mxu0 %vm6567_vm1, %v6510_v18  ;;  %16393 = vmatprep.mubr.msk.f32.mxu1 %vm6567_vm1, %v6351_v0  ;;  %v6535_v18 = vld [vmem:[%s23097_s5 + $0x900] sm:$0xff]  ;;  %v6376_v0 = vld [vmem:[%s23097_s5 + $0x408] sm:$0xff] }
 0x653   :  { %16713 = vmatprep.mubr.msk.f32.mxu0 %vm6567_vm1, %v6511_v28  ;;  %v6536_v28 = vld [vmem:[%s23097_s5 + $0x908] sm:$0xff] }
 0x655   :  { %16394 = vmatmul.mubr.msk.f32.vlgmr.msra.gmra.mrb[0].mxu1 %vm6567_vm1, %v6352_v14  ;;  %v6201_v14 = vld [vmem:[#allocation4 + $0x110] sm:$0xff] }
 0x656   :  { %16714 = vmatmul.mubr.msk.f32.vlgmr.msra.gmra.mrb[0].mxu0 %vm6567_vm1, %v6512_v5  ;;  %16400 = vmatpush3.msra.mxu1 %v6194_v3  ;;  %v6240_v3 = vld [vmem:[#allocation4 + $0x248] sm:$0xff]  ;;  %v6378_v5 = vld [vmem:[%s23097_s5 + $0x418] sm:$0xff] }
 0x657   :  { %16720 = vmatpush3.msra.mxu0 %v6234_v34  ;;  %16396 = vmatprep.mubr.msk.f32.mxu1 %vm6567_vm1, %v6353_v11  ;;  %v6375_v34 = vld [vmem:[%s23097_s5 + $0x400] sm:$0xff]  ;;  %v6241_v11 = vld [vmem:[#allocation4 + $0x250] sm:$0xff] }
 0x658   :  { %16716 = vmatprep.mubr.msk.f32.mxu0 %vm6567_vm1, %v6513_v35  ;;  %16407 = vmatprep.subr.mxu1 %v6195_v36  ;;  %v6538_v35 = vld [vmem:[%s23097_s5 + $0x918] sm:$0xff] }
 0x659   :  { %16397 = vmatmul.mubr.msk.f32.gmra.mrb[2].mxu1 %vm6567_vm1, %v6354_v62  ;;  %16727 = vmatprep.subr.mxu0 %v6235_v51  ;;  %v6539_v62 = vld [vmem:[%s23097_s5 + $0x920] sm:$0xff] }
 0x65a   :  { %16717 = vmatmul.mubr.msk.f32.gmra.mrb[2].mxu0 %vm6567_vm1, %v6514_v23  ;;  %16401 = vmatprep.mubr.msk.f32.mxu1 %vm6567_vm1, %v6355_v54  ;;  %v6540_v23 = vld [vmem:[%s23097_s5 + $0x928] sm:$0xff]  ;;  %v6381_v54 = vld [vmem:[%s23097_s5 + $0x430] sm:$0xff] }
 0x65b   :  { %16721 = vmatprep.mubr.msk.f32.mxu0 %vm6567_vm1, %v6515_v59  ;;  %v6541_v59 = vld [vmem:[%s23097_s5 + $0x930] sm:$0xff] }
 0x65d   :  { %16402 = vmatmul.mubr.msk.f32.vlgmr.msra.gmra.mrb[0].mxu1 %vm6567_vm1, %v6356_v45  ;;  %v6202_v45 = vld [vmem:[#allocation4 + $0x118] sm:$0xff] }
 0x65e   :  { %16722 = vmatmul.mubr.msk.f32.vlgmr.msra.gmra.mrb[0].mxu0 %vm6567_vm1, %v6516_v4  ;;  %16408 = vmatpush3.msra.mxu1 %v6195_v36  ;;  %v6379_v36 = vld [vmem:[%s23097_s5 + $0x420] sm:$0xff]  ;;  %v6382_v4 = vld [vmem:[%s23097_s5 + $0x438] sm:$0xff] }
 0x65f   :  { %16728 = vmatpush3.msra.mxu0 %v6235_v51  ;;  %16404 = vmatprep.mubr.msk.f32.mxu1 %vm6567_vm1, %v6357_v6  ;;  %v6380_v51 = vld [vmem:[%s23097_s5 + $0x428] sm:$0xff]  ;;  %v6242_v6 = vld [vmem:[#allocation4 + $0x258] sm:$0xff] }
 0x660   :  { %16724 = vmatprep.mubr.msk.f32.mxu0 %vm6567_vm1, %v6517_v38  ;;  %16415 = vmatprep.subr.mxu1 %v6196_v41  ;;  %v6542_v38 = vld [vmem:[%s23097_s5 + $0x938] sm:$0xff] }
 0x661   :  { %16405 = vmatmul.mubr.msk.f32.gmra.mrb[2].mxu1 %vm6567_vm1, %v6358_v42  ;;  %16735 = vmatprep.subr.mxu0 %v6236_v31  ;;  %v6543_v42 = vld [vmem:[%s23097_s5 + $0x940] sm:$0xff] }
 0x662   :  { %16725 = vmatmul.mubr.msk.f32.gmra.mrb[2].mxu0 %vm6567_vm1, %v6518_v2  ;;  %16409 = vmatprep.mubr.msk.f32.mxu1 %vm6567_vm1, %v6359_v48  ;;  %v6544_v2 = vld [vmem:[%s23097_s5 + $0x948] sm:$0xff]  ;;  %v6385_v48 = vld [vmem:[%s23097_s5 + $0x450] sm:$0xff] }
 0x663   :  { %16729 = vmatprep.mubr.msk.f32.mxu0 %vm6567_vm1, %v6519_v8  ;;  %v6545_v8 = vld [vmem:[%s23097_s5 + $0x950] sm:$0xff] }
 0x665   :  { %16410 = vmatmul.mubr.msk.f32.vlgmr.msra.gmra.mrb[0].mxu1 %vm6567_vm1, %v6360_v30  ;;  %v6203_v30 = vld [vmem:[#allocation4 + $0x120] sm:$0xff] }
 0x666   :  { %16730 = vmatmul.mubr.msk.f32.vlgmr.msra.gmra.mrb[0].mxu0 %vm6567_vm1, %v6520_v10  ;;  %16416 = vmatpush3.msra.mxu1 %v6196_v41  ;;  %v6383_v41 = vld [vmem:[%s23097_s5 + $0x440] sm:$0xff]  ;;  %v6386_v10 = vld [vmem:[%s23097_s5 + $0x458] sm:$0xff] }
 0x667   :  { %16736 = vmatpush3.msra.mxu0 %v6236_v31  ;;  %16412 = vmatprep.mubr.msk.f32.mxu1 %vm6567_vm1, %v6361_v46  ;;  %v6384_v31 = vld [vmem:[%s23097_s5 + $0x448] sm:$0xff]  ;;  %v6243_v46 = vld [vmem:[#allocation4 + $0x260] sm:$0xff] }
 0x668   :  { %16732 = vmatprep.mubr.msk.f32.mxu0 %vm6567_vm1, %v6521_v17  ;;  %16423 = vmatprep.subr.mxu1 %v6197_v37  ;;  %v6546_v17 = vld [vmem:[%s23097_s5 + $0x958] sm:$0xff] }
 0x669   :  { %16413 = vmatmul.mubr.msk.f32.gmra.mrb[2].mxu1 %vm6567_vm1, %v6362_v49  ;;  %16743 = vmatprep.subr.mxu0 %v6237_v29  ;;  %v6547_v49 = vld [vmem:[%s23097_s5 + $0x960] sm:$0xff] }
 0x66a   :  { %16733 = vmatmul.mubr.msk.f32.gmra.mrb[2].mxu0 %vm6567_vm1, %v6522_v24  ;;  %16417 = vmatprep.mubr.msk.f32.mxu1 %vm6567_vm1, %v6363_v61  ;;  %v6548_v24 = vld [vmem:[%s23097_s5 + $0x968] sm:$0xff]  ;;  %v6389_v61 = vld [vmem:[%s23097_s5 + $0x470] sm:$0xff] }
 0x66b   :  { %16737 = vmatprep.mubr.msk.f32.mxu0 %vm6567_vm1, %v6523_v55  ;;  %v6549_v55 = vld [vmem:[%s23097_s5 + $0x970] sm:$0xff] }
 0x66d   :  { %16418 = vmatmul.mubr.msk.f32.vlgmr.msra.gmra.mrb[0].mxu1 %vm6567_vm1, %v6364_v50  ;;  %v6204_v50 = vld [vmem:[#allocation4 + $0x128] sm:$0xff] }
 0x66e   :  { %16738 = vmatmul.mubr.msk.f32.vlgmr.msra.gmra.mrb[0].mxu0 %vm6567_vm1, %v6524_v22  ;;  %16424 = vmatpush3.msra.mxu1 %v6197_v37  ;;  %v6387_v37 = vld [vmem:[%s23097_s5 + $0x460] sm:$0xff]  ;;  %v6390_v22 = vld [vmem:[%s23097_s5 + $0x478] sm:$0xff] }
 0x66f   :  { %16744 = vmatpush3.msra.mxu0 %v6237_v29  ;;  %16420 = vmatprep.mubr.msk.f32.mxu1 %vm6567_vm1, %v6365_v9  ;;  %v6388_v29 = vld [vmem:[%s23097_s5 + $0x468] sm:$0xff] }
 0x670   :  { %16740 = vmatprep.mubr.msk.f32.mxu0 %vm6567_vm1, %v6525_v7  ;;  %16431 = vmatprep.subr.mxu1 %v6198_v44  ;;  %v6244_v9 = vld [vmem:[#allocation4 + $0x268] sm:$0xff]  ;;  %v6550_v7 = vld [vmem:[%s23097_s5 + $0x978] sm:$0xff] }
 0x671   :  { %16421 = vmatmul.mubr.msk.f32.gmra.mrb[2].mxu1 %vm6567_vm1, %v6366_v12  ;;  %16751 = vmatprep.subr.mxu0 %v6238_v32  ;;  %v6551_v12 = vld [vmem:[%s23097_s5 + $0x980] sm:$0xff] }
 0x672   :  { %16741 = vmatmul.mubr.msk.f32.gmra.mrb[2].mxu0 %vm6567_vm1, %v6526_v63  ;;  %16425 = vmatprep.mubr.msk.f32.mxu1 %vm6567_vm1, %v6367_v15  ;;  %v6552_v63 = vld [vmem:[%s23097_s5 + $0x988] sm:$0xff]  ;;  %v6393_v15 = vld [vmem:[%s23097_s5 + $0x490] sm:$0xff] }
 0x673   :  { %16745 = vmatprep.mubr.msk.f32.mxu0 %vm6567_vm1, %v6527_v52  ;;  %v6553_v52 = vld [vmem:[%s23097_s5 + $0x990] sm:$0xff] }
 0x675   :  { %16426 = vmatmul.mubr.msk.f32.vlgmr.msra.gmra.mrb[0].mxu1 %vm6567_vm1, %v6368_v40  ;;  %v6205_v40 = vld [vmem:[#allocation4 + $0x130] sm:$0xff] }
 0x676   :  { %16746 = vmatmul.mubr.msk.f32.vlgmr.msra.gmra.mrb[0].mxu0 %vm6567_vm1, %v6528_v60  ;;  %16432 = vmatpush3.msra.mxu1 %v6198_v44  ;;  %v6391_v44 = vld [vmem:[%s23097_s5 + $0x480] sm:$0xff]  ;;  %v6394_v60 = vld [vmem:[%s23097_s5 + $0x498] sm:$0xff] }
 0x677   :  { %16752 = vmatpush3.msra.mxu0 %v6238_v32  ;;  %16428 = vmatprep.mubr.msk.f32.mxu1 %vm6567_vm1, %v6369_v21  ;;  %v6392_v32 = vld [vmem:[%s23097_s5 + $0x488] sm:$0xff]  ;;  %v6245_v21 = vld [vmem:[#allocation4 + $0x270] sm:$0xff] }
 0x678   :  { %16748 = vmatprep.mubr.msk.f32.mxu0 %vm6567_vm1, %v6529_v57  ;;  %16439 = vmatprep.subr.mxu1 %v6199_v25  ;;  %v6554_v57 = vld [vmem:[%s23097_s5 + $0x998] sm:$0xff] }
 0x679   :  { %16429 = vmatmul.mubr.msk.f32.gmra.mrb[2].mxu1 %vm6567_vm1, %v6370_v13  ;;  %16759 = vmatprep.subr.mxu0 %v6239_v39  ;;  %v6555_v13 = vld [vmem:[%s23097_s5 + $0x9a0] sm:$0xff] }
 0x67a   :  { %16749 = vmatmul.mubr.msk.f32.gmra.mrb[2].mxu0 %vm6567_vm1, %v6530_v27  ;;  %16433 = vmatprep.mubr.msk.f32.mxu1 %vm6567_vm1, %v6371_v19  ;;  %v6556_v27 = vld [vmem:[%s23097_s5 + $0x9a8] sm:$0xff]  ;;  %v6397_v19 = vld [vmem:[%s23097_s5 + $0x4b0] sm:$0xff] }
 0x67b   :  { %16753 = vmatprep.mubr.msk.f32.mxu0 %vm6567_vm1, %v6531_v43  ;;  %v6557_v43 = vld [vmem:[%s23097_s5 + $0x9b0] sm:$0xff] }
 0x67d   :  { %16434 = vmatmul.mubr.msk.f32.vlgmr.msra.gmra.mrb[0].mxu1 %vm6567_vm1, %v6372_v47  ;;  %v6206_v47 = vld [vmem:[#allocation4 + $0x138] sm:$0xff] }
 0x67e   :  { %16754 = vmatmul.mubr.msk.f32.vlgmr.msra.gmra.mrb[0].mxu0 %vm6567_vm1, %v6532_v53  ;;  %16440 = vmatpush3.msra.mxu1 %v6199_v25  ;;  %v6395_v25 = vld [vmem:[%s23097_s5 + $0x4a0] sm:$0xff]  ;;  %v6398_v53 = vld [vmem:[%s23097_s5 + $0x4b8] sm:$0xff] }
 0x67f   :  { %16760 = vmatpush3.msra.mxu0 %v6239_v39  ;;  %16436 = vmatprep.mubr.msk.f32.mxu1 %vm6567_vm1, %v6373_v26  ;;  %v6396_v39 = vld [vmem:[%s23097_s5 + $0x4a8] sm:$0xff]  ;;  %v6246_v26 = vld [vmem:[#allocation4 + $0x278] sm:$0xff] }
 0x680   :  { %16756 = vmatprep.mubr.msk.f32.mxu0 %vm6567_vm1, %v6533_v16  ;;  %16447 = vmatprep.subr.mxu1 %v6200_v56  ;;  %v6558_v16 = vld [vmem:[%s23097_s5 + $0x9b8] sm:$0xff] }
 0x681   :  { %16437 = vmatmul.mubr.msk.f32.gmra.mrb[2].mxu1 %vm6567_vm1, %v6374_v20  ;;  %16767 = vmatprep.subr.mxu0 %v6240_v3  ;;  %v6559_v20 = vld [vmem:[%s23097_s5 + $0x9c0] sm:$0xff] }
 0x682   :  { %16757 = vmatmul.mubr.msk.f32.gmra.mrb[2].mxu0 %vm6567_vm1, %v6534_v58  ;;  %16441 = vmatprep.mubr.msk.f32.mxu1 %vm6567_vm1, %v6375_v34  ;;  %v6560_v58 = vld [vmem:[%s23097_s5 + $0x9c8] sm:$0xff]  ;;  %v6401_v34 = vld [vmem:[%s23097_s5 + $0x4d0] sm:$0xff] }
 0x683   :  { %16761 = vmatprep.mubr.msk.f32.mxu0 %vm6567_vm1, %v6535_v18  ;;  %v6561_v18 = vld [vmem:[%s23097_s5 + $0x9d0] sm:$0xff] }
 0x685   :  { %16442 = vmatmul.mubr.msk.f32.vlgmr.msra.gmra.mrb[0].mxu1 %vm6567_vm1, %v6376_v0  ;;  %v6402_v0 = vld [vmem:[%s23097_s5 + $0x4d8] sm:$0xff] }
 0x686   :  { %16762 = vmatmul.mubr.msk.f32.vlgmr.msra.gmra.mrb[0].mxu0 %vm6567_vm1, %v6536_v28  ;;  %16448 = vmatpush3.msra.mxu1 %v6200_v56  ;;  %v6399_v56 = vld [vmem:[%s23097_s5 + $0x4c0] sm:$0xff]  ;;  %v6562_v28 = vld [vmem:[%s23097_s5 + $0x9d8] sm:$0xff] }
 0x687   :  { %16768 = vmatpush3.msra.mxu0 %v6240_v3  ;;  %16444 = vmatprep.mubr.msk.f32.mxu1 %vm6567_vm1, %v6377_v1  ;;  %v6400_v3 = vld [vmem:[%s23097_s5 + $0x4c8] sm:$0xff]  ;;  %v6403_v1 = vld [vmem:[%s23097_s5 + $0x4e0] sm:$0xff] }
 0x688   :  { %16764 = vmatprep.mubr.msk.f32.mxu0 %vm6567_vm1, %v6537_v33  ;;  %16455 = vmatprep.subr.mxu1 %v6201_v14  ;;  %v6563_v33 = vld [vmem:[%s23097_s5 + $0x9e0] sm:$0xff] }
 0x689   :  { %16445 = vmatmul.mubr.msk.f32.gmra.mrb[2].mxu1 %vm6567_vm1, %v6378_v5  ;;  %16775 = vmatprep.subr.mxu0 %v6241_v11  ;;  %v6564_v5 = vld [vmem:[%s23097_s5 + $0x9e8] sm:$0xff] }
 0x68a   :  { %16765 = vmatmul.mubr.msk.f32.gmra.mrb[2].mxu0 %vm6567_vm1, %v6538_v35  ;;  %16449 = vmatprep.mubr.msk.f32.mxu1 %vm6567_vm1, %v6379_v36  ;;  %v6565_v35 = vld [vmem:[%s23097_s5 + $0x9f0] sm:$0xff]  ;;  %v6406_v36 = vld [vmem:[%s23097_s5 + $0x4f8] sm:$0xff] }
 0x68b   :  { %16769 = vmatprep.mubr.msk.f32.mxu0 %vm6567_vm1, %v6539_v62  ;;  %v6566_v62 = vld [vmem:[%s23097_s5 + $0x9f8] sm:$0xff] }
 0x68d   :  { %16450 = vmatmul.mubr.msk.f32.vlgmr.msra.gmra.mrb[0].mxu1 %vm6567_vm1, %v6380_v51  ;;  %v14676_v51 = vld [vmem:[%s23099_s7] sm:$0xff] }
 0x68e   :  { %16770 = vmatmul.mubr.msk.f32.vlgmr.msra.gmra.mrb[0].mxu0 %vm6567_vm1, %v6540_v23  ;;  %16456 = vmatpush3.msra.mxu1 %v6201_v14  ;;  %v6404_v14 = vld [vmem:[%s23097_s5 + $0x4e8] sm:$0xff] }
 0x68f   :  { %16776 = vmatpush3.msra.mxu0 %v6241_v11  ;;  %16452 = vmatprep.mubr.msk.f32.mxu1 %vm6567_vm1, %v6381_v54  ;;  %v6405_v11 = vld [vmem:[%s23097_s5 + $0x4f0] sm:$0xff] }
 0x690   :  { %16772 = vmatprep.mubr.msk.f32.mxu0 %vm6567_vm1, %v6541_v59  ;;  %16463 = vmatprep.subr.mxu1 %v6202_v45 }
 0x691   :  { %16453 = vmatmul.mubr.msk.f32.gmra.mrb[2].mxu1 %vm6567_vm1, %v6382_v4  ;;  %16783 = vmatprep.subr.mxu0 %v6242_v6 }
 0x692   :  { %16773 = vmatmul.mubr.msk.f32.gmra.mrb[2].mxu0 %vm6567_vm1, %v6542_v38  ;;  %16457 = vmatprep.mubr.msk.f32.mxu1 %vm6567_vm1, %v6383_v41 }
 0x693   :  { %16777 = vmatprep.mubr.msk.f32.mxu0 %vm6567_vm1, %v6543_v42 }
 0x695   :  { %16458 = vmatmul.mubr.msk.f32.vlgmr.msra.gmra.mrb[0].mxu1 %vm6567_vm1, %v6384_v31 }
 0x696   :  { %16778 = vmatmul.mubr.msk.f32.vlgmr.msra.gmra.mrb[0].mxu0 %vm6567_vm1, %v6544_v2  ;;  %16464 = vmatpush3.msra.mxu1 %v6202_v45 }
 0x697   :  { %16784 = vmatpush3.msra.mxu0 %v6242_v6  ;;  %16460 = vmatprep.mubr.msk.f32.mxu1 %vm6567_vm1, %v6385_v48 }
 0x698   :  { %16780 = vmatprep.mubr.msk.f32.mxu0 %vm6567_vm1, %v6545_v8  ;;  %16471 = vmatprep.subr.mxu1 %v6203_v30 }
 0x699   :  { %16461 = vmatmul.mubr.msk.f32.gmra.mrb[2].mxu1 %vm6567_vm1, %v6386_v10  ;;  %16791 = vmatprep.subr.mxu0 %v6243_v46 }
 0x69a   :  { %16781 = vmatmul.mubr.msk.f32.gmra.mrb[2].mxu0 %vm6567_vm1, %v6546_v17  ;;  %16465 = vmatprep.mubr.msk.f32.mxu1 %vm6567_vm1, %v6387_v37 }
 0x69b   :  { %16785 = vmatprep.mubr.msk.f32.mxu0 %vm6567_vm1, %v6547_v49  ;;  %v14651_v23 = vpop.permute.xlu0 %14650 }
 0x69c   :  { %v14661_v54 = vpop.permute.xlu1 %14660 }
 0x69d   :  { %16466 = vmatmul.mubr.msk.f32.vlgmr.msra.gmra.mrb[0].mxu1 %vm6567_vm1, %v6388_v29 }
 0x69e   :  { %16786 = vmatmul.mubr.msk.f32.vlgmr.msra.gmra.mrb[0].mxu0 %vm6567_vm1, %v6548_v24  ;;  %16472 = vmatpush3.msra.mxu1 %v6203_v30 }
 0x69f   :  { %16792 = vmatpush3.msra.mxu0 %v6243_v46  ;;  %16468 = vmatprep.mubr.msk.f32.mxu1 %vm6567_vm1, %v6389_v61 }
 0x6a0   :  { %16788 = vmatprep.mubr.msk.f32.mxu0 %vm6567_vm1, %v6549_v55  ;;  %16479 = vmatprep.subr.mxu1 %v6204_v50 }
 0x6a1   :  { %16469 = vmatmul.mubr.msk.f32.gmra.mrb[2].mxu1 %vm6567_vm1, %v6390_v22  ;;  %16799 = vmatprep.subr.mxu0 %v6244_v9 }
 0x6a2   :  { %16789 = vmatmul.mubr.msk.f32.gmra.mrb[2].mxu0 %vm6567_vm1, %v6550_v7  ;;  %16473 = vmatprep.mubr.msk.f32.mxu1 %vm6567_vm1, %v6391_v44  ;;  %v14656_v41 = vpop.permute.xlu0 %14655  ;;  %v14677_v7 = vld [vmem:[%s23099_s7 + $0x8] sm:$0x3] }
 0x6a3   :  { %16793 = vmatprep.mubr.msk.f32.mxu0 %vm6567_vm1, %v6551_v12  ;;  %v14666_v37 = vpop.permute.xlu1 %14665 }
 0x6a5   :  { %16474 = vmatmul.mubr.msk.f32.vlgmr.msra.gmra.mrb[0].mxu1 %vm6567_vm1, %v6392_v32 }
 0x6a6   :  { %16794 = vmatmul.mubr.msk.f32.vlgmr.msra.gmra.mrb[0].mxu0 %vm6567_vm1, %v6552_v63  ;;  %16480 = vmatpush3.msra.mxu1 %v6204_v50 }
 0x6a7   :  { %16800 = vmatpush3.msra.mxu0 %v6244_v9  ;;  %16476 = vmatprep.mubr.msk.f32.mxu1 %vm6567_vm1, %v6393_v15 }
 0x6a8   :  { %16796 = vmatprep.mubr.msk.f32.mxu0 %vm6567_vm1, %v6553_v52  ;;  %16487 = vmatprep.subr.mxu1 %v6205_v40 }
 0x6a9   :  { %16477 = vmatmul.mubr.msk.f32.gmra.mrb[2].mxu1 %vm6567_vm1, %v6394_v60  ;;  %16807 = vmatprep.subr.mxu0 %v6245_v21 }
 0x6aa   :  { %16797 = vmatmul.mubr.msk.f32.gmra.mrb[2].mxu0 %vm6567_vm1, %v6554_v57  ;;  %16481 = vmatprep.mubr.msk.f32.mxu1 %vm6567_vm1, %v6395_v25  ;;  %v14683_v32 = vpop.permute.xlu0 %14682 }
 0x6ab   :  { %16801 = vmatprep.mubr.msk.f32.mxu0 %vm6567_vm1, %v6555_v13  ;;  %v14688_v44 = vpop.permute.xlu1 %14687 }
 0x6ad   :  { %16482 = vmatmul.mubr.msk.f32.vlgmr.msra.gmra.mrb[0].mxu1 %vm6567_vm1, %v6396_v39 }
 0x6ae   :  { %16802 = vmatmul.mubr.msk.f32.vlgmr.msra.gmra.mrb[0].mxu0 %vm6567_vm1, %v6556_v27  ;;  %16488 = vmatpush3.msra.mxu1 %v6205_v40 }
 0x6af   :  { %16808 = vmatpush3.msra.mxu0 %v6245_v21  ;;  %16484 = vmatprep.mubr.msk.f32.mxu1 %vm6567_vm1, %v6397_v19 }
 0x6b0   :  { %16804 = vmatprep.mubr.msk.f32.mxu0 %vm6567_vm1, %v6557_v43  ;;  %16495 = vmatprep.subr.mxu1 %v6206_v47 }
 0x6b1   :  { %16485 = vmatmul.mubr.msk.f32.gmra.mrb[2].mxu1 %vm6567_vm1, %v6398_v53  ;;  %16815 = vmatprep.subr.mxu0 %v6246_v26 }
 0x6b2   :  { %16805 = vmatmul.mubr.msk.f32.gmra.mrb[2].mxu0 %vm6567_vm1, %v6558_v16  ;;  %16489 = vmatprep.mubr.msk.f32.mxu1 %vm6567_vm1, %v6399_v56 }
 0x6b3   :  { %16809 = vmatprep.mubr.msk.f32.mxu0 %vm6567_vm1, %v6559_v20 }
 0x6b5   :  { %16490 = vmatmul.mubr.msk.f32.vlgmr.msra.gmra.mrb[0].mxu1 %vm6567_vm1, %v6400_v3 }
 0x6b6   :  { %16810 = vmatmul.mubr.msk.f32.vlgmr.msra.gmra.mrb[0].mxu0 %vm6567_vm1, %v6560_v58  ;;  %16496 = vmatpush3.msra.mxu1 %v6206_v47 }
 0x6b7   :  { %16816 = vmatpush3.msra.mxu0 %v6246_v26  ;;  %16492 = vmatprep.mubr.msk.f32.mxu1 %vm6567_vm1, %v6401_v34 }
 0x6b8   :  { %16812 = vmatprep.mubr.msk.f32.mxu0 %vm6567_vm1, %v6561_v18 }
 0x6b9   :  { %16493 = vmatmul.mubr.msk.f32.gmra.mrb[2].mxu1 %vm6567_vm1, %v6402_v0 }
 0x6ba   :  { %16813 = vmatmul.mubr.msk.f32.gmra.mrb[2].mxu0 %vm6567_vm1, %v6562_v28  ;;  %16497 = vmatprep.mubr.msk.f32.mxu1 %vm6567_vm1, %v6403_v1 }
 0x6bb   :  { %16817 = vmatprep.mubr.msk.f32.mxu0 %vm6567_vm1, %v6563_v33 }
 0x6bd   :  { %16498 = vmatmul.mubr.msk.f32.vlgmr.msra.gmra.mrb[0].mxu1 %vm6567_vm1, %v6404_v14 }
 0x6be   :  { %16818 = vmatmul.mubr.msk.f32.vlgmr.msra.gmra.mrb[0].mxu0 %vm6567_vm1, %v6564_v5  ;;  %16500 = vmatprep.mubr.msk.f32.mxu1 %vm6567_vm1, %v6405_v11 }
 0x6bf   :  { %16820 = vmatprep.mubr.msk.f32.mxu0 %vm6567_vm1, %v6565_v35 }
 0x6c1   :  { %16501 = vmatmul.mubr.msk.f32.gmra.mrb[2].mxu1 %vm6567_vm1, %v6406_v36 }
 0x6c2   :  { %16821 = vmatmul.mubr.msk.f32.gmra.mrb[2].mxu0 %vm6567_vm1, %v6566_v62  ;;  %16831 = vmatprep.mubr.msk.f32.mxu1 %vm14690_vm2, %v14676_v51 }
 0x790   :  { %v16499_v59 = vpop.f32.mrb[0].mxu1 }
 0x791   :  { %v16819_v45 = vpop.f32.mrb[0].mxu0  ;;  %v10429_v4 = vpop.f32.mrb[1].mxu1 }
 0x792   :  { %v16992_v6 = vadd.f32 %v16819_v45, %v16499_v59  ;;  %v14309_v38 = vpop.f32.mrb[1].mxu0 }
 0x793   :  { %v16993_v42 = vadd.f32 %v14309_v38, %v10429_v4 }
 0x794   :  { %v14669_v31 = vadd.f32 %v16992_v6, %v14656_v41  ;;  %v16502_v2 = vpop.f32.mrb[2].mxu1 }
 0x795   :  { %v14668_v48 = vadd.f32 %v16993_v42, %v14651_v23  ;;  %v16822_v8 = vpop.f32.mrb[2].mxu0  ;;  %v10439_v30 = vpop.f32.mrb[3].mxu1 }
 0x796   :  { %v14673_v10 = vmax.f32 %v14669_v31, 0.0  ;;  %v16994_v46 = vadd.f32 %v16822_v8, %v16502_v2  ;;  %v14319_v17 = vpop.f32.mrb[3].mxu0 }
 0x797   :  { %v14672_v49 = vmax.f32 %v14668_v48, 0.0  ;;  %v16995_v29 = vadd.f32 %v14319_v17, %v10439_v30 }
 0x798   :  { %v14671_v24 = vadd.f32 %v16994_v46, %v14666_v37 }
 0x799   :  { %v14670_v61 = vadd.f32 %v16995_v29, %v14661_v54  ;;  %v16984_v55 = vpack.c.bf16 %v14673_v10, %v14672_v49 }
 0x79a   :  { %v14675_v50 = vmax.f32 %v14671_v24, 0.0 }
 0x79b   :  { %v14674_v22 = vmax.f32 %v14670_v61, 0.0  ;;  %16985 = vmatprep.subr.bf16.mxu1 %v16984_v55 }
 0x79c   :  { %16987 = vmatpush3.bf16.msra.mxu1 %v16984_v55 }
 0x79d   :  { %v16988_v9 = vpack.c.bf16 %v14675_v50, %v14674_v22 }
 0x79f   :  { %16989 = vmatprep.subr.bf16.mxu1 %v16988_v9 }
 0x7a0   :  { %16991 = vmatpush3.bf16.msra.mxu1 %v16988_v9 }
 0x7a3   :  { %16832 = vmatmul.mubr.msk.f32.vlgmr.msra.gmra.mrb[4].mxu1 %vm14690_vm2, %v14677_v7 }
 0x876   :  { %v16833_v12 = vpop.f32.mrb[4].mxu1 }
 0x877   :  { %v14769_v63 = vadd.f32 %v16833_v12, %v14688_v44  ;;  %v14763_v15 = vpop.f32.mrb[5].mxu1 }
 0x878   :  { %v14764_v52 = vadd.f32 %v14763_v15, %v14683_v32 }
 0x879   :  { %14773 = vst [vmem:[%s23101_s9 + $0x8] sm:$0x3] %v14769_v63 }
 0x87a   :  { %14772 = vst [vmem:[%s23101_s9] sm:$0xff] %v14764_v52 }
 0x87b   :  { %14778 = vsyncpa [#allocation6], 1 }
 0x87c   :  { %14779 = vsyncpa [#allocation8], 1 }
 0x87d   :  { %14780 = vsyncpa [#allocation11], 1 }

</bundles_post_ra>
